<compile_context>
chip_gen: v7x
topology: tpu7x:2x2x1
jax: 0.10.0
libtpu: 0.0.40
codegen_flags: <defaults>
</compile_context>

<pallas_src>
import functools

import jax
import jax.numpy as jnp
from jax.experimental import pallas as pl
from jax.experimental.pallas import tpu as pltpu

_VMEM_LIMIT = 48 * 1024 * 1024  # leaves headroom inside v7x's 64 MiB VMEM


# --------------------------- direct conv kernel -----------------------------

def _direct_conv_kernel(x_ref, w_ref, b_ref, *rest, KH, KW, Ho, Wo,
                        relu=False, residual=False, sig_mul_add=False):
    """One batch image per grid step; KHxKW tap reduction unrolled in-kernel.

    x_ref : (1, Hp, Wp, Cin)    padded input (f32)
    w_ref : (KH, KW, Cin, Cout) weights (bf16)
    b_ref : (1, Cout)           bias (f32)
    rest  : optional epilogue tensors (each (1, Ho, Wo, Cout)), then o_ref.
    """
    o_ref = rest[-1]
    extras = rest[:-1]
    Cin = x_ref.shape[-1]
    Cout = o_ref.shape[-1]

    acc = jnp.zeros((Ho * Wo, Cout), jnp.float32)
    for ki in range(KH):
        for kj in range(KW):
            win = x_ref[0, ki:ki + Ho, kj:kj + Wo, :].reshape(Ho * Wo, Cin)
            acc = acc + jnp.dot(win.astype(jnp.bfloat16), w_ref[ki, kj],
                                preferred_element_type=jnp.float32)
    acc = acc + b_ref[...]
    if relu:
        acc = jnp.maximum(acc, 0.0)
    if residual:
        acc = acc + extras[0][0].reshape(Ho * Wo, Cout)
    if sig_mul_add:
        t = extras[0][0].reshape(Ho * Wo, Cout)
        r = extras[1][0].reshape(Ho * Wo, Cout)
        acc = jax.nn.sigmoid(acc) * t + r
    o_ref[0] = acc.reshape(Ho, Wo, Cout).astype(o_ref.dtype)


def conv2d(x, w, b, padding=0, relu=False, residual=None,
           sig_mul=None, sig_add=None):
    """Stride-1 conv, NHWC. Fused epilogues: ReLU / (+residual) /
    sigmoid(out) * sig_mul + sig_add.  Activations stay f32 in HBM (keeps the
    v5e elementwise path in f32); MXU operands are bf16 in-kernel."""
    B, H, W, Cin = x.shape
    KH, KW, _, Cout = w.shape
    Ho = H + 2 * padding - KH + 1
    Wo = W + 2 * padding - KW + 1
    xp = x if padding == 0 else jnp.pad(
        x, ((0, 0), (padding, padding), (padding, padding), (0, 0)))
    Hp, Wp = xp.shape[1], xp.shape[2]

    out_spec = pl.BlockSpec((1, Ho, Wo, Cout), lambda bb: (bb, 0, 0, 0))
    extras, extra_specs = [], []
    if residual is not None:
        extras, extra_specs = [residual], [out_spec]
    elif sig_mul is not None:
        extras, extra_specs = [sig_mul, sig_add], [out_spec, out_spec]

    kernel = functools.partial(
        _direct_conv_kernel, KH=KH, KW=KW, Ho=Ho, Wo=Wo, relu=relu,
        residual=residual is not None, sig_mul_add=sig_mul is not None)

    # TODO(synk): grid is (batch,) with the full image resident in VMEM; for
    # very large H*W add an output-row grid axis (needs halo handling).
    return pl.pallas_call(
        kernel,
        out_shape=jax.ShapeDtypeStruct((B, Ho, Wo, Cout), jnp.float32),
        grid=(B,),
        in_specs=[pl.BlockSpec((1, Hp, Wp, Cin), lambda bb: (bb, 0, 0, 0)),
                  pl.BlockSpec((KH, KW, Cin, Cout), lambda bb: (0, 0, 0, 0)),
                  pl.BlockSpec((1, Cout), lambda bb: (0, 0))] + extra_specs,
        out_specs=out_spec,
        compiler_params=pltpu.CompilerParams(
            dimension_semantics=("parallel",),
            vmem_limit_bytes=_VMEM_LIMIT),
    )(xp, w.astype(jnp.bfloat16), b.reshape(1, Cout).astype(jnp.float32),
      *extras)


# ----------------------- strided conv (single use) --------------------------

def _matmul_bias_kernel(x_ref, w_ref, b_ref, o_ref):
    acc = jnp.dot(x_ref[...], w_ref[...], preferred_element_type=jnp.float32)
    o_ref[...] = (acc + b_ref[...]).astype(o_ref.dtype)


def matmul_bias(x, w, b, tm=512):
    """x:(M,K) bf16 @ w:(K,N) bf16 + b:(N,) f32, f32 accumulation.
    No pad/slice copies: ragged last M-tile is masked by Pallas."""
    M, K = x.shape
    N = w.shape[1]
    tm = M if M <= tm else tm
    return pl.pallas_call(
        _matmul_bias_kernel,
        out_shape=jax.ShapeDtypeStruct((M, N), jnp.float32),
        grid=(pl.cdiv(M, tm),),
        in_specs=[pl.BlockSpec((tm, K), lambda i: (i, 0)),
                  pl.BlockSpec((K, N), lambda i: (0, 0)),
                  pl.BlockSpec((1, N), lambda i: (0, 0))],
        out_specs=pl.BlockSpec((tm, N), lambda i: (i, 0)),
        compiler_params=pltpu.CompilerParams(
            dimension_semantics=("parallel",),
            vmem_limit_bytes=_VMEM_LIMIT),
    )(x, w, b.reshape(1, N).astype(jnp.float32))


def conv2d_strided(x, w, b, stride, padding):
    # TODO(synk): the single stride-2 down-conv still uses im2col (bf16 cols);
    # it runs at half resolution so it is a minor term, but the tap reduction
    # could also be folded into the grid like the stride-1 path.
    B, H, W, Cin = x.shape
    KH, KW, _, Cout = w.shape
    xp = jnp.pad(x, ((0, 0), (padding, padding), (padding, padding), (0, 0)))
    Ho = (H + 2 * padding - KH) // stride + 1
    Wo = (W + 2 * padding - KW) // stride + 1
    patches = []
    for i in range(KH):
        for j in range(KW):
            patches.append(xp[:, i:i + stride * (Ho - 1) + 1:stride,
                               j:j + stride * (Wo - 1) + 1:stride, :])
    cols = jnp.concatenate(patches, axis=-1).reshape(
        B * Ho * Wo, KH * KW * Cin).astype(jnp.bfloat16)
    wm = w.reshape(KH * KW * Cin, Cout).astype(jnp.bfloat16)
    out = matmul_bias(cols, wm, b)
    return out.reshape(B, Ho, Wo, Cout)


# ------------------- ConvTranspose2d via phase decomposition ----------------

def conv_transpose2d(x, wt, b, residual=None):
    """PyTorch ConvTranspose2d(n, n, 6, stride=2, padding=2) computed as 4
    phase (sub-pixel) 3x3 stride-1 convs at input resolution (no zero-dilated
    buffer; ~4x fewer MACs).  Optional fused '+ residual' per output phase."""
    B, H, W, Cin = x.shape
    _, Cout, KH, KW = wt.shape
    assert KH == 6 and KW == 6, "decomposition derived for k=6, s=2, p=2"
    if residual is not None:
        assert residual.shape[1] == 2 * H and residual.shape[2] == 2 * W
    # flipped kernel in (KH, KW, Cin, Cout) forward-conv layout
    w_conv = jnp.transpose(wt[:, :, ::-1, ::-1], (2, 3, 0, 1))
    out = jnp.zeros((B, 2 * H, 2 * W, Cout), jnp.float32)
    # even output rows/cols use flipped taps (1,3,5); odd ones use (0,2,4)
    for pr, rs in ((0, slice(1, None, 2)), (1, slice(0, None, 2))):
        for pc, cs in ((0, slice(1, None, 2)), (1, slice(0, None, 2))):
            res_ph = None if residual is None else residual[:, pr::2, pc::2, :]
            ph = conv2d(x, w_conv[rs, cs], b, padding=1, residual=res_ph)
            out = out.at[:, pr::2, pc::2, :].set(ph)
    return out


# ---------------------- non-local attention (chunked) -----------------------

def _nl_attn_kernel(theta_ref, phi_ref, g_ref, o_ref, acc_ref):
    jc = pl.program_id(1)

    @pl.when(jc == 0)
    def _init():
        acc_ref[...] = jnp.zeros_like(acc_ref)

    theta = theta_ref[0].astype(jnp.bfloat16)              # (N, C2)
    phi = phi_ref[0].astype(jnp.bfloat16)                  # (tj, C2)
    # f[i, j] = sum_c theta[i, c] * phi[j, c]  (== torch.matmul(theta_x, phi_x))
    f = jax.lax.dot_general(theta, phi, (((1,), (1,)), ((), ())),
                            preferred_element_type=jnp.float32)   # (N, tj)
    # torch F.softmax(f, dim=1): normalize over the row index i (axis 0 here),
    # independently per column j -> column chunks are exact, no rescaling.
    m = jnp.max(f, axis=0, keepdims=True)
    e = jnp.exp(f - m)
    s = jnp.sum(e, axis=0, keepdims=True)
    p = e * pl.reciprocal(s, approx=True)
    acc_ref[...] += jnp.dot(p.astype(jnp.bfloat16),
                            g_ref[0].astype(jnp.bfloat16),
                            preferred_element_type=jnp.float32)

    @pl.when(jc == pl.num_programs(1) - 1)
    def _done():
        o_ref[0] = acc_ref[...].astype(o_ref.dtype)


def _pick_chunk(n):
    for c in (512, 256, 128):
        if n % c == 0 and n // c >= 2:
            return c
    return n


def nl_attention(theta, phi, g):
    """theta, phi, g: (B, N, C2) -> y: (B, N, C2)."""
    B, N, C2 = theta.shape
    tj = _pick_chunk(N)
    full = pl.BlockSpec((1, N, C2), lambda bb, j: (bb, 0, 0))
    chunk = pl.BlockSpec((1, tj, C2), lambda bb, j: (bb, j, 0))
    return pl.pallas_call(
        _nl_attn_kernel,
        out_shape=jax.ShapeDtypeStruct((B, N, C2), jnp.float32),
        grid=(B, N // tj),
        in_specs=[full, chunk, chunk],
        out_specs=full,
        scratch_shapes=[pltpu.VMEM((N, C2), jnp.float32)],
        compiler_params=pltpu.CompilerParams(
            dimension_semantics=("parallel", "arbitrary"),
            vmem_limit_bytes=_VMEM_LIMIT),
    )(theta, phi, g)


# ---------------------------- module forward --------------------------------

def res_block(x, p):
    h = conv2d(x, p['c1']['w'], p['c1']['b'], padding=1, relu=True)
    return conv2d(h, p['c2']['w'], p['c2']['b'], padding=1, residual=x)


def trunk_branch(x, p):
    return res_block(res_block(x, p['rb1']), p['rb2'])


def nonlocal_block(x, p):
    B, H, W, C = x.shape
    C2 = p['g']['w'].shape[-1]
    g_x = conv2d(x, p['g']['w'], p['g']['b'])
    th_x = conv2d(x, p['theta']['w'], p['theta']['b'])
    ph_x = conv2d(x, p['phi']['w'], p['phi']['b'])
    N = H * W
    y = nl_attention(th_x.reshape(B, N, C2),
                     ph_x.reshape(B, N, C2),
                     g_x.reshape(B, N, C2))
    # W conv with fused "+ x" residual
    return conv2d(y.reshape(B, H, W, C2), p['W']['w'], p['W']['b'], residual=x)


def mask_branch(x, tx, r1, p):
    x_rb1 = nonlocal_block(x, p['nl'])
    x_rb1 = res_block(x_rb1, p['rb1'])
    x_down = conv2d_strided(x_rb1, p['down']['w'], p['down']['b'],
                            stride=2, padding=1)
    x_rb2 = res_block(x_down, p['rb2a'])
    x_rb2 = res_block(x_rb2, p['rb2b'])
    # ConvTranspose up, fused with the "+ x_rb1" skip (per output phase)
    x_pre = conv_transpose2d(x_rb2, p['up']['w'], p['up']['b'], residual=x_rb1)
    x_rb3 = res_block(x_pre, p['rb3'])
    # final 1x1 conv fused with: sigmoid -> * tx -> + r1  (module-level combine)
    return conv2d(x_rb3, p['conv1x1']['w'], p['conv1x1']['b'],
                  sig_mul=tx, sig_add=r1)


def nl_res_att_module(x, p):
    r1 = res_block(x, p['ra_rb1'])
    tx = trunk_branch(r1, p['ra_tb'])
    hx = mask_branch(r1, tx, r1, p['ra_mb'])     # = sigmoid(mask)*tx + r1
    hx = res_block(hx, p['tail1'])
    hx = res_block(hx, p['tail2'])
    return hx


def nl_res_group(x_nchw, p):
    """_NLResGroup.forward: res = body(x); return res  (no outer residual)."""
    x = jnp.transpose(x_nchw, (0, 2, 3, 1))              # NCHW -> NHWC
    h = nl_res_att_module(x, p['module'])
    h = conv2d(h, p['tail']['w'], p['tail']['b'], padding=1)  # default_conv 3x3
    return jnp.transpose(h, (0, 3, 1, 2))                # NHWC -> NCHW


# ----------------------------- parameter init --------------------------------

def init_params(key, n_feats):
    keys = list(jax.random.split(key, 64))
    it = iter(keys)

    def cp(cin, cout, k):
        k1, k2 = jax.random.split(next(it))
        return {'w': jax.random.normal(k1, (k, k, cin, cout), jnp.float32) * 0.05,
                'b': jax.random.normal(k2, (cout,), jnp.float32) * 0.01}

    def rb():
        return {'c1': cp(n_feats, n_feats, 3), 'c2': cp(n_feats, n_feats, 3)}

    f2 = n_feats // 2
    nl = {
        'g': cp(n_feats, f2, 1),
        'theta': cp(n_feats, f2, 1),
        'phi': cp(n_feats, f2, 1),
        # W conv is zero-initialized in the PyTorch module
        'W': {'w': jnp.zeros((1, 1, f2, n_feats), jnp.float32),
              'b': jnp.zeros((n_feats,), jnp.float32)},
    }

    k1, k2 = jax.random.split(next(it))
    up = {'w': jax.random.normal(k1, (n_feats, n_feats, 6, 6), jnp.float32) * 0.05,
          'b': jax.random.normal(k2, (n_feats,), jnp.float32) * 0.01}

    mb = {'nl': nl, 'rb1': rb(), 'down': cp(n_feats, n_feats, 3),
          'rb2a': rb(), 'rb2b': rb(), 'up': up, 'rb3': rb(),
          'conv1x1': cp(n_feats, n_feats, 1)}

    module = {'ra_rb1': rb(),
              'ra_tb': {'rb1': rb(), 'rb2': rb()},
              'ra_mb': mb,
              'tail1': rb(), 'tail2': rb()}

    return {'module': module, 'tail': cp(n_feats, n_feats, 3)}


# ---------------------------------- main -------------------------------------

if __name__ == "__main__":
    key = jax.random.PRNGKey(0)
    kx, kp = jax.random.split(key)

    B, C, H, W = 2, 4, 16, 16          # n_feats = 4, kernel_size = 3
    x = jax.random.normal(kx, (B, C, H, W), jnp.float32)
    params = init_params(kp, C)

    fwd = jax.jit(nl_res_group)
    out = jax.block_until_ready(fwd(x, params))
    assert out.shape == (B, C, H, W), out.shape
    assert bool(jnp.all(jnp.isfinite(out)))
    print("KERNEL_OK")
</pallas_src>

<mosaic_0001>
module attributes {stable_mosaic.version = 11 : i64} {
  func.func @_direct_conv_kernel(%arg0: i32, %arg1: memref<1x18x18x4xf32, #tpu.memory_space<vmem>>, %arg2: memref<3x3x4x4xbf16, #tpu.memory_space<vmem>>, %arg3: memref<1x4xf32, #tpu.memory_space<vmem>>, %arg4: memref<1x16x16x4xf32, #tpu.memory_space<vmem>>) attributes {dimension_semantics = [#tpu.dimension_semantics<parallel>], iteration_bounds = array<i64: 2>, scalar_prefetch = 0 : i64, scratch_operands = 0 : i64, tpu.core_type = #tpu.core_type<tc>, window_params = [{transform_indices = @transform_0, window_bounds = array<i64: 1, 18, 18, 4>}, {pipeline_mode = #tpu.pipeline_mode<synchronous>, transform_indices = @transform_1, window_bounds = array<i64: 3, 3, 4, 4>}, {pipeline_mode = #tpu.pipeline_mode<synchronous>, transform_indices = @transform_2, window_bounds = array<i64: 1, 4>}, {transform_indices = @transform_3, window_bounds = array<i64: 1, 16, 16, 4>}]} {
    %cst = arith.constant 0.000000e+00 : f32
    %0 = vector.broadcast %cst : f32 to vector<256x4xf32>
    %c0 = arith.constant 0 : index
    %c0_0 = arith.constant 0 : index
    %c0_1 = arith.constant 0 : index
    %c0_2 = arith.constant 0 : index
    %1 = vector.load %arg1[%c0, %c0_0, %c0_1, %c0_2] : memref<1x18x18x4xf32, #tpu.memory_space<vmem>>, vector<1x16x16x4xf32>
    %2 = vector.shape_cast %1 : vector<1x16x16x4xf32> to vector<16x16x4xf32>
    %3 = vector.shape_cast %2 : vector<16x16x4xf32> to vector<256x4xf32>
    %4 = arith.truncf %3 : vector<256x4xf32> to vector<256x4xbf16>
    %c0_3 = arith.constant 0 : index
    %c0_4 = arith.constant 0 : index
    %c0_5 = arith.constant 0 : index
    %c0_6 = arith.constant 0 : index
    %5 = vector.load %arg2[%c0_3, %c0_4, %c0_5, %c0_6] : memref<3x3x4x4xbf16, #tpu.memory_space<vmem>>, vector<1x1x4x4xbf16>
    %6 = vector.shape_cast %5 : vector<1x1x4x4xbf16> to vector<4x4xbf16>
    %cst_7 = arith.constant dense<0.000000e+00> : vector<256x4xf32>
    %7 = tpu.matmul %4, %6, %cst_7 {dimension_numbers = #tpu.dot_dimension_numbers<[1], [0], [0], [1], [0, 0, 1, 1], [], []>} : vector<256x4xbf16>, vector<4x4xbf16>, vector<256x4xf32> -> vector<256x4xf32>
    %8 = arith.addf %0, %7 : vector<256x4xf32>
    %c0_8 = arith.constant 0 : index
    %c0_9 = arith.constant 0 : index
    %c1 = arith.constant 1 : index
    %c0_10 = arith.constant 0 : index
    %9 = vector.load %arg1[%c0_8, %c0_9, %c1, %c0_10] : memref<1x18x18x4xf32, #tpu.memory_space<vmem>>, vector<1x16x16x4xf32>
    %10 = vector.shape_cast %9 : vector<1x16x16x4xf32> to vector<16x16x4xf32>
    %11 = vector.shape_cast %10 : vector<16x16x4xf32> to vector<256x4xf32>
    %12 = arith.truncf %11 : vector<256x4xf32> to vector<256x4xbf16>
    %c0_11 = arith.constant 0 : index
    %c1_12 = arith.constant 1 : index
    %c0_13 = arith.constant 0 : index
    %c0_14 = arith.constant 0 : index
    %13 = vector.load %arg2[%c0_11, %c1_12, %c0_13, %c0_14] : memref<3x3x4x4xbf16, #tpu.memory_space<vmem>>, vector<1x1x4x4xbf16>
    %14 = vector.shape_cast %13 : vector<1x1x4x4xbf16> to vector<4x4xbf16>
    %cst_15 = arith.constant dense<0.000000e+00> : vector<256x4xf32>
    %15 = tpu.matmul %12, %14, %cst_15 {dimension_numbers = #tpu.dot_dimension_numbers<[1], [0], [0], [1], [0, 0, 1, 1], [], []>} : vector<256x4xbf16>, vector<4x4xbf16>, vector<256x4xf32> -> vector<256x4xf32>
    %16 = arith.addf %8, %15 : vector<256x4xf32>
    %c0_16 = arith.constant 0 : index
    %c0_17 = arith.constant 0 : index
    %c2 = arith.constant 2 : index
    %c0_18 = arith.constant 0 : index
    %17 = vector.load %arg1[%c0_16, %c0_17, %c2, %c0_18] : memref<1x18x18x4xf32, #tpu.memory_space<vmem>>, vector<1x16x16x4xf32>
    %18 = vector.shape_cast %17 : vector<1x16x16x4xf32> to vector<16x16x4xf32>
    %19 = vector.shape_cast %18 : vector<16x16x4xf32> to vector<256x4xf32>
    %20 = arith.truncf %19 : vector<256x4xf32> to vector<256x4xbf16>
    %c0_19 = arith.constant 0 : index
    %c2_20 = arith.constant 2 : index
    %c0_21 = arith.constant 0 : index
    %c0_22 = arith.constant 0 : index
    %21 = vector.load %arg2[%c0_19, %c2_20, %c0_21, %c0_22] : memref<3x3x4x4xbf16, #tpu.memory_space<vmem>>, vector<1x1x4x4xbf16>
    %22 = vector.shape_cast %21 : vector<1x1x4x4xbf16> to vector<4x4xbf16>
    %cst_23 = arith.constant dense<0.000000e+00> : vector<256x4xf32>
    %23 = tpu.matmul %20, %22, %cst_23 {dimension_numbers = #tpu.dot_dimension_numbers<[1], [0], [0], [1], [0, 0, 1, 1], [], []>} : vector<256x4xbf16>, vector<4x4xbf16>, vector<256x4xf32> -> vector<256x4xf32>
    %24 = arith.addf %16, %23 : vector<256x4xf32>
    %c0_24 = arith.constant 0 : index
    %c1_25 = arith.constant 1 : index
    %c0_26 = arith.constant 0 : index
    %c0_27 = arith.constant 0 : index
    %25 = vector.load %arg1[%c0_24, %c1_25, %c0_26, %c0_27] : memref<1x18x18x4xf32, #tpu.memory_space<vmem>>, vector<1x16x16x4xf32>
    %26 = vector.shape_cast %25 : vector<1x16x16x4xf32> to vector<16x16x4xf32>
    %27 = vector.shape_cast %26 : vector<16x16x4xf32> to vector<256x4xf32>
    %28 = arith.truncf %27 : vector<256x4xf32> to vector<256x4xbf16>
    %c1_28 = arith.constant 1 : index
    %c0_29 = arith.constant 0 : index
    %c0_30 = arith.constant 0 : index
    %c0_31 = arith.constant 0 : index
    %29 = vector.load %arg2[%c1_28, %c0_29, %c0_30, %c0_31] : memref<3x3x4x4xbf16, #tpu.memory_space<vmem>>, vector<1x1x4x4xbf16>
    %30 = vector.shape_cast %29 : vector<1x1x4x4xbf16> to vector<4x4xbf16>
    %cst_32 = arith.constant dense<0.000000e+00> : vector<256x4xf32>
    %31 = tpu.matmul %28, %30, %cst_32 {dimension_numbers = #tpu.dot_dimension_numbers<[1], [0], [0], [1], [0, 0, 1, 1], [], []>} : vector<256x4xbf16>, vector<4x4xbf16>, vector<256x4xf32> -> vector<256x4xf32>
    %32 = arith.addf %24, %31 : vector<256x4xf32>
    %c0_33 = arith.constant 0 : index
    %c1_34 = arith.constant 1 : index
    %c1_35 = arith.constant 1 : index
    %c0_36 = arith.constant 0 : index
    %33 = vector.load %arg1[%c0_33, %c1_34, %c1_35, %c0_36] : memref<1x18x18x4xf32, #tpu.memory_space<vmem>>, vector<1x16x16x4xf32>
    %34 = vector.shape_cast %33 : vector<1x16x16x4xf32> to vector<16x16x4xf32>
    %35 = vector.shape_cast %34 : vector<16x16x4xf32> to vector<256x4xf32>
    %36 = arith.truncf %35 : vector<256x4xf32> to vector<256x4xbf16>
    %c1_37 = arith.constant 1 : index
    %c1_38 = arith.constant 1 : index
    %c0_39 = arith.constant 0 : index
    %c0_40 = arith.constant 0 : index
    %37 = vector.load %arg2[%c1_37, %c1_38, %c0_39, %c0_40] : memref<3x3x4x4xbf16, #tpu.memory_space<vmem>>, vector<1x1x4x4xbf16>
    %38 = vector.shape_cast %37 : vector<1x1x4x4xbf16> to vector<4x4xbf16>
    %cst_41 = arith.constant dense<0.000000e+00> : vector<256x4xf32>
    %39 = tpu.matmul %36, %38, %cst_41 {dimension_numbers = #tpu.dot_dimension_numbers<[1], [0], [0], [1], [0, 0, 1, 1], [], []>} : vector<256x4xbf16>, vector<4x4xbf16>, vector<256x4xf32> -> vector<256x4xf32>
    %40 = arith.addf %32, %39 : vector<256x4xf32>
    %c0_42 = arith.constant 0 : index
    %c1_43 = arith.constant 1 : index
    %c2_44 = arith.constant 2 : index
    %c0_45 = arith.constant 0 : index
    %41 = vector.load %arg1[%c0_42, %c1_43, %c2_44, %c0_45] : memref<1x18x18x4xf32, #tpu.memory_space<vmem>>, vector<1x16x16x4xf32>
    %42 = vector.shape_cast %41 : vector<1x16x16x4xf32> to vector<16x16x4xf32>
    %43 = vector.shape_cast %42 : vector<16x16x4xf32> to vector<256x4xf32>
    %44 = arith.truncf %43 : vector<256x4xf32> to vector<256x4xbf16>
    %c1_46 = arith.constant 1 : index
    %c2_47 = arith.constant 2 : index
    %c0_48 = arith.constant 0 : index
    %c0_49 = arith.constant 0 : index
    %45 = vector.load %arg2[%c1_46, %c2_47, %c0_48, %c0_49] : memref<3x3x4x4xbf16, #tpu.memory_space<vmem>>, vector<1x1x4x4xbf16>
    %46 = vector.shape_cast %45 : vector<1x1x4x4xbf16> to vector<4x4xbf16>
    %cst_50 = arith.constant dense<0.000000e+00> : vector<256x4xf32>
    %47 = tpu.matmul %44, %46, %cst_50 {dimension_numbers = #tpu.dot_dimension_numbers<[1], [0], [0], [1], [0, 0, 1, 1], [], []>} : vector<256x4xbf16>, vector<4x4xbf16>, vector<256x4xf32> -> vector<256x4xf32>
    %48 = arith.addf %40, %47 : vector<256x4xf32>
    %c0_51 = arith.constant 0 : index
    %c2_52 = arith.constant 2 : index
    %c0_53 = arith.constant 0 : index
    %c0_54 = arith.constant 0 : index
    %49 = vector.load %arg1[%c0_51, %c2_52, %c0_53, %c0_54] : memref<1x18x18x4xf32, #tpu.memory_space<vmem>>, vector<1x16x16x4xf32>
    %50 = vector.shape_cast %49 : vector<1x16x16x4xf32> to vector<16x16x4xf32>
    %51 = vector.shape_cast %50 : vector<16x16x4xf32> to vector<256x4xf32>
    %52 = arith.truncf %51 : vector<256x4xf32> to vector<256x4xbf16>
    %c2_55 = arith.constant 2 : index
    %c0_56 = arith.constant 0 : index
    %c0_57 = arith.constant 0 : index
    %c0_58 = arith.constant 0 : index
    %53 = vector.load %arg2[%c2_55, %c0_56, %c0_57, %c0_58] : memref<3x3x4x4xbf16, #tpu.memory_space<vmem>>, vector<1x1x4x4xbf16>
    %54 = vector.shape_cast %53 : vector<1x1x4x4xbf16> to vector<4x4xbf16>
    %cst_59 = arith.constant dense<0.000000e+00> : vector<256x4xf32>
    %55 = tpu.matmul %52, %54, %cst_59 {dimension_numbers = #tpu.dot_dimension_numbers<[1], [0], [0], [1], [0, 0, 1, 1], [], []>} : vector<256x4xbf16>, vector<4x4xbf16>, vector<256x4xf32> -> vector<256x4xf32>
    %56 = arith.addf %48, %55 : vector<256x4xf32>
    %c0_60 = arith.constant 0 : index
    %c2_61 = arith.constant 2 : index
    %c1_62 = arith.constant 1 : index
    %c0_63 = arith.constant 0 : index
    %57 = vector.load %arg1[%c0_60, %c2_61, %c1_62, %c0_63] : memref<1x18x18x4xf32, #tpu.memory_space<vmem>>, vector<1x16x16x4xf32>
    %58 = vector.shape_cast %57 : vector<1x16x16x4xf32> to vector<16x16x4xf32>
    %59 = vector.shape_cast %58 : vector<16x16x4xf32> to vector<256x4xf32>
    %60 = arith.truncf %59 : vector<256x4xf32> to vector<256x4xbf16>
    %c2_64 = arith.constant 2 : index
    %c1_65 = arith.constant 1 : index
    %c0_66 = arith.constant 0 : index
    %c0_67 = arith.constant 0 : index
    %61 = vector.load %arg2[%c2_64, %c1_65, %c0_66, %c0_67] : memref<3x3x4x4xbf16, #tpu.memory_space<vmem>>, vector<1x1x4x4xbf16>
    %62 = vector.shape_cast %61 : vector<1x1x4x4xbf16> to vector<4x4xbf16>
    %cst_68 = arith.constant dense<0.000000e+00> : vector<256x4xf32>
    %63 = tpu.matmul %60, %62, %cst_68 {dimension_numbers = #tpu.dot_dimension_numbers<[1], [0], [0], [1], [0, 0, 1, 1], [], []>} : vector<256x4xbf16>, vector<4x4xbf16>, vector<256x4xf32> -> vector<256x4xf32>
    %64 = arith.addf %56, %63 : vector<256x4xf32>
    %c0_69 = arith.constant 0 : index
    %c2_70 = arith.constant 2 : index
    %c2_71 = arith.constant 2 : index
    %c0_72 = arith.constant 0 : index
    %65 = vector.load %arg1[%c0_69, %c2_70, %c2_71, %c0_72] : memref<1x18x18x4xf32, #tpu.memory_space<vmem>>, vector<1x16x16x4xf32>
    %66 = vector.shape_cast %65 : vector<1x16x16x4xf32> to vector<16x16x4xf32>
    %67 = vector.shape_cast %66 : vector<16x16x4xf32> to vector<256x4xf32>
    %68 = arith.truncf %67 : vector<256x4xf32> to vector<256x4xbf16>
    %c2_73 = arith.constant 2 : index
    %c2_74 = arith.constant 2 : index
    %c0_75 = arith.constant 0 : index
    %c0_76 = arith.constant 0 : index
    %69 = vector.load %arg2[%c2_73, %c2_74, %c0_75, %c0_76] : memref<3x3x4x4xbf16, #tpu.memory_space<vmem>>, vector<1x1x4x4xbf16>
    %70 = vector.shape_cast %69 : vector<1x1x4x4xbf16> to vector<4x4xbf16>
    %cst_77 = arith.constant dense<0.000000e+00> : vector<256x4xf32>
    %71 = tpu.matmul %68, %70, %cst_77 {dimension_numbers = #tpu.dot_dimension_numbers<[1], [0], [0], [1], [0, 0, 1, 1], [], []>} : vector<256x4xbf16>, vector<4x4xbf16>, vector<256x4xf32> -> vector<256x4xf32>
    %72 = arith.addf %64, %71 : vector<256x4xf32>
    %c0_78 = arith.constant 0 : index
    %c0_79 = arith.constant 0 : index
    %73 = vector.load %arg3[%c0_78, %c0_79] : memref<1x4xf32, #tpu.memory_space<vmem>>, vector<1x4xf32>
    %74 = vector.broadcast %73 : vector<1x4xf32> to vector<256x4xf32>
    %75 = arith.addf %72, %74 : vector<256x4xf32>
    %cst_80 = arith.constant 0.000000e+00 : f32
    %76 = vector.broadcast %cst_80 : f32 to vector<256x4xf32>
    %77 = arith.maximumf %75, %76 : vector<256x4xf32>
    %78 = vector.shape_cast %77 : vector<256x4xf32> to vector<16x16x4xf32>
    %c0_81 = arith.constant 0 : index
    %c0_82 = arith.constant 0 : index
    %c0_83 = arith.constant 0 : index
    %c0_84 = arith.constant 0 : index
    %79 = vector.load %arg4[%c0_81, %c0_82, %c0_83, %c0_84] : memref<1x16x16x4xf32, #tpu.memory_space<vmem>>, vector<1x16x16x4xf32>
    %80 = vector.shape_cast %79 : vector<1x16x16x4xf32> to vector<16x16x4xf32>
    %81 = vector.shape_cast %78 : vector<16x16x4xf32> to vector<1x16x16x4xf32>
    tpu.vector_store %arg4[%c0_81, %c0_82, %c0_83, %c0_84], %81 {strides = array<i32>} : memref<1x16x16x4xf32, #tpu.memory_space<vmem>>, vector<1x16x16x4xf32>,
    return
  }
  func.func @transform_0(%arg0: i32) -> (i32, i32, i32, i32) {
    %c0_i32 = arith.constant 0 : i32
    %c0_i32_0 = arith.constant 0 : i32
    %c0_i32_1 = arith.constant 0 : i32
    %c0_i32_2 = arith.constant 0 : i32
    return %arg0, %c0_i32, %c0_i32_0, %c0_i32_1 : i32, i32, i32, i32
  }
  func.func @transform_1(%arg0: i32) -> (i32, i32, i32, i32) {
    %c0_i32 = arith.constant 0 : i32
    %c0_i32_0 = arith.constant 0 : i32
    %c0_i32_1 = arith.constant 0 : i32
    %c0_i32_2 = arith.constant 0 : i32
    %c0_i32_3 = arith.constant 0 : i32
    return %c0_i32, %c0_i32_0, %c0_i32_1, %c0_i32_2 : i32, i32, i32, i32
  }
  func.func @transform_2(%arg0: i32) -> (i32, i32) {
    %c0_i32 = arith.constant 0 : i32
    %c0_i32_0 = arith.constant 0 : i32
    %c0_i32_1 = arith.constant 0 : i32
    return %c0_i32, %c0_i32_0 : i32, i32
  }
  func.func @transform_3(%arg0: i32) -> (i32, i32, i32, i32) {
    %c0_i32 = arith.constant 0 : i32
    %c0_i32_0 = arith.constant 0 : i32
    %c0_i32_1 = arith.constant 0 : i32
    %c0_i32_2 = arith.constant 0 : i32
    return %arg0, %c0_i32, %c0_i32_0, %c0_i32_1 : i32, i32, i32, i32
  }
}

module attributes {stable_mosaic.version = 11 : i64} {
  func.func @_direct_conv_kernel(%arg0: i32, %arg1: memref<1x18x18x4xf32, #tpu.memory_space<vmem>>, %arg2: memref<3x3x4x4xbf16, #tpu.memory_space<vmem>>, %arg3: memref<1x4xf32, #tpu.memory_space<vmem>>, %arg4: memref<1x16x16x4xf32, #tpu.memory_space<vmem>>, %arg5: memref<1x16x16x4xf32, #tpu.memory_space<vmem>>) attributes {dimension_semantics = [#tpu.dimension_semantics<parallel>], iteration_bounds = array<i64: 2>, scalar_prefetch = 0 : i64, scratch_operands = 0 : i64, tpu.core_type = #tpu.core_type<tc>, window_params = [{transform_indices = @transform_0, window_bounds = array<i64: 1, 18, 18, 4>}, {pipeline_mode = #tpu.pipeline_mode<synchronous>, transform_indices = @transform_1, window_bounds = array<i64: 3, 3, 4, 4>}, {pipeline_mode = #tpu.pipeline_mode<synchronous>, transform_indices = @transform_2, window_bounds = array<i64: 1, 4>}, {transform_indices = @transform_3, window_bounds = array<i64: 1, 16, 16, 4>}, {transform_indices = @transform_4, window_bounds = array<i64: 1, 16, 16, 4>}]} {
    %cst = arith.constant 0.000000e+00 : f32
    %0 = vector.broadcast %cst : f32 to vector<256x4xf32>
    %c0 = arith.constant 0 : index
    %c0_0 = arith.constant 0 : index
    %c0_1 = arith.constant 0 : index
    %c0_2 = arith.constant 0 : index
    %1 = vector.load %arg1[%c0, %c0_0, %c0_1, %c0_2] : memref<1x18x18x4xf32, #tpu.memory_space<vmem>>, vector<1x16x16x4xf32>
    %2 = vector.shape_cast %1 : vector<1x16x16x4xf32> to vector<16x16x4xf32>
    %3 = vector.shape_cast %2 : vector<16x16x4xf32> to vector<256x4xf32>
    %4 = arith.truncf %3 : vector<256x4xf32> to vector<256x4xbf16>
    %c0_3 = arith.constant 0 : index
    %c0_4 = arith.constant 0 : index
    %c0_5 = arith.constant 0 : index
    %c0_6 = arith.constant 0 : index
    %5 = vector.load %arg2[%c0_3, %c0_4, %c0_5, %c0_6] : memref<3x3x4x4xbf16, #tpu.memory_space<vmem>>, vector<1x1x4x4xbf16>
    %6 = vector.shape_cast %5 : vector<1x1x4x4xbf16> to vector<4x4xbf16>
    %cst_7 = arith.constant dense<0.000000e+00> : vector<256x4xf32>
    %7 = tpu.matmul %4, %6, %cst_7 {dimension_numbers = #tpu.dot_dimension_numbers<[1], [0], [0], [1], [0, 0, 1, 1], [], []>} : vector<256x4xbf16>, vector<4x4xbf16>, vector<256x4xf32> -> vector<256x4xf32>
    %8 = arith.addf %0, %7 : vector<256x4xf32>
    %c0_8 = arith.constant 0 : index
    %c0_9 = arith.constant 0 : index
    %c1 = arith.constant 1 : index
    %c0_10 = arith.constant 0 : index
    %9 = vector.load %arg1[%c0_8, %c0_9, %c1, %c0_10] : memref<1x18x18x4xf32, #tpu.memory_space<vmem>>, vector<1x16x16x4xf32>
    %10 = vector.shape_cast %9 : vector<1x16x16x4xf32> to vector<16x16x4xf32>
    %11 = vector.shape_cast %10 : vector<16x16x4xf32> to vector<256x4xf32>
    %12 = arith.truncf %11 : vector<256x4xf32> to vector<256x4xbf16>
    %c0_11 = arith.constant 0 : index
    %c1_12 = arith.constant 1 : index
    %c0_13 = arith.constant 0 : index
    %c0_14 = arith.constant 0 : index
    %13 = vector.load %arg2[%c0_11, %c1_12, %c0_13, %c0_14] : memref<3x3x4x4xbf16, #tpu.memory_space<vmem>>, vector<1x1x4x4xbf16>
    %14 = vector.shape_cast %13 : vector<1x1x4x4xbf16> to vector<4x4xbf16>
    %cst_15 = arith.constant dense<0.000000e+00> : vector<256x4xf32>
    %15 = tpu.matmul %12, %14, %cst_15 {dimension_numbers = #tpu.dot_dimension_numbers<[1], [0], [0], [1], [0, 0, 1, 1], [], []>} : vector<256x4xbf16>, vector<4x4xbf16>, vector<256x4xf32> -> vector<256x4xf32>
    %16 = arith.addf %8, %15 : vector<256x4xf32>
    %c0_16 = arith.constant 0 : index
    %c0_17 = arith.constant 0 : index
    %c2 = arith.constant 2 : index
    %c0_18 = arith.constant 0 : index
    %17 = vector.load %arg1[%c0_16, %c0_17, %c2, %c0_18] : memref<1x18x18x4xf32, #tpu.memory_space<vmem>>, vector<1x16x16x4xf32>
    %18 = vector.shape_cast %17 : vector<1x16x16x4xf32> to vector<16x16x4xf32>
    %19 = vector.shape_cast %18 : vector<16x16x4xf32> to vector<256x4xf32>
    %20 = arith.truncf %19 : vector<256x4xf32> to vector<256x4xbf16>
    %c0_19 = arith.constant 0 : index
    %c2_20 = arith.constant 2 : index
    %c0_21 = arith.constant 0 : index
    %c0_22 = arith.constant 0 : index
    %21 = vector.load %arg2[%c0_19, %c2_20, %c0_21, %c0_22] : memref<3x3x4x4xbf16, #tpu.memory_space<vmem>>, vector<1x1x4x4xbf16>
    %22 = vector.shape_cast %21 : vector<1x1x4x4xbf16> to vector<4x4xbf16>
    %cst_23 = arith.constant dense<0.000000e+00> : vector<256x4xf32>
    %23 = tpu.matmul %20, %22, %cst_23 {dimension_numbers = #tpu.dot_dimension_numbers<[1], [0], [0], [1], [0, 0, 1, 1], [], []>} : vector<256x4xbf16>, vector<4x4xbf16>, vector<256x4xf32> -> vector<256x4xf32>
    %24 = arith.addf %16, %23 : vector<256x4xf32>
    %c0_24 = arith.constant 0 : index
    %c1_25 = arith.constant 1 : index
    %c0_26 = arith.constant 0 : index
    %c0_27 = arith.constant 0 : index
    %25 = vector.load %arg1[%c0_24, %c1_25, %c0_26, %c0_27] : memref<1x18x18x4xf32, #tpu.memory_space<vmem>>, vector<1x16x16x4xf32>
    %26 = vector.shape_cast %25 : vector<1x16x16x4xf32> to vector<16x16x4xf32>
    %27 = vector.shape_cast %26 : vector<16x16x4xf32> to vector<256x4xf32>
    %28 = arith.truncf %27 : vector<256x4xf32> to vector<256x4xbf16>
    %c1_28 = arith.constant 1 : index
    %c0_29 = arith.constant 0 : index
    %c0_30 = arith.constant 0 : index
    %c0_31 = arith.constant 0 : index
    %29 = vector.load %arg2[%c1_28, %c0_29, %c0_30, %c0_31] : memref<3x3x4x4xbf16, #tpu.memory_space<vmem>>, vector<1x1x4x4xbf16>
    %30 = vector.shape_cast %29 : vector<1x1x4x4xbf16> to vector<4x4xbf16>
    %cst_32 = arith.constant dense<0.000000e+00> : vector<256x4xf32>
    %31 = tpu.matmul %28, %30, %cst_32 {dimension_numbers = #tpu.dot_dimension_numbers<[1], [0], [0], [1], [0, 0, 1, 1], [], []>} : vector<256x4xbf16>, vector<4x4xbf16>, vector<256x4xf32> -> vector<256x4xf32>
    %32 = arith.addf %24, %31 : vector<256x4xf32>
    %c0_33 = arith.constant 0 : index
    %c1_34 = arith.constant 1 : index
    %c1_35 = arith.constant 1 : index
    %c0_36 = arith.constant 0 : index
    %33 = vector.load %arg1[%c0_33, %c1_34, %c1_35, %c0_36] : memref<1x18x18x4xf32, #tpu.memory_space<vmem>>, vector<1x16x16x4xf32>
    %34 = vector.shape_cast %33 : vector<1x16x16x4xf32> to vector<16x16x4xf32>
    %35 = vector.shape_cast %34 : vector<16x16x4xf32> to vector<256x4xf32>
    %36 = arith.truncf %35 : vector<256x4xf32> to vector<256x4xbf16>
    %c1_37 = arith.constant 1 : index
    %c1_38 = arith.constant 1 : index
    %c0_39 = arith.constant 0 : index
    %c0_40 = arith.constant 0 : index
    %37 = vector.load %arg2[%c1_37, %c1_38, %c0_39, %c0_40] : memref<3x3x4x4xbf16, #tpu.memory_space<vmem>>, vector<1x1x4x4xbf16>
    %38 = vector.shape_cast %37 : vector<1x1x4x4xbf16> to vector<4x4xbf16>
    %cst_41 = arith.constant dense<0.000000e+00> : vector<256x4xf32>
    %39 = tpu.matmul %36, %38, %cst_41 {dimension_numbers = #tpu.dot_dimension_numbers<[1], [0], [0], [1], [0, 0, 1, 1], [], []>} : vector<256x4xbf16>, vector<4x4xbf16>, vector<256x4xf32> -> vector<256x4xf32>
    %40 = arith.addf %32, %39 : vector<256x4xf32>
    %c0_42 = arith.constant 0 : index
    %c1_43 = arith.constant 1 : index
    %c2_44 = arith.constant 2 : index
    %c0_45 = arith.constant 0 : index
    %41 = vector.load %arg1[%c0_42, %c1_43, %c2_44, %c0_45] : memref<1x18x18x4xf32, #tpu.memory_space<vmem>>, vector<1x16x16x4xf32>
    %42 = vector.shape_cast %41 : vector<1x16x16x4xf32> to vector<16x16x4xf32>
    %43 = vector.shape_cast %42 : vector<16x16x4xf32> to vector<256x4xf32>
    %44 = arith.truncf %43 : vector<256x4xf32> to vector<256x4xbf16>
    %c1_46 = arith.constant 1 : index
    %c2_47 = arith.constant 2 : index
    %c0_48 = arith.constant 0 : index
    %c0_49 = arith.constant 0 : index
    %45 = vector.load %arg2[%c1_46, %c2_47, %c0_48, %c0_49] : memref<3x3x4x4xbf16, #tpu.memory_space<vmem>>, vector<1x1x4x4xbf16>
    %46 = vector.shape_cast %45 : vector<1x1x4x4xbf16> to vector<4x4xbf16>
    %cst_50 = arith.constant dense<0.000000e+00> : vector<256x4xf32>
    %47 = tpu.matmul %44, %46, %cst_50 {dimension_numbers = #tpu.dot_dimension_numbers<[1], [0], [0], [1], [0, 0, 1, 1], [], []>} : vector<256x4xbf16>, vector<4x4xbf16>, vector<256x4xf32> -> vector<256x4xf32>
    %48 = arith.addf %40, %47 : vector<256x4xf32>
    %c0_51 = arith.constant 0 : index
    %c2_52 = arith.constant 2 : index
    %c0_53 = arith.constant 0 : index
    %c0_54 = arith.constant 0 : index
    %49 = vector.load %arg1[%c0_51, %c2_52, %c0_53, %c0_54] : memref<1x18x18x4xf32, #tpu.memory_space<vmem>>, vector<1x16x16x4xf32>
    %50 = vector.shape_cast %49 : vector<1x16x16x4xf32> to vector<16x16x4xf32>
    %51 = vector.shape_cast %50 : vector<16x16x4xf32> to vector<256x4xf32>
    %52 = arith.truncf %51 : vector<256x4xf32> to vector<256x4xbf16>
    %c2_55 = arith.constant 2 : index
    %c0_56 = arith.constant 0 : index
    %c0_57 = arith.constant 0 : index
    %c0_58 = arith.constant 0 : index
    %53 = vector.load %arg2[%c2_55, %c0_56, %c0_57, %c0_58] : memref<3x3x4x4xbf16, #tpu.memory_space<vmem>>, vector<1x1x4x4xbf16>
    %54 = vector.shape_cast %53 : vector<1x1x4x4xbf16> to vector<4x4xbf16>
    %cst_59 = arith.constant dense<0.000000e+00> : vector<256x4xf32>
    %55 = tpu.matmul %52, %54, %cst_59 {dimension_numbers = #tpu.dot_dimension_numbers<[1], [0], [0], [1], [0, 0, 1, 1], [], []>} : vector<256x4xbf16>, vector<4x4xbf16>, vector<256x4xf32> -> vector<256x4xf32>
    %56 = arith.addf %48, %55 : vector<256x4xf32>
    %c0_60 = arith.constant 0 : index
    %c2_61 = arith.constant 2 : index
    %c1_62 = arith.constant 1 : index
    %c0_63 = arith.constant 0 : index
    %57 = vector.load %arg1[%c0_60, %c2_61, %c1_62, %c0_63] : memref<1x18x18x4xf32, #tpu.memory_space<vmem>>, vector<1x16x16x4xf32>
    %58 = vector.shape_cast %57 : vector<1x16x16x4xf32> to vector<16x16x4xf32>
    %59 = vector.shape_cast %58 : vector<16x16x4xf32> to vector<256x4xf32>
    %60 = arith.truncf %59 : vector<256x4xf32> to vector<256x4xbf16>
    %c2_64 = arith.constant 2 : index
    %c1_65 = arith.constant 1 : index
    %c0_66 = arith.constant 0 : index
    %c0_67 = arith.constant 0 : index
    %61 = vector.load %arg2[%c2_64, %c1_65, %c0_66, %c0_67] : memref<3x3x4x4xbf16, #tpu.memory_space<vmem>>, vector<1x1x4x4xbf16>
    %62 = vector.shape_cast %61 : vector<1x1x4x4xbf16> to vector<4x4xbf16>
    %cst_68 = arith.constant dense<0.000000e+00> : vector<256x4xf32>
    %63 = tpu.matmul %60, %62, %cst_68 {dimension_numbers = #tpu.dot_dimension_numbers<[1], [0], [0], [1], [0, 0, 1, 1], [], []>} : vector<256x4xbf16>, vector<4x4xbf16>, vector<256x4xf32> -> vector<256x4xf32>
    %64 = arith.addf %56, %63 : vector<256x4xf32>
    %c0_69 = arith.constant 0 : index
    %c2_70 = arith.constant 2 : index
    %c2_71 = arith.constant 2 : index
    %c0_72 = arith.constant 0 : index
    %65 = vector.load %arg1[%c0_69, %c2_70, %c2_71, %c0_72] : memref<1x18x18x4xf32, #tpu.memory_space<vmem>>, vector<1x16x16x4xf32>
    %66 = vector.shape_cast %65 : vector<1x16x16x4xf32> to vector<16x16x4xf32>
    %67 = vector.shape_cast %66 : vector<16x16x4xf32> to vector<256x4xf32>
    %68 = arith.truncf %67 : vector<256x4xf32> to vector<256x4xbf16>
    %c2_73 = arith.constant 2 : index
    %c2_74 = arith.constant 2 : index
    %c0_75 = arith.constant 0 : index
    %c0_76 = arith.constant 0 : index
    %69 = vector.load %arg2[%c2_73, %c2_74, %c0_75, %c0_76] : memref<3x3x4x4xbf16, #tpu.memory_space<vmem>>, vector<1x1x4x4xbf16>
    %70 = vector.shape_cast %69 : vector<1x1x4x4xbf16> to vector<4x4xbf16>
    %cst_77 = arith.constant dense<0.000000e+00> : vector<256x4xf32>
    %71 = tpu.matmul %68, %70, %cst_77 {dimension_numbers = #tpu.dot_dimension_numbers<[1], [0], [0], [1], [0, 0, 1, 1], [], []>} : vector<256x4xbf16>, vector<4x4xbf16>, vector<256x4xf32> -> vector<256x4xf32>
    %72 = arith.addf %64, %71 : vector<256x4xf32>
    %c0_78 = arith.constant 0 : index
    %c0_79 = arith.constant 0 : index
    %73 = vector.load %arg3[%c0_78, %c0_79] : memref<1x4xf32, #tpu.memory_space<vmem>>, vector<1x4xf32>
    %74 = vector.broadcast %73 : vector<1x4xf32> to vector<256x4xf32>
    %75 = arith.addf %72, %74 : vector<256x4xf32>
    %c0_80 = arith.constant 0 : index
    %c0_81 = arith.constant 0 : index
    %c0_82 = arith.constant 0 : index
    %c0_83 = arith.constant 0 : index
    %76 = vector.load %arg4[%c0_80, %c0_81, %c0_82, %c0_83] : memref<1x16x16x4xf32, #tpu.memory_space<vmem>>, vector<1x16x16x4xf32>
    %77 = vector.shape_cast %76 : vector<1x16x16x4xf32> to vector<16x16x4xf32>
    %78 = vector.shape_cast %77 : vector<16x16x4xf32> to vector<256x4xf32>
    %79 = arith.addf %75, %78 : vector<256x4xf32>
    %80 = vector.shape_cast %79 : vector<256x4xf32> to vector<16x16x4xf32>
    %c0_84 = arith.constant 0 : index
    %c0_85 = arith.constant 0 : index
    %c0_86 = arith.constant 0 : index
    %c0_87 = arith.constant 0 : index
    %81 = vector.load %arg5[%c0_84, %c0_85, %c0_86, %c0_87] : memref<1x16x16x4xf32, #tpu.memory_space<vmem>>, vector<1x16x16x4xf32>
    %82 = vector.shape_cast %81 : vector<1x16x16x4xf32> to vector<16x16x4xf32>
    %83 = vector.shape_cast %80 : vector<16x16x4xf32> to vector<1x16x16x4xf32>
    tpu.vector_store %arg5[%c0_84, %c0_85, %c0_86, %c0_87], %83 {strides = array<i32>} : memref<1x16x16x4xf32, #tpu.memory_space<vmem>>, vector<1x16x16x4xf32>,
    return
  }
  func.func @transform_0(%arg0: i32) -> (i32, i32, i32, i32) {
    %c0_i32 = arith.constant 0 : i32
    %c0_i32_0 = arith.constant 0 : i32
    %c0_i32_1 = arith.constant 0 : i32
    %c0_i32_2 = arith.constant 0 : i32
    return %arg0, %c0_i32, %c0_i32_0, %c0_i32_1 : i32, i32, i32, i32
  }
  func.func @transform_1(%arg0: i32) -> (i32, i32, i32, i32) {
    %c0_i32 = arith.constant 0 : i32
    %c0_i32_0 = arith.constant 0 : i32
    %c0_i32_1 = arith.constant 0 : i32
    %c0_i32_2 = arith.constant 0 : i32
    %c0_i32_3 = arith.constant 0 : i32
    return %c0_i32, %c0_i32_0, %c0_i32_1, %c0_i32_2 : i32, i32, i32, i32
  }
  func.func @transform_2(%arg0: i32) -> (i32, i32) {
    %c0_i32 = arith.constant 0 : i32
    %c0_i32_0 = arith.constant 0 : i32
    %c0_i32_1 = arith.constant 0 : i32
    return %c0_i32, %c0_i32_0 : i32, i32
  }
  func.func @transform_3(%arg0: i32) -> (i32, i32, i32, i32) {
    %c0_i32 = arith.constant 0 : i32
    %c0_i32_0 = arith.constant 0 : i32
    %c0_i32_1 = arith.constant 0 : i32
    %c0_i32_2 = arith.constant 0 : i32
    return %arg0, %c0_i32, %c0_i32_0, %c0_i32_1 : i32, i32, i32, i32
  }
  func.func @transform_4(%arg0: i32) -> (i32, i32, i32, i32) {
    %c0_i32 = arith.constant 0 : i32
    %c0_i32_0 = arith.constant 0 : i32
    %c0_i32_1 = arith.constant 0 : i32
    %c0_i32_2 = arith.constant 0 : i32
    return %arg0, %c0_i32, %c0_i32_0, %c0_i32_1 : i32, i32, i32, i32
  }
}

module attributes {stable_mosaic.version = 11 : i64} {
  func.func @_direct_conv_kernel(%arg0: i32, %arg1: memref<1x16x16x4xf32, #tpu.memory_space<vmem>>, %arg2: memref<1x1x4x2xbf16, #tpu.memory_space<vmem>>, %arg3: memref<1x2xf32, #tpu.memory_space<vmem>>, %arg4: memref<1x16x16x2xf32, #tpu.memory_space<vmem>>) attributes {dimension_semantics = [#tpu.dimension_semantics<parallel>], iteration_bounds = array<i64: 2>, scalar_prefetch = 0 : i64, scratch_operands = 0 : i64, tpu.core_type = #tpu.core_type<tc>, window_params = [{transform_indices = @transform_0, window_bounds = array<i64: 1, 16, 16, 4>}, {pipeline_mode = #tpu.pipeline_mode<synchronous>, transform_indices = @transform_1, window_bounds = array<i64: 1, 1, 4, 2>}, {pipeline_mode = #tpu.pipeline_mode<synchronous>, transform_indices = @transform_2, window_bounds = array<i64: 1, 2>}, {transform_indices = @transform_3, window_bounds = array<i64: 1, 16, 16, 2>}]} {
    %cst = arith.constant 0.000000e+00 : f32
    %0 = vector.broadcast %cst : f32 to vector<256x2xf32>
    %c0 = arith.constant 0 : index
    %c0_0 = arith.constant 0 : index
    %c0_1 = arith.constant 0 : index
    %c0_2 = arith.constant 0 : index
    %1 = vector.load %arg1[%c0, %c0_0, %c0_1, %c0_2] : memref<1x16x16x4xf32, #tpu.memory_space<vmem>>, vector<1x16x16x4xf32>
    %2 = vector.shape_cast %1 : vector<1x16x16x4xf32> to vector<16x16x4xf32>
    %3 = vector.shape_cast %2 : vector<16x16x4xf32> to vector<256x4xf32>
    %4 = arith.truncf %3 : vector<256x4xf32> to vector<256x4xbf16>
    %c0_3 = arith.constant 0 : index
    %c0_4 = arith.constant 0 : index
    %c0_5 = arith.constant 0 : index
    %c0_6 = arith.constant 0 : index
    %5 = vector.load %arg2[%c0_3, %c0_4, %c0_5, %c0_6] : memref<1x1x4x2xbf16, #tpu.memory_space<vmem>>, vector<1x1x4x2xbf16>
    %6 = vector.shape_cast %5 : vector<1x1x4x2xbf16> to vector<4x2xbf16>
    %cst_7 = arith.constant dense<0.000000e+00> : vector<256x2xf32>
    %7 = tpu.matmul %4, %6, %cst_7 {dimension_numbers = #tpu.dot_dimension_numbers<[1], [0], [0], [1], [0, 0, 1, 1], [], []>} : vector<256x4xbf16>, vector<4x2xbf16>, vector<256x2xf32> -> vector<256x2xf32>
    %8 = arith.addf %0, %7 : vector<256x2xf32>
    %c0_8 = arith.constant 0 : index
    %c0_9 = arith.constant 0 : index
    %9 = vector.load %arg3[%c0_8, %c0_9] : memref<1x2xf32, #tpu.memory_space<vmem>>, vector<1x2xf32>
    %10 = vector.broadcast %9 : vector<1x2xf32> to vector<256x2xf32>
    %11 = arith.addf %8, %10 : vector<256x2xf32>
    %12 = vector.shape_cast %11 : vector<256x2xf32> to vector<16x16x2xf32>
    %c0_10 = arith.constant 0 : index
    %c0_11 = arith.constant 0 : index
    %c0_12 = arith.constant 0 : index
    %c0_13 = arith.constant 0 : index
    %13 = vector.load %arg4[%c0_10, %c0_11, %c0_12, %c0_13] : memref<1x16x16x2xf32, #tpu.memory_space<vmem>>, vector<1x16x16x2xf32>
    %14 = vector.shape_cast %13 : vector<1x16x16x2xf32> to vector<16x16x2xf32>
    %15 = vector.shape_cast %12 : vector<16x16x2xf32> to vector<1x16x16x2xf32>
    tpu.vector_store %arg4[%c0_10, %c0_11, %c0_12, %c0_13], %15 {strides = array<i32>} : memref<1x16x16x2xf32, #tpu.memory_space<vmem>>, vector<1x16x16x2xf32>,
    return
  }
  func.func @transform_0(%arg0: i32) -> (i32, i32, i32, i32) {
    %c0_i32 = arith.constant 0 : i32
    %c0_i32_0 = arith.constant 0 : i32
    %c0_i32_1 = arith.constant 0 : i32
    %c0_i32_2 = arith.constant 0 : i32
    return %arg0, %c0_i32, %c0_i32_0, %c0_i32_1 : i32, i32, i32, i32
  }
  func.func @transform_1(%arg0: i32) -> (i32, i32, i32, i32) {
    %c0_i32 = arith.constant 0 : i32
    %c0_i32_0 = arith.constant 0 : i32
    %c0_i32_1 = arith.constant 0 : i32
    %c0_i32_2 = arith.constant 0 : i32
    %c0_i32_3 = arith.constant 0 : i32
    return %c0_i32, %c0_i32_0, %c0_i32_1, %c0_i32_2 : i32, i32, i32, i32
  }
  func.func @transform_2(%arg0: i32) -> (i32, i32) {
    %c0_i32 = arith.constant 0 : i32
    %c0_i32_0 = arith.constant 0 : i32
    %c0_i32_1 = arith.constant 0 : i32
    return %c0_i32, %c0_i32_0 : i32, i32
  }
  func.func @transform_3(%arg0: i32) -> (i32, i32, i32, i32) {
    %c0_i32 = arith.constant 0 : i32
    %c0_i32_0 = arith.constant 0 : i32
    %c0_i32_1 = arith.constant 0 : i32
    %c0_i32_2 = arith.constant 0 : i32
    return %arg0, %c0_i32, %c0_i32_0, %c0_i32_1 : i32, i32, i32, i32
  }
}

module attributes {stable_mosaic.version = 11 : i64} {
  func.func @_nl_attn_kernel(%arg0: i32, %arg1: i32, %arg2: memref<1x256x2xf32, #tpu.memory_space<vmem>>, %arg3: memref<1x128x2xf32, #tpu.memory_space<vmem>>, %arg4: memref<1x128x2xf32, #tpu.memory_space<vmem>>, %arg5: memref<1x256x2xf32, #tpu.memory_space<vmem>>, %arg6: memref<256x2xf32, #tpu.memory_space<vmem>>) attributes {dimension_semantics = [#tpu.dimension_semantics<parallel>, #tpu.dimension_semantics<arbitrary>], iteration_bounds = array<i64: 2, 2>, scalar_prefetch = 0 : i64, scratch_operands = 1 : i64, tpu.core_type = #tpu.core_type<tc>, window_params = [{transform_indices = @transform_0, window_bounds = array<i64: 1, 256, 2>}, {transform_indices = @transform_1, window_bounds = array<i64: 1, 128, 2>}, {transform_indices = @transform_2, window_bounds = array<i64: 1, 128, 2>}, {transform_indices = @transform_3, window_bounds = array<i64: 1, 256, 2>}]} {
    %c0_i32 = arith.constant 0 : i32
    %0 = arith.cmpi eq, %arg1, %c0_i32 : i32
    %1 = arith.extui %0 : i1 to i32
    %c0_i32_0 = arith.constant 0 : i32
    %2 = arith.cmpi ne, %1, %c0_i32_0 : i32
    scf.if %2 {
      %cst_17 = arith.constant 0.000000e+00 : f32
      %31 = vector.broadcast %cst_17 : f32 to vector<256x2xf32>
      %c0_18 = arith.constant 0 : index
      %c0_19 = arith.constant 0 : index
      %32 = vector.load %arg6[%c0_18, %c0_19] : memref<256x2xf32, #tpu.memory_space<vmem>>, vector<256x2xf32>
      tpu.vector_store %arg6[%c0_18, %c0_19], %31 {strides = array<i32>} : memref<256x2xf32, #tpu.memory_space<vmem>>, vector<256x2xf32>,
    } else {
    }
    %c0 = arith.constant 0 : index
    %c0_1 = arith.constant 0 : index
    %c0_2 = arith.constant 0 : index
    %3 = vector.load %arg2[%c0, %c0_1, %c0_2] : memref<1x256x2xf32, #tpu.memory_space<vmem>>, vector<1x256x2xf32>
    %4 = vector.shape_cast %3 : vector<1x256x2xf32> to vector<256x2xf32>
    %5 = arith.truncf %4 : vector<256x2xf32> to vector<256x2xbf16>
    %c0_3 = arith.constant 0 : index
    %c0_4 = arith.constant 0 : index
    %c0_5 = arith.constant 0 : index
    %6 = vector.load %arg3[%c0_3, %c0_4, %c0_5] : memref<1x128x2xf32, #tpu.memory_space<vmem>>, vector<1x128x2xf32>
    %7 = vector.shape_cast %6 : vector<1x128x2xf32> to vector<128x2xf32>
    %8 = arith.truncf %7 : vector<128x2xf32> to vector<128x2xbf16>
    %cst = arith.constant dense<0.000000e+00> : vector<256x128xf32>
    %9 = tpu.matmul %5, %8, %cst {dimension_numbers = #tpu.dot_dimension_numbers<[1], [1], [0], [0], [0, 0, 1, 0], [], []>} : vector<256x2xbf16>, vector<128x2xbf16>, vector<256x128xf32> -> vector<256x128xf32>
    %cst_6 = arith.constant dense<0xFF800000> : vector<128xf32>
    %10 = vector.multi_reduction <maximumf>, %9, %cst_6 [0] : vector<256x128xf32> to vector<128xf32>
    %11 = vector.shape_cast %10 : vector<128xf32> to vector<1x128xf32>
    %12 = vector.broadcast %11 : vector<1x128xf32> to vector<256x128xf32>
    %13 = arith.subf %9, %12 : vector<256x128xf32>
    %14 = math.exp %13 : vector<256x128xf32>
    %cst_7 = arith.constant dense<0.000000e+00> : vector<128xf32>
    %15 = vector.multi_reduction <add>, %14, %cst_7 [0] : vector<256x128xf32> to vector<128xf32>
    %16 = vector.shape_cast %15 : vector<128xf32> to vector<1x128xf32>
    %17 = tpu.reciprocal %16 {approx = true} : vector<1x128xf32> -> vector<1x128xf32>
    %18 = vector.broadcast %17 : vector<1x128xf32> to vector<256x128xf32>
    %19 = arith.mulf %14, %18 : vector<256x128xf32>
    %c0_8 = arith.constant 0 : index
    %c0_9 = arith.constant 0 : index
    %20 = vector.load %arg6[%c0_8, %c0_9] : memref<256x2xf32, #tpu.memory_space<vmem>>, vector<256x2xf32>
    %21 = arith.truncf %19 : vector<256x128xf32> to vector<256x128xbf16>
    %c0_10 = arith.constant 0 : index
    %c0_11 = arith.constant 0 : index
    %c0_12 = arith.constant 0 : index
    %22 = vector.load %arg4[%c0_10, %c0_11, %c0_12] : memref<1x128x2xf32, #tpu.memory_space<vmem>>, vector<1x128x2xf32>
    %23 = vector.shape_cast %22 : vector<1x128x2xf32> to vector<128x2xf32>
    %24 = arith.truncf %23 : vector<128x2xf32> to vector<128x2xbf16>
    %cst_13 = arith.constant dense<0.000000e+00> : vector<256x2xf32>
    %25 = tpu.matmul %21, %24, %cst_13 {dimension_numbers = #tpu.dot_dimension_numbers<[1], [0], [0], [1], [0, 0, 1, 1], [], []>} : vector<256x128xbf16>, vector<128x2xbf16>, vector<256x2xf32> -> vector<256x2xf32>
    %26 = arith.addf %20, %25 : vector<256x2xf32>
    %c0_14 = arith.constant 0 : index
    %c0_15 = arith.constant 0 : index
    %27 = vector.load %arg6[%c0_14, %c0_15] : memref<256x2xf32, #tpu.memory_space<vmem>>, vector<256x2xf32>
    tpu.vector_store %arg6[%c0_14, %c0_15], %26 {strides = array<i32>} : memref<256x2xf32, #tpu.memory_space<vmem>>, vector<256x2xf32>,
    %c1_i32 = arith.constant 1 : i32
    %28 = arith.cmpi eq, %arg1, %c1_i32 : i32
    %29 = arith.extui %28 : i1 to i32
    %c0_i32_16 = arith.constant 0 : i32
    %30 = arith.cmpi ne, %29, %c0_i32_16 : i32
    scf.if %30 {
      %c0_17 = arith.constant 0 : index
      %c0_18 = arith.constant 0 : index
      %31 = vector.load %arg6[%c0_17, %c0_18] : memref<256x2xf32, #tpu.memory_space<vmem>>, vector<256x2xf32>
      %c0_19 = arith.constant 0 : index
      %c0_20 = arith.constant 0 : index
      %c0_21 = arith.constant 0 : index
      %32 = vector.load %arg5[%c0_19, %c0_20, %c0_21] : memref<1x256x2xf32, #tpu.memory_space<vmem>>, vector<1x256x2xf32>
      %33 = vector.shape_cast %32 : vector<1x256x2xf32> to vector<256x2xf32>
      %34 = vector.shape_cast %31 : vector<256x2xf32> to vector<1x256x2xf32>
      tpu.vector_store %arg5[%c0_19, %c0_20, %c0_21], %34 {strides = array<i32>} : memref<1x256x2xf32, #tpu.memory_space<vmem>>, vector<1x256x2xf32>,
    } else {
    }
    return
  }
  func.func @transform_0(%arg0: i32, %arg1: i32) -> (i32, i32, i32) {
    %c0_i32 = arith.constant 0 : i32
    %c0_i32_0 = arith.constant 0 : i32
    %c0_i32_1 = arith.constant 0 : i32
    return %arg0, %c0_i32, %c0_i32_0 : i32, i32, i32
  }
  func.func @transform_1(%arg0: i32, %arg1: i32) -> (i32, i32, i32) {
    %c0_i32 = arith.constant 0 : i32
    %c0_i32_0 = arith.constant 0 : i32
    return %arg0, %arg1, %c0_i32 : i32, i32, i32
  }
  func.func @transform_2(%arg0: i32, %arg1: i32) -> (i32, i32, i32) {
    %c0_i32 = arith.constant 0 : i32
    %c0_i32_0 = arith.constant 0 : i32
    return %arg0, %arg1, %c0_i32 : i32, i32, i32
  }
  func.func @transform_3(%arg0: i32, %arg1: i32) -> (i32, i32, i32) {
    %c0_i32 = arith.constant 0 : i32
    %c0_i32_0 = arith.constant 0 : i32
    %c0_i32_1 = arith.constant 0 : i32
    return %arg0, %c0_i32, %c0_i32_0 : i32, i32, i32
  }
}

module attributes {stable_mosaic.version = 11 : i64} {
  func.func @_direct_conv_kernel(%arg0: i32, %arg1: memref<1x16x16x2xf32, #tpu.memory_space<vmem>>, %arg2: memref<1x1x2x4xbf16, #tpu.memory_space<vmem>>, %arg3: memref<1x4xf32, #tpu.memory_space<vmem>>, %arg4: memref<1x16x16x4xf32, #tpu.memory_space<vmem>>, %arg5: memref<1x16x16x4xf32, #tpu.memory_space<vmem>>) attributes {dimension_semantics = [#tpu.dimension_semantics<parallel>], iteration_bounds = array<i64: 2>, scalar_prefetch = 0 : i64, scratch_operands = 0 : i64, tpu.core_type = #tpu.core_type<tc>, window_params = [{transform_indices = @transform_0, window_bounds = array<i64: 1, 16, 16, 2>}, {pipeline_mode = #tpu.pipeline_mode<synchronous>, transform_indices = @transform_1, window_bounds = array<i64: 1, 1, 2, 4>}, {pipeline_mode = #tpu.pipeline_mode<synchronous>, transform_indices = @transform_2, window_bounds = array<i64: 1, 4>}, {transform_indices = @transform_3, window_bounds = array<i64: 1, 16, 16, 4>}, {transform_indices = @transform_4, window_bounds = array<i64: 1, 16, 16, 4>}]} {
    %cst = arith.constant 0.000000e+00 : f32
    %0 = vector.broadcast %cst : f32 to vector<256x4xf32>
    %c0 = arith.constant 0 : index
    %c0_0 = arith.constant 0 : index
    %c0_1 = arith.constant 0 : index
    %c0_2 = arith.constant 0 : index
    %1 = vector.load %arg1[%c0, %c0_0, %c0_1, %c0_2] : memref<1x16x16x2xf32, #tpu.memory_space<vmem>>, vector<1x16x16x2xf32>
    %2 = vector.shape_cast %1 : vector<1x16x16x2xf32> to vector<16x16x2xf32>
    %3 = vector.shape_cast %2 : vector<16x16x2xf32> to vector<256x2xf32>
    %4 = arith.truncf %3 : vector<256x2xf32> to vector<256x2xbf16>
    %c0_3 = arith.constant 0 : index
    %c0_4 = arith.constant 0 : index
    %c0_5 = arith.constant 0 : index
    %c0_6 = arith.constant 0 : index
    %5 = vector.load %arg2[%c0_3, %c0_4, %c0_5, %c0_6] : memref<1x1x2x4xbf16, #tpu.memory_space<vmem>>, vector<1x1x2x4xbf16>
    %6 = vector.shape_cast %5 : vector<1x1x2x4xbf16> to vector<2x4xbf16>
    %cst_7 = arith.constant dense<0.000000e+00> : vector<256x4xf32>
    %7 = tpu.matmul %4, %6, %cst_7 {dimension_numbers = #tpu.dot_dimension_numbers<[1], [0], [0], [1], [0, 0, 1, 1], [], []>} : vector<256x2xbf16>, vector<2x4xbf16>, vector<256x4xf32> -> vector<256x4xf32>
    %8 = arith.addf %0, %7 : vector<256x4xf32>
    %c0_8 = arith.constant 0 : index
    %c0_9 = arith.constant 0 : index
    %9 = vector.load %arg3[%c0_8, %c0_9] : memref<1x4xf32, #tpu.memory_space<vmem>>, vector<1x4xf32>
    %10 = vector.broadcast %9 : vector<1x4xf32> to vector<256x4xf32>
    %11 = arith.addf %8, %10 : vector<256x4xf32>
    %c0_10 = arith.constant 0 : index
    %c0_11 = arith.constant 0 : index
    %c0_12 = arith.constant 0 : index
    %c0_13 = arith.constant 0 : index
    %12 = vector.load %arg4[%c0_10, %c0_11, %c0_12, %c0_13] : memref<1x16x16x4xf32, #tpu.memory_space<vmem>>, vector<1x16x16x4xf32>
    %13 = vector.shape_cast %12 : vector<1x16x16x4xf32> to vector<16x16x4xf32>
    %14 = vector.shape_cast %13 : vector<16x16x4xf32> to vector<256x4xf32>
    %15 = arith.addf %11, %14 : vector<256x4xf32>
    %16 = vector.shape_cast %15 : vector<256x4xf32> to vector<16x16x4xf32>
    %c0_14 = arith.constant 0 : index
    %c0_15 = arith.constant 0 : index
    %c0_16 = arith.constant 0 : index
    %c0_17 = arith.constant 0 : index
    %17 = vector.load %arg5[%c0_14, %c0_15, %c0_16, %c0_17] : memref<1x16x16x4xf32, #tpu.memory_space<vmem>>, vector<1x16x16x4xf32>
    %18 = vector.shape_cast %17 : vector<1x16x16x4xf32> to vector<16x16x4xf32>
    %19 = vector.shape_cast %16 : vector<16x16x4xf32> to vector<1x16x16x4xf32>
    tpu.vector_store %arg5[%c0_14, %c0_15, %c0_16, %c0_17], %19 {strides = array<i32>} : memref<1x16x16x4xf32, #tpu.memory_space<vmem>>, vector<1x16x16x4xf32>,
    return
  }
  func.func @transform_0(%arg0: i32) -> (i32, i32, i32, i32) {
    %c0_i32 = arith.constant 0 : i32
    %c0_i32_0 = arith.constant 0 : i32
    %c0_i32_1 = arith.constant 0 : i32
    %c0_i32_2 = arith.constant 0 : i32
    return %arg0, %c0_i32, %c0_i32_0, %c0_i32_1 : i32, i32, i32, i32
  }
  func.func @transform_1(%arg0: i32) -> (i32, i32, i32, i32) {
    %c0_i32 = arith.constant 0 : i32
    %c0_i32_0 = arith.constant 0 : i32
    %c0_i32_1 = arith.constant 0 : i32
    %c0_i32_2 = arith.constant 0 : i32
    %c0_i32_3 = arith.constant 0 : i32
    return %c0_i32, %c0_i32_0, %c0_i32_1, %c0_i32_2 : i32, i32, i32, i32
  }
  func.func @transform_2(%arg0: i32) -> (i32, i32) {
    %c0_i32 = arith.constant 0 : i32
    %c0_i32_0 = arith.constant 0 : i32
    %c0_i32_1 = arith.constant 0 : i32
    return %c0_i32, %c0_i32_0 : i32, i32
  }
  func.func @transform_3(%arg0: i32) -> (i32, i32, i32, i32) {
    %c0_i32 = arith.constant 0 : i32
    %c0_i32_0 = arith.constant 0 : i32
    %c0_i32_1 = arith.constant 0 : i32
    %c0_i32_2 = arith.constant 0 : i32
    return %arg0, %c0_i32, %c0_i32_0, %c0_i32_1 : i32, i32, i32, i32
  }
  func.func @transform_4(%arg0: i32) -> (i32, i32, i32, i32) {
    %c0_i32 = arith.constant 0 : i32
    %c0_i32_0 = arith.constant 0 : i32
    %c0_i32_1 = arith.constant 0 : i32
    %c0_i32_2 = arith.constant 0 : i32
    return %arg0, %c0_i32, %c0_i32_0, %c0_i32_1 : i32, i32, i32, i32
  }
}

module attributes {stable_mosaic.version = 11 : i64} {
  func.func @_matmul_bias_kernel(%arg0: i32, %arg1: memref<128x36xbf16, #tpu.memory_space<vmem>>, %arg2: memref<36x4xbf16, #tpu.memory_space<vmem>>, %arg3: memref<1x4xf32, #tpu.memory_space<vmem>>, %arg4: memref<128x4xf32, #tpu.memory_space<vmem>>) attributes {dimension_semantics = [#tpu.dimension_semantics<parallel>], iteration_bounds = array<i64: 1>, scalar_prefetch = 0 : i64, scratch_operands = 0 : i64, tpu.core_type = #tpu.core_type<tc>, window_params = [{transform_indices = @transform_0, window_bounds = array<i64: 128, 36>}, {pipeline_mode = #tpu.pipeline_mode<synchronous>, transform_indices = @transform_1, window_bounds = array<i64: 36, 4>}, {pipeline_mode = #tpu.pipeline_mode<synchronous>, transform_indices = @transform_2, window_bounds = array<i64: 1, 4>}, {transform_indices = @transform_3, window_bounds = array<i64: 128, 4>}]} {
    %c0 = arith.constant 0 : index
    %c0_0 = arith.constant 0 : index
    %0 = vector.load %arg1[%c0, %c0_0] : memref<128x36xbf16, #tpu.memory_space<vmem>>, vector<128x36xbf16>
    %c0_1 = arith.constant 0 : index
    %c0_2 = arith.constant 0 : index
    %1 = vector.load %arg2[%c0_1, %c0_2] : memref<36x4xbf16, #tpu.memory_space<vmem>>, vector<36x4xbf16>
    %cst = arith.constant dense<0.000000e+00> : vector<128x4xf32>
    %2 = tpu.matmul %0, %1, %cst {dimension_numbers = #tpu.dot_dimension_numbers<[1], [0], [0], [1], [0, 0, 1, 1], [], []>} : vector<128x36xbf16>, vector<36x4xbf16>, vector<128x4xf32> -> vector<128x4xf32>
    %c0_3 = arith.constant 0 : index
    %c0_4 = arith.constant 0 : index
    %3 = vector.load %arg3[%c0_3, %c0_4] : memref<1x4xf32, #tpu.memory_space<vmem>>, vector<1x4xf32>
    %4 = vector.broadcast %3 : vector<1x4xf32> to vector<128x4xf32>
    %5 = arith.addf %2, %4 : vector<128x4xf32>
    %c0_5 = arith.constant 0 : index
    %c0_6 = arith.constant 0 : index
    %6 = vector.load %arg4[%c0_5, %c0_6] : memref<128x4xf32, #tpu.memory_space<vmem>>, vector<128x4xf32>
    tpu.vector_store %arg4[%c0_5, %c0_6], %5 {strides = array<i32>} : memref<128x4xf32, #tpu.memory_space<vmem>>, vector<128x4xf32>,
    return
  }
  func.func @transform_0(%arg0: i32) -> (i32, i32) {
    %c0_i32 = arith.constant 0 : i32
    %c0_i32_0 = arith.constant 0 : i32
    return %arg0, %c0_i32 : i32, i32
  }
  func.func @transform_1(%arg0: i32) -> (i32, i32) {
    %c0_i32 = arith.constant 0 : i32
    %c0_i32_0 = arith.constant 0 : i32
    %c0_i32_1 = arith.constant 0 : i32
    return %c0_i32, %c0_i32_0 : i32, i32
  }
  func.func @transform_2(%arg0: i32) -> (i32, i32) {
    %c0_i32 = arith.constant 0 : i32
    %c0_i32_0 = arith.constant 0 : i32
    %c0_i32_1 = arith.constant 0 : i32
    return %c0_i32, %c0_i32_0 : i32, i32
  }
  func.func @transform_3(%arg0: i32) -> (i32, i32) {
    %c0_i32 = arith.constant 0 : i32
    %c0_i32_0 = arith.constant 0 : i32
    return %arg0, %c0_i32 : i32, i32
  }
}

module attributes {stable_mosaic.version = 11 : i64} {
  func.func @_direct_conv_kernel(%arg0: i32, %arg1: memref<1x10x10x4xf32, #tpu.memory_space<vmem>>, %arg2: memref<3x3x4x4xbf16, #tpu.memory_space<vmem>>, %arg3: memref<1x4xf32, #tpu.memory_space<vmem>>, %arg4: memref<1x8x8x4xf32, #tpu.memory_space<vmem>>) attributes {dimension_semantics = [#tpu.dimension_semantics<parallel>], iteration_bounds = array<i64: 2>, scalar_prefetch = 0 : i64, scratch_operands = 0 : i64, tpu.core_type = #tpu.core_type<tc>, window_params = [{transform_indices = @transform_0, window_bounds = array<i64: 1, 10, 10, 4>}, {pipeline_mode = #tpu.pipeline_mode<synchronous>, transform_indices = @transform_1, window_bounds = array<i64: 3, 3, 4, 4>}, {pipeline_mode = #tpu.pipeline_mode<synchronous>, transform_indices = @transform_2, window_bounds = array<i64: 1, 4>}, {transform_indices = @transform_3, window_bounds = array<i64: 1, 8, 8, 4>}]} {
    %cst = arith.constant 0.000000e+00 : f32
    %0 = vector.broadcast %cst : f32 to vector<64x4xf32>
    %c0 = arith.constant 0 : index
    %c0_0 = arith.constant 0 : index
    %c0_1 = arith.constant 0 : index
    %c0_2 = arith.constant 0 : index
    %1 = vector.load %arg1[%c0, %c0_0, %c0_1, %c0_2] : memref<1x10x10x4xf32, #tpu.memory_space<vmem>>, vector<1x8x8x4xf32>
    %2 = vector.shape_cast %1 : vector<1x8x8x4xf32> to vector<8x8x4xf32>
    %3 = vector.shape_cast %2 : vector<8x8x4xf32> to vector<64x4xf32>
    %4 = arith.truncf %3 : vector<64x4xf32> to vector<64x4xbf16>
    %c0_3 = arith.constant 0 : index
    %c0_4 = arith.constant 0 : index
    %c0_5 = arith.constant 0 : index
    %c0_6 = arith.constant 0 : index
    %5 = vector.load %arg2[%c0_3, %c0_4, %c0_5, %c0_6] : memref<3x3x4x4xbf16, #tpu.memory_space<vmem>>, vector<1x1x4x4xbf16>
    %6 = vector.shape_cast %5 : vector<1x1x4x4xbf16> to vector<4x4xbf16>
    %cst_7 = arith.constant dense<0.000000e+00> : vector<64x4xf32>
    %7 = tpu.matmul %4, %6, %cst_7 {dimension_numbers = #tpu.dot_dimension_numbers<[1], [0], [0], [1], [0, 0, 1, 1], [], []>} : vector<64x4xbf16>, vector<4x4xbf16>, vector<64x4xf32> -> vector<64x4xf32>
    %8 = arith.addf %0, %7 : vector<64x4xf32>
    %c0_8 = arith.constant 0 : index
    %c0_9 = arith.constant 0 : index
    %c1 = arith.constant 1 : index
    %c0_10 = arith.constant 0 : index
    %9 = vector.load %arg1[%c0_8, %c0_9, %c1, %c0_10] : memref<1x10x10x4xf32, #tpu.memory_space<vmem>>, vector<1x8x8x4xf32>
    %10 = vector.shape_cast %9 : vector<1x8x8x4xf32> to vector<8x8x4xf32>
    %11 = vector.shape_cast %10 : vector<8x8x4xf32> to vector<64x4xf32>
    %12 = arith.truncf %11 : vector<64x4xf32> to vector<64x4xbf16>
    %c0_11 = arith.constant 0 : index
    %c1_12 = arith.constant 1 : index
    %c0_13 = arith.constant 0 : index
    %c0_14 = arith.constant 0 : index
    %13 = vector.load %arg2[%c0_11, %c1_12, %c0_13, %c0_14] : memref<3x3x4x4xbf16, #tpu.memory_space<vmem>>, vector<1x1x4x4xbf16>
    %14 = vector.shape_cast %13 : vector<1x1x4x4xbf16> to vector<4x4xbf16>
    %cst_15 = arith.constant dense<0.000000e+00> : vector<64x4xf32>
    %15 = tpu.matmul %12, %14, %cst_15 {dimension_numbers = #tpu.dot_dimension_numbers<[1], [0], [0], [1], [0, 0, 1, 1], [], []>} : vector<64x4xbf16>, vector<4x4xbf16>, vector<64x4xf32> -> vector<64x4xf32>
    %16 = arith.addf %8, %15 : vector<64x4xf32>
    %c0_16 = arith.constant 0 : index
    %c0_17 = arith.constant 0 : index
    %c2 = arith.constant 2 : index
    %c0_18 = arith.constant 0 : index
    %17 = vector.load %arg1[%c0_16, %c0_17, %c2, %c0_18] : memref<1x10x10x4xf32, #tpu.memory_space<vmem>>, vector<1x8x8x4xf32>
    %18 = vector.shape_cast %17 : vector<1x8x8x4xf32> to vector<8x8x4xf32>
    %19 = vector.shape_cast %18 : vector<8x8x4xf32> to vector<64x4xf32>
    %20 = arith.truncf %19 : vector<64x4xf32> to vector<64x4xbf16>
    %c0_19 = arith.constant 0 : index
    %c2_20 = arith.constant 2 : index
    %c0_21 = arith.constant 0 : index
    %c0_22 = arith.constant 0 : index
    %21 = vector.load %arg2[%c0_19, %c2_20, %c0_21, %c0_22] : memref<3x3x4x4xbf16, #tpu.memory_space<vmem>>, vector<1x1x4x4xbf16>
    %22 = vector.shape_cast %21 : vector<1x1x4x4xbf16> to vector<4x4xbf16>
    %cst_23 = arith.constant dense<0.000000e+00> : vector<64x4xf32>
    %23 = tpu.matmul %20, %22, %cst_23 {dimension_numbers = #tpu.dot_dimension_numbers<[1], [0], [0], [1], [0, 0, 1, 1], [], []>} : vector<64x4xbf16>, vector<4x4xbf16>, vector<64x4xf32> -> vector<64x4xf32>
    %24 = arith.addf %16, %23 : vector<64x4xf32>
    %c0_24 = arith.constant 0 : index
    %c1_25 = arith.constant 1 : index
    %c0_26 = arith.constant 0 : index
    %c0_27 = arith.constant 0 : index
    %25 = vector.load %arg1[%c0_24, %c1_25, %c0_26, %c0_27] : memref<1x10x10x4xf32, #tpu.memory_space<vmem>>, vector<1x8x8x4xf32>
    %26 = vector.shape_cast %25 : vector<1x8x8x4xf32> to vector<8x8x4xf32>
    %27 = vector.shape_cast %26 : vector<8x8x4xf32> to vector<64x4xf32>
    %28 = arith.truncf %27 : vector<64x4xf32> to vector<64x4xbf16>
    %c1_28 = arith.constant 1 : index
    %c0_29 = arith.constant 0 : index
    %c0_30 = arith.constant 0 : index
    %c0_31 = arith.constant 0 : index
    %29 = vector.load %arg2[%c1_28, %c0_29, %c0_30, %c0_31] : memref<3x3x4x4xbf16, #tpu.memory_space<vmem>>, vector<1x1x4x4xbf16>
    %30 = vector.shape_cast %29 : vector<1x1x4x4xbf16> to vector<4x4xbf16>
    %cst_32 = arith.constant dense<0.000000e+00> : vector<64x4xf32>
    %31 = tpu.matmul %28, %30, %cst_32 {dimension_numbers = #tpu.dot_dimension_numbers<[1], [0], [0], [1], [0, 0, 1, 1], [], []>} : vector<64x4xbf16>, vector<4x4xbf16>, vector<64x4xf32> -> vector<64x4xf32>
    %32 = arith.addf %24, %31 : vector<64x4xf32>
    %c0_33 = arith.constant 0 : index
    %c1_34 = arith.constant 1 : index
    %c1_35 = arith.constant 1 : index
    %c0_36 = arith.constant 0 : index
    %33 = vector.load %arg1[%c0_33, %c1_34, %c1_35, %c0_36] : memref<1x10x10x4xf32, #tpu.memory_space<vmem>>, vector<1x8x8x4xf32>
    %34 = vector.shape_cast %33 : vector<1x8x8x4xf32> to vector<8x8x4xf32>
    %35 = vector.shape_cast %34 : vector<8x8x4xf32> to vector<64x4xf32>
    %36 = arith.truncf %35 : vector<64x4xf32> to vector<64x4xbf16>
    %c1_37 = arith.constant 1 : index
    %c1_38 = arith.constant 1 : index
    %c0_39 = arith.constant 0 : index
    %c0_40 = arith.constant 0 : index
    %37 = vector.load %arg2[%c1_37, %c1_38, %c0_39, %c0_40] : memref<3x3x4x4xbf16, #tpu.memory_space<vmem>>, vector<1x1x4x4xbf16>
    %38 = vector.shape_cast %37 : vector<1x1x4x4xbf16> to vector<4x4xbf16>
    %cst_41 = arith.constant dense<0.000000e+00> : vector<64x4xf32>
    %39 = tpu.matmul %36, %38, %cst_41 {dimension_numbers = #tpu.dot_dimension_numbers<[1], [0], [0], [1], [0, 0, 1, 1], [], []>} : vector<64x4xbf16>, vector<4x4xbf16>, vector<64x4xf32> -> vector<64x4xf32>
    %40 = arith.addf %32, %39 : vector<64x4xf32>
    %c0_42 = arith.constant 0 : index
    %c1_43 = arith.constant 1 : index
    %c2_44 = arith.constant 2 : index
    %c0_45 = arith.constant 0 : index
    %41 = vector.load %arg1[%c0_42, %c1_43, %c2_44, %c0_45] : memref<1x10x10x4xf32, #tpu.memory_space<vmem>>, vector<1x8x8x4xf32>
    %42 = vector.shape_cast %41 : vector<1x8x8x4xf32> to vector<8x8x4xf32>
    %43 = vector.shape_cast %42 : vector<8x8x4xf32> to vector<64x4xf32>
    %44 = arith.truncf %43 : vector<64x4xf32> to vector<64x4xbf16>
    %c1_46 = arith.constant 1 : index
    %c2_47 = arith.constant 2 : index
    %c0_48 = arith.constant 0 : index
    %c0_49 = arith.constant 0 : index
    %45 = vector.load %arg2[%c1_46, %c2_47, %c0_48, %c0_49] : memref<3x3x4x4xbf16, #tpu.memory_space<vmem>>, vector<1x1x4x4xbf16>
    %46 = vector.shape_cast %45 : vector<1x1x4x4xbf16> to vector<4x4xbf16>
    %cst_50 = arith.constant dense<0.000000e+00> : vector<64x4xf32>
    %47 = tpu.matmul %44, %46, %cst_50 {dimension_numbers = #tpu.dot_dimension_numbers<[1], [0], [0], [1], [0, 0, 1, 1], [], []>} : vector<64x4xbf16>, vector<4x4xbf16>, vector<64x4xf32> -> vector<64x4xf32>
    %48 = arith.addf %40, %47 : vector<64x4xf32>
    %c0_51 = arith.constant 0 : index
    %c2_52 = arith.constant 2 : index
    %c0_53 = arith.constant 0 : index
    %c0_54 = arith.constant 0 : index
    %49 = vector.load %arg1[%c0_51, %c2_52, %c0_53, %c0_54] : memref<1x10x10x4xf32, #tpu.memory_space<vmem>>, vector<1x8x8x4xf32>
    %50 = vector.shape_cast %49 : vector<1x8x8x4xf32> to vector<8x8x4xf32>
    %51 = vector.shape_cast %50 : vector<8x8x4xf32> to vector<64x4xf32>
    %52 = arith.truncf %51 : vector<64x4xf32> to vector<64x4xbf16>
    %c2_55 = arith.constant 2 : index
    %c0_56 = arith.constant 0 : index
    %c0_57 = arith.constant 0 : index
    %c0_58 = arith.constant 0 : index
    %53 = vector.load %arg2[%c2_55, %c0_56, %c0_57, %c0_58] : memref<3x3x4x4xbf16, #tpu.memory_space<vmem>>, vector<1x1x4x4xbf16>
    %54 = vector.shape_cast %53 : vector<1x1x4x4xbf16> to vector<4x4xbf16>
    %cst_59 = arith.constant dense<0.000000e+00> : vector<64x4xf32>
    %55 = tpu.matmul %52, %54, %cst_59 {dimension_numbers = #tpu.dot_dimension_numbers<[1], [0], [0], [1], [0, 0, 1, 1], [], []>} : vector<64x4xbf16>, vector<4x4xbf16>, vector<64x4xf32> -> vector<64x4xf32>
    %56 = arith.addf %48, %55 : vector<64x4xf32>
    %c0_60 = arith.constant 0 : index
    %c2_61 = arith.constant 2 : index
    %c1_62 = arith.constant 1 : index
    %c0_63 = arith.constant 0 : index
    %57 = vector.load %arg1[%c0_60, %c2_61, %c1_62, %c0_63] : memref<1x10x10x4xf32, #tpu.memory_space<vmem>>, vector<1x8x8x4xf32>
    %58 = vector.shape_cast %57 : vector<1x8x8x4xf32> to vector<8x8x4xf32>
    %59 = vector.shape_cast %58 : vector<8x8x4xf32> to vector<64x4xf32>
    %60 = arith.truncf %59 : vector<64x4xf32> to vector<64x4xbf16>
    %c2_64 = arith.constant 2 : index
    %c1_65 = arith.constant 1 : index
    %c0_66 = arith.constant 0 : index
    %c0_67 = arith.constant 0 : index
    %61 = vector.load %arg2[%c2_64, %c1_65, %c0_66, %c0_67] : memref<3x3x4x4xbf16, #tpu.memory_space<vmem>>, vector<1x1x4x4xbf16>
    %62 = vector.shape_cast %61 : vector<1x1x4x4xbf16> to vector<4x4xbf16>
    %cst_68 = arith.constant dense<0.000000e+00> : vector<64x4xf32>
    %63 = tpu.matmul %60, %62, %cst_68 {dimension_numbers = #tpu.dot_dimension_numbers<[1], [0], [0], [1], [0, 0, 1, 1], [], []>} : vector<64x4xbf16>, vector<4x4xbf16>, vector<64x4xf32> -> vector<64x4xf32>
    %64 = arith.addf %56, %63 : vector<64x4xf32>
    %c0_69 = arith.constant 0 : index
    %c2_70 = arith.constant 2 : index
    %c2_71 = arith.constant 2 : index
    %c0_72 = arith.constant 0 : index
    %65 = vector.load %arg1[%c0_69, %c2_70, %c2_71, %c0_72] : memref<1x10x10x4xf32, #tpu.memory_space<vmem>>, vector<1x8x8x4xf32>
    %66 = vector.shape_cast %65 : vector<1x8x8x4xf32> to vector<8x8x4xf32>
    %67 = vector.shape_cast %66 : vector<8x8x4xf32> to vector<64x4xf32>
    %68 = arith.truncf %67 : vector<64x4xf32> to vector<64x4xbf16>
    %c2_73 = arith.constant 2 : index
    %c2_74 = arith.constant 2 : index
    %c0_75 = arith.constant 0 : index
    %c0_76 = arith.constant 0 : index
    %69 = vector.load %arg2[%c2_73, %c2_74, %c0_75, %c0_76] : memref<3x3x4x4xbf16, #tpu.memory_space<vmem>>, vector<1x1x4x4xbf16>
    %70 = vector.shape_cast %69 : vector<1x1x4x4xbf16> to vector<4x4xbf16>
    %cst_77 = arith.constant dense<0.000000e+00> : vector<64x4xf32>
    %71 = tpu.matmul %68, %70, %cst_77 {dimension_numbers = #tpu.dot_dimension_numbers<[1], [0], [0], [1], [0, 0, 1, 1], [], []>} : vector<64x4xbf16>, vector<4x4xbf16>, vector<64x4xf32> -> vector<64x4xf32>
    %72 = arith.addf %64, %71 : vector<64x4xf32>
    %c0_78 = arith.constant 0 : index
    %c0_79 = arith.constant 0 : index
    %73 = vector.load %arg3[%c0_78, %c0_79] : memref<1x4xf32, #tpu.memory_space<vmem>>, vector<1x4xf32>
    %74 = vector.broadcast %73 : vector<1x4xf32> to vector<64x4xf32>
    %75 = arith.addf %72, %74 : vector<64x4xf32>
    %cst_80 = arith.constant 0.000000e+00 : f32
    %76 = vector.broadcast %cst_80 : f32 to vector<64x4xf32>
    %77 = arith.maximumf %75, %76 : vector<64x4xf32>
    %78 = vector.shape_cast %77 : vector<64x4xf32> to vector<8x8x4xf32>
    %c0_81 = arith.constant 0 : index
    %c0_82 = arith.constant 0 : index
    %c0_83 = arith.constant 0 : index
    %c0_84 = arith.constant 0 : index
    %79 = vector.load %arg4[%c0_81, %c0_82, %c0_83, %c0_84] : memref<1x8x8x4xf32, #tpu.memory_space<vmem>>, vector<1x8x8x4xf32>
    %80 = vector.shape_cast %79 : vector<1x8x8x4xf32> to vector<8x8x4xf32>
    %81 = vector.shape_cast %78 : vector<8x8x4xf32> to vector<1x8x8x4xf32>
    tpu.vector_store %arg4[%c0_81, %c0_82, %c0_83, %c0_84], %81 {strides = array<i32>} : memref<1x8x8x4xf32, #tpu.memory_space<vmem>>, vector<1x8x8x4xf32>,
    return
  }
  func.func @transform_0(%arg0: i32) -> (i32, i32, i32, i32) {
    %c0_i32 = arith.constant 0 : i32
    %c0_i32_0 = arith.constant 0 : i32
    %c0_i32_1 = arith.constant 0 : i32
    %c0_i32_2 = arith.constant 0 : i32
    return %arg0, %c0_i32, %c0_i32_0, %c0_i32_1 : i32, i32, i32, i32
  }
  func.func @transform_1(%arg0: i32) -> (i32, i32, i32, i32) {
    %c0_i32 = arith.constant 0 : i32
    %c0_i32_0 = arith.constant 0 : i32
    %c0_i32_1 = arith.constant 0 : i32
    %c0_i32_2 = arith.constant 0 : i32
    %c0_i32_3 = arith.constant 0 : i32
    return %c0_i32, %c0_i32_0, %c0_i32_1, %c0_i32_2 : i32, i32, i32, i32
  }
  func.func @transform_2(%arg0: i32) -> (i32, i32) {
    %c0_i32 = arith.constant 0 : i32
    %c0_i32_0 = arith.constant 0 : i32
    %c0_i32_1 = arith.constant 0 : i32
    return %c0_i32, %c0_i32_0 : i32, i32
  }
  func.func @transform_3(%arg0: i32) -> (i32, i32, i32, i32) {
    %c0_i32 = arith.constant 0 : i32
    %c0_i32_0 = arith.constant 0 : i32
    %c0_i32_1 = arith.constant 0 : i32
    %c0_i32_2 = arith.constant 0 : i32
    return %arg0, %c0_i32, %c0_i32_0, %c0_i32_1 : i32, i32, i32, i32
  }
}

module attributes {stable_mosaic.version = 11 : i64} {
  func.func @_direct_conv_kernel(%arg0: i32, %arg1: memref<1x10x10x4xf32, #tpu.memory_space<vmem>>, %arg2: memref<3x3x4x4xbf16, #tpu.memory_space<vmem>>, %arg3: memref<1x4xf32, #tpu.memory_space<vmem>>, %arg4: memref<1x8x8x4xf32, #tpu.memory_space<vmem>>, %arg5: memref<1x8x8x4xf32, #tpu.memory_space<vmem>>) attributes {dimension_semantics = [#tpu.dimension_semantics<parallel>], iteration_bounds = array<i64: 2>, scalar_prefetch = 0 : i64, scratch_operands = 0 : i64, tpu.core_type = #tpu.core_type<tc>, window_params = [{transform_indices = @transform_0, window_bounds = array<i64: 1, 10, 10, 4>}, {pipeline_mode = #tpu.pipeline_mode<synchronous>, transform_indices = @transform_1, window_bounds = array<i64: 3, 3, 4, 4>}, {pipeline_mode = #tpu.pipeline_mode<synchronous>, transform_indices = @transform_2, window_bounds = array<i64: 1, 4>}, {transform_indices = @transform_3, window_bounds = array<i64: 1, 8, 8, 4>}, {transform_indices = @transform_4, window_bounds = array<i64: 1, 8, 8, 4>}]} {
    %cst = arith.constant 0.000000e+00 : f32
    %0 = vector.broadcast %cst : f32 to vector<64x4xf32>
    %c0 = arith.constant 0 : index
    %c0_0 = arith.constant 0 : index
    %c0_1 = arith.constant 0 : index
    %c0_2 = arith.constant 0 : index
    %1 = vector.load %arg1[%c0, %c0_0, %c0_1, %c0_2] : memref<1x10x10x4xf32, #tpu.memory_space<vmem>>, vector<1x8x8x4xf32>
    %2 = vector.shape_cast %1 : vector<1x8x8x4xf32> to vector<8x8x4xf32>
    %3 = vector.shape_cast %2 : vector<8x8x4xf32> to vector<64x4xf32>
    %4 = arith.truncf %3 : vector<64x4xf32> to vector<64x4xbf16>
    %c0_3 = arith.constant 0 : index
    %c0_4 = arith.constant 0 : index
    %c0_5 = arith.constant 0 : index
    %c0_6 = arith.constant 0 : index
    %5 = vector.load %arg2[%c0_3, %c0_4, %c0_5, %c0_6] : memref<3x3x4x4xbf16, #tpu.memory_space<vmem>>, vector<1x1x4x4xbf16>
    %6 = vector.shape_cast %5 : vector<1x1x4x4xbf16> to vector<4x4xbf16>
    %cst_7 = arith.constant dense<0.000000e+00> : vector<64x4xf32>
    %7 = tpu.matmul %4, %6, %cst_7 {dimension_numbers = #tpu.dot_dimension_numbers<[1], [0], [0], [1], [0, 0, 1, 1], [], []>} : vector<64x4xbf16>, vector<4x4xbf16>, vector<64x4xf32> -> vector<64x4xf32>
    %8 = arith.addf %0, %7 : vector<64x4xf32>
    %c0_8 = arith.constant 0 : index
    %c0_9 = arith.constant 0 : index
    %c1 = arith.constant 1 : index
    %c0_10 = arith.constant 0 : index
    %9 = vector.load %arg1[%c0_8, %c0_9, %c1, %c0_10] : memref<1x10x10x4xf32, #tpu.memory_space<vmem>>, vector<1x8x8x4xf32>
    %10 = vector.shape_cast %9 : vector<1x8x8x4xf32> to vector<8x8x4xf32>
    %11 = vector.shape_cast %10 : vector<8x8x4xf32> to vector<64x4xf32>
    %12 = arith.truncf %11 : vector<64x4xf32> to vector<64x4xbf16>
    %c0_11 = arith.constant 0 : index
    %c1_12 = arith.constant 1 : index
    %c0_13 = arith.constant 0 : index
    %c0_14 = arith.constant 0 : index
    %13 = vector.load %arg2[%c0_11, %c1_12, %c0_13, %c0_14] : memref<3x3x4x4xbf16, #tpu.memory_space<vmem>>, vector<1x1x4x4xbf16>
    %14 = vector.shape_cast %13 : vector<1x1x4x4xbf16> to vector<4x4xbf16>
    %cst_15 = arith.constant dense<0.000000e+00> : vector<64x4xf32>
    %15 = tpu.matmul %12, %14, %cst_15 {dimension_numbers = #tpu.dot_dimension_numbers<[1], [0], [0], [1], [0, 0, 1, 1], [], []>} : vector<64x4xbf16>, vector<4x4xbf16>, vector<64x4xf32> -> vector<64x4xf32>
    %16 = arith.addf %8, %15 : vector<64x4xf32>
    %c0_16 = arith.constant 0 : index
    %c0_17 = arith.constant 0 : index
    %c2 = arith.constant 2 : index
    %c0_18 = arith.constant 0 : index
    %17 = vector.load %arg1[%c0_16, %c0_17, %c2, %c0_18] : memref<1x10x10x4xf32, #tpu.memory_space<vmem>>, vector<1x8x8x4xf32>
    %18 = vector.shape_cast %17 : vector<1x8x8x4xf32> to vector<8x8x4xf32>
    %19 = vector.shape_cast %18 : vector<8x8x4xf32> to vector<64x4xf32>
    %20 = arith.truncf %19 : vector<64x4xf32> to vector<64x4xbf16>
    %c0_19 = arith.constant 0 : index
    %c2_20 = arith.constant 2 : index
    %c0_21 = arith.constant 0 : index
    %c0_22 = arith.constant 0 : index
    %21 = vector.load %arg2[%c0_19, %c2_20, %c0_21, %c0_22] : memref<3x3x4x4xbf16, #tpu.memory_space<vmem>>, vector<1x1x4x4xbf16>
    %22 = vector.shape_cast %21 : vector<1x1x4x4xbf16> to vector<4x4xbf16>
    %cst_23 = arith.constant dense<0.000000e+00> : vector<64x4xf32>
    %23 = tpu.matmul %20, %22, %cst_23 {dimension_numbers = #tpu.dot_dimension_numbers<[1], [0], [0], [1], [0, 0, 1, 1], [], []>} : vector<64x4xbf16>, vector<4x4xbf16>, vector<64x4xf32> -> vector<64x4xf32>
    %24 = arith.addf %16, %23 : vector<64x4xf32>
    %c0_24 = arith.constant 0 : index
    %c1_25 = arith.constant 1 : index
    %c0_26 = arith.constant 0 : index
    %c0_27 = arith.constant 0 : index
    %25 = vector.load %arg1[%c0_24, %c1_25, %c0_26, %c0_27] : memref<1x10x10x4xf32, #tpu.memory_space<vmem>>, vector<1x8x8x4xf32>
    %26 = vector.shape_cast %25 : vector<1x8x8x4xf32> to vector<8x8x4xf32>
    %27 = vector.shape_cast %26 : vector<8x8x4xf32> to vector<64x4xf32>
    %28 = arith.truncf %27 : vector<64x4xf32> to vector<64x4xbf16>
    %c1_28 = arith.constant 1 : index
    %c0_29 = arith.constant 0 : index
    %c0_30 = arith.constant 0 : index
    %c0_31 = arith.constant 0 : index
    %29 = vector.load %arg2[%c1_28, %c0_29, %c0_30, %c0_31] : memref<3x3x4x4xbf16, #tpu.memory_space<vmem>>, vector<1x1x4x4xbf16>
    %30 = vector.shape_cast %29 : vector<1x1x4x4xbf16> to vector<4x4xbf16>
    %cst_32 = arith.constant dense<0.000000e+00> : vector<64x4xf32>
    %31 = tpu.matmul %28, %30, %cst_32 {dimension_numbers = #tpu.dot_dimension_numbers<[1], [0], [0], [1], [0, 0, 1, 1], [], []>} : vector<64x4xbf16>, vector<4x4xbf16>, vector<64x4xf32> -> vector<64x4xf32>
    %32 = arith.addf %24, %31 : vector<64x4xf32>
    %c0_33 = arith.constant 0 : index
    %c1_34 = arith.constant 1 : index
    %c1_35 = arith.constant 1 : index
    %c0_36 = arith.constant 0 : index
    %33 = vector.load %arg1[%c0_33, %c1_34, %c1_35, %c0_36] : memref<1x10x10x4xf32, #tpu.memory_space<vmem>>, vector<1x8x8x4xf32>
    %34 = vector.shape_cast %33 : vector<1x8x8x4xf32> to vector<8x8x4xf32>
    %35 = vector.shape_cast %34 : vector<8x8x4xf32> to vector<64x4xf32>
    %36 = arith.truncf %35 : vector<64x4xf32> to vector<64x4xbf16>
    %c1_37 = arith.constant 1 : index
    %c1_38 = arith.constant 1 : index
    %c0_39 = arith.constant 0 : index
    %c0_40 = arith.constant 0 : index
    %37 = vector.load %arg2[%c1_37, %c1_38, %c0_39, %c0_40] : memref<3x3x4x4xbf16, #tpu.memory_space<vmem>>, vector<1x1x4x4xbf16>
    %38 = vector.shape_cast %37 : vector<1x1x4x4xbf16> to vector<4x4xbf16>
    %cst_41 = arith.constant dense<0.000000e+00> : vector<64x4xf32>
    %39 = tpu.matmul %36, %38, %cst_41 {dimension_numbers = #tpu.dot_dimension_numbers<[1], [0], [0], [1], [0, 0, 1, 1], [], []>} : vector<64x4xbf16>, vector<4x4xbf16>, vector<64x4xf32> -> vector<64x4xf32>
    %40 = arith.addf %32, %39 : vector<64x4xf32>
    %c0_42 = arith.constant 0 : index
    %c1_43 = arith.constant 1 : index
    %c2_44 = arith.constant 2 : index
    %c0_45 = arith.constant 0 : index
    %41 = vector.load %arg1[%c0_42, %c1_43, %c2_44, %c0_45] : memref<1x10x10x4xf32, #tpu.memory_space<vmem>>, vector<1x8x8x4xf32>
    %42 = vector.shape_cast %41 : vector<1x8x8x4xf32> to vector<8x8x4xf32>
    %43 = vector.shape_cast %42 : vector<8x8x4xf32> to vector<64x4xf32>
    %44 = arith.truncf %43 : vector<64x4xf32> to vector<64x4xbf16>
    %c1_46 = arith.constant 1 : index
    %c2_47 = arith.constant 2 : index
    %c0_48 = arith.constant 0 : index
    %c0_49 = arith.constant 0 : index
    %45 = vector.load %arg2[%c1_46, %c2_47, %c0_48, %c0_49] : memref<3x3x4x4xbf16, #tpu.memory_space<vmem>>, vector<1x1x4x4xbf16>
    %46 = vector.shape_cast %45 : vector<1x1x4x4xbf16> to vector<4x4xbf16>
    %cst_50 = arith.constant dense<0.000000e+00> : vector<64x4xf32>
    %47 = tpu.matmul %44, %46, %cst_50 {dimension_numbers = #tpu.dot_dimension_numbers<[1], [0], [0], [1], [0, 0, 1, 1], [], []>} : vector<64x4xbf16>, vector<4x4xbf16>, vector<64x4xf32> -> vector<64x4xf32>
    %48 = arith.addf %40, %47 : vector<64x4xf32>
    %c0_51 = arith.constant 0 : index
    %c2_52 = arith.constant 2 : index
    %c0_53 = arith.constant 0 : index
    %c0_54 = arith.constant 0 : index
    %49 = vector.load %arg1[%c0_51, %c2_52, %c0_53, %c0_54] : memref<1x10x10x4xf32, #tpu.memory_space<vmem>>, vector<1x8x8x4xf32>
    %50 = vector.shape_cast %49 : vector<1x8x8x4xf32> to vector<8x8x4xf32>
    %51 = vector.shape_cast %50 : vector<8x8x4xf32> to vector<64x4xf32>
    %52 = arith.truncf %51 : vector<64x4xf32> to vector<64x4xbf16>
    %c2_55 = arith.constant 2 : index
    %c0_56 = arith.constant 0 : index
    %c0_57 = arith.constant 0 : index
    %c0_58 = arith.constant 0 : index
    %53 = vector.load %arg2[%c2_55, %c0_56, %c0_57, %c0_58] : memref<3x3x4x4xbf16, #tpu.memory_space<vmem>>, vector<1x1x4x4xbf16>
    %54 = vector.shape_cast %53 : vector<1x1x4x4xbf16> to vector<4x4xbf16>
    %cst_59 = arith.constant dense<0.000000e+00> : vector<64x4xf32>
    %55 = tpu.matmul %52, %54, %cst_59 {dimension_numbers = #tpu.dot_dimension_numbers<[1], [0], [0], [1], [0, 0, 1, 1], [], []>} : vector<64x4xbf16>, vector<4x4xbf16>, vector<64x4xf32> -> vector<64x4xf32>
    %56 = arith.addf %48, %55 : vector<64x4xf32>
    %c0_60 = arith.constant 0 : index
    %c2_61 = arith.constant 2 : index
    %c1_62 = arith.constant 1 : index
    %c0_63 = arith.constant 0 : index
    %57 = vector.load %arg1[%c0_60, %c2_61, %c1_62, %c0_63] : memref<1x10x10x4xf32, #tpu.memory_space<vmem>>, vector<1x8x8x4xf32>
    %58 = vector.shape_cast %57 : vector<1x8x8x4xf32> to vector<8x8x4xf32>
    %59 = vector.shape_cast %58 : vector<8x8x4xf32> to vector<64x4xf32>
    %60 = arith.truncf %59 : vector<64x4xf32> to vector<64x4xbf16>
    %c2_64 = arith.constant 2 : index
    %c1_65 = arith.constant 1 : index
    %c0_66 = arith.constant 0 : index
    %c0_67 = arith.constant 0 : index
    %61 = vector.load %arg2[%c2_64, %c1_65, %c0_66, %c0_67] : memref<3x3x4x4xbf16, #tpu.memory_space<vmem>>, vector<1x1x4x4xbf16>
    %62 = vector.shape_cast %61 : vector<1x1x4x4xbf16> to vector<4x4xbf16>
    %cst_68 = arith.constant dense<0.000000e+00> : vector<64x4xf32>
    %63 = tpu.matmul %60, %62, %cst_68 {dimension_numbers = #tpu.dot_dimension_numbers<[1], [0], [0], [1], [0, 0, 1, 1], [], []>} : vector<64x4xbf16>, vector<4x4xbf16>, vector<64x4xf32> -> vector<64x4xf32>
    %64 = arith.addf %56, %63 : vector<64x4xf32>
    %c0_69 = arith.constant 0 : index
    %c2_70 = arith.constant 2 : index
    %c2_71 = arith.constant 2 : index
    %c0_72 = arith.constant 0 : index
    %65 = vector.load %arg1[%c0_69, %c2_70, %c2_71, %c0_72] : memref<1x10x10x4xf32, #tpu.memory_space<vmem>>, vector<1x8x8x4xf32>
    %66 = vector.shape_cast %65 : vector<1x8x8x4xf32> to vector<8x8x4xf32>
    %67 = vector.shape_cast %66 : vector<8x8x4xf32> to vector<64x4xf32>
    %68 = arith.truncf %67 : vector<64x4xf32> to vector<64x4xbf16>
    %c2_73 = arith.constant 2 : index
    %c2_74 = arith.constant 2 : index
    %c0_75 = arith.constant 0 : index
    %c0_76 = arith.constant 0 : index
    %69 = vector.load %arg2[%c2_73, %c2_74, %c0_75, %c0_76] : memref<3x3x4x4xbf16, #tpu.memory_space<vmem>>, vector<1x1x4x4xbf16>
    %70 = vector.shape_cast %69 : vector<1x1x4x4xbf16> to vector<4x4xbf16>
    %cst_77 = arith.constant dense<0.000000e+00> : vector<64x4xf32>
    %71 = tpu.matmul %68, %70, %cst_77 {dimension_numbers = #tpu.dot_dimension_numbers<[1], [0], [0], [1], [0, 0, 1, 1], [], []>} : vector<64x4xbf16>, vector<4x4xbf16>, vector<64x4xf32> -> vector<64x4xf32>
    %72 = arith.addf %64, %71 : vector<64x4xf32>
    %c0_78 = arith.constant 0 : index
    %c0_79 = arith.constant 0 : index
    %73 = vector.load %arg3[%c0_78, %c0_79] : memref<1x4xf32, #tpu.memory_space<vmem>>, vector<1x4xf32>
    %74 = vector.broadcast %73 : vector<1x4xf32> to vector<64x4xf32>
    %75 = arith.addf %72, %74 : vector<64x4xf32>
    %c0_80 = arith.constant 0 : index
    %c0_81 = arith.constant 0 : index
    %c0_82 = arith.constant 0 : index
    %c0_83 = arith.constant 0 : index
    %76 = vector.load %arg4[%c0_80, %c0_81, %c0_82, %c0_83] : memref<1x8x8x4xf32, #tpu.memory_space<vmem>>, vector<1x8x8x4xf32>
    %77 = vector.shape_cast %76 : vector<1x8x8x4xf32> to vector<8x8x4xf32>
    %78 = vector.shape_cast %77 : vector<8x8x4xf32> to vector<64x4xf32>
    %79 = arith.addf %75, %78 : vector<64x4xf32>
    %80 = vector.shape_cast %79 : vector<64x4xf32> to vector<8x8x4xf32>
    %c0_84 = arith.constant 0 : index
    %c0_85 = arith.constant 0 : index
    %c0_86 = arith.constant 0 : index
    %c0_87 = arith.constant 0 : index
    %81 = vector.load %arg5[%c0_84, %c0_85, %c0_86, %c0_87] : memref<1x8x8x4xf32, #tpu.memory_space<vmem>>, vector<1x8x8x4xf32>
    %82 = vector.shape_cast %81 : vector<1x8x8x4xf32> to vector<8x8x4xf32>
    %83 = vector.shape_cast %80 : vector<8x8x4xf32> to vector<1x8x8x4xf32>
    tpu.vector_store %arg5[%c0_84, %c0_85, %c0_86, %c0_87], %83 {strides = array<i32>} : memref<1x8x8x4xf32, #tpu.memory_space<vmem>>, vector<1x8x8x4xf32>,
    return
  }
  func.func @transform_0(%arg0: i32) -> (i32, i32, i32, i32) {
    %c0_i32 = arith.constant 0 : i32
    %c0_i32_0 = arith.constant 0 : i32
    %c0_i32_1 = arith.constant 0 : i32
    %c0_i32_2 = arith.constant 0 : i32
    return %arg0, %c0_i32, %c0_i32_0, %c0_i32_1 : i32, i32, i32, i32
  }
  func.func @transform_1(%arg0: i32) -> (i32, i32, i32, i32) {
    %c0_i32 = arith.constant 0 : i32
    %c0_i32_0 = arith.constant 0 : i32
    %c0_i32_1 = arith.constant 0 : i32
    %c0_i32_2 = arith.constant 0 : i32
    %c0_i32_3 = arith.constant 0 : i32
    return %c0_i32, %c0_i32_0, %c0_i32_1, %c0_i32_2 : i32, i32, i32, i32
  }
  func.func @transform_2(%arg0: i32) -> (i32, i32) {
    %c0_i32 = arith.constant 0 : i32
    %c0_i32_0 = arith.constant 0 : i32
    %c0_i32_1 = arith.constant 0 : i32
    return %c0_i32, %c0_i32_0 : i32, i32
  }
  func.func @transform_3(%arg0: i32) -> (i32, i32, i32, i32) {
    %c0_i32 = arith.constant 0 : i32
    %c0_i32_0 = arith.constant 0 : i32
    %c0_i32_1 = arith.constant 0 : i32
    %c0_i32_2 = arith.constant 0 : i32
    return %arg0, %c0_i32, %c0_i32_0, %c0_i32_1 : i32, i32, i32, i32
  }
  func.func @transform_4(%arg0: i32) -> (i32, i32, i32, i32) {
    %c0_i32 = arith.constant 0 : i32
    %c0_i32_0 = arith.constant 0 : i32
    %c0_i32_1 = arith.constant 0 : i32
    %c0_i32_2 = arith.constant 0 : i32
    return %arg0, %c0_i32, %c0_i32_0, %c0_i32_1 : i32, i32, i32, i32
  }
}

module attributes {stable_mosaic.version = 11 : i64} {
  func.func @_direct_conv_kernel(%arg0: i32, %arg1: memref<1x18x18x4xf32, #tpu.memory_space<vmem>>, %arg2: memref<3x3x4x4xbf16, #tpu.memory_space<vmem>>, %arg3: memref<1x4xf32, #tpu.memory_space<vmem>>, %arg4: memref<1x16x16x4xf32, #tpu.memory_space<vmem>>) attributes {dimension_semantics = [#tpu.dimension_semantics<parallel>], iteration_bounds = array<i64: 2>, scalar_prefetch = 0 : i64, scratch_operands = 0 : i64, tpu.core_type = #tpu.core_type<tc>, window_params = [{transform_indices = @transform_0, window_bounds = array<i64: 1, 18, 18, 4>}, {pipeline_mode = #tpu.pipeline_mode<synchronous>, transform_indices = @transform_1, window_bounds = array<i64: 3, 3, 4, 4>}, {pipeline_mode = #tpu.pipeline_mode<synchronous>, transform_indices = @transform_2, window_bounds = array<i64: 1, 4>}, {transform_indices = @transform_3, window_bounds = array<i64: 1, 16, 16, 4>}]} {
    %cst = arith.constant 0.000000e+00 : f32
    %0 = vector.broadcast %cst : f32 to vector<256x4xf32>
    %c0 = arith.constant 0 : index
    %c0_0 = arith.constant 0 : index
    %c0_1 = arith.constant 0 : index
    %c0_2 = arith.constant 0 : index
    %1 = vector.load %arg1[%c0, %c0_0, %c0_1, %c0_2] : memref<1x18x18x4xf32, #tpu.memory_space<vmem>>, vector<1x16x16x4xf32>
    %2 = vector.shape_cast %1 : vector<1x16x16x4xf32> to vector<16x16x4xf32>
    %3 = vector.shape_cast %2 : vector<16x16x4xf32> to vector<256x4xf32>
    %4 = arith.truncf %3 : vector<256x4xf32> to vector<256x4xbf16>
    %c0_3 = arith.constant 0 : index
    %c0_4 = arith.constant 0 : index
    %c0_5 = arith.constant 0 : index
    %c0_6 = arith.constant 0 : index
    %5 = vector.load %arg2[%c0_3, %c0_4, %c0_5, %c0_6] : memref<3x3x4x4xbf16, #tpu.memory_space<vmem>>, vector<1x1x4x4xbf16>
    %6 = vector.shape_cast %5 : vector<1x1x4x4xbf16> to vector<4x4xbf16>
    %cst_7 = arith.constant dense<0.000000e+00> : vector<256x4xf32>
    %7 = tpu.matmul %4, %6, %cst_7 {dimension_numbers = #tpu.dot_dimension_numbers<[1], [0], [0], [1], [0, 0, 1, 1], [], []>} : vector<256x4xbf16>, vector<4x4xbf16>, vector<256x4xf32> -> vector<256x4xf32>
    %8 = arith.addf %0, %7 : vector<256x4xf32>
    %c0_8 = arith.constant 0 : index
    %c0_9 = arith.constant 0 : index
    %c1 = arith.constant 1 : index
    %c0_10 = arith.constant 0 : index
    %9 = vector.load %arg1[%c0_8, %c0_9, %c1, %c0_10] : memref<1x18x18x4xf32, #tpu.memory_space<vmem>>, vector<1x16x16x4xf32>
    %10 = vector.shape_cast %9 : vector<1x16x16x4xf32> to vector<16x16x4xf32>
    %11 = vector.shape_cast %10 : vector<16x16x4xf32> to vector<256x4xf32>
    %12 = arith.truncf %11 : vector<256x4xf32> to vector<256x4xbf16>
    %c0_11 = arith.constant 0 : index
    %c1_12 = arith.constant 1 : index
    %c0_13 = arith.constant 0 : index
    %c0_14 = arith.constant 0 : index
    %13 = vector.load %arg2[%c0_11, %c1_12, %c0_13, %c0_14] : memref<3x3x4x4xbf16, #tpu.memory_space<vmem>>, vector<1x1x4x4xbf16>
    %14 = vector.shape_cast %13 : vector<1x1x4x4xbf16> to vector<4x4xbf16>
    %cst_15 = arith.constant dense<0.000000e+00> : vector<256x4xf32>
    %15 = tpu.matmul %12, %14, %cst_15 {dimension_numbers = #tpu.dot_dimension_numbers<[1], [0], [0], [1], [0, 0, 1, 1], [], []>} : vector<256x4xbf16>, vector<4x4xbf16>, vector<256x4xf32> -> vector<256x4xf32>
    %16 = arith.addf %8, %15 : vector<256x4xf32>
    %c0_16 = arith.constant 0 : index
    %c0_17 = arith.constant 0 : index
    %c2 = arith.constant 2 : index
    %c0_18 = arith.constant 0 : index
    %17 = vector.load %arg1[%c0_16, %c0_17, %c2, %c0_18] : memref<1x18x18x4xf32, #tpu.memory_space<vmem>>, vector<1x16x16x4xf32>
    %18 = vector.shape_cast %17 : vector<1x16x16x4xf32> to vector<16x16x4xf32>
    %19 = vector.shape_cast %18 : vector<16x16x4xf32> to vector<256x4xf32>
    %20 = arith.truncf %19 : vector<256x4xf32> to vector<256x4xbf16>
    %c0_19 = arith.constant 0 : index
    %c2_20 = arith.constant 2 : index
    %c0_21 = arith.constant 0 : index
    %c0_22 = arith.constant 0 : index
    %21 = vector.load %arg2[%c0_19, %c2_20, %c0_21, %c0_22] : memref<3x3x4x4xbf16, #tpu.memory_space<vmem>>, vector<1x1x4x4xbf16>
    %22 = vector.shape_cast %21 : vector<1x1x4x4xbf16> to vector<4x4xbf16>
    %cst_23 = arith.constant dense<0.000000e+00> : vector<256x4xf32>
    %23 = tpu.matmul %20, %22, %cst_23 {dimension_numbers = #tpu.dot_dimension_numbers<[1], [0], [0], [1], [0, 0, 1, 1], [], []>} : vector<256x4xbf16>, vector<4x4xbf16>, vector<256x4xf32> -> vector<256x4xf32>
    %24 = arith.addf %16, %23 : vector<256x4xf32>
    %c0_24 = arith.constant 0 : index
    %c1_25 = arith.constant 1 : index
    %c0_26 = arith.constant 0 : index
    %c0_27 = arith.constant 0 : index
    %25 = vector.load %arg1[%c0_24, %c1_25, %c0_26, %c0_27] : memref<1x18x18x4xf32, #tpu.memory_space<vmem>>, vector<1x16x16x4xf32>
    %26 = vector.shape_cast %25 : vector<1x16x16x4xf32> to vector<16x16x4xf32>
    %27 = vector.shape_cast %26 : vector<16x16x4xf32> to vector<256x4xf32>
    %28 = arith.truncf %27 : vector<256x4xf32> to vector<256x4xbf16>
    %c1_28 = arith.constant 1 : index
    %c0_29 = arith.constant 0 : index
    %c0_30 = arith.constant 0 : index
    %c0_31 = arith.constant 0 : index
    %29 = vector.load %arg2[%c1_28, %c0_29, %c0_30, %c0_31] : memref<3x3x4x4xbf16, #tpu.memory_space<vmem>>, vector<1x1x4x4xbf16>
    %30 = vector.shape_cast %29 : vector<1x1x4x4xbf16> to vector<4x4xbf16>
    %cst_32 = arith.constant dense<0.000000e+00> : vector<256x4xf32>
    %31 = tpu.matmul %28, %30, %cst_32 {dimension_numbers = #tpu.dot_dimension_numbers<[1], [0], [0], [1], [0, 0, 1, 1], [], []>} : vector<256x4xbf16>, vector<4x4xbf16>, vector<256x4xf32> -> vector<256x4xf32>
    %32 = arith.addf %24, %31 : vector<256x4xf32>
    %c0_33 = arith.constant 0 : index
    %c1_34 = arith.constant 1 : index
    %c1_35 = arith.constant 1 : index
    %c0_36 = arith.constant 0 : index
    %33 = vector.load %arg1[%c0_33, %c1_34, %c1_35, %c0_36] : memref<1x18x18x4xf32, #tpu.memory_space<vmem>>, vector<1x16x16x4xf32>
    %34 = vector.shape_cast %33 : vector<1x16x16x4xf32> to vector<16x16x4xf32>
    %35 = vector.shape_cast %34 : vector<16x16x4xf32> to vector<256x4xf32>
    %36 = arith.truncf %35 : vector<256x4xf32> to vector<256x4xbf16>
    %c1_37 = arith.constant 1 : index
    %c1_38 = arith.constant 1 : index
    %c0_39 = arith.constant 0 : index
    %c0_40 = arith.constant 0 : index
    %37 = vector.load %arg2[%c1_37, %c1_38, %c0_39, %c0_40] : memref<3x3x4x4xbf16, #tpu.memory_space<vmem>>, vector<1x1x4x4xbf16>
    %38 = vector.shape_cast %37 : vector<1x1x4x4xbf16> to vector<4x4xbf16>
    %cst_41 = arith.constant dense<0.000000e+00> : vector<256x4xf32>
    %39 = tpu.matmul %36, %38, %cst_41 {dimension_numbers = #tpu.dot_dimension_numbers<[1], [0], [0], [1], [0, 0, 1, 1], [], []>} : vector<256x4xbf16>, vector<4x4xbf16>, vector<256x4xf32> -> vector<256x4xf32>
    %40 = arith.addf %32, %39 : vector<256x4xf32>
    %c0_42 = arith.constant 0 : index
    %c1_43 = arith.constant 1 : index
    %c2_44 = arith.constant 2 : index
    %c0_45 = arith.constant 0 : index
    %41 = vector.load %arg1[%c0_42, %c1_43, %c2_44, %c0_45] : memref<1x18x18x4xf32, #tpu.memory_space<vmem>>, vector<1x16x16x4xf32>
    %42 = vector.shape_cast %41 : vector<1x16x16x4xf32> to vector<16x16x4xf32>
    %43 = vector.shape_cast %42 : vector<16x16x4xf32> to vector<256x4xf32>
    %44 = arith.truncf %43 : vector<256x4xf32> to vector<256x4xbf16>
    %c1_46 = arith.constant 1 : index
    %c2_47 = arith.constant 2 : index
    %c0_48 = arith.constant 0 : index
    %c0_49 = arith.constant 0 : index
    %45 = vector.load %arg2[%c1_46, %c2_47, %c0_48, %c0_49] : memref<3x3x4x4xbf16, #tpu.memory_space<vmem>>, vector<1x1x4x4xbf16>
    %46 = vector.shape_cast %45 : vector<1x1x4x4xbf16> to vector<4x4xbf16>
    %cst_50 = arith.constant dense<0.000000e+00> : vector<256x4xf32>
    %47 = tpu.matmul %44, %46, %cst_50 {dimension_numbers = #tpu.dot_dimension_numbers<[1], [0], [0], [1], [0, 0, 1, 1], [], []>} : vector<256x4xbf16>, vector<4x4xbf16>, vector<256x4xf32> -> vector<256x4xf32>
    %48 = arith.addf %40, %47 : vector<256x4xf32>
    %c0_51 = arith.constant 0 : index
    %c2_52 = arith.constant 2 : index
    %c0_53 = arith.constant 0 : index
    %c0_54 = arith.constant 0 : index
    %49 = vector.load %arg1[%c0_51, %c2_52, %c0_53, %c0_54] : memref<1x18x18x4xf32, #tpu.memory_space<vmem>>, vector<1x16x16x4xf32>
    %50 = vector.shape_cast %49 : vector<1x16x16x4xf32> to vector<16x16x4xf32>
    %51 = vector.shape_cast %50 : vector<16x16x4xf32> to vector<256x4xf32>
    %52 = arith.truncf %51 : vector<256x4xf32> to vector<256x4xbf16>
    %c2_55 = arith.constant 2 : index
    %c0_56 = arith.constant 0 : index
    %c0_57 = arith.constant 0 : index
    %c0_58 = arith.constant 0 : index
    %53 = vector.load %arg2[%c2_55, %c0_56, %c0_57, %c0_58] : memref<3x3x4x4xbf16, #tpu.memory_space<vmem>>, vector<1x1x4x4xbf16>
    %54 = vector.shape_cast %53 : vector<1x1x4x4xbf16> to vector<4x4xbf16>
    %cst_59 = arith.constant dense<0.000000e+00> : vector<256x4xf32>
    %55 = tpu.matmul %52, %54, %cst_59 {dimension_numbers = #tpu.dot_dimension_numbers<[1], [0], [0], [1], [0, 0, 1, 1], [], []>} : vector<256x4xbf16>, vector<4x4xbf16>, vector<256x4xf32> -> vector<256x4xf32>
    %56 = arith.addf %48, %55 : vector<256x4xf32>
    %c0_60 = arith.constant 0 : index
    %c2_61 = arith.constant 2 : index
    %c1_62 = arith.constant 1 : index
    %c0_63 = arith.constant 0 : index
    %57 = vector.load %arg1[%c0_60, %c2_61, %c1_62, %c0_63] : memref<1x18x18x4xf32, #tpu.memory_space<vmem>>, vector<1x16x16x4xf32>
    %58 = vector.shape_cast %57 : vector<1x16x16x4xf32> to vector<16x16x4xf32>
    %59 = vector.shape_cast %58 : vector<16x16x4xf32> to vector<256x4xf32>
    %60 = arith.truncf %59 : vector<256x4xf32> to vector<256x4xbf16>
    %c2_64 = arith.constant 2 : index
    %c1_65 = arith.constant 1 : index
    %c0_66 = arith.constant 0 : index
    %c0_67 = arith.constant 0 : index
    %61 = vector.load %arg2[%c2_64, %c1_65, %c0_66, %c0_67] : memref<3x3x4x4xbf16, #tpu.memory_space<vmem>>, vector<1x1x4x4xbf16>
    %62 = vector.shape_cast %61 : vector<1x1x4x4xbf16> to vector<4x4xbf16>
    %cst_68 = arith.constant dense<0.000000e+00> : vector<256x4xf32>
    %63 = tpu.matmul %60, %62, %cst_68 {dimension_numbers = #tpu.dot_dimension_numbers<[1], [0], [0], [1], [0, 0, 1, 1], [], []>} : vector<256x4xbf16>, vector<4x4xbf16>, vector<256x4xf32> -> vector<256x4xf32>
    %64 = arith.addf %56, %63 : vector<256x4xf32>
    %c0_69 = arith.constant 0 : index
    %c2_70 = arith.constant 2 : index
    %c2_71 = arith.constant 2 : index
    %c0_72 = arith.constant 0 : index
    %65 = vector.load %arg1[%c0_69, %c2_70, %c2_71, %c0_72] : memref<1x18x18x4xf32, #tpu.memory_space<vmem>>, vector<1x16x16x4xf32>
    %66 = vector.shape_cast %65 : vector<1x16x16x4xf32> to vector<16x16x4xf32>
    %67 = vector.shape_cast %66 : vector<16x16x4xf32> to vector<256x4xf32>
    %68 = arith.truncf %67 : vector<256x4xf32> to vector<256x4xbf16>
    %c2_73 = arith.constant 2 : index
    %c2_74 = arith.constant 2 : index
    %c0_75 = arith.constant 0 : index
    %c0_76 = arith.constant 0 : index
    %69 = vector.load %arg2[%c2_73, %c2_74, %c0_75, %c0_76] : memref<3x3x4x4xbf16, #tpu.memory_space<vmem>>, vector<1x1x4x4xbf16>
    %70 = vector.shape_cast %69 : vector<1x1x4x4xbf16> to vector<4x4xbf16>
    %cst_77 = arith.constant dense<0.000000e+00> : vector<256x4xf32>
    %71 = tpu.matmul %68, %70, %cst_77 {dimension_numbers = #tpu.dot_dimension_numbers<[1], [0], [0], [1], [0, 0, 1, 1], [], []>} : vector<256x4xbf16>, vector<4x4xbf16>, vector<256x4xf32> -> vector<256x4xf32>
    %72 = arith.addf %64, %71 : vector<256x4xf32>
    %c0_78 = arith.constant 0 : index
    %c0_79 = arith.constant 0 : index
    %73 = vector.load %arg3[%c0_78, %c0_79] : memref<1x4xf32, #tpu.memory_space<vmem>>, vector<1x4xf32>
    %74 = vector.broadcast %73 : vector<1x4xf32> to vector<256x4xf32>
    %75 = arith.addf %72, %74 : vector<256x4xf32>
    %76 = vector.shape_cast %75 : vector<256x4xf32> to vector<16x16x4xf32>
    %c0_80 = arith.constant 0 : index
    %c0_81 = arith.constant 0 : index
    %c0_82 = arith.constant 0 : index
    %c0_83 = arith.constant 0 : index
    %77 = vector.load %arg4[%c0_80, %c0_81, %c0_82, %c0_83] : memref<1x16x16x4xf32, #tpu.memory_space<vmem>>, vector<1x16x16x4xf32>
    %78 = vector.shape_cast %77 : vector<1x16x16x4xf32> to vector<16x16x4xf32>
    %79 = vector.shape_cast %76 : vector<16x16x4xf32> to vector<1x16x16x4xf32>
    tpu.vector_store %arg4[%c0_80, %c0_81, %c0_82, %c0_83], %79 {strides = array<i32>} : memref<1x16x16x4xf32, #tpu.memory_space<vmem>>, vector<1x16x16x4xf32>,
    return
  }
  func.func @transform_0(%arg0: i32) -> (i32, i32, i32, i32) {
    %c0_i32 = arith.constant 0 : i32
    %c0_i32_0 = arith.constant 0 : i32
    %c0_i32_1 = arith.constant 0 : i32
    %c0_i32_2 = arith.constant 0 : i32
    return %arg0, %c0_i32, %c0_i32_0, %c0_i32_1 : i32, i32, i32, i32
  }
  func.func @transform_1(%arg0: i32) -> (i32, i32, i32, i32) {
    %c0_i32 = arith.constant 0 : i32
    %c0_i32_0 = arith.constant 0 : i32
    %c0_i32_1 = arith.constant 0 : i32
    %c0_i32_2 = arith.constant 0 : i32
    %c0_i32_3 = arith.constant 0 : i32
    return %c0_i32, %c0_i32_0, %c0_i32_1, %c0_i32_2 : i32, i32, i32, i32
  }
  func.func @transform_2(%arg0: i32) -> (i32, i32) {
    %c0_i32 = arith.constant 0 : i32
    %c0_i32_0 = arith.constant 0 : i32
    %c0_i32_1 = arith.constant 0 : i32
    return %c0_i32, %c0_i32_0 : i32, i32
  }
  func.func @transform_3(%arg0: i32) -> (i32, i32, i32, i32) {
    %c0_i32 = arith.constant 0 : i32
    %c0_i32_0 = arith.constant 0 : i32
    %c0_i32_1 = arith.constant 0 : i32
    %c0_i32_2 = arith.constant 0 : i32
    return %arg0, %c0_i32, %c0_i32_0, %c0_i32_1 : i32, i32, i32, i32
  }
}

module attributes {stable_mosaic.version = 11 : i64} {
  func.func @_direct_conv_kernel(%arg0: i32, %arg1: memref<1x16x16x4xf32, #tpu.memory_space<vmem>>, %arg2: memref<1x1x4x4xbf16, #tpu.memory_space<vmem>>, %arg3: memref<1x4xf32, #tpu.memory_space<vmem>>, %arg4: memref<1x16x16x4xf32, #tpu.memory_space<vmem>>, %arg5: memref<1x16x16x4xf32, #tpu.memory_space<vmem>>, %arg6: memref<1x16x16x4xf32, #tpu.memory_space<vmem>>) attributes {dimension_semantics = [#tpu.dimension_semantics<parallel>], iteration_bounds = array<i64: 2>, scalar_prefetch = 0 : i64, scratch_operands = 0 : i64, tpu.core_type = #tpu.core_type<tc>, window_params = [{transform_indices = @transform_0, window_bounds = array<i64: 1, 16, 16, 4>}, {pipeline_mode = #tpu.pipeline_mode<synchronous>, transform_indices = @transform_1, window_bounds = array<i64: 1, 1, 4, 4>}, {pipeline_mode = #tpu.pipeline_mode<synchronous>, transform_indices = @transform_2, window_bounds = array<i64: 1, 4>}, {transform_indices = @transform_3, window_bounds = array<i64: 1, 16, 16, 4>}, {transform_indices = @transform_4, window_bounds = array<i64: 1, 16, 16, 4>}, {transform_indices = @transform_5, window_bounds = array<i64: 1, 16, 16, 4>}]} {
    %cst = arith.constant 0.000000e+00 : f32
    %0 = vector.broadcast %cst : f32 to vector<256x4xf32>
    %c0 = arith.constant 0 : index
    %c0_0 = arith.constant 0 : index
    %c0_1 = arith.constant 0 : index
    %c0_2 = arith.constant 0 : index
    %1 = vector.load %arg1[%c0, %c0_0, %c0_1, %c0_2] : memref<1x16x16x4xf32, #tpu.memory_space<vmem>>, vector<1x16x16x4xf32>
    %2 = vector.shape_cast %1 : vector<1x16x16x4xf32> to vector<16x16x4xf32>
    %3 = vector.shape_cast %2 : vector<16x16x4xf32> to vector<256x4xf32>
    %4 = arith.truncf %3 : vector<256x4xf32> to vector<256x4xbf16>
    %c0_3 = arith.constant 0 : index
    %c0_4 = arith.constant 0 : index
    %c0_5 = arith.constant 0 : index
    %c0_6 = arith.constant 0 : index
    %5 = vector.load %arg2[%c0_3, %c0_4, %c0_5, %c0_6] : memref<1x1x4x4xbf16, #tpu.memory_space<vmem>>, vector<1x1x4x4xbf16>
    %6 = vector.shape_cast %5 : vector<1x1x4x4xbf16> to vector<4x4xbf16>
    %cst_7 = arith.constant dense<0.000000e+00> : vector<256x4xf32>
    %7 = tpu.matmul %4, %6, %cst_7 {dimension_numbers = #tpu.dot_dimension_numbers<[1], [0], [0], [1], [0, 0, 1, 1], [], []>} : vector<256x4xbf16>, vector<4x4xbf16>, vector<256x4xf32> -> vector<256x4xf32>
    %8 = arith.addf %0, %7 : vector<256x4xf32>
    %c0_8 = arith.constant 0 : index
    %c0_9 = arith.constant 0 : index
    %9 = vector.load %arg3[%c0_8, %c0_9] : memref<1x4xf32, #tpu.memory_space<vmem>>, vector<1x4xf32>
    %10 = vector.broadcast %9 : vector<1x4xf32> to vector<256x4xf32>
    %11 = arith.addf %8, %10 : vector<256x4xf32>
    %c0_10 = arith.constant 0 : index
    %c0_11 = arith.constant 0 : index
    %c0_12 = arith.constant 0 : index
    %c0_13 = arith.constant 0 : index
    %12 = vector.load %arg4[%c0_10, %c0_11, %c0_12, %c0_13] : memref<1x16x16x4xf32, #tpu.memory_space<vmem>>, vector<1x16x16x4xf32>
    %13 = vector.shape_cast %12 : vector<1x16x16x4xf32> to vector<16x16x4xf32>
    %14 = vector.shape_cast %13 : vector<16x16x4xf32> to vector<256x4xf32>
    %c0_14 = arith.constant 0 : index
    %c0_15 = arith.constant 0 : index
    %c0_16 = arith.constant 0 : index
    %c0_17 = arith.constant 0 : index
    %15 = vector.load %arg5[%c0_14, %c0_15, %c0_16, %c0_17] : memref<1x16x16x4xf32, #tpu.memory_space<vmem>>, vector<1x16x16x4xf32>
    %16 = vector.shape_cast %15 : vector<1x16x16x4xf32> to vector<16x16x4xf32>
    %17 = vector.shape_cast %16 : vector<16x16x4xf32> to vector<256x4xf32>
    %18 = arith.negf %11 : vector<256x4xf32>
    %19 = math.exp %18 : vector<256x4xf32>
    %cst_18 = arith.constant 1.000000e+00 : f32
    %20 = vector.broadcast %cst_18 : f32 to vector<256x4xf32>
    %21 = arith.addf %20, %19 : vector<256x4xf32>
    %22 = arith.divf %20, %21 : vector<256x4xf32>
    %23 = arith.mulf %22, %14 : vector<256x4xf32>
    %24 = arith.addf %23, %17 : vector<256x4xf32>
    %25 = vector.shape_cast %24 : vector<256x4xf32> to vector<16x16x4xf32>
    %c0_19 = arith.constant 0 : index
    %c0_20 = arith.constant 0 : index
    %c0_21 = arith.constant 0 : index
    %c0_22 = arith.constant 0 : index
    %26 = vector.load %arg6[%c0_19, %c0_20, %c0_21, %c0_22] : memref<1x16x16x4xf32, #tpu.memory_space<vmem>>, vector<1x16x16x4xf32>
    %27 = vector.shape_cast %26 : vector<1x16x16x4xf32> to vector<16x16x4xf32>
    %28 = vector.shape_cast %25 : vector<16x16x4xf32> to vector<1x16x16x4xf32>
    tpu.vector_store %arg6[%c0_19, %c0_20, %c0_21, %c0_22], %28 {strides = array<i32>} : memref<1x16x16x4xf32, #tpu.memory_space<vmem>>, vector<1x16x16x4xf32>,
    return
  }
  func.func @transform_0(%arg0: i32) -> (i32, i32, i32, i32) {
    %c0_i32 = arith.constant 0 : i32
    %c0_i32_0 = arith.constant 0 : i32
    %c0_i32_1 = arith.constant 0 : i32
    %c0_i32_2 = arith.constant 0 : i32
    return %arg0, %c0_i32, %c0_i32_0, %c0_i32_1 : i32, i32, i32, i32
  }
  func.func @transform_1(%arg0: i32) -> (i32, i32, i32, i32) {
    %c0_i32 = arith.constant 0 : i32
    %c0_i32_0 = arith.constant 0 : i32
    %c0_i32_1 = arith.constant 0 : i32
    %c0_i32_2 = arith.constant 0 : i32
    %c0_i32_3 = arith.constant 0 : i32
    return %c0_i32, %c0_i32_0, %c0_i32_1, %c0_i32_2 : i32, i32, i32, i32
  }
  func.func @transform_2(%arg0: i32) -> (i32, i32) {
    %c0_i32 = arith.constant 0 : i32
    %c0_i32_0 = arith.constant 0 : i32
    %c0_i32_1 = arith.constant 0 : i32
    return %c0_i32, %c0_i32_0 : i32, i32
  }
  func.func @transform_3(%arg0: i32) -> (i32, i32, i32, i32) {
    %c0_i32 = arith.constant 0 : i32
    %c0_i32_0 = arith.constant 0 : i32
    %c0_i32_1 = arith.constant 0 : i32
    %c0_i32_2 = arith.constant 0 : i32
    return %arg0, %c0_i32, %c0_i32_0, %c0_i32_1 : i32, i32, i32, i32
  }
  func.func @transform_4(%arg0: i32) -> (i32, i32, i32, i32) {
    %c0_i32 = arith.constant 0 : i32
    %c0_i32_0 = arith.constant 0 : i32
    %c0_i32_1 = arith.constant 0 : i32
    %c0_i32_2 = arith.constant 0 : i32
    return %arg0, %c0_i32, %c0_i32_0, %c0_i32_1 : i32, i32, i32, i32
  }
  func.func @transform_5(%arg0: i32) -> (i32, i32, i32, i32) {
    %c0_i32 = arith.constant 0 : i32
    %c0_i32_0 = arith.constant 0 : i32
    %c0_i32_1 = arith.constant 0 : i32
    %c0_i32_2 = arith.constant 0 : i32
    return %arg0, %c0_i32, %c0_i32_0, %c0_i32_1 : i32, i32, i32, i32
  }
}

</mosaic_0001>

<bundles_post_ra>
// kernel: nl_res_group.37
= control target key start
LH: loop header
LB: loop body
LE: loop exit
PB: predicated region body
PF: predicated region fallthrough
CT: control target
= control target key end

     0   :  { %s651_s12 = smov 0   ;;  %s831_s0 = inlined_call_operand.vmem [shape: f32[2,16,16,4], index: 0, kind: input, shape index: {}]   ;;  %s832_s1 = inlined_call_operand.vmem [shape: bf16[1,1,4,2], index: 1, kind: input, shape index: {}]   ;;  %s833_s2 = inlined_call_operand.vmem [shape: f32[1,2], index: 2, kind: input, shape index: {}]   ;;  %s834_s3 = inlined_call_operand.vmem [shape: f32[2,16,16,2], index: 3, kind: output, shape index: {}]  }
   0x1 LB: > { %s530_s13 = sadd.s32 4294967295, %s629_s12   ;;  %p534_p0 = scmp.ge.s32.totalorder %s629_s12, 1  ;;  %s629_s12 = sphi %s651_s12, %s13_s12  }
   0x2   : > { %p137_p1 = scmp.lt.s32.totalorder %s629_s12, 3 }
   0x4   : > { %p138_p2 = pnand %p534_p0, %p137_p1 }
   0x5   : > { %v220_v0 = vld [vmem:[%s832_s1] sm:$0x3] (!%p138_p2)  ;;  %vm277_vm0 = vcmask (!%p138_p2), 1041408   ;;  %p161_p3 = scmp.lt.s32.totalorder (!%p138_p2), %s530_s13, 1  ;;  %vm228_vm1 = vcmask (!%p138_p2), 31744   ;;  %vm442_vm2 = vcmask (!%p138_p2), 15360  }
   0x6   : > { %141 = sbr.rel (%p138_p2) target bundleno = 263 (0x107), region = 32  ;;  %613 = vmatprep.subr.msk.bf16.mxu0 (!%p138_p2), %vm277_vm0, %v220_v0  ;;  %614 = vmatprep.subr.msk.bf16.mxu1 (!%p138_p2), %vm277_vm0, %v220_v0  ;;  %v279_v1 = vsel (!%p138_p2), %vm277_vm0, %v220_v0, 0  ;;  %v723_v50 = vld [vmem:[%s833_s2] ss:$0 sm:$0xff] (!%p138_p2) }
   0x7   : > { %578 = vmatpush3.bf16.msra.mxu0 (!%p138_p2), %v279_v1  ;;  %612 = vmatpush3.bf16.msra.mxu1 (!%p138_p2), %v279_v1 }
   0xd   : > { %s836_s13 = smov (!%p161_p3, %s530_s13), 1 }
   0xe   : > { %s558_s16 = sshll.u32 %s836_s13, 8 }
   0xf   : > { %s670_s19 = scalar_lea.vmem %s831_s0, %s558_s16  ;;  %s730_s24 = scalar_lea.vmem %s834_s3, %s558_s16 }
  0x10   : > { %v172_v2 = vld [vmem:[%s670_s19] sm:$0xff]  ;;  %v173_v3 = vld [vmem:[%s670_s19 + $0x8] sm:$0xff]  ;;  %v174_v7 = vld [vmem:[%s670_s19 + $0x10] sm:$0xff] }
  0x11   : > { %v188_v4 = vld [vmem:[%s670_s19 + $0x80] sm:$0xff]  ;;  %v204_v5 = vpack.c.bf16 %v173_v3, %v172_v2  ;;  %v189_v6 = vld [vmem:[%s670_s19 + $0x88] sm:$0xff]  ;;  %v175_v8 = vld [vmem:[%s670_s19 + $0x18] sm:$0xff] }
  0x12   : > { %v212_v9 = vpack.c.bf16 %v189_v6, %v188_v4  ;;  %v205_v10 = vpack.c.bf16 %v175_v8, %v174_v7  ;;  %v190_v11 = vld [vmem:[%s670_s19 + $0x90] sm:$0xff]  ;;  %v191_v12 = vld [vmem:[%s670_s19 + $0x98] sm:$0xff]  ;;  %v176_v13 = vld [vmem:[%s670_s19 + $0x20] sm:$0xff] }
  0x13   : > { %579 = vmatprep.mubr.msk.bf16.mxu0 %vm228_vm1, %v204_v5  ;;  %v213_v14 = vpack.c.bf16 %v191_v12, %v190_v11  ;;  %v177_v15 = vld [vmem:[%s670_s19 + $0x28] sm:$0xff]  ;;  %v192_v16 = vld [vmem:[%s670_s19 + $0xa0] sm:$0xff]  ;;  %v178_v20 = vld [vmem:[%s670_s19 + $0x30] sm:$0xff] }
  0x14   : > { %v193_v17 = vld [vmem:[%s670_s19 + $0xa8] sm:$0xff]  ;;  %595 = vmatprep.mubr.msk.bf16.mxu1 %vm228_vm1, %v212_v9  ;;  %580 = vmatmul.mubr.msk.bf16.vlgmr.msra.gmra.mrb[0].mxu0 %vm228_vm1, %v205_v10  ;;  %v206_v18 = vpack.c.bf16 %v177_v15, %v176_v13  ;;  %v179_v21 = vld [vmem:[%s670_s19 + $0x38] sm:$0xff]  ;;  %v194_v22 = vld [vmem:[%s670_s19 + $0xb0] sm:$0xff] }
  0x15   : > { %v214_v19 = vpack.c.bf16 %v193_v17, %v192_v16  ;;  %596 = vmatmul.mubr.msk.bf16.vlgmr.msra.gmra.mrb[0].mxu1 %vm228_vm1, %v213_v14  ;;  %v195_v23 = vld [vmem:[%s670_s19 + $0xb8] sm:$0xff]  ;;  %v180_v24 = vld [vmem:[%s670_s19 + $0x40] sm:$0xff]  ;;  %v181_v25 = vld [vmem:[%s670_s19 + $0x48] sm:$0xff]  ;;  %v207_v28 = vpack.c.bf16 %v179_v21, %v178_v20 }
  0x16   : > { %583 = vmatprep.mubr.msk.bf16.mxu0 %vm228_vm1, %v206_v18  ;;  %v196_v26 = vld [vmem:[%s670_s19 + $0xc0] sm:$0xff]  ;;  %v197_v27 = vld [vmem:[%s670_s19 + $0xc8] sm:$0xff]  ;;  %v215_v29 = vpack.c.bf16 %v195_v23, %v194_v22  ;;  %v208_v30 = vpack.c.bf16 %v181_v25, %v180_v24  ;;  %v182_v32 = vld [vmem:[%s670_s19 + $0x50] sm:$0xff] }
  0x17   : > { %599 = vmatprep.mubr.msk.bf16.mxu1 %vm228_vm1, %v214_v19  ;;  %v216_v31 = vpack.c.bf16 %v197_v27, %v196_v26  ;;  %v183_v33 = vld [vmem:[%s670_s19 + $0x58] sm:$0xff]  ;;  %v198_v34 = vld [vmem:[%s670_s19 + $0xd0] sm:$0xff]  ;;  %v184_v36 = vld [vmem:[%s670_s19 + $0x60] sm:$0xff] }
  0x18   : > { %v199_v35 = vld [vmem:[%s670_s19 + $0xd8] sm:$0xff]  ;;  %v185_v37 = vld [vmem:[%s670_s19 + $0x68] sm:$0xff]  ;;  %v200_v38 = vld [vmem:[%s670_s19 + $0xe0] sm:$0xff]  ;;  %v209_v40 = vpack.c.bf16 %v183_v33, %v182_v32 }
  0x19   : > { %v201_v39 = vld [vmem:[%s670_s19 + $0xe8] sm:$0xff]  ;;  %v217_v41 = vpack.c.bf16 %v199_v35, %v198_v34  ;;  %v210_v42 = vpack.c.bf16 %v185_v37, %v184_v36  ;;  %v186_v44 = vld [vmem:[%s670_s19 + $0x70] sm:$0xff]  ;;  %v187_v45 = vld [vmem:[%s670_s19 + $0x78] sm:$0xff] }
  0x1a   : > { %v218_v43 = vpack.c.bf16 %v201_v39, %v200_v38  ;;  %v202_v46 = vld [vmem:[%s670_s19 + $0xf0] sm:$0xff]  ;;  %v203_v47 = vld [vmem:[%s670_s19 + $0xf8] sm:$0xff]  ;;  %v211_v48 = vpack.c.bf16 %v187_v45, %v186_v44 }
  0x1b   : > { %v219_v49 = vpack.c.bf16 %v203_v47, %v202_v46 }
  0x1c   : > { %584 = vmatmul.mubr.msk.bf16.gmra.mrb[4].mxu0 %vm228_vm1, %v207_v28 }
  0x1d   : > { %600 = vmatmul.mubr.msk.bf16.gmra.mrb[4].mxu1 %vm228_vm1, %v215_v29  ;;  %587 = vmatprep.mubr.msk.bf16.mxu0 %vm228_vm1, %v208_v30 }
  0x1e   : > { %603 = vmatprep.mubr.msk.bf16.mxu1 %vm228_vm1, %v216_v31 }
  0x24   : > { %588 = vmatmul.mubr.msk.bf16.gmra.mrb[8].mxu0 %vm228_vm1, %v209_v40 }
  0x25   : > { %604 = vmatmul.mubr.msk.bf16.gmra.mrb[8].mxu1 %vm228_vm1, %v217_v41  ;;  %591 = vmatprep.mubr.msk.bf16.mxu0 %vm228_vm1, %v210_v42 }
  0x26   : > { %607 = vmatprep.mubr.msk.bf16.mxu1 %vm228_vm1, %v218_v43 }
  0x2c   : > { %592 = vmatmul.mubr.msk.bf16.gmra.mrb[12].mxu0 %vm228_vm1, %v211_v48 }
  0x2d   : > { %608 = vmatmul.mubr.msk.bf16.gmra.mrb[12].mxu1 %vm228_vm1, %v219_v49 }
  0xe7   : > { %v581_v51 = vpop.f32.mrb[0].mxu0 }
  0xe8   : > { %v324_v52 = vadd.f32 %v581_v51, %v723_v50  ;;  %v597_v53 = vpop.f32.mrb[0].mxu1  ;;  %v315_v54 = vpop.f32.mrb[1].mxu0 }
  0xe9   : > { %v388_v55 = vadd.f32 %v597_v53, %v723_v50  ;;  %v316_v56 = vadd.f32 %v723_v50, %v315_v54  ;;  %v379_v57 = vpop.f32.mrb[1].mxu1  ;;  %v582_v58 = vpop.f32.mrb[2].mxu0 }
  0xea   : > { %445 = vst.msk [vmem:[%s730_s24 + $0x10] sm:$0xff] %vm442_vm2, %v324_v52  ;;  %v380_v59 = vadd.f32 %v723_v50, %v379_v57  ;;  %v327_v60 = vadd.f32 %v582_v58, %v723_v50  ;;  %v598_v61 = vpop.f32.mrb[2].mxu1  ;;  %v318_v62 = vpop.f32.mrb[3].mxu0 }
  0xeb   : > { %461 = vst.msk [vmem:[%s730_s24 + $0x90] sm:$0xff] %vm442_vm2, %v388_v55  ;;  %443 = vst.msk [vmem:[%s730_s24] sm:$0xff] %vm442_vm2, %v316_v56  ;;  %v391_v63 = vadd.f32 %v598_v61, %v723_v50  ;;  %v319_v0 = vadd.f32 %v723_v50, %v318_v62  ;;  %v382_v1 = vpop.f32.mrb[3].mxu1 }
  0xec   : > { %459 = vst.msk [vmem:[%s730_s24 + $0x80] sm:$0xff] %vm442_vm2, %v380_v59  ;;  %446 = vst.msk [vmem:[%s730_s24 + $0x18] sm:$0xff] %vm442_vm2, %v327_v60  ;;  %v383_v2 = vadd.f32 %v723_v50, %v382_v1 }
  0xed   : > { %462 = vst.msk [vmem:[%s730_s24 + $0x98] sm:$0xff] %vm442_vm2, %v391_v63  ;;  %444 = vst.msk [vmem:[%s730_s24 + $0x8] sm:$0xff] %vm442_vm2, %v319_v0 }
  0xee   : > { %460 = vst.msk [vmem:[%s730_s24 + $0x88] sm:$0xff] %vm442_vm2, %v383_v2 }
  0xef   : > { %v585_v3 = vpop.f32.mrb[4].mxu0 }
  0xf0   : > { %v340_v4 = vadd.f32 %v585_v3, %v723_v50  ;;  %v601_v5 = vpop.f32.mrb[4].mxu1  ;;  %v331_v6 = vpop.f32.mrb[5].mxu0 }
  0xf1   : > { %v404_v7 = vadd.f32 %v601_v5, %v723_v50  ;;  %v332_v8 = vadd.f32 %v723_v50, %v331_v6  ;;  %v395_v9 = vpop.f32.mrb[5].mxu1  ;;  %v586_v10 = vpop.f32.mrb[6].mxu0 }
  0xf2   : > { %449 = vst.msk [vmem:[%s730_s24 + $0x30] sm:$0xff] %vm442_vm2, %v340_v4  ;;  %v396_v11 = vadd.f32 %v723_v50, %v395_v9  ;;  %v343_v12 = vadd.f32 %v586_v10, %v723_v50  ;;  %v602_v13 = vpop.f32.mrb[6].mxu1  ;;  %v334_v14 = vpop.f32.mrb[7].mxu0 }
  0xf3   : > { %465 = vst.msk [vmem:[%s730_s24 + $0xb0] sm:$0xff] %vm442_vm2, %v404_v7  ;;  %447 = vst.msk [vmem:[%s730_s24 + $0x20] sm:$0xff] %vm442_vm2, %v332_v8  ;;  %v407_v15 = vadd.f32 %v602_v13, %v723_v50  ;;  %v335_v16 = vadd.f32 %v723_v50, %v334_v14  ;;  %v398_v17 = vpop.f32.mrb[7].mxu1 }
  0xf4   : > { %463 = vst.msk [vmem:[%s730_s24 + $0xa0] sm:$0xff] %vm442_vm2, %v396_v11  ;;  %450 = vst.msk [vmem:[%s730_s24 + $0x38] sm:$0xff] %vm442_vm2, %v343_v12  ;;  %v399_v18 = vadd.f32 %v723_v50, %v398_v17 }
  0xf5   : > { %466 = vst.msk [vmem:[%s730_s24 + $0xb8] sm:$0xff] %vm442_vm2, %v407_v15  ;;  %448 = vst.msk [vmem:[%s730_s24 + $0x28] sm:$0xff] %vm442_vm2, %v335_v16 }
  0xf6   : > { %464 = vst.msk [vmem:[%s730_s24 + $0xa8] sm:$0xff] %vm442_vm2, %v399_v18 }
  0xf7   : > { %v589_v19 = vpop.f32.mrb[8].mxu0 }
  0xf8   : > { %v356_v20 = vadd.f32 %v589_v19, %v723_v50  ;;  %v605_v21 = vpop.f32.mrb[8].mxu1  ;;  %v347_v22 = vpop.f32.mrb[9].mxu0 }
  0xf9   : > { %v420_v23 = vadd.f32 %v605_v21, %v723_v50  ;;  %v348_v24 = vadd.f32 %v723_v50, %v347_v22  ;;  %v411_v25 = vpop.f32.mrb[9].mxu1  ;;  %v590_v26 = vpop.f32.mrb[10].mxu0 }
  0xfa   : > { %453 = vst.msk [vmem:[%s730_s24 + $0x50] sm:$0xff] %vm442_vm2, %v356_v20  ;;  %v412_v27 = vadd.f32 %v723_v50, %v411_v25  ;;  %v359_v28 = vadd.f32 %v590_v26, %v723_v50  ;;  %v606_v29 = vpop.f32.mrb[10].mxu1  ;;  %v350_v30 = vpop.f32.mrb[11].mxu0 }
  0xfb   : > { %469 = vst.msk [vmem:[%s730_s24 + $0xd0] sm:$0xff] %vm442_vm2, %v420_v23  ;;  %451 = vst.msk [vmem:[%s730_s24 + $0x40] sm:$0xff] %vm442_vm2, %v348_v24  ;;  %v423_v31 = vadd.f32 %v606_v29, %v723_v50  ;;  %v351_v32 = vadd.f32 %v723_v50, %v350_v30  ;;  %v414_v33 = vpop.f32.mrb[11].mxu1 }
  0xfc   : > { %467 = vst.msk [vmem:[%s730_s24 + $0xc0] sm:$0xff] %vm442_vm2, %v412_v27  ;;  %454 = vst.msk [vmem:[%s730_s24 + $0x58] sm:$0xff] %vm442_vm2, %v359_v28  ;;  %v415_v34 = vadd.f32 %v723_v50, %v414_v33 }
  0xfd   : > { %470 = vst.msk [vmem:[%s730_s24 + $0xd8] sm:$0xff] %vm442_vm2, %v423_v31  ;;  %452 = vst.msk [vmem:[%s730_s24 + $0x48] sm:$0xff] %vm442_vm2, %v351_v32 }
  0xfe   : > { %468 = vst.msk [vmem:[%s730_s24 + $0xc8] sm:$0xff] %vm442_vm2, %v415_v34 }
  0xff   : > { %v593_v35 = vpop.f32.mrb[12].mxu0 }
 0x100   : > { %v372_v36 = vadd.f32 %v593_v35, %v723_v50  ;;  %v609_v37 = vpop.f32.mrb[12].mxu1  ;;  %v363_v38 = vpop.f32.mrb[13].mxu0 }
 0x101   : > { %v436_v39 = vadd.f32 %v609_v37, %v723_v50  ;;  %v364_v40 = vadd.f32 %v723_v50, %v363_v38  ;;  %v427_v41 = vpop.f32.mrb[13].mxu1  ;;  %v594_v42 = vpop.f32.mrb[14].mxu0 }
 0x102   : > { %457 = vst.msk [vmem:[%s730_s24 + $0x70] sm:$0xff] %vm442_vm2, %v372_v36  ;;  %v428_v43 = vadd.f32 %v723_v50, %v427_v41  ;;  %v375_v44 = vadd.f32 %v594_v42, %v723_v50  ;;  %v610_v45 = vpop.f32.mrb[14].mxu1  ;;  %v366_v46 = vpop.f32.mrb[15].mxu0 }
 0x103   : > { %473 = vst.msk [vmem:[%s730_s24 + $0xf0] sm:$0xff] %vm442_vm2, %v436_v39  ;;  %455 = vst.msk [vmem:[%s730_s24 + $0x60] sm:$0xff] %vm442_vm2, %v364_v40  ;;  %v439_v47 = vadd.f32 %v610_v45, %v723_v50  ;;  %v367_v48 = vadd.f32 %v723_v50, %v366_v46  ;;  %v430_v49 = vpop.f32.mrb[15].mxu1 }
 0x104   : > { %471 = vst.msk [vmem:[%s730_s24 + $0xe0] sm:$0xff] %vm442_vm2, %v428_v43  ;;  %458 = vst.msk [vmem:[%s730_s24 + $0x78] sm:$0xff] %vm442_vm2, %v375_v44  ;;  %v431_v51 = vadd.f32 %v723_v50, %v430_v49 }
 0x105   : > { %474 = vst.msk [vmem:[%s730_s24 + $0xf8] sm:$0xff] %vm442_vm2, %v439_v47  ;;  %456 = vst.msk [vmem:[%s730_s24 + $0x68] sm:$0xff] %vm442_vm2, %v367_v48 }
 0x106   : > { %472 = vst.msk [vmem:[%s730_s24 + $0xe8] sm:$0xff] %vm442_vm2, %v431_v51 }
 0x107 PF: > { %s13_s12 = sadd.s32 1, %s629_s12  }
 0x108   : > { %p10_p4 = scmp.ge.s32.totalorder %s13_s12, 4  }
 0x10a   :  { %12 = sbr.rel (!%p10_p4) target bundleno = 1 (0x1), region = 62 }

// kernel: nl_res_group.39
= control target key start
LH: loop header
LB: loop body
LE: loop exit
PB: predicated region body
PF: predicated region fallthrough
CT: control target
= control target key end

     0   :  { %s1626_s12 = smov 0   ;;  %s1628_s13 = smov 0   ;;  %s2218_s0 = inlined_call_operand.vmem [shape: f32[2,256,2], index: 0, kind: input, shape index: {}]   ;;  %s2219_s1 = inlined_call_operand.vmem [shape: f32[2,256,2], index: 1, kind: input, shape index: {}]   ;;  %s2220_s2 = inlined_call_operand.vmem [shape: f32[2,256,2], index: 2, kind: input, shape index: {}]   ;;  %s2221_s3 = inlined_call_operand.vmem [shape: f32[2,256,2], index: 3, kind: output, shape index: {}]  }
   0x1   :  { %s1630_s14 = smov 0   ;;  %s1632_s15 = smov 0  }
   0x2   :  { %s1634_s16 = smov 0  }
   0x3 LB: > { %s22_s17 = sadd.s32 1, %s1595_s14  ;;  %s25_s18 = sadd.s32 1, %s1599_s15  ;;  %s1603_s16 = sphi %s1634_s16, %s13_s16   ;;  %s1599_s15 = sphi %s1632_s15, %s2225_s15   ;;  %s1595_s14 = sphi %s1630_s14, %s2224_s14   ;;  %s1591_s13 = sphi %s1628_s13, %s2223_s13   ;;  %s1587_s12 = sphi %s1626_s12, %s2222_s12  }
   0x4   : > { %p23_p0 = scmp.ge.s32.totalorder %s22_s17, 2  ;;  %p1273_p1 = scmp.ge.s32.totalorder %s1603_s16, 1 }
   0x5   : > { %p183_p2 = scmp.lt.s32.totalorder %s1603_s16, 5 }
   0x6   : > { %s2227_s17 = smov (%p23_p0, %s22_s17), 0  ;;  %s2229_s18 = smov (!%p23_p0, %s25_s18), %s1599_s15 }
   0x7   : > { %p184_p3 = pnand %p1273_p1, %p183_p2  ;;  %p27_p4 = scmp.ge.s32.totalorder %s2229_s18, 2 }
   0x8   : > { %p225_p5 = scmp.lt.s32.totalorder (!%p184_p3), %s1591_s13, 1  ;;  %s1276_s19 = sshll.u32 (!%p184_p3), %s1587_s12, 4 }
   0x9   : > { %s2231_s18 = smov (%p27_p4, %s2229_s18), 0  ;;  %187 = sbr.rel (%p184_p3) target bundleno = 784 (0x310), region = 32 }
   0xa   : > { %p233_p6 = scmp.lt.s32.totalorder (!%p184_p3), %s1276_s19, 31  ;;  %p1284_p7 = scmp.ne.s32.totalorder (!%p184_p3), %s1587_s12, 0 }
  0x10   : > { %s2233_s13 = smov (!%p225_p5, %s1591_s13), 1  ;;  %s2235_s19 = smov (!%p233_p6, %s1276_s19), 31 }
  0x11   : > { %s1304_s20 = sshll.u32 %s2233_s13, 8  ;;  %s1277_s21 = sshll.u32 %s2233_s13, 5  ;;  %vm260_vm0 = vcmask (!%p1284_p7), 15360   ;;  %v1605_v0 = vmov (!%p1284_p7), 0.0  }
  0x12   : > { %s1662_s24 = scalar_lea.vmem %s2218_s0, %s1304_s20  ;;  %s236_s25 = sadd.s32 %s1277_s21, %s2235_s19  ;;  %261 = vst.msk [vmem:[#allocation2] sm:$0xff] (!%p1284_p7), %vm260_vm0, %v1605_v0  ;;  %262 = vst.msk [vmem:[#allocation2 + $0x8] sm:$0xff] (!%p1284_p7), %vm260_vm0, %v1605_v0 }
  0x13   : > { %s1278_s26 = sshll.u32 %s236_s25, 3  ;;  %s1667_s29 = scalar_lea.vmem %s2221_s3, %s1304_s20  ;;  %263 = vst.msk [vmem:[#allocation2 + $0x10] sm:$0xff] (!%p1284_p7), %vm260_vm0, %v1605_v0  ;;  %264 = vst.msk [vmem:[#allocation2 + $0x18] sm:$0xff] (!%p1284_p7), %vm260_vm0, %v1605_v0 }
  0x14   : > { %s1672_s5 = scalar_lea.vmem %s2219_s1, %s1278_s26  ;;  %s1677_s8 = scalar_lea.vmem %s2220_s2, %s1278_s26  ;;  %265 = vst.msk [vmem:[#allocation2 + $0x20] sm:$0xff] (!%p1284_p7), %vm260_vm0, %v1605_v0  ;;  %266 = vst.msk [vmem:[#allocation2 + $0x28] sm:$0xff] (!%p1284_p7), %vm260_vm0, %v1605_v0 }
  0x15   : > { %259 = sbr.rel (%p1284_p7) target bundleno = 34 (0x22), region = 36  ;;  %267 = vst.msk [vmem:[#allocation2 + $0x30] sm:$0xff] (!%p1284_p7), %vm260_vm0, %v1605_v0  ;;  %268 = vst.msk [vmem:[#allocation2 + $0x38] sm:$0xff] (!%p1284_p7), %vm260_vm0, %v1605_v0 }
  0x16   : > { %269 = vst.msk [vmem:[#allocation2 + $0x40] sm:$0xff] (!%p1284_p7), %vm260_vm0, %v1605_v0  ;;  %270 = vst.msk [vmem:[#allocation2 + $0x48] sm:$0xff] (!%p1284_p7), %vm260_vm0, %v1605_v0 }
  0x17   : > { %271 = vst.msk [vmem:[#allocation2 + $0x50] sm:$0xff] (!%p1284_p7), %vm260_vm0, %v1605_v0  ;;  %272 = vst.msk [vmem:[#allocation2 + $0x58] sm:$0xff] (!%p1284_p7), %vm260_vm0, %v1605_v0 }
  0x18   : > { %273 = vst.msk [vmem:[#allocation2 + $0x60] sm:$0xff] (!%p1284_p7), %vm260_vm0, %v1605_v0  ;;  %274 = vst.msk [vmem:[#allocation2 + $0x68] sm:$0xff] (!%p1284_p7), %vm260_vm0, %v1605_v0 }
  0x19   : > { %275 = vst.msk [vmem:[#allocation2 + $0x70] sm:$0xff] (!%p1284_p7), %vm260_vm0, %v1605_v0  ;;  %276 = vst.msk [vmem:[#allocation2 + $0x78] sm:$0xff] (!%p1284_p7), %vm260_vm0, %v1605_v0 }
  0x1a   : > { %277 = vst.msk [vmem:[#allocation2 + $0x80] sm:$0xff] (!%p1284_p7), %vm260_vm0, %v1605_v0  ;;  %278 = vst.msk [vmem:[#allocation2 + $0x88] sm:$0xff] (!%p1284_p7), %vm260_vm0, %v1605_v0 }
  0x1b   : > { %279 = vst.msk [vmem:[#allocation2 + $0x90] sm:$0xff] (!%p1284_p7), %vm260_vm0, %v1605_v0  ;;  %280 = vst.msk [vmem:[#allocation2 + $0x98] sm:$0xff] (!%p1284_p7), %vm260_vm0, %v1605_v0 }
  0x1c   : > { %281 = vst.msk [vmem:[#allocation2 + $0xa0] sm:$0xff] %vm260_vm0, %v1605_v0  ;;  %282 = vst.msk [vmem:[#allocation2 + $0xa8] sm:$0xff] %vm260_vm0, %v1605_v0 }
  0x1d   : > { %283 = vst.msk [vmem:[#allocation2 + $0xb0] sm:$0xff] %vm260_vm0, %v1605_v0  ;;  %284 = vst.msk [vmem:[#allocation2 + $0xb8] sm:$0xff] %vm260_vm0, %v1605_v0 }
  0x1e   : > { %285 = vst.msk [vmem:[#allocation2 + $0xc0] sm:$0xff] %vm260_vm0, %v1605_v0  ;;  %286 = vst.msk [vmem:[#allocation2 + $0xc8] sm:$0xff] %vm260_vm0, %v1605_v0 }
  0x1f   : > { %287 = vst.msk [vmem:[#allocation2 + $0xd0] sm:$0xff] %vm260_vm0, %v1605_v0  ;;  %288 = vst.msk [vmem:[#allocation2 + $0xd8] sm:$0xff] %vm260_vm0, %v1605_v0 }
  0x20   : > { %289 = vst.msk [vmem:[#allocation2 + $0xe0] sm:$0xff] %vm260_vm0, %v1605_v0  ;;  %290 = vst.msk [vmem:[#allocation2 + $0xe8] sm:$0xff] %vm260_vm0, %v1605_v0 }
  0x21   : > { %291 = vst.msk [vmem:[#allocation2 + $0xf0] sm:$0xff] %vm260_vm0, %v1605_v0  ;;  %292 = vst.msk [vmem:[#allocation2 + $0xf8] sm:$0xff] %vm260_vm0, %v1605_v0 }
  0x22 PF: > { %v341_v1 = vld [vmem:[%s1672_s5] sm:$0xff]  ;;  %v342_v2 = vld [vmem:[%s1672_s5 + $0x8] sm:$0xff]  ;;  %vm365_vm1 = vcmask 15360   ;;  %v343_v3 = vld [vmem:[%s1672_s5 + $0x10] sm:$0xff]  ;;  %p1301_p8 = scmp.ne.s32.totalorder %s1587_s12, 1 }
  0x23   : > { %v357_v4 = vpack.c.bf16 %v342_v2, %v341_v1  ;;  %v344_v5 = vld [vmem:[%s1672_s5 + $0x18] sm:$0xff]  ;;  %v293_v8 = vld [vmem:[%s1662_s24] sm:$0xff]  ;;  %v294_v9 = vld [vmem:[%s1662_s24 + $0x8] sm:$0xff] }
  0x24   : > { %v358_v6 = vpack.c.bf16 %v344_v5, %v343_v3  ;;  %v345_v10 = vld [vmem:[%s1672_s5 + $0x20] sm:$0xff]  ;;  %v346_v11 = vld [vmem:[%s1672_s5 + $0x28] sm:$0xff]  ;;  %v325_v12 = vpack.c.bf16 %v294_v9, %v293_v8  ;;  %v347_v15 = vld [vmem:[%s1672_s5 + $0x30] sm:$0xff] }
  0x25   : > { %1450 = vmatprep.subr.msk.bf16.mxu0 %vm365_vm1, %v357_v4  ;;  %v415_v7 = vsel %vm365_vm1, %v357_v4, 0  ;;  %v359_v14 = vpack.c.bf16 %v346_v11, %v345_v10  ;;  %v348_v16 = vld [vmem:[%s1672_s5 + $0x38] sm:$0xff]  ;;  %v349_v19 = vld [vmem:[%s1672_s5 + $0x40] sm:$0xff]  ;;  %v350_v20 = vld [vmem:[%s1672_s5 + $0x48] sm:$0xff] }
  0x26   : > { %1355 = vmatpush3.bf16.xpose.msra.mxu0 %v415_v7  ;;  %1370 = vmatprep.mubr.msk.bf16.mxu0 %vm365_vm1, %v325_v12  ;;  %v418_v13 = vsel %vm365_vm1, %v358_v6, 0  ;;  %v360_v18 = vpack.c.bf16 %v348_v16, %v347_v15  ;;  %v361_v22 = vpack.c.bf16 %v350_v20, %v349_v19  ;;  %v351_v23 = vld [vmem:[%s1672_s5 + $0x50] sm:$0xff]  ;;  %v352_v24 = vld [vmem:[%s1672_s5 + $0x58] sm:$0xff]  ;;  %v353_v27 = vld [vmem:[%s1672_s5 + $0x60] sm:$0xff] }
  0x27   : > { %1451 = vmatprep.subr.msk.bf16.mxu0 %vm365_vm1, %v358_v6  ;;  %v421_v17 = vsel %vm365_vm1, %v359_v14, 0  ;;  %v362_v26 = vpack.c.bf16 %v352_v24, %v351_v23  ;;  %v354_v28 = vld [vmem:[%s1672_s5 + $0x68] sm:$0xff]  ;;  %v355_v31 = vld [vmem:[%s1672_s5 + $0x70] sm:$0xff]  ;;  %v356_v32 = vld [vmem:[%s1672_s5 + $0x78] sm:$0xff] }
  0x28   : > { %v424_v21 = vsel %vm365_vm1, %v360_v18, 0  ;;  %v427_v25 = vsel %vm365_vm1, %v361_v22, 0  ;;  %v363_v30 = vpack.c.bf16 %v354_v28, %v353_v27  ;;  %v364_v34 = vpack.c.bf16 %v356_v32, %v355_v31  ;;  %v295_v36 = vld [vmem:[%s1662_s24 + $0x10] sm:$0xff]  ;;  %v296_v37 = vld [vmem:[%s1662_s24 + $0x18] sm:$0xff]  ;;  %v297_v38 = vld [vmem:[%s1662_s24 + $0x20] sm:$0xff] }
  0x29   : > { %v430_v29 = vsel %vm365_vm1, %v362_v26, 0  ;;  %v298_v39 = vld [vmem:[%s1662_s24 + $0x28] sm:$0xff]  ;;  %v326_v40 = vpack.c.bf16 %v296_v37, %v295_v36  ;;  %v299_v42 = vld [vmem:[%s1662_s24 + $0x30] sm:$0xff]  ;;  %v300_v43 = vld [vmem:[%s1662_s24 + $0x38] sm:$0xff] }
  0x2a   : > { %v433_v33 = vsel %vm365_vm1, %v363_v30, 0  ;;  %v436_v35 = vsel %vm365_vm1, %v364_v34, 0  ;;  %v327_v41 = vpack.c.bf16 %v298_v39, %v297_v38  ;;  %v301_v44 = vld [vmem:[%s1662_s24 + $0x40] sm:$0xff]  ;;  %v302_v45 = vld [vmem:[%s1662_s24 + $0x48] sm:$0xff]  ;;  %v328_v46 = vpack.c.bf16 %v300_v43, %v299_v42  ;;  %v303_v48 = vld [vmem:[%s1662_s24 + $0x50] sm:$0xff] }
  0x2b   : > { %v329_v47 = vpack.c.bf16 %v302_v45, %v301_v44  ;;  %v304_v49 = vld [vmem:[%s1662_s24 + $0x58] sm:$0xff]  ;;  %v305_v50 = vld [vmem:[%s1662_s24 + $0x60] sm:$0xff]  ;;  %v306_v51 = vld [vmem:[%s1662_s24 + $0x68] sm:$0xff] }
  0x2c   : > { %v330_v52 = vpack.c.bf16 %v304_v49, %v303_v48  ;;  %v331_v53 = vpack.c.bf16 %v306_v51, %v305_v50  ;;  %v307_v54 = vld [vmem:[%s1662_s24 + $0x70] sm:$0xff]  ;;  %v308_v55 = vld [vmem:[%s1662_s24 + $0x78] sm:$0xff]  ;;  %v309_v56 = vld [vmem:[%s1662_s24 + $0x80] sm:$0xff] }
  0x2d   : > { %v310_v57 = vld [vmem:[%s1662_s24 + $0x88] sm:$0xff]  ;;  %v332_v58 = vpack.c.bf16 %v308_v55, %v307_v54  ;;  %v311_v60 = vld [vmem:[%s1662_s24 + $0x90] sm:$0xff]  ;;  %v312_v61 = vld [vmem:[%s1662_s24 + $0x98] sm:$0xff] }
  0x2e   : > { %1357 = vmatpush3.bf16.xpose.msra.mxu0 %v418_v13  ;;  %v333_v59 = vpack.c.bf16 %v310_v57, %v309_v56  ;;  %v313_v62 = vld [vmem:[%s1662_s24 + $0xa0] sm:$0xff]  ;;  %v314_v63 = vld [vmem:[%s1662_s24 + $0xa8] sm:$0xff]  ;;  %v334_v0 = vpack.c.bf16 %v312_v61, %v311_v60  ;;  %v315_v2 = vld [vmem:[%s1662_s24 + $0xb0] sm:$0xff] }
  0x2f   : > { %1452 = vmatprep.subr.msk.bf16.mxu0 %vm365_vm1, %v359_v14  ;;  %v335_v1 = vpack.c.bf16 %v314_v63, %v313_v62  ;;  %v316_v3 = vld [vmem:[%s1662_s24 + $0xb8] sm:$0xff]  ;;  %v317_v4 = vld [vmem:[%s1662_s24 + $0xc0] sm:$0xff]  ;;  %v318_v5 = vld [vmem:[%s1662_s24 + $0xc8] sm:$0xff] }
  0x30   : > { %v336_v6 = vpack.c.bf16 %v316_v3, %v315_v2  ;;  %v337_v7 = vpack.c.bf16 %v318_v5, %v317_v4  ;;  %v319_v8 = vld [vmem:[%s1662_s24 + $0xd0] sm:$0xff]  ;;  %v320_v9 = vld [vmem:[%s1662_s24 + $0xd8] sm:$0xff]  ;;  %v321_v10 = vld [vmem:[%s1662_s24 + $0xe0] sm:$0xff] }
  0x31   : > { %v322_v11 = vld [vmem:[%s1662_s24 + $0xe8] sm:$0xff]  ;;  %v338_v12 = vpack.c.bf16 %v320_v9, %v319_v8  ;;  %v323_v14 = vld [vmem:[%s1662_s24 + $0xf0] sm:$0xff]  ;;  %v324_v15 = vld [vmem:[%s1662_s24 + $0xf8] sm:$0xff] }
  0x32   : > { %v339_v13 = vpack.c.bf16 %v322_v11, %v321_v10  ;;  %v340_v16 = vpack.c.bf16 %v324_v15, %v323_v14  ;;  %v850_v61 = vld [vmem:[%s1677_s8] sm:$0xff]  ;;  %v851_v62 = vld [vmem:[%s1677_s8 + $0x8] sm:$0xff]  ;;  %v852_v63 = vld [vmem:[%s1677_s8 + $0x10] sm:$0xff] }
  0x33   : > { %v854_v4 = vld [vmem:[%s1677_s8 + $0x20] sm:$0xff]  ;;  %v855_v5 = vld [vmem:[%s1677_s8 + $0x28] sm:$0xff]  ;;  %v856_v14 = vld [vmem:[%s1677_s8 + $0x30] sm:$0xff] }
  0x34   : > { %v857_v15 = vld [vmem:[%s1677_s8 + $0x38] sm:$0xff] }
  0x36   : > { %1359 = vmatpush3.bf16.xpose.msra.mxu0 %v421_v17 }
  0x37   : > { %1453 = vmatprep.subr.msk.bf16.mxu0 %vm365_vm1, %v360_v18 }
  0x3e   : > { %1361 = vmatpush3.bf16.xpose.msra.mxu0 %v424_v21 }
  0x3f   : > { %1454 = vmatprep.subr.msk.bf16.mxu0 %vm365_vm1, %v361_v22 }
  0x46   : > { %1363 = vmatpush3.bf16.xpose.msra.mxu0 %v427_v25 }
  0x47   : > { %1455 = vmatprep.subr.msk.bf16.mxu0 %vm365_vm1, %v362_v26 }
  0x4e   : > { %1365 = vmatpush3.bf16.xpose.msra.mxu0 %v430_v29 }
  0x4f   : > { %1456 = vmatprep.subr.msk.bf16.mxu0 %vm365_vm1, %v363_v30 }
  0x56   : > { %1367 = vmatpush3.bf16.xpose.msra.mxu0 %v433_v33 }
  0x57   : > { %1457 = vmatprep.subr.msk.bf16.mxu0 %vm365_vm1, %v364_v34 }
  0x5e   : > { %1369 = vmatpush3.bf16.xpose.msra.mxu0 %v436_v35 }
  0x65   : > { %1371 = vmatmul.mubr.msk.bf16.vlgmr.msra.gmra.mrb[0].mxu0 %vm365_vm1, %v326_v40 }
  0x66   : > { %1374 = vmatprep.mubr.msk.bf16.mxu0 %vm365_vm1, %v327_v41 }
  0x6d   : > { %1375 = vmatmul.mubr.msk.bf16.gmra.mrb[4].mxu0 %vm365_vm1, %v328_v46 }
  0x6e   : > { %1378 = vmatprep.mubr.msk.bf16.mxu0 %vm365_vm1, %v329_v47 }
  0x75   : > { %1379 = vmatmul.mubr.msk.bf16.gmra.mrb[8].mxu0 %vm365_vm1, %v330_v52 }
  0x76   : > { %1382 = vmatprep.mubr.msk.bf16.mxu0 %vm365_vm1, %v331_v53 }
  0x7d   : > { %1383 = vmatmul.mubr.msk.bf16.gmra.mrb[12].mxu0 %vm365_vm1, %v332_v58 }
  0x7e   : > { %1386 = vmatprep.mubr.msk.bf16.mxu0 %vm365_vm1, %v333_v59 }
  0x85   : > { %1387 = vmatmul.mubr.msk.bf16.gmra.mrb[16].mxu0 %vm365_vm1, %v334_v0  ;;  %v866_v0 = vpack.c.bf16 %v851_v62, %v850_v61 }
  0x86   : > { %1390 = vmatprep.mubr.msk.bf16.mxu0 %vm365_vm1, %v335_v1  ;;  %v853_v1 = vld [vmem:[%s1677_s8 + $0x18] sm:$0xff] }
  0x87   : > { %v867_v3 = vpack.c.bf16 %v853_v1, %v852_v63  ;;  %1402 = vmatprep.subr.bf16.mxu1 %v866_v0  ;;  %v864_v63 = vld [vmem:[%s1677_s8 + $0x70] sm:$0xff] }
  0x88   : > { %1403 = vmatpush3.bf16.msra.mxu1 %v866_v0  ;;  %v865_v0 = vld [vmem:[%s1677_s8 + $0x78] sm:$0xff] }
  0x89   : > { %1404 = vmatprep.subr.bf16.mxu1 %v867_v3 }
  0x8c   : > { %1405 = vmatpush3.bf16.msra.mxu1 %v867_v3  ;;  %v873_v3 = vpack.c.bf16 %v865_v0, %v864_v63 }
  0x8d   : > { %1391 = vmatmul.mubr.msk.bf16.gmra.mrb[20].mxu0 %vm365_vm1, %v336_v6 }
  0x8e   : > { %1394 = vmatprep.mubr.msk.bf16.mxu0 %vm365_vm1, %v337_v7 }
  0x95   : > { %1395 = vmatmul.mubr.msk.bf16.gmra.mrb[24].mxu0 %vm365_vm1, %v338_v12  ;;  %v868_v12 = vpack.c.bf16 %v855_v5, %v854_v4 }
  0x96   : > { %1398 = vmatprep.mubr.msk.bf16.mxu0 %vm365_vm1, %v339_v13 }
  0x97   : > { %1406 = vmatprep.subr.bf16.mxu1 %v868_v12 }
  0x98   : > { %1407 = vmatpush3.bf16.msra.mxu1 %v868_v12 }
  0x9d   : > { %1399 = vmatmul.mubr.msk.bf16.gmra.mrb[28].mxu0 %vm365_vm1, %v340_v16  ;;  %v869_v16 = vpack.c.bf16 %v857_v15, %v856_v14 }
  0x9f   : > { %1408 = vmatprep.subr.bf16.mxu1 %v869_v16 }
  0xa0   : > { %1409 = vmatpush3.bf16.msra.mxu1 %v869_v16 }
 0x138   : > { %v1792_v17 = vpop.f32.mrb[0].mxu0 }
 0x139   : > { %v1794_v18 = vpop.f32.mrb[1].mxu0 }
 0x13a   : > { %v1796_v19 = vpop.f32.mrb[2].mxu0 }
 0x13b   : > { %v1798_v20 = vpop.f32.mrb[3].mxu0 }
 0x140   : > { %v1800_v21 = vpop.f32.mrb[4].mxu0 }
 0x141   : > { %v601_v22 = vmax.f32 %v1792_v17, %v1800_v21  ;;  %v1804_v23 = vpop.f32.mrb[5].mxu0 }
 0x142   : > { %v599_v24 = vmax.f32 %v1794_v18, %v1804_v23  ;;  %v1808_v25 = vpop.f32.mrb[6].mxu0 }
 0x143   : > { %v602_v26 = vmax.f32 %v1796_v19, %v1808_v25  ;;  %v1812_v27 = vpop.f32.mrb[7].mxu0 }
 0x144   : > { %v600_v28 = vmax.f32 %v1798_v20, %v1812_v27 }
 0x148   : > { %v1816_v29 = vpop.f32.mrb[8].mxu0 }
 0x149   : > { %v605_v30 = vmax.f32 %v601_v22, %v1816_v29  ;;  %v1819_v31 = vpop.f32.mrb[9].mxu0 }
 0x14a   : > { %v603_v32 = vmax.f32 %v599_v24, %v1819_v31  ;;  %v1822_v33 = vpop.f32.mrb[10].mxu0  ;;  %v858_v24 = vld [vmem:[%s1677_s8 + $0x40] sm:$0xff] }
 0x14b   : > { %v606_v34 = vmax.f32 %v602_v26, %v1822_v33  ;;  %v1825_v35 = vpop.f32.mrb[11].mxu0  ;;  %v859_v26 = vld [vmem:[%s1677_s8 + $0x48] sm:$0xff] }
 0x14c   : > { %v604_v36 = vmax.f32 %v600_v28, %v1825_v35 }
 0x150   : > { %v1828_v37 = vpop.f32.mrb[12].mxu0 }
 0x151   : > { %v609_v38 = vmax.f32 %v605_v30, %v1828_v37  ;;  %v1831_v39 = vpop.f32.mrb[13].mxu0 }
 0x152   : > { %v607_v40 = vmax.f32 %v603_v32, %v1831_v39  ;;  %v1834_v41 = vpop.f32.mrb[14].mxu0 }
 0x153   : > { %v610_v42 = vmax.f32 %v606_v34, %v1834_v41  ;;  %v1837_v43 = vpop.f32.mrb[15].mxu0 }
 0x154   : > { %v608_v44 = vmax.f32 %v604_v36, %v1837_v43 }
 0x158   : > { %v1840_v45 = vpop.f32.mrb[16].mxu0 }
 0x159   : > { %v613_v46 = vmax.f32 %v609_v38, %v1840_v45  ;;  %v1843_v47 = vpop.f32.mrb[17].mxu0 }
 0x15a   : > { %v611_v48 = vmax.f32 %v607_v40, %v1843_v47  ;;  %v1846_v49 = vpop.f32.mrb[18].mxu0  ;;  %v870_v40 = vpack.c.bf16 %v859_v26, %v858_v24 }
 0x15b   : > { %v614_v50 = vmax.f32 %v610_v42, %v1846_v49  ;;  %v1849_v51 = vpop.f32.mrb[19].mxu0 }
 0x15c   : > { %v612_v52 = vmax.f32 %v608_v44, %v1849_v51  ;;  %v860_v44 = vld [vmem:[%s1677_s8 + $0x50] sm:$0xff]  ;;  %1410 = vmatprep.subr.bf16.mxu1 %v870_v40 }
 0x15d   : > { %1411 = vmatpush3.bf16.msra.mxu1 %v870_v40 }
 0x160   : > { %v1852_v53 = vpop.f32.mrb[20].mxu0 }
 0x161   : > { %v617_v54 = vmax.f32 %v613_v46, %v1852_v53  ;;  %v1855_v55 = vpop.f32.mrb[21].mxu0  ;;  %v861_v46 = vld [vmem:[%s1677_s8 + $0x58] sm:$0xff] }
 0x162   : > { %v615_v56 = vmax.f32 %v611_v48, %v1855_v55  ;;  %v1858_v57 = vpop.f32.mrb[22].mxu0 }
 0x163   : > { %v618_v58 = vmax.f32 %v614_v50, %v1858_v57  ;;  %v1861_v59 = vpop.f32.mrb[23].mxu0 }
 0x164   : > { %v616_v60 = vmax.f32 %v612_v52, %v1861_v59  ;;  %v871_v52 = vpack.c.bf16 %v861_v46, %v860_v44 }
 0x166   : > { %1412 = vmatprep.subr.bf16.mxu1 %v871_v52 }
 0x167   : > { %1413 = vmatpush3.bf16.msra.mxu1 %v871_v52 }
 0x168   : > { %v1868_v2 = vpop.f32.mrb[24].mxu0 }
 0x169   : > { %v621_v6 = vmax.f32 %v617_v54, %v1868_v2  ;;  %v1873_v7 = vpop.f32.mrb[25].mxu0 }
 0x16a   : > { %v619_v8 = vmax.f32 %v615_v56, %v1873_v7  ;;  %v1876_v9 = vpop.f32.mrb[26].mxu0  ;;  %v862_v56 = vld [vmem:[%s1677_s8 + $0x60] sm:$0xff] }
 0x16b   : > { %v622_v10 = vmax.f32 %v618_v58, %v1876_v9  ;;  %v1879_v11 = vpop.f32.mrb[27].mxu0  ;;  %v863_v58 = vld [vmem:[%s1677_s8 + $0x68] sm:$0xff] }
 0x16c   : > { %v620_v13 = vmax.f32 %v616_v60, %v1879_v11  ;;  %v872_v61 = vpack.c.bf16 %v863_v58, %v862_v56 }
 0x16e   : > { %1414 = vmatprep.subr.bf16.mxu1 %v872_v61 }
 0x16f   : > { %1415 = vmatpush3.bf16.msra.mxu1 %v872_v61 }
 0x170   : > { %v1884_v22 = vpop.f32.mrb[28].mxu0  ;;  %1416 = vmatprep.subr.bf16.mxu1 %v873_v3 }
 0x171   : > { %v625_v28 = vmax.f32 %v621_v6, %v1884_v22  ;;  %v1889_v30 = vpop.f32.mrb[29].mxu0 }
 0x172   : > { %v623_v32 = vmax.f32 %v619_v8, %v1889_v30  ;;  %v1892_v34 = vpop.f32.mrb[30].mxu0 }
 0x173   : > { %v626_v36 = vmax.f32 %v622_v10, %v1892_v34  ;;  %v1895_v38 = vpop.f32.mrb[31].mxu0  ;;  %1417 = vmatpush3.bf16.msra.mxu1 %v873_v3 }
 0x174   : > { %v624_v42 = vmax.f32 %v620_v13, %v1895_v38 }
 0x175   : > { %v628_v48 = vmax.f32 %v625_v28, %v626_v36 }
 0x176   : > { %v627_v50 = vmax.f32 %v623_v32, %v624_v42 }
 0x178   : > { %v629_v54 = vmax.f32 %v627_v50, %v628_v48 }
 0x17a   : > { %v630_v60 = vrot.slane %v629_v54, 4 }
 0x17c   : > { %v631_v62 = vmax.f32 %v629_v54, %v630_v60 }
 0x17e   : > { %v632_v1 = vrot.slane %v631_v62, 2 }
 0x180   : > { %v633_v4 = vmax.f32 %v631_v62, %v632_v1 }
 0x182   : > { %v634_v5 = vrot.slane %v633_v4, 1 }
 0x184   : > { %v1904_v6 = vmax.f32 %v633_v4, %v634_v5 }
 0x186   : > { %v636_v8 = vsub.f32 %v1794_v18, %v1904_v6  ;;  %v637_v10 = vsub.f32 %v1798_v20, %v1904_v6  ;;  %v638_v12 = vsub.f32 %v1792_v17, %v1904_v6  ;;  %v639_v13 = vsub.f32 %v1796_v19, %v1904_v6 }
 0x187   : > { %v640_v14 = vsub.f32 %v1804_v23, %v1904_v6  ;;  %v641_v15 = vsub.f32 %v1812_v27, %v1904_v6  ;;  %v642_v16 = vsub.f32 %v1800_v21, %v1904_v6  ;;  %v643_v18 = vsub.f32 %v1808_v25, %v1904_v6 }
 0x188   : > { %v644_v20 = vsub.f32 %v1819_v31, %v1904_v6  ;;  %v645_v17 = vsub.f32 %v1825_v35, %v1904_v6  ;;  %v646_v19 = vsub.f32 %v1816_v29, %v1904_v6  ;;  %v647_v23 = vsub.f32 %v1822_v33, %v1904_v6 }
 0x189   : > { %v648_v27 = vsub.f32 %v1831_v39, %v1904_v6  ;;  %v649_v21 = vsub.f32 %v1837_v43, %v1904_v6  ;;  %v650_v25 = vsub.f32 %v1828_v37, %v1904_v6  ;;  %v651_v31 = vsub.f32 %v1834_v41, %v1904_v6 }
 0x18a   : > { %v652_v35 = vsub.f32 %v1843_v47, %v1904_v6  ;;  %v653_v29 = vsub.f32 %v1849_v51, %v1904_v6  ;;  %v654_v33 = vsub.f32 %v1840_v45, %v1904_v6  ;;  %v655_v39 = vsub.f32 %v1846_v49, %v1904_v6 }
 0x18b   : > { %v656_v43 = vsub.f32 %v1855_v55, %v1904_v6  ;;  %v657_v37 = vsub.f32 %v1861_v59, %v1904_v6  ;;  %v658_v41 = vsub.f32 %v1852_v53, %v1904_v6  ;;  %v659_v24 = vsub.f32 %v1858_v57, %v1904_v6 }
 0x18c   : > { %v660_v26 = vsub.f32 %v1873_v7, %v1904_v6  ;;  %v661_v28 = vsub.f32 %v1879_v11, %v1904_v6  ;;  %v662_v32 = vsub.f32 %v1868_v2, %v1904_v6  ;;  %v663_v36 = vsub.f32 %v1876_v9, %v1904_v6 }
 0x18d   : > { %v664_v40 = vsub.f32 %v1889_v30, %v1904_v6  ;;  %v665_v42 = vsub.f32 %v1895_v38, %v1904_v6  ;;  %v666_v44 = vsub.f32 %v1884_v22, %v1904_v6  ;;  %v667_v46 = vsub.f32 %v1892_v34, %v1904_v6 }
 0x18e   : > { %v668_v48 = vmul.f32 1.442695, %v636_v8  ;;  %v670_v50 = vmul.f32 1.442695, %v637_v10  ;;  %v672_v52 = vmul.f32 1.442695, %v638_v12 }
 0x18f   : > { %v674_v54 = vmul.f32 1.442695, %v639_v13  ;;  %v676_v56 = vmul.f32 1.442695, %v640_v14  ;;  %v678_v58 = vmul.f32 1.442695, %v641_v15 }
 0x190   : > { %1499 = vpow2.f32 %v668_v48  ;;  %v680_v60 = vmul.f32 1.442695, %v642_v16  ;;  %v682_v61 = vmul.f32 1.442695, %v643_v18  ;;  %v684_v0 = vmul.f32 1.442695, %v644_v20 }
 0x191   : > { %1501 = vpow2.f32 %v670_v50  ;;  %v686_v4 = vmul.f32 1.442695, %v645_v17  ;;  %v688_v10 = vmul.f32 1.442695, %v646_v19  ;;  %v690_v14 = vmul.f32 1.442695, %v647_v23 }
 0x192   : > { %1503 = vpow2.f32 %v672_v52  ;;  %v692_v18 = vmul.f32 1.442695, %v648_v27  ;;  %v694_v48 = vmul.f32 1.442695, %v649_v21  ;;  %v696_v52 = vmul.f32 1.442695, %v650_v25 }
 0x193   : > { %1505 = vpow2.f32 %v674_v54  ;;  %v700_v21 = vmul.f32 1.442695, %v652_v35  ;;  %v702_v25 = vmul.f32 1.442695, %v653_v29  ;;  %v730_v30 = vmul.f32 1.442695, %v667_v46 }
 0x194   : > { %1507 = vpow2.f32 %v676_v56  ;;  %v698_v56 = vmul.f32 1.442695, %v651_v31 }
 0x195   : > { %1509 = vpow2.f32 %v678_v58 }
 0x196   : > { %1511 = vpow2.f32 %v680_v60 }
 0x197   : > { %1513 = vpow2.f32 %v682_v61 }
 0x198   : > { %1515 = vpow2.f32 %v684_v0 }
 0x199   : > { %1517 = vpow2.f32 %v686_v4  ;;  %v706_v4 = vmul.f32 1.442695, %v655_v39 }
 0x19a   : > { %v1970_v62 = vpop.eup %1499  ;;  %1519 = vpow2.f32 %v688_v10  ;;  %v710_v10 = vmul.f32 1.442695, %v657_v37 }
 0x19b   : > { %v1972_v63 = vpop.eup %1501  ;;  %1521 = vpow2.f32 %v690_v14  ;;  %v714_v14 = vmul.f32 1.442695, %v659_v24 }
 0x19c   : > { %v732_v1 = vadd.f32 %v1972_v63, %v1970_v62  ;;  %v1976_v3 = vpop.eup %1503  ;;  %1523 = vpow2.f32 %v692_v18  ;;  %v718_v18 = vmul.f32 1.442695, %v661_v28 }
 0x19d   : > { %v1979_v8 = vpop.eup %1505  ;;  %1525 = vpow2.f32 %v694_v48  ;;  %v722_v48 = vmul.f32 1.442695, %v663_v36  ;;  %v728_v36 = vmul.f32 1.442695, %v666_v44 }
 0x19e   : > { %v733_v5 = vadd.f32 %v1976_v3, %v732_v1  ;;  %v1982_v13 = vpop.eup %1507  ;;  %1527 = vpow2.f32 %v696_v52  ;;  %v704_v1 = vmul.f32 1.442695, %v654_v33  ;;  %v726_v52 = vmul.f32 1.442695, %v665_v42 }
 0x19f   : > { %v1985_v16 = vpop.eup %1509  ;;  %1529 = vpow2.f32 %v698_v56 }
 0x1a0   : > { %v734_v12 = vadd.f32 %v1979_v8, %v733_v5  ;;  %v1988_v17 = vpop.eup %1511  ;;  %1531 = vpow2.f32 %v700_v21  ;;  %v708_v5 = vmul.f32 1.442695, %v656_v43 }
 0x1a1   : > { %v1991_v50 = vpop.eup %1513  ;;  %1533 = vpow2.f32 %v702_v25 }
 0x1a2   : > { %v735_v15 = vadd.f32 %v1982_v13, %v734_v12  ;;  %v1994_v54 = vpop.eup %1515  ;;  %1535 = vpow2.f32 %v704_v1  ;;  %v712_v12 = vmul.f32 1.442695, %v658_v41 }
 0x1a3   : > { %v1997_v58 = vpop.eup %1517  ;;  %1537 = vpow2.f32 %v706_v4 }
 0x1a4   : > { %v736_v20 = vadd.f32 %v1985_v16, %v735_v15  ;;  %v2003_v61 = vpop.eup %1519  ;;  %1539 = vpow2.f32 %v708_v5  ;;  %v716_v15 = vmul.f32 1.442695, %v660_v26 }
 0x1a5   : > { %v2009_v0 = vpop.eup %1521  ;;  %1541 = vpow2.f32 %v710_v10 }
 0x1a6   : > { %v737_v19 = vadd.f32 %v1988_v17, %v736_v20  ;;  %v2015_v35 = vpop.eup %1523  ;;  %1543 = vpow2.f32 %v712_v12  ;;  %v720_v20 = vmul.f32 1.442695, %v662_v32 }
 0x1a7   : > { %v2021_v29 = vpop.eup %1525  ;;  %1545 = vpow2.f32 %v714_v14 }
 0x1a8   : > { %v738_v23 = vadd.f32 %v1991_v50, %v737_v19  ;;  %v2027_v33 = vpop.eup %1527  ;;  %1547 = vpow2.f32 %v716_v15  ;;  %v724_v19 = vmul.f32 1.442695, %v664_v40 }
 0x1a9   : > { %v2033_v39 = vpop.eup %1529  ;;  %1549 = vpow2.f32 %v718_v18 }
 0x1aa   : > { %v739_v27 = vadd.f32 %v1994_v54, %v738_v23  ;;  %v2039_v43 = vpop.eup %1531  ;;  %1551 = vpow2.f32 %v720_v20 }
 0x1ab   : > { %v2045_v37 = vpop.eup %1533  ;;  %1553 = vpow2.f32 %v722_v48 }
 0x1ac   : > { %v740_v60 = vadd.f32 %v1997_v58, %v739_v27  ;;  %v2051_v41 = vpop.eup %1535  ;;  %1555 = vpow2.f32 %v724_v19 }
 0x1ad   : > { %v2057_v24 = vpop.eup %1537  ;;  %1557 = vpow2.f32 %v726_v52 }
 0x1ae   : > { %v741_v31 = vadd.f32 %v2003_v61, %v740_v60  ;;  %v2063_v26 = vpop.eup %1539  ;;  %1559 = vpow2.f32 %v728_v36 }
 0x1af   : > { %v2069_v28 = vpop.eup %1541  ;;  %1561 = vpow2.f32 %v730_v30 }
 0x1b0   : > { %v742_v47 = vadd.f32 %v2009_v0, %v741_v31  ;;  %v1544_v32 = vpop.eup %1543 }
 0x1b1   : > { %v1546_v9 = vpop.eup %1545 }
 0x1b2   : > { %v743_v51 = vadd.f32 %v2015_v35, %v742_v47  ;;  %v1548_v27 = vpop.eup %1547 }
 0x1b3   : > { %v1550_v21 = vpop.eup %1549 }
 0x1b4   : > { %v744_v45 = vadd.f32 %v2021_v29, %v743_v51  ;;  %v1552_v38 = vpop.eup %1551 }
 0x1b5   : > { %v1554_v25 = vpop.eup %1553 }
 0x1b6   : > { %v745_v49 = vadd.f32 %v2027_v33, %v744_v45  ;;  %v1556_v1 = vpop.eup %1555 }
 0x1b7   : > { %v1558_v22 = vpop.eup %1557 }
 0x1b8   : > { %v746_v55 = vadd.f32 %v2033_v39, %v745_v49  ;;  %v1560_v4 = vpop.eup %1559 }
 0x1b9   : > { %v1562_v5 = vpop.eup %1561 }
 0x1ba   : > { %v747_v59 = vadd.f32 %v2039_v43, %v746_v55 }
 0x1bc   : > { %v748_v53 = vadd.f32 %v2045_v37, %v747_v59 }
 0x1be   : > { %v749_v57 = vadd.f32 %v2051_v41, %v748_v53 }
 0x1c0   : > { %v750_v7 = vadd.f32 %v2057_v24, %v749_v57 }
 0x1c2   : > { %v751_v11 = vadd.f32 %v2063_v26, %v750_v7 }
 0x1c4   : > { %v752_v2 = vadd.f32 %v2069_v28, %v751_v11 }
 0x1c6   : > { %v753_v23 = vadd.f32 %v1544_v32, %v752_v2 }
 0x1c8   : > { %v754_v56 = vadd.f32 %v1546_v9, %v753_v23 }
 0x1ca   : > { %v755_v40 = vadd.f32 %v1548_v27, %v754_v56 }
 0x1cc   : > { %v756_v60 = vadd.f32 %v1550_v21, %v755_v40 }
 0x1ce   : > { %v757_v42 = vadd.f32 %v1552_v38, %v756_v60 }
 0x1d0   : > { %v758_v31 = vadd.f32 %v1554_v25, %v757_v42 }
 0x1d2   : > { %v759_v47 = vadd.f32 %v1556_v1, %v758_v31 }
 0x1d4   : > { %v760_v44 = vadd.f32 %v1558_v22, %v759_v47 }
 0x1d6   : > { %v761_v51 = vadd.f32 %v1560_v4, %v760_v44 }
 0x1d8   : > { %v762_v45 = vadd.f32 %v1562_v5, %v761_v51 }
 0x1da   : > { %v763_v10 = vrot.slane %v762_v45, 4 }
 0x1dc   : > { %v764_v34 = vadd.f32 %v763_v10, %v762_v45 }
 0x1de   : > { %v765_v6 = vrot.slane %v764_v34, 2 }
 0x1e0   : > { %v766_v46 = vadd.f32 %v765_v6, %v764_v34 }
 0x1e2   : > { %v767_v49 = vrot.slane %v766_v46, 1 }
 0x1e4   : > { %v768_v12 = vadd.f32 %v767_v49, %v766_v46  ;;  %v808_v46 = vld [vmem:[#allocation2 + $0x30] sm:$0xff]  ;;  %v806_v49 = vld [vmem:[#allocation2 + $0x20] sm:$0xff] }
 0x1e6   : > { %1563 = vrcp.f32 %v768_v12 }
 0x1f0   : > { %v1564_v55 = vpop.eup %1563 }
 0x1f1   : > { %v770_v14 = vmul.f32 %v1564_v55, %v1970_v62  ;;  %v771_v59 = vmul.f32 %v1564_v55, %v1972_v63  ;;  %v772_v15 = vmul.f32 %v1564_v55, %v1976_v3  ;;  %v773_v53 = vmul.f32 %v1564_v55, %v1979_v8 }
 0x1f2   : > { %v774_v18 = vmul.f32 %v1564_v55, %v1982_v13  ;;  %v775_v57 = vmul.f32 %v1564_v55, %v1985_v16  ;;  %v776_v11 = vmul.f32 %v1564_v55, %v1988_v17  ;;  %v777_v19 = vmul.f32 %v1564_v55, %v1991_v50 }
 0x1f3   : > { %v834_v20 = vpack.c.bf16 %v771_v59, %v770_v14  ;;  %v835_v7 = vpack.c.bf16 %v773_v53, %v772_v15  ;;  %v784_v62 = vmul.f32 %v1564_v55, %v2027_v33  ;;  %v778_v63 = vmul.f32 %v1564_v55, %v1994_v54  ;;  %v807_v15 = vld [vmem:[#allocation2 + $0x28] sm:$0xff] }
 0x1f4   : > { %v836_v48 = vpack.c.bf16 %v775_v57, %v774_v18  ;;  %v785_v3 = vmul.f32 %v1564_v55, %v2033_v39  ;;  %v786_v8 = vmul.f32 %v1564_v55, %v2039_v43  ;;  %v787_v13 = vmul.f32 %v1564_v55, %v2045_v37 }
 0x1f5   : > { %1418 = vmatprep.mubr.bf16.mxu1 %v834_v20  ;;  %v779_v16 = vmul.f32 %v1564_v55, %v1997_v58  ;;  %v788_v2 = vmul.f32 %v1564_v55, %v2051_v41  ;;  %v789_v17 = vmul.f32 %v1564_v55, %v2057_v24  ;;  %v790_v50 = vmul.f32 %v1564_v55, %v2063_v26 }
 0x1f6   : > { %1419 = vmatmul.mubr.bf16.vlgmr.msra.gmra.mrb[0].mxu1 %v835_v7  ;;  %v841_v52 = vpack.c.bf16 %v785_v3, %v784_v62  ;;  %v842_v33 = vpack.c.bf16 %v787_v13, %v786_v8  ;;  %v791_v23 = vmul.f32 %v1564_v55, %v2069_v28  ;;  %v792_v54 = vmul.f32 %v1564_v55, %v1544_v32  ;;  %v813_v62 = vld [vmem:[#allocation2 + $0x58] sm:$0xff]  ;;  %v811_v8 = vld [vmem:[#allocation2 + $0x48] sm:$0xff] }
 0x1f7   : > { %1422 = vmatprep.mubr.bf16.mxu1 %v836_v48  ;;  %v843_v36 = vpack.c.bf16 %v789_v17, %v788_v2  ;;  %v793_v39 = vmul.f32 %v1564_v55, %v1546_v9  ;;  %v794_v56 = vmul.f32 %v1564_v55, %v1548_v27  ;;  %v795_v43 = vmul.f32 %v1564_v55, %v1550_v21  ;;  %v812_v48 = vld [vmem:[#allocation2 + $0x50] sm:$0xff] }
 0x1f8   : > { %v844_v30 = vpack.c.bf16 %v791_v23, %v790_v50  ;;  %v796_v37 = vmul.f32 %v1564_v55, %v1552_v38  ;;  %v797_v40 = vmul.f32 %v1564_v55, %v1554_v25  ;;  %v798_v60 = vmul.f32 %v1564_v55, %v1556_v1  ;;  %v802_v1 = vld [vmem:[#allocation2] sm:$0xff] }
 0x1f9   : > { %v845_v58 = vpack.c.bf16 %v793_v39, %v792_v54  ;;  %v846_v42 = vpack.c.bf16 %v795_v43, %v794_v56  ;;  %v799_v41 = vmul.f32 %v1564_v55, %v1558_v22  ;;  %v800_v31 = vmul.f32 %v1564_v55, %v1560_v4  ;;  %v805_v22 = vld [vmem:[#allocation2 + $0x18] sm:$0xff]  ;;  %v815_v56 = vld [vmem:[#allocation2 + $0x68] sm:$0xff] }
 0x1fa   : > { %v837_v24 = vpack.c.bf16 %v777_v19, %v776_v11  ;;  %v847_v47 = vpack.c.bf16 %v797_v40, %v796_v37  ;;  %v801_v26 = vmul.f32 %v1564_v55, %v1562_v5  ;;  %v838_v44 = vpack.c.bf16 %v779_v16, %v778_v63  ;;  %v810_v11 = vld [vmem:[#allocation2 + $0x40] sm:$0xff]  ;;  %v817_v54 = vld [vmem:[#allocation2 + $0x78] sm:$0xff] }
 0x1fb   : > { %v848_v51 = vpack.c.bf16 %v799_v41, %v798_v60  ;;  %v780_v32 = vmul.f32 %v1564_v55, %v2003_v61  ;;  %v781_v9 = vmul.f32 %v1564_v55, %v2009_v0  ;;  %v782_v27 = vmul.f32 %v1564_v55, %v2015_v35  ;;  %v804_v61 = vld [vmem:[#allocation2 + $0x10] sm:$0xff] }
 0x1fc   : > { %v849_v28 = vpack.c.bf16 %v801_v26, %v800_v31  ;;  %v783_v21 = vmul.f32 %v1564_v55, %v2021_v29  ;;  %v803_v29 = vld [vmem:[#allocation2 + $0x8] sm:$0xff]  ;;  %v809_v55 = vld [vmem:[#allocation2 + $0x38] sm:$0xff] }
 0x1fd   : > { %v839_v38 = vpack.c.bf16 %v781_v9, %v780_v32  ;;  %v821_v31 = vld [vmem:[#allocation2 + $0x98] sm:$0xff]  ;;  %v819_v26 = vld [vmem:[#allocation2 + $0x88] sm:$0xff] }
 0x1fe   : > { %1423 = vmatmul.mubr.bf16.gmra.mrb[4].mxu1 %v837_v24  ;;  %v840_v25 = vpack.c.bf16 %v783_v21, %v782_v27  ;;  %v824_v27 = vld [vmem:[#allocation2 + $0xb0] sm:$0xff]  ;;  %v822_v21 = vld [vmem:[#allocation2 + $0xa0] sm:$0xff] }
 0x1ff   : > { %1426 = vmatprep.mubr.bf16.mxu1 %v838_v44 }
 0x206   : > { %1427 = vmatmul.mubr.bf16.gmra.mrb[8].mxu1 %v839_v38 }
 0x207   : > { %1430 = vmatprep.mubr.bf16.mxu1 %v840_v25  ;;  %v825_v25 = vld [vmem:[#allocation2 + $0xb8] sm:$0xff] }
 0x20e   : > { %1431 = vmatmul.mubr.bf16.gmra.mrb[12].mxu1 %v841_v52  ;;  %v816_v52 = vld [vmem:[#allocation2 + $0x70] sm:$0xff] }
 0x20f   : > { %1434 = vmatprep.mubr.bf16.mxu1 %v842_v33  ;;  %v814_v33 = vld [vmem:[#allocation2 + $0x60] sm:$0xff] }
 0x216   : > { %1435 = vmatmul.mubr.bf16.gmra.mrb[16].mxu1 %v843_v36 }
 0x217   : > { %1438 = vmatprep.mubr.bf16.mxu1 %v844_v30 }
 0x21e   : > { %1439 = vmatmul.mubr.bf16.gmra.mrb[20].mxu1 %v845_v58  ;;  %v820_v58 = vld [vmem:[#allocation2 + $0x90] sm:$0xff] }
 0x21f   : > { %1442 = vmatprep.mubr.bf16.mxu1 %v846_v42  ;;  %v818_v42 = vld [vmem:[#allocation2 + $0x80] sm:$0xff] }
 0x226   : > { %1443 = vmatmul.mubr.bf16.gmra.mrb[24].mxu1 %v847_v47 }
 0x227   : > { %1446 = vmatprep.mubr.bf16.mxu1 %v848_v51 }
 0x22e   : > { %1447 = vmatmul.mubr.bf16.gmra.mrb[28].mxu1 %v849_v28 }
 0x2c9   : > { %v1420_v0 = vpop.f32.mrb[0].mxu1 }
 0x2ca   : > { %v1037_v35 = vadd.f32 %v1420_v0, %v804_v61  ;;  %v908_v4 = vpop.f32.mrb[1].mxu1  ;;  %v823_v0 = vld [vmem:[#allocation2 + $0xa8] sm:$0xff] }
 0x2cb   : > { %v1035_v5 = vadd.f32 %v908_v4, %v802_v1  ;;  %v1421_v45 = vpop.f32.mrb[2].mxu1 }
 0x2cc   : > { %1069 = vst.msk [vmem:[#allocation2 + $0x10] sm:$0xff] %vm365_vm1, %v1037_v35  ;;  %v1038_v10 = vadd.f32 %v1421_v45, %v805_v22  ;;  %v911_v34 = vpop.f32.mrb[3].mxu1  ;;  %v828_v45 = vld [vmem:[#allocation2 + $0xd0] sm:$0xff] }
 0x2cd   : > { %1067 = vst.msk [vmem:[#allocation2] sm:$0xff] %vm365_vm1, %v1035_v5  ;;  %v1036_v6 = vadd.f32 %v911_v34, %v803_v29 }
 0x2ce   : > { %1070 = vst.msk [vmem:[#allocation2 + $0x18] sm:$0xff] %vm365_vm1, %v1038_v10  ;;  %v826_v10 = vld [vmem:[#allocation2 + $0xc0] sm:$0xff] }
 0x2cf   : > { %1068 = vst.msk [vmem:[#allocation2 + $0x8] sm:$0xff] %vm365_vm1, %v1036_v6  ;;  %v829_v6 = vld [vmem:[#allocation2 + $0xd8] sm:$0xff] }
 0x2d1   : > { %v1424_v12 = vpop.f32.mrb[4].mxu1 }
 0x2d2   : > { %v1041_v14 = vadd.f32 %v1424_v12, %v808_v46  ;;  %v924_v59 = vpop.f32.mrb[5].mxu1  ;;  %v827_v12 = vld [vmem:[#allocation2 + $0xc8] sm:$0xff] }
 0x2d3   : > { %v1039_v53 = vadd.f32 %v924_v59, %v806_v49  ;;  %v1425_v18 = vpop.f32.mrb[6].mxu1 }
 0x2d4   : > { %1073 = vst.msk [vmem:[#allocation2 + $0x30] sm:$0xff] %vm365_vm1, %v1041_v14  ;;  %v1042_v57 = vadd.f32 %v1425_v18, %v809_v55  ;;  %v927_v20 = vpop.f32.mrb[7].mxu1  ;;  %v832_v18 = vld [vmem:[#allocation2 + $0xf0] sm:$0xff] }
 0x2d5   : > { %1071 = vst.msk [vmem:[#allocation2 + $0x20] sm:$0xff] %vm365_vm1, %v1039_v53  ;;  %v1040_v7 = vadd.f32 %v927_v20, %v807_v15 }
 0x2d6   : > { %1074 = vst.msk [vmem:[#allocation2 + $0x38] sm:$0xff] %vm365_vm1, %v1042_v57  ;;  %v830_v57 = vld [vmem:[#allocation2 + $0xe0] sm:$0xff] }
 0x2d7   : > { %1072 = vst.msk [vmem:[#allocation2 + $0x28] sm:$0xff] %vm365_vm1, %v1040_v7  ;;  %v833_v7 = vld [vmem:[#allocation2 + $0xf8] sm:$0xff] }
 0x2d9   : > { %v1428_v19 = vpop.f32.mrb[8].mxu1 }
 0x2da   : > { %v1045_v63 = vadd.f32 %v1428_v19, %v812_v48  ;;  %v940_v3 = vpop.f32.mrb[9].mxu1  ;;  %v831_v19 = vld [vmem:[#allocation2 + $0xe8] sm:$0xff] }
 0x2db   : > { %v1043_v13 = vadd.f32 %v940_v3, %v810_v11  ;;  %v1429_v16 = vpop.f32.mrb[10].mxu1 }
 0x2dc   : > { %1077 = vst.msk [vmem:[#allocation2 + $0x50] sm:$0xff] %vm365_vm1, %v1045_v63  ;;  %v1046_v2 = vadd.f32 %v1429_v16, %v813_v62  ;;  %v943_v17 = vpop.f32.mrb[11].mxu1  ;;  %v1103_v16 = vld [vmem:[#allocation2] sm:$0xff] (!%p1301_p8) }
 0x2dd   : > { %1075 = vst.msk [vmem:[#allocation2 + $0x40] sm:$0xff] %vm365_vm1, %v1043_v13  ;;  %v1044_v50 = vadd.f32 %v943_v17, %v811_v8  ;;  %v1105_v17 = vld [vmem:[#allocation2 + $0x10] sm:$0xff] (!%p1301_p8)  ;;  %1135 = vst.msk [vmem:[%s1667_s29] sm:$0xff] (!%p1301_p8), %vm365_vm1, %v1103_v16 }
 0x2de   : > { %1078 = vst.msk [vmem:[#allocation2 + $0x58] sm:$0xff] %vm365_vm1, %v1046_v2  ;;  %v1104_v2 = vld [vmem:[#allocation2 + $0x8] sm:$0xff] (!%p1301_p8)  ;;  %1137 = vst.msk [vmem:[%s1667_s29 + $0x10] sm:$0xff] (!%p1301_p8), %vm365_vm1, %v1105_v17 }
 0x2df   : > { %1076 = vst.msk [vmem:[#allocation2 + $0x48] sm:$0xff] %vm365_vm1, %v1044_v50  ;;  %1136 = vst.msk [vmem:[%s1667_s29 + $0x8] sm:$0xff] (!%p1301_p8), %vm365_vm1, %v1104_v2  ;;  %v1106_v50 = vld [vmem:[#allocation2 + $0x18] sm:$0xff] (!%p1301_p8) }
 0x2e0   : > { %1138 = vst.msk [vmem:[%s1667_s29 + $0x18] sm:$0xff] (!%p1301_p8), %vm365_vm1, %v1106_v50 }
 0x2e1   : > { %v1432_v23 = vpop.f32.mrb[12].mxu1 }
 0x2e2   : > { %v1049_v36 = vadd.f32 %v1432_v23, %v816_v52  ;;  %v956_v39 = vpop.f32.mrb[13].mxu1  ;;  %v1107_v52 = vld [vmem:[#allocation2 + $0x20] sm:$0xff] (!%p1301_p8)  ;;  %v1109_v23 = vld [vmem:[#allocation2 + $0x30] sm:$0xff] (!%p1301_p8) }
 0x2e3   : > { %v1047_v43 = vadd.f32 %v956_v39, %v814_v33  ;;  %v1433_v30 = vpop.f32.mrb[14].mxu1  ;;  %v1108_v33 = vld [vmem:[#allocation2 + $0x28] sm:$0xff] (!%p1301_p8)  ;;  %1139 = vst.msk [vmem:[%s1667_s29 + $0x20] sm:$0xff] (!%p1301_p8), %vm365_vm1, %v1107_v52  ;;  %1141 = vst.msk [vmem:[%s1667_s29 + $0x30] sm:$0xff] (!%p1301_p8), %vm365_vm1, %v1109_v23 }
 0x2e4   : > { %1081 = vst.msk [vmem:[#allocation2 + $0x70] sm:$0xff] %vm365_vm1, %v1049_v36  ;;  %v1050_v37 = vadd.f32 %v1433_v30, %v817_v54  ;;  %v959_v40 = vpop.f32.mrb[15].mxu1  ;;  %1140 = vst.msk [vmem:[%s1667_s29 + $0x28] sm:$0xff] (!%p1301_p8), %vm365_vm1, %v1108_v33  ;;  %v1110_v54 = vld [vmem:[#allocation2 + $0x38] sm:$0xff] (!%p1301_p8)  ;;  %v1111_v36 = vld [vmem:[#allocation2 + $0x40] sm:$0xff] (!%p1301_p8) }
 0x2e5   : > { %1079 = vst.msk [vmem:[#allocation2 + $0x60] sm:$0xff] %vm365_vm1, %v1047_v43  ;;  %v1048_v60 = vadd.f32 %v959_v40, %v815_v56  ;;  %1142 = vst.msk [vmem:[%s1667_s29 + $0x38] sm:$0xff] (!%p1301_p8), %vm365_vm1, %v1110_v54  ;;  %v1113_v56 = vld [vmem:[#allocation2 + $0x50] sm:$0xff] (!%p1301_p8)  ;;  %v1114_v43 = vld [vmem:[#allocation2 + $0x58] sm:$0xff] (!%p1301_p8) }
 0x2e6   : > { %1082 = vst.msk [vmem:[#allocation2 + $0x78] sm:$0xff] %vm365_vm1, %v1050_v37  ;;  %1143 = vst.msk [vmem:[%s1667_s29 + $0x40] sm:$0xff] (!%p1301_p8), %vm365_vm1, %v1111_v36  ;;  %v1112_v39 = vld [vmem:[#allocation2 + $0x48] sm:$0xff] (!%p1301_p8) }
 0x2e7   : > { %1080 = vst.msk [vmem:[#allocation2 + $0x68] sm:$0xff] %vm365_vm1, %v1048_v60  ;;  %1144 = vst.msk [vmem:[%s1667_s29 + $0x48] sm:$0xff] (!%p1301_p8), %vm365_vm1, %v1112_v39 }
 0x2e8   : > { %1145 = vst.msk [vmem:[%s1667_s29 + $0x50] sm:$0xff] (!%p1301_p8), %vm365_vm1, %v1113_v56  ;;  %1146 = vst.msk [vmem:[%s1667_s29 + $0x58] sm:$0xff] (!%p1301_p8), %vm365_vm1, %v1114_v43 }
 0x2e9   : > { %v1436_v41 = vpop.f32.mrb[16].mxu1 }
 0x2ea   : > { %v1053_v24 = vadd.f32 %v1436_v41, %v820_v58  ;;  %v972_v47 = vpop.f32.mrb[17].mxu1 }
 0x2eb   : > { %v1051_v44 = vadd.f32 %v972_v47, %v818_v42  ;;  %v1437_v51 = vpop.f32.mrb[18].mxu1  ;;  %v1117_v40 = vld [vmem:[#allocation2 + $0x70] sm:$0xff] (!%p1301_p8) }
 0x2ec   : > { %1085 = vst.msk [vmem:[#allocation2 + $0x90] sm:$0xff] %vm365_vm1, %v1053_v24  ;;  %v1054_v28 = vadd.f32 %v1437_v51, %v821_v31  ;;  %v975_v32 = vpop.f32.mrb[19].mxu1  ;;  %v1115_v30 = vld [vmem:[#allocation2 + $0x60] sm:$0xff] (!%p1301_p8)  ;;  %1149 = vst.msk [vmem:[%s1667_s29 + $0x70] sm:$0xff] (!%p1301_p8), %vm365_vm1, %v1117_v40 }
 0x2ed   : > { %1083 = vst.msk [vmem:[#allocation2 + $0x80] sm:$0xff] %vm365_vm1, %v1051_v44  ;;  %v1052_v9 = vadd.f32 %v975_v32, %v819_v26  ;;  %1147 = vst.msk [vmem:[%s1667_s29 + $0x60] sm:$0xff] (!%p1301_p8), %vm365_vm1, %v1115_v30  ;;  %v1118_v60 = vld [vmem:[#allocation2 + $0x78] sm:$0xff] (!%p1301_p8) }
 0x2ee   : > { %1086 = vst.msk [vmem:[#allocation2 + $0x98] sm:$0xff] %vm365_vm1, %v1054_v28  ;;  %v1116_v37 = vld [vmem:[#allocation2 + $0x68] sm:$0xff] (!%p1301_p8)  ;;  %1150 = vst.msk [vmem:[%s1667_s29 + $0x78] sm:$0xff] (!%p1301_p8), %vm365_vm1, %v1118_v60 }
 0x2ef   : > { %1084 = vst.msk [vmem:[#allocation2 + $0x88] sm:$0xff] %vm365_vm1, %v1052_v9  ;;  %1148 = vst.msk [vmem:[%s1667_s29 + $0x68] sm:$0xff] (!%p1301_p8), %vm365_vm1, %v1116_v37 }
 0x2f1   : > { %v1440_v38 = vpop.f32.mrb[20].mxu1 }
 0x2f2   : > { %v1057_v61 = vadd.f32 %v1440_v38, %v824_v27  ;;  %v988_v1 = vpop.f32.mrb[21].mxu1 }
 0x2f3   : > { %v1055_v22 = vadd.f32 %v988_v1, %v822_v21  ;;  %v1441_v35 = vpop.f32.mrb[22].mxu1  ;;  %v1121_v41 = vld [vmem:[#allocation2 + $0x90] sm:$0xff] (!%p1301_p8) }
 0x2f4   : > { %1089 = vst.msk [vmem:[#allocation2 + $0xb0] sm:$0xff] %vm365_vm1, %v1057_v61  ;;  %v1058_v4 = vadd.f32 %v1441_v35, %v825_v25  ;;  %v991_v29 = vpop.f32.mrb[23].mxu1  ;;  %v1119_v58 = vld [vmem:[#allocation2 + $0x80] sm:$0xff] (!%p1301_p8)  ;;  %1153 = vst.msk [vmem:[%s1667_s29 + $0x90] sm:$0xff] (!%p1301_p8), %vm365_vm1, %v1121_v41 }
 0x2f5   : > { %1087 = vst.msk [vmem:[#allocation2 + $0xa0] sm:$0xff] %vm365_vm1, %v1055_v22  ;;  %v1056_v5 = vadd.f32 %v991_v29, %v823_v0  ;;  %1151 = vst.msk [vmem:[%s1667_s29 + $0x80] sm:$0xff] (!%p1301_p8), %vm365_vm1, %v1119_v58  ;;  %v1122_v31 = vld [vmem:[#allocation2 + $0x98] sm:$0xff] (!%p1301_p8) }
 0x2f6   : > { %1090 = vst.msk [vmem:[#allocation2 + $0xb8] sm:$0xff] %vm365_vm1, %v1058_v4  ;;  %v1120_v42 = vld [vmem:[#allocation2 + $0x88] sm:$0xff] (!%p1301_p8)  ;;  %1154 = vst.msk [vmem:[%s1667_s29 + $0x98] sm:$0xff] (!%p1301_p8), %vm365_vm1, %v1122_v31 }
 0x2f7   : > { %1088 = vst.msk [vmem:[#allocation2 + $0xa8] sm:$0xff] %vm365_vm1, %v1056_v5  ;;  %1152 = vst.msk [vmem:[%s1667_s29 + $0x88] sm:$0xff] (!%p1301_p8), %vm365_vm1, %v1120_v42 }
 0x2f9   : > { %v1444_v34 = vpop.f32.mrb[24].mxu1 }
 0x2fa   : > { %v1061_v46 = vadd.f32 %v1444_v34, %v828_v45  ;;  %v1004_v49 = vpop.f32.mrb[25].mxu1 }
 0x2fb   : > { %v1059_v55 = vadd.f32 %v1004_v49, %v826_v10  ;;  %v1445_v14 = vpop.f32.mrb[26].mxu1  ;;  %v1125_v26 = vld [vmem:[#allocation2 + $0xb0] sm:$0xff] (!%p1301_p8) }
 0x2fc   : > { %1093 = vst.msk [vmem:[#allocation2 + $0xd0] sm:$0xff] %vm365_vm1, %v1061_v46  ;;  %v1062_v59 = vadd.f32 %v1445_v14, %v829_v6  ;;  %v1007_v15 = vpop.f32.mrb[27].mxu1  ;;  %v1123_v24 = vld [vmem:[#allocation2 + $0xa0] sm:$0xff] (!%p1301_p8)  ;;  %1157 = vst.msk [vmem:[%s1667_s29 + $0xb0] sm:$0xff] (!%p1301_p8), %vm365_vm1, %v1125_v26 }
 0x2fd   : > { %1091 = vst.msk [vmem:[#allocation2 + $0xc0] sm:$0xff] %vm365_vm1, %v1059_v55  ;;  %v1060_v53 = vadd.f32 %v1007_v15, %v827_v12  ;;  %1155 = vst.msk [vmem:[%s1667_s29 + $0xa0] sm:$0xff] (!%p1301_p8), %vm365_vm1, %v1123_v24  ;;  %v1126_v44 = vld [vmem:[#allocation2 + $0xb8] sm:$0xff] (!%p1301_p8) }
 0x2fe   : > { %1094 = vst.msk [vmem:[#allocation2 + $0xd8] sm:$0xff] %vm365_vm1, %v1062_v59  ;;  %v1124_v47 = vld [vmem:[#allocation2 + $0xa8] sm:$0xff] (!%p1301_p8)  ;;  %1158 = vst.msk [vmem:[%s1667_s29 + $0xb8] sm:$0xff] (!%p1301_p8), %vm365_vm1, %v1126_v44 }
 0x2ff   : > { %1092 = vst.msk [vmem:[#allocation2 + $0xc8] sm:$0xff] %vm365_vm1, %v1060_v53  ;;  %1156 = vst.msk [vmem:[%s1667_s29 + $0xa8] sm:$0xff] (!%p1301_p8), %vm365_vm1, %v1124_v47 }
 0x301   : > { %v1448_v20 = vpop.f32.mrb[28].mxu1  ;;  %1102 = sbr.rel (%p1301_p8) target bundleno = 784 (0x310), region = 40 }
 0x302   : > { %v1065_v48 = vadd.f32 %v1448_v20, %v832_v18  ;;  %v1020_v11 = vpop.f32.mrb[29].mxu1 }
 0x303   : > { %v1063_v62 = vadd.f32 %v1020_v11, %v830_v57  ;;  %v1449_v63 = vpop.f32.mrb[30].mxu1  ;;  %v1129_v32 = vld [vmem:[#allocation2 + $0xd0] sm:$0xff] (!%p1301_p8) }
 0x304   : > { %1097 = vst.msk [vmem:[#allocation2 + $0xf0] sm:$0xff] %vm365_vm1, %v1065_v48  ;;  %v1066_v3 = vadd.f32 %v1449_v63, %v833_v7  ;;  %v1023_v8 = vpop.f32.mrb[31].mxu1  ;;  %v1127_v51 = vld [vmem:[#allocation2 + $0xc0] sm:$0xff] (!%p1301_p8)  ;;  %1161 = vst.msk [vmem:[%s1667_s29 + $0xd0] sm:$0xff] (!%p1301_p8), %vm365_vm1, %v1129_v32 }
 0x305   : > { %1095 = vst.msk [vmem:[#allocation2 + $0xe0] sm:$0xff] %vm365_vm1, %v1063_v62  ;;  %v1064_v13 = vadd.f32 %v1023_v8, %v831_v19  ;;  %1159 = vst.msk [vmem:[%s1667_s29 + $0xc0] sm:$0xff] (!%p1301_p8), %vm365_vm1, %v1127_v51  ;;  %v1130_v9 = vld [vmem:[#allocation2 + $0xd8] sm:$0xff] (!%p1301_p8) }
 0x306   : > { %1098 = vst.msk [vmem:[#allocation2 + $0xf8] sm:$0xff] %vm365_vm1, %v1066_v3  ;;  %v1128_v28 = vld [vmem:[#allocation2 + $0xc8] sm:$0xff] (!%p1301_p8)  ;;  %1162 = vst.msk [vmem:[%s1667_s29 + $0xd8] sm:$0xff] (!%p1301_p8), %vm365_vm1, %v1130_v9 }
 0x307   : > { %1096 = vst.msk [vmem:[#allocation2 + $0xe8] sm:$0xff] %vm365_vm1, %v1064_v13  ;;  %1160 = vst.msk [vmem:[%s1667_s29 + $0xc8] sm:$0xff] (!%p1301_p8), %vm365_vm1, %v1128_v28 }
 0x30b   : > { %v1133_v38 = vld [vmem:[#allocation2 + $0xf0] sm:$0xff] }
 0x30c   : > { %v1131_v27 = vld [vmem:[#allocation2 + $0xe0] sm:$0xff]  ;;  %1165 = vst.msk [vmem:[%s1667_s29 + $0xf0] sm:$0xff] %vm365_vm1, %v1133_v38 }
 0x30d   : > { %1163 = vst.msk [vmem:[%s1667_s29 + $0xe0] sm:$0xff] %vm365_vm1, %v1131_v27  ;;  %v1134_v25 = vld [vmem:[#allocation2 + $0xf8] sm:$0xff] }
 0x30e   : > { %v1132_v21 = vld [vmem:[#allocation2 + $0xe8] sm:$0xff]  ;;  %1166 = vst.msk [vmem:[%s1667_s29 + $0xf8] sm:$0xff] %vm365_vm1, %v1134_v25 }
 0x30f   : > { %1164 = vst.msk [vmem:[%s1667_s29 + $0xe8] sm:$0xff] %vm365_vm1, %v1132_v21 }
 0x310 PF: > { %s13_s16 = sadd.s32 1, %s1603_s16   ;;  %s2222_s12 = smov %s1595_s14 }
 0x311   : > { %p10_p9 = scmp.ge.s32.totalorder %s13_s16, 6   ;;  %s2223_s13 = smov %s1599_s15 }
 0x312   : > { %s2224_s14 = smov %s2227_s17  ;;  %s2225_s15 = smov %s2231_s18 }
 0x313   :  { %12 = sbr.rel (!%p10_p9) target bundleno = 3 (0x3), region = 76 }

// kernel: nl_res_group.30
= control target key start
LH: loop header
LB: loop body
LE: loop exit
PB: predicated region body
PF: predicated region fallthrough
CT: control target
= control target key end

     0   :  { %s4035_s12 = smov 0   ;;  %s4718_s0 = inlined_call_operand.vmem [shape: f32[2,18,18,4], index: 0, kind: input, shape index: {}]   ;;  %s4719_s1 = inlined_call_operand.vmem [shape: bf16[3,3,4,4], index: 1, kind: input, shape index: {}]   ;;  %s4720_s2 = inlined_call_operand.vmem [shape: f32[1,4], index: 2, kind: input, shape index: {}]   ;;  %s4721_s3 = inlined_call_operand.vmem [shape: f32[2,16,16,4], index: 3, kind: output, shape index: {}]  }
   0x1 LB: > { %s2915_s13 = sadd.s32 4294967295, %s4013_s12   ;;  %p2919_p0 = scmp.ge.s32.totalorder %s4013_s12, 1  ;;  %s4013_s12 = sphi %s4035_s12, %s13_s12  }
   0x2   : > { %p137_p1 = scmp.lt.s32.totalorder %s4013_s12, 3 }
   0x4   : > { %p138_p2 = pnand %p2919_p0, %p137_p1 }
   0x5   : > { %v2923_v0 = vld [vmem:[%s4719_s1 + $0x2] sm:$0x3] (!%p138_p2)  ;;  %vm320_vm0 = vcmask (!%p138_p2), 1041408   ;;  %v4049_v1 = vld [vmem:[%s4719_s1 + $0x8] sm:$0x3] (!%p138_p2)  ;;  %p161_p3 = scmp.lt.s32.totalorder (!%p138_p2), %s2915_s13, 1 }
   0x6   : > { %141 = sbr.rel (%p138_p2) target bundleno = 524 (0x20c), region = 32  ;;  %3988 = vmatprep.subr.msk.bf16.mxu1 (!%p138_p2), %vm320_vm0, %v2923_v0  ;;  %3992 = vmatprep.subr.msk.bf16.mxu0 (!%p138_p2), %vm320_vm0, %v4049_v1  ;;  %v322_v2 = vsel (!%p138_p2), %vm320_vm0, %v2923_v0, 0  ;;  %v4057_v3 = vsel (!%p138_p2), %vm320_vm0, %v4049_v1, 0  ;;  %v220_v4 = vld [vmem:[%s4719_s1] sm:$0x3] (!%p138_p2)  ;;  %vm271_vm1 = vcmask (!%p138_p2), 31744  }
   0x7   : > { %3425 = vmatpush3.bf16.msra.mxu1 (!%p138_p2), %v322_v2  ;;  %3561 = vmatpush3.bf16.msra.mxu0 (!%p138_p2), %v4057_v3  ;;  %v3103_v5 = vld [vmem:[%s4719_s1 + $0xa] sm:$0x3] (!%p138_p2)  ;;  %v534_v14 = vsel (!%p138_p2), %vm320_vm0, %v220_v4, 0  ;;  %v3152_v20 = vld [vmem:[%s4719_s1 + $0xc] sm:$0x3] (!%p138_p2) }
   0x8   : > { %3989 = vmatprep.subr.msk.bf16.mxu1 (!%p138_p2), %vm320_vm0, %v220_v4  ;;  %3994 = vmatprep.subr.msk.bf16.mxu0 (!%p138_p2), %vm320_vm0, %v3103_v5  ;;  %v1679_v18 = vsel (!%p138_p2), %vm320_vm0, %v3103_v5, 0  ;;  %v4101_v21 = vld [vmem:[%s4719_s1 + $0x4] sm:$0x3] (!%p138_p2)  ;;  %v1974_v52 = vsel (!%p138_p2), %vm320_vm0, %v3152_v20, 0  ;;  %v4180_v53 = vld [vmem:[%s4719_s1 + $0xe] sm:$0x3] (!%p138_p2) }
   0xd   : > { %s4723_s13 = smov (!%p161_p3, %s2915_s13), 1 }
   0xe   : > { %s3998_s22 = smul.u32 432, %s4723_s13  ;;  %s3270_s11 = sshll.u32 %s4723_s13, 8 }
   0xf   : > { %s4614_s16 = scalar_lea.vmem %s4721_s3, %s3270_s11 }
  0x10   : > { %s4074_s25 = scalar_lea.vmem %s4718_s0, %s3998_s22 }
  0x11   : > { %v221_v6 = vld [vmem:[%s4074_s25 + $0x1] sm:$0xff]  ;;  %v222_v7 = vld [vmem:[%s4074_s25 + $0x9] sm:$0xff]  ;;  %v3022_v8 = vld [vmem:[%s4074_s25 + $0x19] sm:$0xff] }
  0x12   : > { %v253_v9 = vpack.c.bf16 %v222_v7, %v221_v6  ;;  %v3023_v10 = vld [vmem:[%s4074_s25 + $0x21] sm:$0xff]  ;;  %v3024_v11 = vld [vmem:[%s4074_s25 + $0x31] sm:$0xff]  ;;  %v3025_v12 = vld [vmem:[%s4074_s25 + $0x39] sm:$0xff] }
  0x13   : > { %v1318_v13 = vpack.c.bf16 %v3023_v10, %v3022_v8  ;;  %v4083_v15 = vpack.c.bf16 %v3025_v12, %v3024_v11  ;;  %v3026_v16 = vld [vmem:[%s4074_s25 + $0x49] sm:$0xff]  ;;  %v3027_v17 = vld [vmem:[%s4074_s25 + $0x51] sm:$0xff]  ;;  %v3028_v22 = vld [vmem:[%s4074_s25 + $0x61] sm:$0xff] }
  0x14   : > { %3426 = vmatprep.mubr.msk.bf16.mxu1 %vm271_vm1, %v253_v9  ;;  %v4089_v19 = vpack.c.bf16 %v3027_v17, %v3026_v16  ;;  %v3029_v23 = vld [vmem:[%s4074_s25 + $0x69] sm:$0xff]  ;;  %v3030_v24 = vld [vmem:[%s4074_s25 + $0x79] sm:$0xff]  ;;  %v3031_v25 = vld [vmem:[%s4074_s25 + $0x81] sm:$0xff] }
  0x15   : > { %3562 = vmatprep.mubr.msk.bf16.mxu0 %vm271_vm1, %v1318_v13  ;;  %3427 = vmatmul.mubr.msk.bf16.vlgmr.msra.gmra.mrb[0].mxu1 %vm271_vm1, %v1318_v13  ;;  %v4114_v26 = vpack.c.bf16 %v3029_v23, %v3028_v22  ;;  %v4116_v27 = vpack.c.bf16 %v3031_v25, %v3030_v24  ;;  %v3032_v28 = vld [vmem:[%s4074_s25 + $0x91] sm:$0xff]  ;;  %v3033_v29 = vld [vmem:[%s4074_s25 + $0x99] sm:$0xff]  ;;  %v3034_v30 = vld [vmem:[%s4074_s25 + $0xa9] sm:$0xff] }
  0x16   : > { %3459 = vmatpush3.bf16.msra.mxu1 %v534_v14  ;;  %3563 = vmatmul.mubr.msk.bf16.vlgmr.msra.gmra.mrb[0].mxu0 %vm271_vm1, %v4083_v15  ;;  %v3035_v31 = vld [vmem:[%s4074_s25 + $0xb1] sm:$0xff]  ;;  %v4130_v32 = vpack.c.bf16 %v3033_v29, %v3032_v28  ;;  %v3036_v34 = vld [vmem:[%s4074_s25 + $0xc1] sm:$0xff]  ;;  %v3037_v35 = vld [vmem:[%s4074_s25 + $0xc9] sm:$0xff] }
  0x17   : > { %3595 = vmatpush3.bf16.msra.mxu0 %v1679_v18  ;;  %3430 = vmatprep.mubr.msk.bf16.mxu1 %vm271_vm1, %v4083_v15  ;;  %v4132_v33 = vpack.c.bf16 %v3035_v31, %v3034_v30  ;;  %v3071_v36 = vld [vmem:[%s4074_s25 + $0x1a] sm:$0xff]  ;;  %v3072_v37 = vld [vmem:[%s4074_s25 + $0x22] sm:$0xff]  ;;  %v4146_v38 = vpack.c.bf16 %v3037_v35, %v3036_v34  ;;  %v3073_v42 = vld [vmem:[%s4074_s25 + $0x32] sm:$0xff] }
  0x18   : > { %3566 = vmatprep.mubr.msk.bf16.mxu0 %vm271_vm1, %v4089_v19  ;;  %3995 = vmatprep.subr.msk.bf16.mxu0 %vm320_vm0, %v3152_v20  ;;  %v4148_v39 = vpack.c.bf16 %v3072_v37, %v3071_v36  ;;  %v239_v40 = vld [vmem:[%s4074_s25 + $0xd9] sm:$0xff]  ;;  %v240_v41 = vld [vmem:[%s4074_s25 + $0xe1] sm:$0xff]  ;;  %v241_v44 = vld [vmem:[%s4074_s25 + $0xf1] sm:$0xff] }
  0x19   : > { %3990 = vmatprep.subr.msk.bf16.mxu1 %vm320_vm0, %v4101_v21  ;;  %v3074_v43 = vld [vmem:[%s4074_s25 + $0x3a] sm:$0xff]  ;;  %v3075_v46 = vld [vmem:[%s4074_s25 + $0x4a] sm:$0xff]  ;;  %v3076_v47 = vld [vmem:[%s4074_s25 + $0x52] sm:$0xff]  ;;  %v4166_v48 = vpack.c.bf16 %v240_v41, %v239_v40 }
  0x1a   : > { %v242_v45 = vld [vmem:[%s4074_s25 + $0xf9] sm:$0xff]  ;;  %v4168_v49 = vpack.c.bf16 %v3074_v43, %v3073_v42  ;;  %v4172_v51 = vpack.c.bf16 %v3076_v47, %v3075_v46  ;;  %v243_v54 = vld [vmem:[%s4074_s25 + $0x109] sm:$0xff]  ;;  %v244_v55 = vld [vmem:[%s4074_s25 + $0x111] sm:$0xff]  ;;  %v796_v47 = vsel %vm320_vm0, %v4101_v21, 0 }
  0x1b   : > { %v4170_v50 = vpack.c.bf16 %v242_v45, %v241_v44  ;;  %v3077_v56 = vld [vmem:[%s4074_s25 + $0x62] sm:$0xff]  ;;  %v3078_v57 = vld [vmem:[%s4074_s25 + $0x6a] sm:$0xff]  ;;  %v3079_v60 = vld [vmem:[%s4074_s25 + $0x7a] sm:$0xff]  ;;  %v4198_v62 = vpack.c.bf16 %v244_v55, %v243_v54 }
  0x1c   : > { %v245_v58 = vld [vmem:[%s4074_s25 + $0x121] sm:$0xff]  ;;  %v246_v59 = vld [vmem:[%s4074_s25 + $0x129] sm:$0xff]  ;;  %v4200_v63 = vpack.c.bf16 %v3078_v57, %v3077_v56  ;;  %v247_v4 = vld [vmem:[%s4074_s25 + $0x139] sm:$0xff] }
  0x1d   : > { %3431 = vmatmul.mubr.msk.bf16.gmra.mrb[4].mxu1 %vm271_vm1, %v4089_v19  ;;  %v3080_v61 = vld [vmem:[%s4074_s25 + $0x82] sm:$0xff]  ;;  %v4202_v0 = vpack.c.bf16 %v246_v59, %v245_v58  ;;  %v3081_v6 = vld [vmem:[%s4074_s25 + $0x92] sm:$0xff]  ;;  %v3082_v7 = vld [vmem:[%s4074_s25 + $0x9a] sm:$0xff] }
  0x1e   : > { %3567 = vmatmul.mubr.msk.bf16.gmra.mrb[4].mxu0 %vm271_vm1, %v4114_v26  ;;  %3434 = vmatprep.mubr.msk.bf16.mxu1 %vm271_vm1, %v4114_v26  ;;  %v4204_v2 = vpack.c.bf16 %v3080_v61, %v3079_v60  ;;  %v248_v5 = vld [vmem:[%s4074_s25 + $0x141] sm:$0xff]  ;;  %v249_v8 = vld [vmem:[%s4074_s25 + $0x151] sm:$0xff]  ;;  %v250_v9 = vld [vmem:[%s4074_s25 + $0x159] sm:$0xff]  ;;  %v4224_v13 = vpack.c.bf16 %v3082_v7, %v3081_v6 }
  0x1f   : > { %3570 = vmatprep.mubr.msk.bf16.mxu0 %vm271_vm1, %v4116_v27  ;;  %v3083_v10 = vld [vmem:[%s4074_s25 + $0xaa] sm:$0xff]  ;;  %v3084_v11 = vld [vmem:[%s4074_s25 + $0xb2] sm:$0xff]  ;;  %v4222_v12 = vpack.c.bf16 %v248_v5, %v247_v4  ;;  %v4226_v14 = vpack.c.bf16 %v250_v9, %v249_v8  ;;  %v3085_v20 = vld [vmem:[%s4074_s25 + $0xc2] sm:$0xff] }
  0x20   : > { %v4228_v16 = vpack.c.bf16 %v3084_v11, %v3083_v10  ;;  %v251_v17 = vld [vmem:[%s4074_s25 + $0x169] sm:$0xff]  ;;  %v252_v18 = vld [vmem:[%s4074_s25 + $0x171] sm:$0xff]  ;;  %v172_v23 = vld [vmem:[%s4074_s25] sm:$0xff] }
  0x21   : > { %v3086_v22 = vld [vmem:[%s4074_s25 + $0xca] sm:$0xff]  ;;  %v3087_v25 = vld [vmem:[%s4074_s25 + $0xda] sm:$0xff]  ;;  %v3088_v28 = vld [vmem:[%s4074_s25 + $0xe2] sm:$0xff]  ;;  %v4246_v29 = vpack.c.bf16 %v252_v18, %v251_v17 }
  0x22   : > { %v173_v24 = vld [vmem:[%s4074_s25 + $0x8] sm:$0xff]  ;;  %v4248_v30 = vpack.c.bf16 %v3086_v22, %v3085_v20  ;;  %v4250_v34 = vpack.c.bf16 %v3088_v28, %v3087_v25  ;;  %v174_v35 = vld [vmem:[%s4074_s25 + $0x18] sm:$0xff]  ;;  %v175_v36 = vld [vmem:[%s4074_s25 + $0x20] sm:$0xff] }
  0x23   : > { %v204_v31 = vpack.c.bf16 %v173_v24, %v172_v23  ;;  %v3089_v37 = vld [vmem:[%s4074_s25 + $0xf2] sm:$0xff]  ;;  %v3090_v40 = vld [vmem:[%s4074_s25 + $0xfa] sm:$0xff]  ;;  %v3091_v43 = vld [vmem:[%s4074_s25 + $0x10a] sm:$0xff]  ;;  %v4267_v45 = vpack.c.bf16 %v175_v36, %v174_v35 }
  0x24   : > { %v176_v41 = vld [vmem:[%s4074_s25 + $0x30] sm:$0xff]  ;;  %v177_v42 = vld [vmem:[%s4074_s25 + $0x38] sm:$0xff]  ;;  %v4269_v46 = vpack.c.bf16 %v3090_v40, %v3089_v37  ;;  %v4282_v55 = vld [vmem:[%s4719_s1 + $0x6] sm:$0x3] }
  0x25   : > { %3435 = vmatmul.mubr.msk.bf16.gmra.mrb[8].mxu1 %vm271_vm1, %v4116_v27  ;;  %v3092_v44 = vld [vmem:[%s4074_s25 + $0x112] sm:$0xff]  ;;  %v178_v56 = vld [vmem:[%s4074_s25 + $0x48] sm:$0xff]  ;;  %v180_v59 = vld [vmem:[%s4074_s25 + $0x60] sm:$0xff] }
  0x26   : > { %3571 = vmatmul.mubr.msk.bf16.gmra.mrb[8].mxu0 %vm271_vm1, %v4130_v32  ;;  %3438 = vmatprep.mubr.msk.bf16.mxu1 %vm271_vm1, %v4130_v32  ;;  %v4275_v54 = vpack.c.bf16 %v3092_v44, %v3091_v43  ;;  %v179_v57 = vld [vmem:[%s4074_s25 + $0x50] sm:$0xff]  ;;  %v3093_v21 = vld [vmem:[%s4074_s25 + $0x122] sm:$0xff]  ;;  %v3095_v61 = vld [vmem:[%s4074_s25 + $0x13a] sm:$0xff] }
  0x27   : > { %3574 = vmatprep.mubr.msk.bf16.mxu0 %vm271_vm1, %v4132_v33  ;;  %v3094_v58 = vld [vmem:[%s4074_s25 + $0x12a] sm:$0xff]  ;;  %v3096_v4 = vld [vmem:[%s4074_s25 + $0x142] sm:$0xff]  ;;  %v4300_v5 = vpack.c.bf16 %v179_v57, %v178_v56  ;;  %v182_v9 = vld [vmem:[%s4074_s25 + $0x78] sm:$0xff] }
  0x28   : > { %v181_v60 = vld [vmem:[%s4074_s25 + $0x68] sm:$0xff]  ;;  %v4302_v6 = vpack.c.bf16 %v3094_v58, %v3093_v21  ;;  %v4306_v8 = vpack.c.bf16 %v3096_v4, %v3095_v61  ;;  %v183_v10 = vld [vmem:[%s4074_s25 + $0x80] sm:$0xff]  ;;  %v3097_v11 = vld [vmem:[%s4074_s25 + $0x152] sm:$0xff]  ;;  %v2268_v61 = vsel %vm320_vm0, %v4180_v53, 0 }
  0x29   : > { %v4304_v7 = vpack.c.bf16 %v181_v60, %v180_v59  ;;  %v3098_v17 = vld [vmem:[%s4074_s25 + $0x15a] sm:$0xff]  ;;  %v184_v18 = vld [vmem:[%s4074_s25 + $0x90] sm:$0xff]  ;;  %v4324_v24 = vpack.c.bf16 %v183_v10, %v182_v9  ;;  %v186_v35 = vld [vmem:[%s4074_s25 + $0xa8] sm:$0xff] }
  0x2a   : > { %v185_v20 = vld [vmem:[%s4074_s25 + $0x98] sm:$0xff]  ;;  %v3099_v22 = vld [vmem:[%s4074_s25 + $0x16a] sm:$0xff]  ;;  %v4326_v25 = vpack.c.bf16 %v3098_v17, %v3097_v11  ;;  %v3101_v37 = vld [vmem:[%s4074_s25 + $0x182] sm:$0xff] }
  0x2b   : > { %v3100_v23 = vld [vmem:[%s4074_s25 + $0x172] sm:$0xff]  ;;  %v4328_v28 = vpack.c.bf16 %v185_v20, %v184_v18  ;;  %v3102_v40 = vld [vmem:[%s4074_s25 + $0x18a] sm:$0xff]  ;;  %v191_v57 = vld [vmem:[%s4074_s25 + $0xe0] sm:$0xff] }
  0x2c   : > { %v187_v36 = vld [vmem:[%s4074_s25 + $0xb0] sm:$0xff]  ;;  %v4348_v44 = vpack.c.bf16 %v3102_v40, %v3101_v37  ;;  %v190_v56 = vld [vmem:[%s4074_s25 + $0xd8] sm:$0xff]  ;;  %v194_v9 = vld [vmem:[%s4074_s25 + $0x108] sm:$0xff] }
  0x2d   : > { %3439 = vmatmul.mubr.msk.bf16.gmra.mrb[12].mxu1 %vm271_vm1, %v4132_v33  ;;  %v4346_v43 = vpack.c.bf16 %v187_v36, %v186_v35  ;;  %v192_v21 = vld [vmem:[%s4074_s25 + $0xf0] sm:$0xff]  ;;  %v193_v58 = vld [vmem:[%s4074_s25 + $0xf8] sm:$0xff]  ;;  %v4364_v59 = vpack.c.bf16 %v191_v57, %v190_v56  ;;  %v197_v11 = vld [vmem:[%s4074_s25 + $0x128] sm:$0xff] }
  0x2e   : > { %3575 = vmatmul.mubr.msk.bf16.gmra.mrb[12].mxu0 %vm271_vm1, %v4146_v38  ;;  %3442 = vmatprep.mubr.msk.bf16.mxu1 %vm271_vm1, %v4146_v38  ;;  %v4366_v60 = vpack.c.bf16 %v193_v58, %v192_v21  ;;  %v3250_v4 = vld [vmem:[%s4719_s1 + $0x10] sm:$0x3]  ;;  %v198_v20 = vld [vmem:[%s4074_s25 + $0x138] sm:$0xff]  ;;  %v202_v40 = vld [vmem:[%s4074_s25 + $0x168] sm:$0xff]  ;;  %v1091_v58 = vsel %vm320_vm0, %v4282_v55, 0 }
  0x2f   : > { %3596 = vmatprep.mubr.msk.bf16.mxu0 %vm271_vm1, %v4148_v39  ;;  %v195_v10 = vld [vmem:[%s4074_s25 + $0x110] sm:$0xff]  ;;  %v201_v35 = vld [vmem:[%s4074_s25 + $0x158] sm:$0xff] }
  0x30   : > { %v4386_v17 = vpack.c.bf16 %v195_v10, %v194_v9  ;;  %v698_v56 = vld [vmem:[%s4074_s25 + $0xa] sm:$0xff]  ;;  %v3151_v9 = vld [vmem:[%s4074_s25 + $0x1a0] sm:$0xff] }
  0x35   : > { %3443 = vmatmul.mubr.msk.bf16.gmra.mrb[16].mxu1 %vm271_vm1, %v4166_v48 }
  0x36   : > { %3597 = vmatmul.mubr.msk.bf16.vlgmr.msra.gmra.mrb[0].mxu0 %vm271_vm1, %v4168_v49  ;;  %3446 = vmatprep.mubr.msk.bf16.mxu1 %vm271_vm1, %v4170_v50 }
  0x37   : > { %3629 = vmatpush3.bf16.msra.mxu0 %v1974_v52  ;;  %3600 = vmatprep.mubr.msk.bf16.mxu0 %vm271_vm1, %v4172_v51  ;;  %v4273_v52 = vpack.c.bf16 %v177_v42, %v176_v41  ;;  %v188_v41 = vld [vmem:[%s4074_s25 + $0xc0] sm:$0xff]  ;;  %v189_v42 = vld [vmem:[%s4074_s25 + $0xc8] sm:$0xff] }
  0x38   : > { %3996 = vmatprep.subr.msk.bf16.mxu0 %vm320_vm0, %v4180_v53  ;;  %v196_v53 = vld [vmem:[%s4074_s25 + $0x120] sm:$0xff] }
  0x39   : > { %v4388_v18 = vpack.c.bf16 %v197_v11, %v196_v53  ;;  %v2562_v53 = vsel %vm320_vm0, %v3250_v4, 0 }
  0x3d   : > { %3447 = vmatmul.mubr.msk.bf16.gmra.mrb[20].mxu1 %vm271_vm1, %v4198_v62 }
  0x3e   : > { %3601 = vmatmul.mubr.msk.bf16.gmra.mrb[4].mxu0 %vm271_vm1, %v4200_v63  ;;  %3450 = vmatprep.mubr.msk.bf16.mxu1 %vm271_vm1, %v4202_v0 }
  0x3f   : > { %3604 = vmatprep.mubr.msk.bf16.mxu0 %vm271_vm1, %v4204_v2 }
  0x45   : > { %3451 = vmatmul.mubr.msk.bf16.gmra.mrb[24].mxu1 %vm271_vm1, %v4222_v12 }
  0x46   : > { %3605 = vmatmul.mubr.msk.bf16.gmra.mrb[8].mxu0 %vm271_vm1, %v4224_v13  ;;  %3454 = vmatprep.mubr.msk.bf16.mxu1 %vm271_vm1, %v4226_v14 }
  0x47   : > { %3608 = vmatprep.mubr.msk.bf16.mxu0 %vm271_vm1, %v4228_v16 }
  0x4d   : > { %3455 = vmatmul.mubr.msk.bf16.gmra.mrb[28].mxu1 %vm271_vm1, %v4246_v29 }
  0x4e   : > { %3609 = vmatmul.mubr.msk.bf16.gmra.mrb[12].mxu0 %vm271_vm1, %v4248_v30  ;;  %3460 = vmatprep.mubr.msk.bf16.mxu1 %vm271_vm1, %v204_v31  ;;  %v4330_v31 = vpack.c.bf16 %v3100_v23, %v3099_v22  ;;  %v199_v22 = vld [vmem:[%s4074_s25 + $0x140] sm:$0xff]  ;;  %v200_v23 = vld [vmem:[%s4074_s25 + $0x150] sm:$0xff] }
  0x4f   : > { %3612 = vmatprep.mubr.msk.bf16.mxu0 %vm271_vm1, %v4250_v34  ;;  %v4402_v36 = vpack.c.bf16 %v199_v22, %v198_v20  ;;  %v4404_v37 = vpack.c.bf16 %v201_v35, %v200_v23 }
  0x55   : > { %3461 = vmatmul.mubr.msk.bf16.vlgmr.msra.gmra.mrb[0].mxu1 %vm271_vm1, %v4267_v45 }
  0x56   : > { %3493 = vmatpush3.bf16.msra.mxu1 %v796_v47  ;;  %3613 = vmatmul.mubr.msk.bf16.gmra.mrb[16].mxu0 %vm271_vm1, %v4269_v46  ;;  %v4350_v47 = vpack.c.bf16 %v189_v42, %v188_v41  ;;  %v203_v41 = vld [vmem:[%s4074_s25 + $0x170] sm:$0xff]  ;;  %v697_v42 = vld [vmem:[%s4074_s25 + $0x2] sm:$0xff] }
  0x57   : > { %3464 = vmatprep.mubr.msk.bf16.mxu1 %vm271_vm1, %v4273_v52  ;;  %3616 = vmatprep.mubr.msk.bf16.mxu0 %vm271_vm1, %v4275_v54  ;;  %v4418_v57 = vpack.c.bf16 %v203_v41, %v202_v40  ;;  %v729_v21 = vpack.c.bf16 %v698_v56, %v697_v42 }
  0x58   : > { %3991 = vmatprep.subr.msk.bf16.mxu1 %vm320_vm0, %v4282_v55  ;;  %v3149_v55 = vld [vmem:[%s4074_s25 + $0x188] sm:$0xff] }
  0x5d   : > { %3465 = vmatmul.mubr.msk.bf16.gmra.mrb[4].mxu1 %vm271_vm1, %v4300_v5 }
  0x5e   : > { %3617 = vmatmul.mubr.msk.bf16.gmra.mrb[20].mxu0 %vm271_vm1, %v4302_v6  ;;  %3468 = vmatprep.mubr.msk.bf16.mxu1 %vm271_vm1, %v4304_v7 }
  0x5f   : > { %3620 = vmatprep.mubr.msk.bf16.mxu0 %vm271_vm1, %v4306_v8 }
  0x65   : > { %3469 = vmatmul.mubr.msk.bf16.gmra.mrb[8].mxu1 %vm271_vm1, %v4324_v24 }
  0x66   : > { %3621 = vmatmul.mubr.msk.bf16.gmra.mrb[24].mxu0 %vm271_vm1, %v4326_v25  ;;  %3472 = vmatprep.mubr.msk.bf16.mxu1 %vm271_vm1, %v4328_v28 }
  0x67   : > { %3624 = vmatprep.mubr.msk.bf16.mxu0 %vm271_vm1, %v4330_v31 }
  0x6d   : > { %3473 = vmatmul.mubr.msk.bf16.gmra.mrb[12].mxu1 %vm271_vm1, %v4346_v43 }
  0x6e   : > { %3625 = vmatmul.mubr.msk.bf16.gmra.mrb[28].mxu0 %vm271_vm1, %v4348_v44  ;;  %3476 = vmatprep.mubr.msk.bf16.mxu1 %vm271_vm1, %v4350_v47 }
  0x6f   : > { %3630 = vmatprep.mubr.msk.bf16.mxu0 %vm271_vm1, %v4273_v52 }
  0x75   : > { %3477 = vmatmul.mubr.msk.bf16.gmra.mrb[16].mxu1 %vm271_vm1, %v4364_v59 }
  0x76   : > { %3631 = vmatmul.mubr.msk.bf16.vlgmr.msra.gmra.mrb[0].mxu0 %vm271_vm1, %v4300_v5  ;;  %3480 = vmatprep.mubr.msk.bf16.mxu1 %vm271_vm1, %v4366_v60 }
  0x77   : > { %3663 = vmatpush3.bf16.msra.mxu0 %v2268_v61  ;;  %3634 = vmatprep.mubr.msk.bf16.mxu0 %vm271_vm1, %v4304_v7 }
  0x78   : > { %3997 = vmatprep.subr.msk.bf16.mxu0 %vm320_vm0, %v3250_v4 }
  0x7d   : > { %3481 = vmatmul.mubr.msk.bf16.gmra.mrb[20].mxu1 %vm271_vm1, %v4386_v17 }
  0x7e   : > { %3635 = vmatmul.mubr.msk.bf16.gmra.mrb[4].mxu0 %vm271_vm1, %v4324_v24  ;;  %3484 = vmatprep.mubr.msk.bf16.mxu1 %vm271_vm1, %v4388_v18 }
  0x7f   : > { %3638 = vmatprep.mubr.msk.bf16.mxu0 %vm271_vm1, %v4328_v28 }
  0x85   : > { %3485 = vmatmul.mubr.msk.bf16.gmra.mrb[24].mxu1 %vm271_vm1, %v4402_v36 }
  0x86   : > { %3639 = vmatmul.mubr.msk.bf16.gmra.mrb[8].mxu0 %vm271_vm1, %v4346_v43  ;;  %3488 = vmatprep.mubr.msk.bf16.mxu1 %vm271_vm1, %v4404_v37 }
  0x87   : > { %3642 = vmatprep.mubr.msk.bf16.mxu0 %vm271_vm1, %v4350_v47 }
  0x8d   : > { %3489 = vmatmul.mubr.msk.bf16.gmra.mrb[28].mxu1 %vm271_vm1, %v4418_v57 }
  0x8e   : > { %3643 = vmatmul.mubr.msk.bf16.gmra.mrb[12].mxu0 %vm271_vm1, %v4364_v59  ;;  %3494 = vmatprep.mubr.msk.bf16.mxu1 %vm271_vm1, %v729_v21 }
  0x8f   : > { %3646 = vmatprep.mubr.msk.bf16.mxu0 %vm271_vm1, %v4366_v60 }
  0x95   : > { %3495 = vmatmul.mubr.msk.bf16.vlgmr.msra.gmra.mrb[0].mxu1 %vm271_vm1, %v4148_v39  ;;  %v3148_v39 = vld [vmem:[%s4074_s25 + $0x180] sm:$0xff] }
  0x96   : > { %3527 = vmatpush3.bf16.msra.mxu1 %v1091_v58  ;;  %3647 = vmatmul.mubr.msk.bf16.gmra.mrb[16].mxu0 %vm271_vm1, %v4386_v17  ;;  %v4449_v61 = vpack.c.bf16 %v3149_v55, %v3148_v39 }
  0x97   : > { %3498 = vmatprep.mubr.msk.bf16.mxu1 %vm271_vm1, %v4168_v49  ;;  %3650 = vmatprep.mubr.msk.bf16.mxu0 %vm271_vm1, %v4388_v18 }
  0x98   : > { %3993 = vmatprep.subr.msk.bf16.mxu1 %vm320_vm0, %v4049_v1  ;;  %v3150_v1 = vld [vmem:[%s4074_s25 + $0x198] sm:$0xff] }
  0x99   : > { %v1922_v10 = vpack.c.bf16 %v3151_v9, %v3150_v1 }
  0x9d   : > { %3499 = vmatmul.mubr.msk.bf16.gmra.mrb[4].mxu1 %vm271_vm1, %v4172_v51 }
  0x9e   : > { %3651 = vmatmul.mubr.msk.bf16.gmra.mrb[20].mxu0 %vm271_vm1, %v4402_v36  ;;  %3502 = vmatprep.mubr.msk.bf16.mxu1 %vm271_vm1, %v4200_v63 }
  0x9f   : > { %3654 = vmatprep.mubr.msk.bf16.mxu0 %vm271_vm1, %v4404_v37 }
  0xa5   : > { %3503 = vmatmul.mubr.msk.bf16.gmra.mrb[8].mxu1 %vm271_vm1, %v4204_v2 }
  0xa6   : > { %3655 = vmatmul.mubr.msk.bf16.gmra.mrb[24].mxu0 %vm271_vm1, %v4418_v57  ;;  %3506 = vmatprep.mubr.msk.bf16.mxu1 %vm271_vm1, %v4224_v13 }
  0xa7   : > { %3658 = vmatprep.mubr.msk.bf16.mxu0 %vm271_vm1, %v4449_v61 }
  0xad   : > { %3507 = vmatmul.mubr.msk.bf16.gmra.mrb[12].mxu1 %vm271_vm1, %v4228_v16 }
  0xae   : > { %3659 = vmatmul.mubr.msk.bf16.gmra.mrb[28].mxu0 %vm271_vm1, %v1922_v10  ;;  %3510 = vmatprep.mubr.msk.bf16.mxu1 %vm271_vm1, %v4248_v30 }
  0xaf   : > { %3664 = vmatprep.mubr.msk.bf16.mxu0 %vm271_vm1, %v4083_v15  ;;  %v3198_v15 = vld [vmem:[%s4074_s25 + $0x189] sm:$0xff] }
  0xb5   : > { %3511 = vmatmul.mubr.msk.bf16.gmra.mrb[16].mxu1 %vm271_vm1, %v4250_v34 }
  0xb6   : > { %3665 = vmatmul.mubr.msk.bf16.vlgmr.msra.gmra.mrb[0].mxu0 %vm271_vm1, %v4089_v19  ;;  %3514 = vmatprep.mubr.msk.bf16.mxu1 %vm271_vm1, %v4269_v46 }
  0xb7   : > { %3697 = vmatpush3.bf16.msra.mxu0 %v2562_v53  ;;  %3668 = vmatprep.mubr.msk.bf16.mxu0 %vm271_vm1, %v4114_v26  ;;  %v3199_v26 = vld [vmem:[%s4074_s25 + $0x199] sm:$0xff] }
  0xbd   : > { %3515 = vmatmul.mubr.msk.bf16.gmra.mrb[20].mxu1 %vm271_vm1, %v4275_v54 }
  0xbe   : > { %3669 = vmatmul.mubr.msk.bf16.gmra.mrb[4].mxu0 %vm271_vm1, %v4116_v27  ;;  %3518 = vmatprep.mubr.msk.bf16.mxu1 %vm271_vm1, %v4302_v6  ;;  %v3200_v27 = vld [vmem:[%s4074_s25 + $0x1a1] sm:$0xff] }
  0xbf   : > { %3672 = vmatprep.mubr.msk.bf16.mxu0 %vm271_vm1, %v4130_v32  ;;  %v2216_v32 = vpack.c.bf16 %v3200_v27, %v3199_v26 }
  0xc5   : > { %3519 = vmatmul.mubr.msk.bf16.gmra.mrb[24].mxu1 %vm271_vm1, %v4306_v8 }
  0xc6   : > { %3673 = vmatmul.mubr.msk.bf16.gmra.mrb[8].mxu0 %vm271_vm1, %v4132_v33  ;;  %3522 = vmatprep.mubr.msk.bf16.mxu1 %vm271_vm1, %v4326_v25  ;;  %v3248_v33 = vld [vmem:[%s4074_s25 + $0x19a] sm:$0xff] }
  0xc7   : > { %3676 = vmatprep.mubr.msk.bf16.mxu0 %vm271_vm1, %v4146_v38  ;;  %v3249_v38 = vld [vmem:[%s4074_s25 + $0x1a2] sm:$0xff] }
  0xcd   : > { %3523 = vmatmul.mubr.msk.bf16.gmra.mrb[28].mxu1 %vm271_vm1, %v4330_v31 }
  0xce   : > { %3677 = vmatmul.mubr.msk.bf16.gmra.mrb[12].mxu0 %vm271_vm1, %v4166_v48  ;;  %3528 = vmatprep.mubr.msk.bf16.mxu1 %vm271_vm1, %v4267_v45 }
  0xcf   : > { %3680 = vmatprep.mubr.msk.bf16.mxu0 %vm271_vm1, %v4170_v50 }
  0xd5   : > { %3529 = vmatmul.mubr.msk.bf16.vlgmr.msra.gmra.mrb[0].mxu1 %vm271_vm1, %v4273_v52 }
  0xd6   : > { %3731 = vmatpush3.bf16.msra.mxu1 %v4057_v3  ;;  %3681 = vmatmul.mubr.msk.bf16.gmra.mrb[16].mxu0 %vm271_vm1, %v4198_v62  ;;  %v3197_v3 = vld [vmem:[%s4074_s25 + $0x181] sm:$0xff] }
  0xd7   : > { %3532 = vmatprep.mubr.msk.bf16.mxu1 %vm271_vm1, %v4300_v5  ;;  %3684 = vmatprep.mubr.msk.bf16.mxu0 %vm271_vm1, %v4202_v0  ;;  %v2215_v19 = vpack.c.bf16 %v3198_v15, %v3197_v3 }
  0xdd   : > { %3533 = vmatmul.mubr.msk.bf16.gmra.mrb[4].mxu1 %vm271_vm1, %v4304_v7 }
  0xde   : > { %3685 = vmatmul.mubr.msk.bf16.gmra.mrb[20].mxu0 %vm271_vm1, %v4222_v12  ;;  %3536 = vmatprep.mubr.msk.bf16.mxu1 %vm271_vm1, %v4324_v24 }
  0xdf   : > { %3688 = vmatprep.mubr.msk.bf16.mxu0 %vm271_vm1, %v4226_v14 }
  0xe5   : > { %3537 = vmatmul.mubr.msk.bf16.gmra.mrb[8].mxu1 %vm271_vm1, %v4328_v28 }
  0xe6   : > { %3689 = vmatmul.mubr.msk.bf16.gmra.mrb[24].mxu0 %vm271_vm1, %v4246_v29  ;;  %3540 = vmatprep.mubr.msk.bf16.mxu1 %vm271_vm1, %v4346_v43 }
  0xe7   : > { %3692 = vmatprep.mubr.msk.bf16.mxu0 %vm271_vm1, %v2215_v19 }
  0xed   : > { %3541 = vmatmul.mubr.msk.bf16.gmra.mrb[12].mxu1 %vm271_vm1, %v4350_v47 }
  0xee   : > { %3693 = vmatmul.mubr.msk.bf16.gmra.mrb[28].mxu0 %vm271_vm1, %v2216_v32  ;;  %3544 = vmatprep.mubr.msk.bf16.mxu1 %vm271_vm1, %v4364_v59 }
  0xef   : > { %3698 = vmatprep.mubr.msk.bf16.mxu0 %vm271_vm1, %v4168_v49 }
  0xf5   : > { %3545 = vmatmul.mubr.msk.bf16.gmra.mrb[16].mxu1 %vm271_vm1, %v4366_v60 }
  0xf6   : > { %3699 = vmatmul.mubr.msk.bf16.vlgmr.msra.gmra.mrb[0].mxu0 %vm271_vm1, %v4172_v51  ;;  %3548 = vmatprep.mubr.msk.bf16.mxu1 %vm271_vm1, %v4386_v17 }
  0xf7   : > { %3702 = vmatprep.mubr.msk.bf16.mxu0 %vm271_vm1, %v4200_v63 }
  0xfd   : > { %3549 = vmatmul.mubr.msk.bf16.gmra.mrb[20].mxu1 %vm271_vm1, %v4388_v18 }
  0xfe   : > { %3703 = vmatmul.mubr.msk.bf16.gmra.mrb[4].mxu0 %vm271_vm1, %v4204_v2  ;;  %3552 = vmatprep.mubr.msk.bf16.mxu1 %vm271_vm1, %v4402_v36 }
  0xff   : > { %3706 = vmatprep.mubr.msk.bf16.mxu0 %vm271_vm1, %v4224_v13 }
 0x105   : > { %3553 = vmatmul.mubr.msk.bf16.gmra.mrb[24].mxu1 %vm271_vm1, %v4404_v37 }
 0x106   : > { %3707 = vmatmul.mubr.msk.bf16.gmra.mrb[8].mxu0 %vm271_vm1, %v4228_v16  ;;  %3556 = vmatprep.mubr.msk.bf16.mxu1 %vm271_vm1, %v4418_v57 }
 0x107   : > { %3710 = vmatprep.mubr.msk.bf16.mxu0 %vm271_vm1, %v4248_v30 }
 0x10d   : > { %3557 = vmatmul.mubr.msk.bf16.gmra.mrb[28].mxu1 %vm271_vm1, %v4449_v61 }
 0x10e   : > { %3711 = vmatmul.mubr.msk.bf16.gmra.mrb[12].mxu0 %vm271_vm1, %v4250_v34  ;;  %3578 = vmatprep.mubr.msk.bf16.mxu1 %vm271_vm1, %v4166_v48  ;;  %v2510_v48 = vpack.c.bf16 %v3249_v38, %v3248_v33 }
 0x10f   : > { %3714 = vmatprep.mubr.msk.bf16.mxu0 %vm271_vm1, %v4269_v46 }
 0x115   : > { %3579 = vmatmul.mubr.msk.bf16.vlgmr.msra.gmra.mrb[16].mxu1 %vm271_vm1, %v4170_v50 }
 0x116   : > { %3715 = vmatmul.mubr.msk.bf16.gmra.mrb[16].mxu0 %vm271_vm1, %v4275_v54  ;;  %3582 = vmatprep.mubr.msk.bf16.mxu1 %vm271_vm1, %v4198_v62  ;;  %v4607_v54 = vld [vmem:[%s4720_s2] ss:$0 sm:$0xff] }
 0x117   : > { %3718 = vmatprep.mubr.msk.bf16.mxu0 %vm271_vm1, %v4302_v6 }
 0x11d   : > { %3583 = vmatmul.mubr.msk.bf16.gmra.mrb[20].mxu1 %vm271_vm1, %v4202_v0 }
 0x11e   : > { %3719 = vmatmul.mubr.msk.bf16.gmra.mrb[20].mxu0 %vm271_vm1, %v4306_v8  ;;  %3586 = vmatprep.mubr.msk.bf16.mxu1 %vm271_vm1, %v4222_v12 }
 0x11f   : > { %3722 = vmatprep.mubr.msk.bf16.mxu0 %vm271_vm1, %v4326_v25 }
 0x125   : > { %3587 = vmatmul.mubr.msk.bf16.gmra.mrb[24].mxu1 %vm271_vm1, %v4226_v14 }
 0x126   : > { %3723 = vmatmul.mubr.msk.bf16.gmra.mrb[24].mxu0 %vm271_vm1, %v4330_v31  ;;  %3590 = vmatprep.mubr.msk.bf16.mxu1 %vm271_vm1, %v4246_v29 }
 0x127   : > { %3726 = vmatprep.mubr.msk.bf16.mxu0 %vm271_vm1, %v4348_v44 }
 0x12d   : > { %3591 = vmatmul.mubr.msk.bf16.gmra.mrb[28].mxu1 %vm271_vm1, %v2215_v19 }
 0x12e   : > { %3727 = vmatmul.mubr.msk.bf16.gmra.mrb[28].mxu0 %vm271_vm1, %v2510_v48 }
 0x1a8   : > { %v3530_v49 = vpop.f32.mrb[0].mxu1 }
 0x1a9   : > { %v1127_v50 = vpop.f32.mrb[1].mxu1 }
 0x1aa   : > { %v3531_v51 = vpop.f32.mrb[2].mxu1 }
 0x1ab   : > { %v1130_v62 = vpop.f32.mrb[3].mxu1 }
 0x1b0   : > { %v3534_v63 = vpop.f32.mrb[4].mxu1 }
 0x1b1   : > { %v1143_v0 = vpop.f32.mrb[5].mxu1 }
 0x1b2   : > { %v3535_v2 = vpop.f32.mrb[6].mxu1 }
 0x1b3   : > { %v1146_v12 = vpop.f32.mrb[7].mxu1 }
 0x1b8   : > { %v3538_v13 = vpop.f32.mrb[8].mxu1 }
 0x1b9   : > { %v1159_v14 = vpop.f32.mrb[9].mxu1 }
 0x1ba   : > { %v3539_v16 = vpop.f32.mrb[10].mxu1 }
 0x1bb   : > { %v1162_v29 = vpop.f32.mrb[11].mxu1 }
 0x1c0   : > { %v4596_v30 = vpop.f32.mrb[12].mxu1 }
 0x1c1   : > { %v4598_v34 = vpop.f32.mrb[13].mxu1 }
 0x1c2   : > { %v4600_v45 = vpop.f32.mrb[14].mxu1 }
 0x1c3   : > { %v4602_v46 = vpop.f32.mrb[15].mxu1 }
 0x1c9   : > { %v3700_v52 = vpop.f32.mrb[0].mxu0 }
 0x1ca   : > { %v3732_v5 = vadd.f32 %v3700_v52, %v3530_v49  ;;  %v2598_v6 = vpop.f32.mrb[1].mxu0 }
 0x1cb   : > { %v3733_v7 = vadd.f32 %v2598_v6, %v1127_v50  ;;  %v3701_v8 = vpop.f32.mrb[2].mxu0 }
 0x1cc   : > { %v2766_v24 = vadd.f32 %v3732_v5, %v4607_v54  ;;  %v3734_v25 = vadd.f32 %v3701_v8, %v3531_v51  ;;  %v2601_v28 = vpop.f32.mrb[3].mxu0 }
 0x1cd   : > { %v2764_v31 = vadd.f32 %v3733_v7, %v4607_v54  ;;  %v3735_v43 = vadd.f32 %v2601_v28, %v1130_v62 }
 0x1ce   : > { %v2798_v44 = vmax.f32 %v2766_v24, 0.0  ;;  %v2767_v47 = vadd.f32 %v3734_v25, %v4607_v54 }
 0x1cf   : > { %v2796_v59 = vmax.f32 %v2764_v31, 0.0  ;;  %v2765_v60 = vadd.f32 %v3735_v43, %v4607_v54 }
 0x1d0   : > { %2830 = vst.msk [vmem:[%s4614_s16 + $0x10] sm:$0xff] %vm271_vm1, %v2798_v44  ;;  %v2799_v4 = vmax.f32 %v2767_v47, 0.0 }
 0x1d1   : > { %2828 = vst.msk [vmem:[%s4614_s16] sm:$0xff] %vm271_vm1, %v2796_v59  ;;  %v2797_v11 = vmax.f32 %v2765_v60, 0.0  ;;  %v3704_v17 = vpop.f32.mrb[4].mxu0 }
 0x1d2   : > { %2831 = vst.msk [vmem:[%s4614_s16 + $0x18] sm:$0xff] %vm271_vm1, %v2799_v4  ;;  %v3736_v18 = vadd.f32 %v3704_v17, %v3534_v63  ;;  %v2614_v20 = vpop.f32.mrb[5].mxu0 }
 0x1d3   : > { %2829 = vst.msk [vmem:[%s4614_s16 + $0x8] sm:$0xff] %vm271_vm1, %v2797_v11  ;;  %v3737_v22 = vadd.f32 %v2614_v20, %v1143_v0  ;;  %v3705_v23 = vpop.f32.mrb[6].mxu0 }
 0x1d4   : > { %v2770_v35 = vadd.f32 %v3736_v18, %v4607_v54  ;;  %v3738_v36 = vadd.f32 %v3705_v23, %v3535_v2  ;;  %v2617_v37 = vpop.f32.mrb[7].mxu0 }
 0x1d5   : > { %v2768_v40 = vadd.f32 %v3737_v22, %v4607_v54  ;;  %v3739_v41 = vadd.f32 %v2617_v37, %v1146_v12 }
 0x1d6   : > { %v2802_v42 = vmax.f32 %v2770_v35, 0.0  ;;  %v2771_v56 = vadd.f32 %v3738_v36, %v4607_v54 }
 0x1d7   : > { %v2800_v57 = vmax.f32 %v2768_v40, 0.0  ;;  %v2769_v21 = vadd.f32 %v3739_v41, %v4607_v54 }
 0x1d8   : > { %2834 = vst.msk [vmem:[%s4614_s16 + $0x30] sm:$0xff] %vm271_vm1, %v2802_v42  ;;  %v2803_v58 = vmax.f32 %v2771_v56, 0.0 }
 0x1d9   : > { %2832 = vst.msk [vmem:[%s4614_s16 + $0x20] sm:$0xff] %vm271_vm1, %v2800_v57  ;;  %v2801_v39 = vmax.f32 %v2769_v21, 0.0  ;;  %v3708_v55 = vpop.f32.mrb[8].mxu0 }
 0x1da   : > { %2835 = vst.msk [vmem:[%s4614_s16 + $0x38] sm:$0xff] %vm271_vm1, %v2803_v58  ;;  %v3740_v61 = vadd.f32 %v3708_v55, %v3538_v13  ;;  %v2630_v1 = vpop.f32.mrb[9].mxu0 }
 0x1db   : > { %2833 = vst.msk [vmem:[%s4614_s16 + $0x28] sm:$0xff] %vm271_vm1, %v2801_v39  ;;  %v3741_v9 = vadd.f32 %v2630_v1, %v1159_v14  ;;  %v3709_v10 = vpop.f32.mrb[10].mxu0 }
 0x1dc   : > { %v2774_v53 = vadd.f32 %v3740_v61, %v4607_v54  ;;  %v3742_v3 = vadd.f32 %v3709_v10, %v3539_v16  ;;  %v2633_v15 = vpop.f32.mrb[11].mxu0 }
 0x1dd   : > { %v2772_v19 = vadd.f32 %v3741_v9, %v4607_v54  ;;  %v3743_v26 = vadd.f32 %v2633_v15, %v1162_v29 }
 0x1de   : > { %v2806_v27 = vmax.f32 %v2774_v53, 0.0  ;;  %v2775_v32 = vadd.f32 %v3742_v3, %v4607_v54 }
 0x1df   : > { %v2804_v33 = vmax.f32 %v2772_v19, 0.0  ;;  %v2773_v38 = vadd.f32 %v3743_v26, %v4607_v54 }
 0x1e0   : > { %2838 = vst.msk [vmem:[%s4614_s16 + $0x50] sm:$0xff] %vm271_vm1, %v2806_v27  ;;  %v2807_v48 = vmax.f32 %v2775_v32, 0.0 }
 0x1e1   : > { %2836 = vst.msk [vmem:[%s4614_s16 + $0x40] sm:$0xff] %vm271_vm1, %v2804_v33  ;;  %v2805_v49 = vmax.f32 %v2773_v38, 0.0  ;;  %v3712_v50 = vpop.f32.mrb[12].mxu0 }
 0x1e2   : > { %2839 = vst.msk [vmem:[%s4614_s16 + $0x58] sm:$0xff] %vm271_vm1, %v2807_v48  ;;  %v3744_v51 = vadd.f32 %v3712_v50, %v4596_v30  ;;  %v2646_v62 = vpop.f32.mrb[13].mxu0 }
 0x1e3   : > { %2837 = vst.msk [vmem:[%s4614_s16 + $0x48] sm:$0xff] %vm271_vm1, %v2805_v49  ;;  %v3745_v63 = vadd.f32 %v2646_v62, %v4598_v34  ;;  %v3713_v0 = vpop.f32.mrb[14].mxu0 }
 0x1e4   : > { %v2778_v2 = vadd.f32 %v3744_v51, %v4607_v54  ;;  %v3746_v12 = vadd.f32 %v3713_v0, %v4600_v45  ;;  %v2649_v13 = vpop.f32.mrb[15].mxu0 }
 0x1e5   : > { %v2776_v14 = vadd.f32 %v3745_v63, %v4607_v54  ;;  %v3747_v16 = vadd.f32 %v2649_v13, %v4602_v46 }
 0x1e6   : > { %v2810_v29 = vmax.f32 %v2778_v2, 0.0  ;;  %v2779_v30 = vadd.f32 %v3746_v12, %v4607_v54 }
 0x1e7   : > { %v2808_v52 = vmax.f32 %v2776_v14, 0.0  ;;  %v2777_v5 = vadd.f32 %v3747_v16, %v4607_v54 }
 0x1e8   : > { %2842 = vst.msk [vmem:[%s4614_s16 + $0x70] sm:$0xff] %vm271_vm1, %v2810_v29  ;;  %v2811_v34 = vmax.f32 %v2779_v30, 0.0  ;;  %v3580_v6 = vpop.f32.mrb[16].mxu1 }
 0x1e9   : > { %2840 = vst.msk [vmem:[%s4614_s16 + $0x60] sm:$0xff] %vm271_vm1, %v2808_v52  ;;  %v2809_v7 = vmax.f32 %v2777_v5, 0.0  ;;  %v3716_v45 = vpop.f32.mrb[16].mxu0  ;;  %v1485_v8 = vpop.f32.mrb[17].mxu1 }
 0x1ea   : > { %2843 = vst.msk [vmem:[%s4614_s16 + $0x78] sm:$0xff] %vm271_vm1, %v2811_v34  ;;  %v3748_v24 = vadd.f32 %v3716_v45, %v3580_v6  ;;  %v2662_v46 = vpop.f32.mrb[17].mxu0  ;;  %v3581_v25 = vpop.f32.mrb[18].mxu1 }
 0x1eb   : > { %2841 = vst.msk [vmem:[%s4614_s16 + $0x68] sm:$0xff] %vm271_vm1, %v2809_v7  ;;  %v3749_v28 = vadd.f32 %v2662_v46, %v1485_v8  ;;  %v3717_v31 = vpop.f32.mrb[18].mxu0  ;;  %v1488_v43 = vpop.f32.mrb[19].mxu1 }
 0x1ec   : > { %v2782_v44 = vadd.f32 %v3748_v24, %v4607_v54  ;;  %v3750_v47 = vadd.f32 %v3717_v31, %v3581_v25  ;;  %v2665_v59 = vpop.f32.mrb[19].mxu0 }
 0x1ed   : > { %v2780_v60 = vadd.f32 %v3749_v28, %v4607_v54  ;;  %v3751_v4 = vadd.f32 %v2665_v59, %v1488_v43 }
 0x1ee   : > { %v2814_v11 = vmax.f32 %v2782_v44, 0.0  ;;  %v2783_v17 = vadd.f32 %v3750_v47, %v4607_v54 }
 0x1ef   : > { %v2812_v18 = vmax.f32 %v2780_v60, 0.0  ;;  %v2781_v20 = vadd.f32 %v3751_v4, %v4607_v54 }
 0x1f0   : > { %2846 = vst.msk [vmem:[%s4614_s16 + $0x90] sm:$0xff] %vm271_vm1, %v2814_v11  ;;  %v2815_v22 = vmax.f32 %v2783_v17, 0.0  ;;  %v3584_v23 = vpop.f32.mrb[20].mxu1 }
 0x1f1   : > { %2844 = vst.msk [vmem:[%s4614_s16 + $0x80] sm:$0xff] %vm271_vm1, %v2812_v18  ;;  %v2813_v35 = vmax.f32 %v2781_v20, 0.0  ;;  %v3720_v36 = vpop.f32.mrb[20].mxu0  ;;  %v1501_v37 = vpop.f32.mrb[21].mxu1 }
 0x1f2   : > { %2847 = vst.msk [vmem:[%s4614_s16 + $0x98] sm:$0xff] %vm271_vm1, %v2815_v22  ;;  %v3752_v40 = vadd.f32 %v3720_v36, %v3584_v23  ;;  %v2678_v41 = vpop.f32.mrb[21].mxu0  ;;  %v3585_v42 = vpop.f32.mrb[22].mxu1 }
 0x1f3   : > { %2845 = vst.msk [vmem:[%s4614_s16 + $0x88] sm:$0xff] %vm271_vm1, %v2813_v35  ;;  %v3753_v56 = vadd.f32 %v2678_v41, %v1501_v37  ;;  %v3721_v57 = vpop.f32.mrb[22].mxu0  ;;  %v1504_v21 = vpop.f32.mrb[23].mxu1 }
 0x1f4   : > { %v2786_v58 = vadd.f32 %v3752_v40, %v4607_v54  ;;  %v3754_v39 = vadd.f32 %v3721_v57, %v3585_v42  ;;  %v2681_v55 = vpop.f32.mrb[23].mxu0 }
 0x1f5   : > { %v2784_v61 = vadd.f32 %v3753_v56, %v4607_v54  ;;  %v3755_v1 = vadd.f32 %v2681_v55, %v1504_v21 }
 0x1f6   : > { %v2818_v9 = vmax.f32 %v2786_v58, 0.0  ;;  %v2787_v10 = vadd.f32 %v3754_v39, %v4607_v54 }
 0x1f7   : > { %v2816_v53 = vmax.f32 %v2784_v61, 0.0  ;;  %v2785_v3 = vadd.f32 %v3755_v1, %v4607_v54 }
 0x1f8   : > { %2850 = vst.msk [vmem:[%s4614_s16 + $0xb0] sm:$0xff] %vm271_vm1, %v2818_v9  ;;  %v2819_v15 = vmax.f32 %v2787_v10, 0.0  ;;  %v3588_v19 = vpop.f32.mrb[24].mxu1 }
 0x1f9   : > { %2848 = vst.msk [vmem:[%s4614_s16 + $0xa0] sm:$0xff] %vm271_vm1, %v2816_v53  ;;  %v2817_v26 = vmax.f32 %v2785_v3, 0.0  ;;  %v3724_v27 = vpop.f32.mrb[24].mxu0  ;;  %v1517_v32 = vpop.f32.mrb[25].mxu1 }
 0x1fa   : > { %2851 = vst.msk [vmem:[%s4614_s16 + $0xb8] sm:$0xff] %vm271_vm1, %v2819_v15  ;;  %v3756_v33 = vadd.f32 %v3724_v27, %v3588_v19  ;;  %v2694_v38 = vpop.f32.mrb[25].mxu0  ;;  %v3589_v48 = vpop.f32.mrb[26].mxu1 }
 0x1fb   : > { %2849 = vst.msk [vmem:[%s4614_s16 + $0xa8] sm:$0xff] %vm271_vm1, %v2817_v26  ;;  %v3757_v49 = vadd.f32 %v2694_v38, %v1517_v32  ;;  %v3725_v50 = vpop.f32.mrb[26].mxu0  ;;  %v1520_v51 = vpop.f32.mrb[27].mxu1 }
 0x1fc   : > { %v2790_v62 = vadd.f32 %v3756_v33, %v4607_v54  ;;  %v3758_v63 = vadd.f32 %v3725_v50, %v3589_v48  ;;  %v2697_v0 = vpop.f32.mrb[27].mxu0 }
 0x1fd   : > { %v2788_v2 = vadd.f32 %v3757_v49, %v4607_v54  ;;  %v3759_v12 = vadd.f32 %v2697_v0, %v1520_v51 }
 0x1fe   : > { %v2822_v13 = vmax.f32 %v2790_v62, 0.0  ;;  %v2791_v14 = vadd.f32 %v3758_v63, %v4607_v54 }
 0x1ff   : > { %v2820_v16 = vmax.f32 %v2788_v2, 0.0  ;;  %v2789_v29 = vadd.f32 %v3759_v12, %v4607_v54 }
 0x200   : > { %2854 = vst.msk [vmem:[%s4614_s16 + $0xd0] sm:$0xff] %vm271_vm1, %v2822_v13  ;;  %v2823_v30 = vmax.f32 %v2791_v14, 0.0  ;;  %v3592_v52 = vpop.f32.mrb[28].mxu1 }
 0x201   : > { %2852 = vst.msk [vmem:[%s4614_s16 + $0xc0] sm:$0xff] %vm271_vm1, %v2820_v16  ;;  %v2821_v5 = vmax.f32 %v2789_v29, 0.0  ;;  %v3728_v34 = vpop.f32.mrb[28].mxu0  ;;  %v1533_v6 = vpop.f32.mrb[29].mxu1 }
 0x202   : > { %2855 = vst.msk [vmem:[%s4614_s16 + $0xd8] sm:$0xff] %vm271_vm1, %v2823_v30  ;;  %v3760_v7 = vadd.f32 %v3728_v34, %v3592_v52  ;;  %v2710_v45 = vpop.f32.mrb[29].mxu0  ;;  %v3593_v8 = vpop.f32.mrb[30].mxu1 }
 0x203   : > { %2853 = vst.msk [vmem:[%s4614_s16 + $0xc8] sm:$0xff] %vm271_vm1, %v2821_v5  ;;  %v3761_v24 = vadd.f32 %v2710_v45, %v1533_v6  ;;  %v3729_v46 = vpop.f32.mrb[30].mxu0  ;;  %v1536_v25 = vpop.f32.mrb[31].mxu1 }
 0x204   : > { %v2794_v28 = vadd.f32 %v3760_v7, %v4607_v54  ;;  %v3762_v31 = vadd.f32 %v3729_v46, %v3593_v8  ;;  %v2713_v43 = vpop.f32.mrb[31].mxu0 }
 0x205   : > { %v2792_v44 = vadd.f32 %v3761_v24, %v4607_v54  ;;  %v3763_v47 = vadd.f32 %v2713_v43, %v1536_v25 }
 0x206   : > { %v2826_v59 = vmax.f32 %v2794_v28, 0.0  ;;  %v2795_v60 = vadd.f32 %v3762_v31, %v4607_v54 }
 0x207   : > { %v2824_v4 = vmax.f32 %v2792_v44, 0.0  ;;  %v2793_v11 = vadd.f32 %v3763_v47, %v4607_v54 }
 0x208   : > { %2858 = vst.msk [vmem:[%s4614_s16 + $0xf0] sm:$0xff] %vm271_vm1, %v2826_v59  ;;  %v2827_v17 = vmax.f32 %v2795_v60, 0.0 }
 0x209   : > { %2856 = vst.msk [vmem:[%s4614_s16 + $0xe0] sm:$0xff] %vm271_vm1, %v2824_v4  ;;  %v2825_v18 = vmax.f32 %v2793_v11, 0.0 }
 0x20a   : > { %2859 = vst.msk [vmem:[%s4614_s16 + $0xf8] sm:$0xff] %vm271_vm1, %v2827_v17 }
 0x20b   : > { %2857 = vst.msk [vmem:[%s4614_s16 + $0xe8] sm:$0xff] %vm271_vm1, %v2825_v18 }
 0x20c PF: > { %s13_s12 = sadd.s32 1, %s4013_s12  }
 0x20d   : > { %p10_p4 = scmp.ge.s32.totalorder %s13_s12, 4  }
 0x20f   :  { %12 = sbr.rel (!%p10_p4) target bundleno = 1 (0x1), region = 72 }

// kernel: nl_res_group.31
= control target key start
LH: loop header
LB: loop body
LE: loop exit
PB: predicated region body
PF: predicated region fallthrough
CT: control target
= control target key end

     0   :  { %s4134_s15 = smov 0   ;;  %s4863_s0 = inlined_call_operand.vmem [shape: f32[2,18,18,4], index: 0, kind: input, shape index: {}]   ;;  %s4864_s1 = inlined_call_operand.vmem [shape: bf16[3,3,4,4], index: 1, kind: input, shape index: {}]   ;;  %s4865_s2 = inlined_call_operand.vmem [shape: f32[1,4], index: 2, kind: input, shape index: {}]   ;;  %s4866_s3 = inlined_call_operand.vmem [shape: f32[2,16,16,4], index: 3, kind: input, shape index: {}]   ;;  %s4867_s4 = inlined_call_operand.vmem [shape: f32[2,16,16,4], index: 4, kind: output, shape index: {}]  }
   0x1 LB: > { %s3006_s16 = sadd.s32 4294967295, %s4107_s15   ;;  %p3010_p0 = scmp.ge.s32.totalorder %s4107_s15, 1  ;;  %s4107_s15 = sphi %s4134_s15, %s14_s15  }
   0x2   : > { %p172_p1 = scmp.lt.s32.totalorder %s4107_s15, 3 }
   0x4   : > { %p173_p2 = pnand %p3010_p0, %p172_p1 }
   0x5   : > { %v3016_v0 = vld [vmem:[%s4864_s1 + $0x2] sm:$0x3] (!%p173_p2)  ;;  %vm367_vm0 = vcmask (!%p173_p2), 1041408   ;;  %v4148_v1 = vld [vmem:[%s4864_s1 + $0x8] sm:$0x3] (!%p173_p2)  ;;  %p203_p3 = scmp.lt.s32.totalorder (!%p173_p2), %s3006_s16, 1 }
   0x6   : > { %176 = sbr.rel (%p173_p2) target bundleno = 524 (0x20c), region = 36  ;;  %4082 = vmatprep.subr.msk.bf16.mxu1 (!%p173_p2), %vm367_vm0, %v3016_v0  ;;  %4086 = vmatprep.subr.msk.bf16.mxu0 (!%p173_p2), %vm367_vm0, %v4148_v1  ;;  %v369_v2 = vsel (!%p173_p2), %vm367_vm0, %v3016_v0, 0  ;;  %v4156_v3 = vsel (!%p173_p2), %vm367_vm0, %v4148_v1, 0  ;;  %v267_v4 = vld [vmem:[%s4864_s1] sm:$0x3] (!%p173_p2)  ;;  %vm318_vm1 = vcmask (!%p173_p2), 31744  }
   0x7   : > { %3519 = vmatpush3.bf16.msra.mxu1 (!%p173_p2), %v369_v2  ;;  %3655 = vmatpush3.bf16.msra.mxu0 (!%p173_p2), %v4156_v3  ;;  %v3196_v5 = vld [vmem:[%s4864_s1 + $0xa] sm:$0x3] (!%p173_p2)  ;;  %v581_v14 = vsel (!%p173_p2), %vm367_vm0, %v267_v4, 0  ;;  %v3245_v20 = vld [vmem:[%s4864_s1 + $0xc] sm:$0x3] (!%p173_p2) }
   0x8   : > { %4083 = vmatprep.subr.msk.bf16.mxu1 (!%p173_p2), %vm367_vm0, %v267_v4  ;;  %4088 = vmatprep.subr.msk.bf16.mxu0 (!%p173_p2), %vm367_vm0, %v3196_v5  ;;  %v1726_v18 = vsel (!%p173_p2), %vm367_vm0, %v3196_v5, 0  ;;  %v4200_v21 = vld [vmem:[%s4864_s1 + $0x4] sm:$0x3] (!%p173_p2)  ;;  %v2021_v52 = vsel (!%p173_p2), %vm367_vm0, %v3245_v20, 0  ;;  %v4279_v53 = vld [vmem:[%s4864_s1 + $0xe] sm:$0x3] (!%p173_p2) }
   0xd   : > { %s4869_s16 = smov (!%p203_p3, %s3006_s16), 1 }
   0xe   : > { %s4092_s25 = smul.u32 432, %s4869_s16  ;;  %s3363_s13 = sshll.u32 %s4869_s16, 8 }
   0xf   : > { %s4713_s18 = scalar_lea.vmem %s4866_s3, %s3363_s13  ;;  %s4726_s22 = scalar_lea.vmem %s4867_s4, %s3363_s13 }
  0x10   : > { %s4173_s28 = scalar_lea.vmem %s4863_s0, %s4092_s25 }
  0x11   : > { %v268_v6 = vld [vmem:[%s4173_s28 + $0x1] sm:$0xff]  ;;  %v269_v7 = vld [vmem:[%s4173_s28 + $0x9] sm:$0xff]  ;;  %v3115_v8 = vld [vmem:[%s4173_s28 + $0x19] sm:$0xff] }
  0x12   : > { %v300_v9 = vpack.c.bf16 %v269_v7, %v268_v6  ;;  %v3116_v10 = vld [vmem:[%s4173_s28 + $0x21] sm:$0xff]  ;;  %v3117_v11 = vld [vmem:[%s4173_s28 + $0x31] sm:$0xff]  ;;  %v3118_v12 = vld [vmem:[%s4173_s28 + $0x39] sm:$0xff] }
  0x13   : > { %v1365_v13 = vpack.c.bf16 %v3116_v10, %v3115_v8  ;;  %v4182_v15 = vpack.c.bf16 %v3118_v12, %v3117_v11  ;;  %v3119_v16 = vld [vmem:[%s4173_s28 + $0x49] sm:$0xff]  ;;  %v3120_v17 = vld [vmem:[%s4173_s28 + $0x51] sm:$0xff]  ;;  %v3121_v22 = vld [vmem:[%s4173_s28 + $0x61] sm:$0xff] }
  0x14   : > { %3520 = vmatprep.mubr.msk.bf16.mxu1 %vm318_vm1, %v300_v9  ;;  %v4188_v19 = vpack.c.bf16 %v3120_v17, %v3119_v16  ;;  %v3122_v23 = vld [vmem:[%s4173_s28 + $0x69] sm:$0xff]  ;;  %v3123_v24 = vld [vmem:[%s4173_s28 + $0x79] sm:$0xff]  ;;  %v3124_v25 = vld [vmem:[%s4173_s28 + $0x81] sm:$0xff] }
  0x15   : > { %3656 = vmatprep.mubr.msk.bf16.mxu0 %vm318_vm1, %v1365_v13  ;;  %3521 = vmatmul.mubr.msk.bf16.vlgmr.msra.gmra.mrb[0].mxu1 %vm318_vm1, %v1365_v13  ;;  %v4213_v26 = vpack.c.bf16 %v3122_v23, %v3121_v22  ;;  %v4215_v27 = vpack.c.bf16 %v3124_v25, %v3123_v24  ;;  %v3125_v28 = vld [vmem:[%s4173_s28 + $0x91] sm:$0xff]  ;;  %v3126_v29 = vld [vmem:[%s4173_s28 + $0x99] sm:$0xff]  ;;  %v3127_v30 = vld [vmem:[%s4173_s28 + $0xa9] sm:$0xff] }
  0x16   : > { %3553 = vmatpush3.bf16.msra.mxu1 %v581_v14  ;;  %3657 = vmatmul.mubr.msk.bf16.vlgmr.msra.gmra.mrb[0].mxu0 %vm318_vm1, %v4182_v15  ;;  %v3128_v31 = vld [vmem:[%s4173_s28 + $0xb1] sm:$0xff]  ;;  %v4229_v32 = vpack.c.bf16 %v3126_v29, %v3125_v28  ;;  %v3129_v34 = vld [vmem:[%s4173_s28 + $0xc1] sm:$0xff]  ;;  %v3130_v35 = vld [vmem:[%s4173_s28 + $0xc9] sm:$0xff] }
  0x17   : > { %3689 = vmatpush3.bf16.msra.mxu0 %v1726_v18  ;;  %3524 = vmatprep.mubr.msk.bf16.mxu1 %vm318_vm1, %v4182_v15  ;;  %v4231_v33 = vpack.c.bf16 %v3128_v31, %v3127_v30  ;;  %v3164_v36 = vld [vmem:[%s4173_s28 + $0x1a] sm:$0xff]  ;;  %v3165_v37 = vld [vmem:[%s4173_s28 + $0x22] sm:$0xff]  ;;  %v4245_v38 = vpack.c.bf16 %v3130_v35, %v3129_v34  ;;  %v3166_v42 = vld [vmem:[%s4173_s28 + $0x32] sm:$0xff] }
  0x18   : > { %3660 = vmatprep.mubr.msk.bf16.mxu0 %vm318_vm1, %v4188_v19  ;;  %4089 = vmatprep.subr.msk.bf16.mxu0 %vm367_vm0, %v3245_v20  ;;  %v4247_v39 = vpack.c.bf16 %v3165_v37, %v3164_v36  ;;  %v286_v40 = vld [vmem:[%s4173_s28 + $0xd9] sm:$0xff]  ;;  %v287_v41 = vld [vmem:[%s4173_s28 + $0xe1] sm:$0xff]  ;;  %v288_v44 = vld [vmem:[%s4173_s28 + $0xf1] sm:$0xff] }
  0x19   : > { %4084 = vmatprep.subr.msk.bf16.mxu1 %vm367_vm0, %v4200_v21  ;;  %v3167_v43 = vld [vmem:[%s4173_s28 + $0x3a] sm:$0xff]  ;;  %v3168_v46 = vld [vmem:[%s4173_s28 + $0x4a] sm:$0xff]  ;;  %v3169_v47 = vld [vmem:[%s4173_s28 + $0x52] sm:$0xff]  ;;  %v4265_v48 = vpack.c.bf16 %v287_v41, %v286_v40 }
  0x1a   : > { %v289_v45 = vld [vmem:[%s4173_s28 + $0xf9] sm:$0xff]  ;;  %v4267_v49 = vpack.c.bf16 %v3167_v43, %v3166_v42  ;;  %v4271_v51 = vpack.c.bf16 %v3169_v47, %v3168_v46  ;;  %v290_v54 = vld [vmem:[%s4173_s28 + $0x109] sm:$0xff]  ;;  %v291_v55 = vld [vmem:[%s4173_s28 + $0x111] sm:$0xff]  ;;  %v843_v47 = vsel %vm367_vm0, %v4200_v21, 0 }
  0x1b   : > { %v4269_v50 = vpack.c.bf16 %v289_v45, %v288_v44  ;;  %v3170_v56 = vld [vmem:[%s4173_s28 + $0x62] sm:$0xff]  ;;  %v3171_v57 = vld [vmem:[%s4173_s28 + $0x6a] sm:$0xff]  ;;  %v3172_v60 = vld [vmem:[%s4173_s28 + $0x7a] sm:$0xff]  ;;  %v4297_v62 = vpack.c.bf16 %v291_v55, %v290_v54 }
  0x1c   : > { %v292_v58 = vld [vmem:[%s4173_s28 + $0x121] sm:$0xff]  ;;  %v293_v59 = vld [vmem:[%s4173_s28 + $0x129] sm:$0xff]  ;;  %v4299_v63 = vpack.c.bf16 %v3171_v57, %v3170_v56  ;;  %v294_v4 = vld [vmem:[%s4173_s28 + $0x139] sm:$0xff] }
  0x1d   : > { %3525 = vmatmul.mubr.msk.bf16.gmra.mrb[4].mxu1 %vm318_vm1, %v4188_v19  ;;  %v3173_v61 = vld [vmem:[%s4173_s28 + $0x82] sm:$0xff]  ;;  %v4301_v0 = vpack.c.bf16 %v293_v59, %v292_v58  ;;  %v3174_v6 = vld [vmem:[%s4173_s28 + $0x92] sm:$0xff]  ;;  %v3175_v7 = vld [vmem:[%s4173_s28 + $0x9a] sm:$0xff] }
  0x1e   : > { %3661 = vmatmul.mubr.msk.bf16.gmra.mrb[4].mxu0 %vm318_vm1, %v4213_v26  ;;  %3528 = vmatprep.mubr.msk.bf16.mxu1 %vm318_vm1, %v4213_v26  ;;  %v4303_v2 = vpack.c.bf16 %v3173_v61, %v3172_v60  ;;  %v295_v5 = vld [vmem:[%s4173_s28 + $0x141] sm:$0xff]  ;;  %v296_v8 = vld [vmem:[%s4173_s28 + $0x151] sm:$0xff]  ;;  %v297_v9 = vld [vmem:[%s4173_s28 + $0x159] sm:$0xff]  ;;  %v4323_v13 = vpack.c.bf16 %v3175_v7, %v3174_v6 }
  0x1f   : > { %3664 = vmatprep.mubr.msk.bf16.mxu0 %vm318_vm1, %v4215_v27  ;;  %v3176_v10 = vld [vmem:[%s4173_s28 + $0xaa] sm:$0xff]  ;;  %v3177_v11 = vld [vmem:[%s4173_s28 + $0xb2] sm:$0xff]  ;;  %v4321_v12 = vpack.c.bf16 %v295_v5, %v294_v4  ;;  %v4325_v14 = vpack.c.bf16 %v297_v9, %v296_v8  ;;  %v3178_v20 = vld [vmem:[%s4173_s28 + $0xc2] sm:$0xff] }
  0x20   : > { %v4327_v16 = vpack.c.bf16 %v3177_v11, %v3176_v10  ;;  %v298_v17 = vld [vmem:[%s4173_s28 + $0x169] sm:$0xff]  ;;  %v299_v18 = vld [vmem:[%s4173_s28 + $0x171] sm:$0xff]  ;;  %v219_v23 = vld [vmem:[%s4173_s28] sm:$0xff] }
  0x21   : > { %v3179_v22 = vld [vmem:[%s4173_s28 + $0xca] sm:$0xff]  ;;  %v3180_v25 = vld [vmem:[%s4173_s28 + $0xda] sm:$0xff]  ;;  %v3181_v28 = vld [vmem:[%s4173_s28 + $0xe2] sm:$0xff]  ;;  %v4345_v29 = vpack.c.bf16 %v299_v18, %v298_v17 }
  0x22   : > { %v220_v24 = vld [vmem:[%s4173_s28 + $0x8] sm:$0xff]  ;;  %v4347_v30 = vpack.c.bf16 %v3179_v22, %v3178_v20  ;;  %v4349_v34 = vpack.c.bf16 %v3181_v28, %v3180_v25  ;;  %v221_v35 = vld [vmem:[%s4173_s28 + $0x18] sm:$0xff]  ;;  %v222_v36 = vld [vmem:[%s4173_s28 + $0x20] sm:$0xff] }
  0x23   : > { %v251_v31 = vpack.c.bf16 %v220_v24, %v219_v23  ;;  %v3182_v37 = vld [vmem:[%s4173_s28 + $0xf2] sm:$0xff]  ;;  %v3183_v40 = vld [vmem:[%s4173_s28 + $0xfa] sm:$0xff]  ;;  %v3184_v43 = vld [vmem:[%s4173_s28 + $0x10a] sm:$0xff]  ;;  %v4366_v45 = vpack.c.bf16 %v222_v36, %v221_v35 }
  0x24   : > { %v223_v41 = vld [vmem:[%s4173_s28 + $0x30] sm:$0xff]  ;;  %v224_v42 = vld [vmem:[%s4173_s28 + $0x38] sm:$0xff]  ;;  %v4368_v46 = vpack.c.bf16 %v3183_v40, %v3182_v37  ;;  %v4381_v55 = vld [vmem:[%s4864_s1 + $0x6] sm:$0x3] }
  0x25   : > { %3529 = vmatmul.mubr.msk.bf16.gmra.mrb[8].mxu1 %vm318_vm1, %v4215_v27  ;;  %v3185_v44 = vld [vmem:[%s4173_s28 + $0x112] sm:$0xff]  ;;  %v225_v56 = vld [vmem:[%s4173_s28 + $0x48] sm:$0xff]  ;;  %v227_v59 = vld [vmem:[%s4173_s28 + $0x60] sm:$0xff] }
  0x26   : > { %3665 = vmatmul.mubr.msk.bf16.gmra.mrb[8].mxu0 %vm318_vm1, %v4229_v32  ;;  %3532 = vmatprep.mubr.msk.bf16.mxu1 %vm318_vm1, %v4229_v32  ;;  %v4374_v54 = vpack.c.bf16 %v3185_v44, %v3184_v43  ;;  %v226_v57 = vld [vmem:[%s4173_s28 + $0x50] sm:$0xff]  ;;  %v3186_v21 = vld [vmem:[%s4173_s28 + $0x122] sm:$0xff]  ;;  %v3188_v61 = vld [vmem:[%s4173_s28 + $0x13a] sm:$0xff] }
  0x27   : > { %3668 = vmatprep.mubr.msk.bf16.mxu0 %vm318_vm1, %v4231_v33  ;;  %v3187_v58 = vld [vmem:[%s4173_s28 + $0x12a] sm:$0xff]  ;;  %v3189_v4 = vld [vmem:[%s4173_s28 + $0x142] sm:$0xff]  ;;  %v4399_v5 = vpack.c.bf16 %v226_v57, %v225_v56  ;;  %v229_v9 = vld [vmem:[%s4173_s28 + $0x78] sm:$0xff] }
  0x28   : > { %v228_v60 = vld [vmem:[%s4173_s28 + $0x68] sm:$0xff]  ;;  %v4401_v6 = vpack.c.bf16 %v3187_v58, %v3186_v21  ;;  %v4405_v8 = vpack.c.bf16 %v3189_v4, %v3188_v61  ;;  %v230_v10 = vld [vmem:[%s4173_s28 + $0x80] sm:$0xff]  ;;  %v3190_v11 = vld [vmem:[%s4173_s28 + $0x152] sm:$0xff]  ;;  %v2315_v61 = vsel %vm367_vm0, %v4279_v53, 0 }
  0x29   : > { %v4403_v7 = vpack.c.bf16 %v228_v60, %v227_v59  ;;  %v3191_v17 = vld [vmem:[%s4173_s28 + $0x15a] sm:$0xff]  ;;  %v231_v18 = vld [vmem:[%s4173_s28 + $0x90] sm:$0xff]  ;;  %v4423_v24 = vpack.c.bf16 %v230_v10, %v229_v9  ;;  %v233_v35 = vld [vmem:[%s4173_s28 + $0xa8] sm:$0xff] }
  0x2a   : > { %v232_v20 = vld [vmem:[%s4173_s28 + $0x98] sm:$0xff]  ;;  %v3192_v22 = vld [vmem:[%s4173_s28 + $0x16a] sm:$0xff]  ;;  %v4425_v25 = vpack.c.bf16 %v3191_v17, %v3190_v11  ;;  %v3194_v37 = vld [vmem:[%s4173_s28 + $0x182] sm:$0xff] }
  0x2b   : > { %v3193_v23 = vld [vmem:[%s4173_s28 + $0x172] sm:$0xff]  ;;  %v4427_v28 = vpack.c.bf16 %v232_v20, %v231_v18  ;;  %v3195_v40 = vld [vmem:[%s4173_s28 + $0x18a] sm:$0xff]  ;;  %v238_v57 = vld [vmem:[%s4173_s28 + $0xe0] sm:$0xff] }
  0x2c   : > { %v234_v36 = vld [vmem:[%s4173_s28 + $0xb0] sm:$0xff]  ;;  %v4447_v44 = vpack.c.bf16 %v3195_v40, %v3194_v37  ;;  %v237_v56 = vld [vmem:[%s4173_s28 + $0xd8] sm:$0xff]  ;;  %v241_v9 = vld [vmem:[%s4173_s28 + $0x108] sm:$0xff] }
  0x2d   : > { %3533 = vmatmul.mubr.msk.bf16.gmra.mrb[12].mxu1 %vm318_vm1, %v4231_v33  ;;  %v4445_v43 = vpack.c.bf16 %v234_v36, %v233_v35  ;;  %v239_v21 = vld [vmem:[%s4173_s28 + $0xf0] sm:$0xff]  ;;  %v240_v58 = vld [vmem:[%s4173_s28 + $0xf8] sm:$0xff]  ;;  %v4463_v59 = vpack.c.bf16 %v238_v57, %v237_v56  ;;  %v244_v11 = vld [vmem:[%s4173_s28 + $0x128] sm:$0xff] }
  0x2e   : > { %3669 = vmatmul.mubr.msk.bf16.gmra.mrb[12].mxu0 %vm318_vm1, %v4245_v38  ;;  %3536 = vmatprep.mubr.msk.bf16.mxu1 %vm318_vm1, %v4245_v38  ;;  %v4465_v60 = vpack.c.bf16 %v240_v58, %v239_v21  ;;  %v3343_v4 = vld [vmem:[%s4864_s1 + $0x10] sm:$0x3]  ;;  %v245_v20 = vld [vmem:[%s4173_s28 + $0x138] sm:$0xff]  ;;  %v249_v40 = vld [vmem:[%s4173_s28 + $0x168] sm:$0xff]  ;;  %v1138_v58 = vsel %vm367_vm0, %v4381_v55, 0 }
  0x2f   : > { %3690 = vmatprep.mubr.msk.bf16.mxu0 %vm318_vm1, %v4247_v39  ;;  %v242_v10 = vld [vmem:[%s4173_s28 + $0x110] sm:$0xff]  ;;  %v248_v35 = vld [vmem:[%s4173_s28 + $0x158] sm:$0xff] }
  0x30   : > { %v4485_v17 = vpack.c.bf16 %v242_v10, %v241_v9  ;;  %v745_v56 = vld [vmem:[%s4173_s28 + $0xa] sm:$0xff]  ;;  %v3244_v9 = vld [vmem:[%s4173_s28 + $0x1a0] sm:$0xff] }
  0x35   : > { %3537 = vmatmul.mubr.msk.bf16.gmra.mrb[16].mxu1 %vm318_vm1, %v4265_v48 }
  0x36   : > { %3691 = vmatmul.mubr.msk.bf16.vlgmr.msra.gmra.mrb[0].mxu0 %vm318_vm1, %v4267_v49  ;;  %3540 = vmatprep.mubr.msk.bf16.mxu1 %vm318_vm1, %v4269_v50 }
  0x37   : > { %3723 = vmatpush3.bf16.msra.mxu0 %v2021_v52  ;;  %3694 = vmatprep.mubr.msk.bf16.mxu0 %vm318_vm1, %v4271_v51  ;;  %v4372_v52 = vpack.c.bf16 %v224_v42, %v223_v41  ;;  %v235_v41 = vld [vmem:[%s4173_s28 + $0xc0] sm:$0xff]  ;;  %v236_v42 = vld [vmem:[%s4173_s28 + $0xc8] sm:$0xff] }
  0x38   : > { %4090 = vmatprep.subr.msk.bf16.mxu0 %vm367_vm0, %v4279_v53  ;;  %v243_v53 = vld [vmem:[%s4173_s28 + $0x120] sm:$0xff] }
  0x39   : > { %v4487_v18 = vpack.c.bf16 %v244_v11, %v243_v53  ;;  %v2609_v53 = vsel %vm367_vm0, %v3343_v4, 0  ;;  %v2844_v11 = vld [vmem:[%s4713_s18 + $0x8] sm:$0xff] }
  0x3d   : > { %3541 = vmatmul.mubr.msk.bf16.gmra.mrb[20].mxu1 %vm318_vm1, %v4297_v62 }
  0x3e   : > { %3695 = vmatmul.mubr.msk.bf16.gmra.mrb[4].mxu0 %vm318_vm1, %v4299_v63  ;;  %3544 = vmatprep.mubr.msk.bf16.mxu1 %vm318_vm1, %v4301_v0 }
  0x3f   : > { %3698 = vmatprep.mubr.msk.bf16.mxu0 %vm318_vm1, %v4303_v2 }
  0x45   : > { %3545 = vmatmul.mubr.msk.bf16.gmra.mrb[24].mxu1 %vm318_vm1, %v4321_v12 }
  0x46   : > { %3699 = vmatmul.mubr.msk.bf16.gmra.mrb[8].mxu0 %vm318_vm1, %v4323_v13  ;;  %3548 = vmatprep.mubr.msk.bf16.mxu1 %vm318_vm1, %v4325_v14 }
  0x47   : > { %3702 = vmatprep.mubr.msk.bf16.mxu0 %vm318_vm1, %v4327_v16 }
  0x4d   : > { %3549 = vmatmul.mubr.msk.bf16.gmra.mrb[28].mxu1 %vm318_vm1, %v4345_v29 }
  0x4e   : > { %3703 = vmatmul.mubr.msk.bf16.gmra.mrb[12].mxu0 %vm318_vm1, %v4347_v30  ;;  %3554 = vmatprep.mubr.msk.bf16.mxu1 %vm318_vm1, %v251_v31  ;;  %v4429_v31 = vpack.c.bf16 %v3193_v23, %v3192_v22  ;;  %v246_v22 = vld [vmem:[%s4173_s28 + $0x140] sm:$0xff]  ;;  %v247_v23 = vld [vmem:[%s4173_s28 + $0x150] sm:$0xff] }
  0x4f   : > { %3706 = vmatprep.mubr.msk.bf16.mxu0 %vm318_vm1, %v4349_v34  ;;  %v4501_v36 = vpack.c.bf16 %v246_v22, %v245_v20  ;;  %v4503_v37 = vpack.c.bf16 %v248_v35, %v247_v23 }
  0x55   : > { %3555 = vmatmul.mubr.msk.bf16.vlgmr.msra.gmra.mrb[0].mxu1 %vm318_vm1, %v4366_v45 }
  0x56   : > { %3587 = vmatpush3.bf16.msra.mxu1 %v843_v47  ;;  %3707 = vmatmul.mubr.msk.bf16.gmra.mrb[16].mxu0 %vm318_vm1, %v4368_v46  ;;  %v4449_v47 = vpack.c.bf16 %v236_v42, %v235_v41  ;;  %v250_v41 = vld [vmem:[%s4173_s28 + $0x170] sm:$0xff]  ;;  %v744_v42 = vld [vmem:[%s4173_s28 + $0x2] sm:$0xff] }
  0x57   : > { %3558 = vmatprep.mubr.msk.bf16.mxu1 %vm318_vm1, %v4372_v52  ;;  %3710 = vmatprep.mubr.msk.bf16.mxu0 %vm318_vm1, %v4374_v54  ;;  %v4517_v57 = vpack.c.bf16 %v250_v41, %v249_v40  ;;  %v776_v21 = vpack.c.bf16 %v745_v56, %v744_v42  ;;  %v2847_v56 = vld [vmem:[%s4713_s18 + $0x20] sm:$0xff] }
  0x58   : > { %4085 = vmatprep.subr.msk.bf16.mxu1 %vm367_vm0, %v4381_v55  ;;  %v3242_v55 = vld [vmem:[%s4173_s28 + $0x188] sm:$0xff] }
  0x5d   : > { %3559 = vmatmul.mubr.msk.bf16.gmra.mrb[4].mxu1 %vm318_vm1, %v4399_v5 }
  0x5e   : > { %3711 = vmatmul.mubr.msk.bf16.gmra.mrb[20].mxu0 %vm318_vm1, %v4401_v6  ;;  %3562 = vmatprep.mubr.msk.bf16.mxu1 %vm318_vm1, %v4403_v7 }
  0x5f   : > { %3714 = vmatprep.mubr.msk.bf16.mxu0 %vm318_vm1, %v4405_v8 }
  0x65   : > { %3563 = vmatmul.mubr.msk.bf16.gmra.mrb[8].mxu1 %vm318_vm1, %v4423_v24 }
  0x66   : > { %3715 = vmatmul.mubr.msk.bf16.gmra.mrb[24].mxu0 %vm318_vm1, %v4425_v25  ;;  %3566 = vmatprep.mubr.msk.bf16.mxu1 %vm318_vm1, %v4427_v28 }
  0x67   : > { %3718 = vmatprep.mubr.msk.bf16.mxu0 %vm318_vm1, %v4429_v31 }
  0x6d   : > { %3567 = vmatmul.mubr.msk.bf16.gmra.mrb[12].mxu1 %vm318_vm1, %v4445_v43 }
  0x6e   : > { %3719 = vmatmul.mubr.msk.bf16.gmra.mrb[28].mxu0 %vm318_vm1, %v4447_v44  ;;  %3570 = vmatprep.mubr.msk.bf16.mxu1 %vm318_vm1, %v4449_v47 }
  0x6f   : > { %3724 = vmatprep.mubr.msk.bf16.mxu0 %vm318_vm1, %v4372_v52 }
  0x75   : > { %3571 = vmatmul.mubr.msk.bf16.gmra.mrb[16].mxu1 %vm318_vm1, %v4463_v59 }
  0x76   : > { %3725 = vmatmul.mubr.msk.bf16.vlgmr.msra.gmra.mrb[0].mxu0 %vm318_vm1, %v4399_v5  ;;  %3574 = vmatprep.mubr.msk.bf16.mxu1 %vm318_vm1, %v4465_v60 }
  0x77   : > { %3757 = vmatpush3.bf16.msra.mxu0 %v2315_v61  ;;  %3728 = vmatprep.mubr.msk.bf16.mxu0 %vm318_vm1, %v4403_v7 }
  0x78   : > { %4091 = vmatprep.subr.msk.bf16.mxu0 %vm367_vm0, %v3343_v4 }
  0x7d   : > { %3575 = vmatmul.mubr.msk.bf16.gmra.mrb[20].mxu1 %vm318_vm1, %v4485_v17 }
  0x7e   : > { %3729 = vmatmul.mubr.msk.bf16.gmra.mrb[4].mxu0 %vm318_vm1, %v4423_v24  ;;  %3578 = vmatprep.mubr.msk.bf16.mxu1 %vm318_vm1, %v4487_v18 }
  0x7f   : > { %3732 = vmatprep.mubr.msk.bf16.mxu0 %vm318_vm1, %v4427_v28 }
  0x85   : > { %3579 = vmatmul.mubr.msk.bf16.gmra.mrb[24].mxu1 %vm318_vm1, %v4501_v36 }
  0x86   : > { %3733 = vmatmul.mubr.msk.bf16.gmra.mrb[8].mxu0 %vm318_vm1, %v4445_v43  ;;  %3582 = vmatprep.mubr.msk.bf16.mxu1 %vm318_vm1, %v4503_v37 }
  0x87   : > { %3736 = vmatprep.mubr.msk.bf16.mxu0 %vm318_vm1, %v4449_v47 }
  0x8d   : > { %3583 = vmatmul.mubr.msk.bf16.gmra.mrb[28].mxu1 %vm318_vm1, %v4517_v57 }
  0x8e   : > { %3737 = vmatmul.mubr.msk.bf16.gmra.mrb[12].mxu0 %vm318_vm1, %v4463_v59  ;;  %3588 = vmatprep.mubr.msk.bf16.mxu1 %vm318_vm1, %v776_v21 }
  0x8f   : > { %3740 = vmatprep.mubr.msk.bf16.mxu0 %vm318_vm1, %v4465_v60 }
  0x95   : > { %3589 = vmatmul.mubr.msk.bf16.vlgmr.msra.gmra.mrb[0].mxu1 %vm318_vm1, %v4247_v39  ;;  %v3241_v39 = vld [vmem:[%s4173_s28 + $0x180] sm:$0xff] }
  0x96   : > { %3621 = vmatpush3.bf16.msra.mxu1 %v1138_v58  ;;  %3741 = vmatmul.mubr.msk.bf16.gmra.mrb[16].mxu0 %vm318_vm1, %v4485_v17  ;;  %v4548_v61 = vpack.c.bf16 %v3242_v55, %v3241_v39  ;;  %v2850_v39 = vld [vmem:[%s4713_s18 + $0x38] sm:$0xff] }
  0x97   : > { %3592 = vmatprep.mubr.msk.bf16.mxu1 %vm318_vm1, %v4267_v49  ;;  %3744 = vmatprep.mubr.msk.bf16.mxu0 %vm318_vm1, %v4487_v18 }
  0x98   : > { %4087 = vmatprep.subr.msk.bf16.mxu1 %vm367_vm0, %v4148_v1  ;;  %v3243_v1 = vld [vmem:[%s4173_s28 + $0x198] sm:$0xff] }
  0x99   : > { %v1969_v10 = vpack.c.bf16 %v3244_v9, %v3243_v1  ;;  %v2848_v9 = vld [vmem:[%s4713_s18 + $0x28] sm:$0xff] }
  0x9d   : > { %3593 = vmatmul.mubr.msk.bf16.gmra.mrb[4].mxu1 %vm318_vm1, %v4271_v51 }
  0x9e   : > { %3745 = vmatmul.mubr.msk.bf16.gmra.mrb[20].mxu0 %vm318_vm1, %v4501_v36  ;;  %3596 = vmatprep.mubr.msk.bf16.mxu1 %vm318_vm1, %v4299_v63 }
  0x9f   : > { %3748 = vmatprep.mubr.msk.bf16.mxu0 %vm318_vm1, %v4503_v37 }
  0xa5   : > { %3597 = vmatmul.mubr.msk.bf16.gmra.mrb[8].mxu1 %vm318_vm1, %v4303_v2 }
  0xa6   : > { %3749 = vmatmul.mubr.msk.bf16.gmra.mrb[24].mxu0 %vm318_vm1, %v4517_v57  ;;  %3600 = vmatprep.mubr.msk.bf16.mxu1 %vm318_vm1, %v4323_v13 }
  0xa7   : > { %3752 = vmatprep.mubr.msk.bf16.mxu0 %vm318_vm1, %v4548_v61 }
  0xad   : > { %3601 = vmatmul.mubr.msk.bf16.gmra.mrb[12].mxu1 %vm318_vm1, %v4327_v16 }
  0xae   : > { %3753 = vmatmul.mubr.msk.bf16.gmra.mrb[28].mxu0 %vm318_vm1, %v1969_v10  ;;  %3604 = vmatprep.mubr.msk.bf16.mxu1 %vm318_vm1, %v4347_v30 }
  0xaf   : > { %3758 = vmatprep.mubr.msk.bf16.mxu0 %vm318_vm1, %v4182_v15  ;;  %v3291_v15 = vld [vmem:[%s4173_s28 + $0x189] sm:$0xff] }
  0xb5   : > { %3605 = vmatmul.mubr.msk.bf16.gmra.mrb[16].mxu1 %vm318_vm1, %v4349_v34 }
  0xb6   : > { %3759 = vmatmul.mubr.msk.bf16.vlgmr.msra.gmra.mrb[0].mxu0 %vm318_vm1, %v4188_v19  ;;  %3608 = vmatprep.mubr.msk.bf16.mxu1 %vm318_vm1, %v4368_v46 }
  0xb7   : > { %3791 = vmatpush3.bf16.msra.mxu0 %v2609_v53  ;;  %3762 = vmatprep.mubr.msk.bf16.mxu0 %vm318_vm1, %v4213_v26  ;;  %v3292_v26 = vld [vmem:[%s4173_s28 + $0x199] sm:$0xff] }
  0xbd   : > { %3609 = vmatmul.mubr.msk.bf16.gmra.mrb[20].mxu1 %vm318_vm1, %v4374_v54 }
  0xbe   : > { %3763 = vmatmul.mubr.msk.bf16.gmra.mrb[4].mxu0 %vm318_vm1, %v4215_v27  ;;  %3612 = vmatprep.mubr.msk.bf16.mxu1 %vm318_vm1, %v4401_v6  ;;  %v3293_v27 = vld [vmem:[%s4173_s28 + $0x1a1] sm:$0xff] }
  0xbf   : > { %3766 = vmatprep.mubr.msk.bf16.mxu0 %vm318_vm1, %v4229_v32  ;;  %v2263_v32 = vpack.c.bf16 %v3293_v27, %v3292_v26 }
  0xc5   : > { %3613 = vmatmul.mubr.msk.bf16.gmra.mrb[24].mxu1 %vm318_vm1, %v4405_v8 }
  0xc6   : > { %3767 = vmatmul.mubr.msk.bf16.gmra.mrb[8].mxu0 %vm318_vm1, %v4231_v33  ;;  %3616 = vmatprep.mubr.msk.bf16.mxu1 %vm318_vm1, %v4425_v25  ;;  %v3341_v33 = vld [vmem:[%s4173_s28 + $0x19a] sm:$0xff] }
  0xc7   : > { %3770 = vmatprep.mubr.msk.bf16.mxu0 %vm318_vm1, %v4245_v38  ;;  %v3342_v38 = vld [vmem:[%s4173_s28 + $0x1a2] sm:$0xff] }
  0xcd   : > { %3617 = vmatmul.mubr.msk.bf16.gmra.mrb[28].mxu1 %vm318_vm1, %v4429_v31 }
  0xce   : > { %3771 = vmatmul.mubr.msk.bf16.gmra.mrb[12].mxu0 %vm318_vm1, %v4265_v48  ;;  %3622 = vmatprep.mubr.msk.bf16.mxu1 %vm318_vm1, %v4366_v45 }
  0xcf   : > { %3774 = vmatprep.mubr.msk.bf16.mxu0 %vm318_vm1, %v4269_v50 }
  0xd5   : > { %3623 = vmatmul.mubr.msk.bf16.vlgmr.msra.gmra.mrb[0].mxu1 %vm318_vm1, %v4372_v52 }
  0xd6   : > { %3825 = vmatpush3.bf16.msra.mxu1 %v4156_v3  ;;  %3775 = vmatmul.mubr.msk.bf16.gmra.mrb[16].mxu0 %vm318_vm1, %v4297_v62  ;;  %v3290_v3 = vld [vmem:[%s4173_s28 + $0x181] sm:$0xff] }
  0xd7   : > { %3626 = vmatprep.mubr.msk.bf16.mxu1 %vm318_vm1, %v4399_v5  ;;  %3778 = vmatprep.mubr.msk.bf16.mxu0 %vm318_vm1, %v4301_v0  ;;  %v2262_v19 = vpack.c.bf16 %v3291_v15, %v3290_v3 }
  0xdd   : > { %3627 = vmatmul.mubr.msk.bf16.gmra.mrb[4].mxu1 %vm318_vm1, %v4403_v7  ;;  %v2845_v7 = vld [vmem:[%s4713_s18 + $0x10] sm:$0xff] }
  0xde   : > { %3779 = vmatmul.mubr.msk.bf16.gmra.mrb[20].mxu0 %vm318_vm1, %v4321_v12  ;;  %3630 = vmatprep.mubr.msk.bf16.mxu1 %vm318_vm1, %v4423_v24 }
  0xdf   : > { %3782 = vmatprep.mubr.msk.bf16.mxu0 %vm318_vm1, %v4325_v14 }
  0xe5   : > { %3631 = vmatmul.mubr.msk.bf16.gmra.mrb[8].mxu1 %vm318_vm1, %v4427_v28  ;;  %v2843_v28 = vld [vmem:[%s4713_s18] sm:$0xff] }
  0xe6   : > { %3783 = vmatmul.mubr.msk.bf16.gmra.mrb[24].mxu0 %vm318_vm1, %v4345_v29  ;;  %3634 = vmatprep.mubr.msk.bf16.mxu1 %vm318_vm1, %v4445_v43 }
  0xe7   : > { %3786 = vmatprep.mubr.msk.bf16.mxu0 %vm318_vm1, %v2262_v19 }
  0xed   : > { %3635 = vmatmul.mubr.msk.bf16.gmra.mrb[12].mxu1 %vm318_vm1, %v4449_v47  ;;  %v2846_v47 = vld [vmem:[%s4713_s18 + $0x18] sm:$0xff] }
  0xee   : > { %3787 = vmatmul.mubr.msk.bf16.gmra.mrb[28].mxu0 %vm318_vm1, %v2263_v32  ;;  %3638 = vmatprep.mubr.msk.bf16.mxu1 %vm318_vm1, %v4463_v59  ;;  %v2853_v32 = vld [vmem:[%s4713_s18 + $0x50] sm:$0xff] }
  0xef   : > { %3792 = vmatprep.mubr.msk.bf16.mxu0 %vm318_vm1, %v4267_v49 }
  0xf5   : > { %3639 = vmatmul.mubr.msk.bf16.gmra.mrb[16].mxu1 %vm318_vm1, %v4465_v60 }
  0xf6   : > { %3793 = vmatmul.mubr.msk.bf16.vlgmr.msra.gmra.mrb[0].mxu0 %vm318_vm1, %v4271_v51  ;;  %3642 = vmatprep.mubr.msk.bf16.mxu1 %vm318_vm1, %v4485_v17 }
  0xf7   : > { %3796 = vmatprep.mubr.msk.bf16.mxu0 %vm318_vm1, %v4299_v63 }
  0xfd   : > { %3643 = vmatmul.mubr.msk.bf16.gmra.mrb[20].mxu1 %vm318_vm1, %v4487_v18 }
  0xfe   : > { %3797 = vmatmul.mubr.msk.bf16.gmra.mrb[4].mxu0 %vm318_vm1, %v4303_v2  ;;  %3646 = vmatprep.mubr.msk.bf16.mxu1 %vm318_vm1, %v4501_v36 }
  0xff   : > { %3800 = vmatprep.mubr.msk.bf16.mxu0 %vm318_vm1, %v4323_v13 }
 0x105   : > { %3647 = vmatmul.mubr.msk.bf16.gmra.mrb[24].mxu1 %vm318_vm1, %v4503_v37  ;;  %v2849_v37 = vld [vmem:[%s4713_s18 + $0x30] sm:$0xff] }
 0x106   : > { %3801 = vmatmul.mubr.msk.bf16.gmra.mrb[8].mxu0 %vm318_vm1, %v4327_v16  ;;  %3650 = vmatprep.mubr.msk.bf16.mxu1 %vm318_vm1, %v4517_v57 }
 0x107   : > { %3804 = vmatprep.mubr.msk.bf16.mxu0 %vm318_vm1, %v4347_v30 }
 0x10d   : > { %3651 = vmatmul.mubr.msk.bf16.gmra.mrb[28].mxu1 %vm318_vm1, %v4548_v61 }
 0x10e   : > { %3805 = vmatmul.mubr.msk.bf16.gmra.mrb[12].mxu0 %vm318_vm1, %v4349_v34  ;;  %3672 = vmatprep.mubr.msk.bf16.mxu1 %vm318_vm1, %v4265_v48  ;;  %v2557_v48 = vpack.c.bf16 %v3342_v38, %v3341_v33 }
 0x10f   : > { %3808 = vmatprep.mubr.msk.bf16.mxu0 %vm318_vm1, %v4368_v46 }
 0x115   : > { %3673 = vmatmul.mubr.msk.bf16.vlgmr.msra.gmra.mrb[16].mxu1 %vm318_vm1, %v4269_v50 }
 0x116   : > { %3809 = vmatmul.mubr.msk.bf16.gmra.mrb[16].mxu0 %vm318_vm1, %v4374_v54  ;;  %3676 = vmatprep.mubr.msk.bf16.mxu1 %vm318_vm1, %v4297_v62  ;;  %v4718_v54 = vld [vmem:[%s4865_s2] ss:$0 sm:$0xff] }
 0x117   : > { %3812 = vmatprep.mubr.msk.bf16.mxu0 %vm318_vm1, %v4401_v6 }
 0x11d   : > { %3677 = vmatmul.mubr.msk.bf16.gmra.mrb[20].mxu1 %vm318_vm1, %v4301_v0 }
 0x11e   : > { %3813 = vmatmul.mubr.msk.bf16.gmra.mrb[20].mxu0 %vm318_vm1, %v4405_v8  ;;  %3680 = vmatprep.mubr.msk.bf16.mxu1 %vm318_vm1, %v4321_v12 }
 0x11f   : > { %3816 = vmatprep.mubr.msk.bf16.mxu0 %vm318_vm1, %v4425_v25 }
 0x125   : > { %3681 = vmatmul.mubr.msk.bf16.gmra.mrb[24].mxu1 %vm318_vm1, %v4325_v14 }
 0x126   : > { %3817 = vmatmul.mubr.msk.bf16.gmra.mrb[24].mxu0 %vm318_vm1, %v4429_v31  ;;  %3684 = vmatprep.mubr.msk.bf16.mxu1 %vm318_vm1, %v4345_v29 }
 0x127   : > { %3820 = vmatprep.mubr.msk.bf16.mxu0 %vm318_vm1, %v4447_v44 }
 0x12d   : > { %3685 = vmatmul.mubr.msk.bf16.gmra.mrb[28].mxu1 %vm318_vm1, %v2262_v19 }
 0x12e   : > { %3821 = vmatmul.mubr.msk.bf16.gmra.mrb[28].mxu0 %vm318_vm1, %v2557_v48 }
 0x1a8   : > { %v3624_v49 = vpop.f32.mrb[0].mxu1 }
 0x1a9   : > { %v1174_v50 = vpop.f32.mrb[1].mxu1 }
 0x1aa   : > { %v3625_v51 = vpop.f32.mrb[2].mxu1 }
 0x1ab   : > { %v1177_v62 = vpop.f32.mrb[3].mxu1 }
 0x1b0   : > { %v3628_v63 = vpop.f32.mrb[4].mxu1 }
 0x1b1   : > { %v1190_v0 = vpop.f32.mrb[5].mxu1 }
 0x1b2   : > { %v3629_v2 = vpop.f32.mrb[6].mxu1 }
 0x1b3   : > { %v1193_v12 = vpop.f32.mrb[7].mxu1 }
 0x1b8   : > { %v3632_v13 = vpop.f32.mrb[8].mxu1 }
 0x1b9   : > { %v4695_v14 = vpop.f32.mrb[9].mxu1 }
 0x1ba   : > { %v4697_v16 = vpop.f32.mrb[10].mxu1 }
 0x1bb   : > { %v4699_v29 = vpop.f32.mrb[11].mxu1 }
 0x1c0   : > { %v4701_v30 = vpop.f32.mrb[12].mxu1 }
 0x1c1   : > { %v4703_v34 = vpop.f32.mrb[13].mxu1 }
 0x1c2   : > { %v4705_v45 = vpop.f32.mrb[14].mxu1 }
 0x1c3   : > { %v4707_v46 = vpop.f32.mrb[15].mxu1 }
 0x1c9   : > { %v3794_v52 = vpop.f32.mrb[0].mxu0 }
 0x1ca   : > { %v3826_v5 = vadd.f32 %v3794_v52, %v3624_v49  ;;  %v2645_v6 = vpop.f32.mrb[1].mxu0  ;;  %v2851_v49 = vld [vmem:[%s4713_s18 + $0x40] sm:$0xff] }
 0x1cb   : > { %v3827_v8 = vadd.f32 %v2645_v6, %v1174_v50  ;;  %v3795_v24 = vpop.f32.mrb[2].mxu0 }
 0x1cc   : > { %v2813_v25 = vadd.f32 %v3826_v5, %v4718_v54  ;;  %v3828_v31 = vadd.f32 %v3795_v24, %v3625_v51  ;;  %v2648_v43 = vpop.f32.mrb[3].mxu0 }
 0x1cd   : > { %v2811_v44 = vadd.f32 %v3827_v8, %v4718_v54  ;;  %v3829_v59 = vadd.f32 %v2648_v43, %v1177_v62  ;;  %v2857_v8 = vld [vmem:[%s4713_s18 + $0x70] sm:$0xff] }
 0x1ce   : > { %v2877_v60 = vadd.f32 %v2845_v7, %v2813_v25  ;;  %v2814_v4 = vadd.f32 %v3828_v31, %v4718_v54  ;;  %v2855_v31 = vld [vmem:[%s4713_s18 + $0x60] sm:$0xff] }
 0x1cf   : > { %v2875_v17 = vadd.f32 %v2843_v28, %v2811_v44  ;;  %v2812_v18 = vadd.f32 %v3829_v59, %v4718_v54  ;;  %v2858_v59 = vld [vmem:[%s4713_s18 + $0x78] sm:$0xff] }
 0x1d0   : > { %2909 = vst.msk [vmem:[%s4726_s22 + $0x10] sm:$0xff] %vm318_vm1, %v2877_v60  ;;  %v2878_v20 = vadd.f32 %v2846_v47, %v2814_v4 }
 0x1d1   : > { %2907 = vst.msk [vmem:[%s4726_s22] sm:$0xff] %vm318_vm1, %v2875_v17  ;;  %v2876_v22 = vadd.f32 %v2844_v11, %v2812_v18  ;;  %v3798_v23 = vpop.f32.mrb[4].mxu0 }
 0x1d2   : > { %2910 = vst.msk [vmem:[%s4726_s22 + $0x18] sm:$0xff] %vm318_vm1, %v2878_v20  ;;  %v3830_v35 = vadd.f32 %v3798_v23, %v3628_v63  ;;  %v2661_v36 = vpop.f32.mrb[5].mxu0  ;;  %v2854_v63 = vld [vmem:[%s4713_s18 + $0x58] sm:$0xff] }
 0x1d3   : > { %2908 = vst.msk [vmem:[%s4726_s22 + $0x8] sm:$0xff] %vm318_vm1, %v2876_v22  ;;  %v3831_v40 = vadd.f32 %v2661_v36, %v1190_v0  ;;  %v3799_v41 = vpop.f32.mrb[6].mxu0 }
 0x1d4   : > { %v2817_v42 = vadd.f32 %v3830_v35, %v4718_v54  ;;  %v3832_v57 = vadd.f32 %v3799_v41, %v3629_v2  ;;  %v2664_v21 = vpop.f32.mrb[7].mxu0 }
 0x1d5   : > { %v2815_v58 = vadd.f32 %v3831_v40, %v4718_v54  ;;  %v3833_v55 = vadd.f32 %v2664_v21, %v1193_v12 }
 0x1d6   : > { %v2881_v61 = vadd.f32 %v2849_v37, %v2817_v42  ;;  %v2818_v1 = vadd.f32 %v3832_v57, %v4718_v54  ;;  %v2861_v37 = vld [vmem:[%s4713_s18 + $0x90] sm:$0xff]  ;;  %v2859_v57 = vld [vmem:[%s4713_s18 + $0x80] sm:$0xff] }
 0x1d7   : > { %v2879_v10 = vadd.f32 %v2847_v56, %v2815_v58  ;;  %v2816_v53 = vadd.f32 %v3833_v55, %v4718_v54  ;;  %v2862_v55 = vld [vmem:[%s4713_s18 + $0x98] sm:$0xff] }
 0x1d8   : > { %2913 = vst.msk [vmem:[%s4726_s22 + $0x30] sm:$0xff] %vm318_vm1, %v2881_v61  ;;  %v2882_v3 = vadd.f32 %v2850_v39, %v2818_v1 }
 0x1d9   : > { %2911 = vst.msk [vmem:[%s4726_s22 + $0x20] sm:$0xff] %vm318_vm1, %v2879_v10  ;;  %v2880_v15 = vadd.f32 %v2848_v9, %v2816_v53  ;;  %v3802_v19 = vpop.f32.mrb[8].mxu0  ;;  %v2860_v10 = vld [vmem:[%s4713_s18 + $0x88] sm:$0xff] }
 0x1da   : > { %2914 = vst.msk [vmem:[%s4726_s22 + $0x38] sm:$0xff] %vm318_vm1, %v2882_v3  ;;  %v3834_v26 = vadd.f32 %v3802_v19, %v3632_v13  ;;  %v2677_v27 = vpop.f32.mrb[9].mxu0  ;;  %v2852_v13 = vld [vmem:[%s4713_s18 + $0x48] sm:$0xff] }
 0x1db   : > { %2912 = vst.msk [vmem:[%s4726_s22 + $0x28] sm:$0xff] %vm318_vm1, %v2880_v15  ;;  %v3835_v33 = vadd.f32 %v2677_v27, %v4695_v14  ;;  %v3803_v38 = vpop.f32.mrb[10].mxu0 }
 0x1dc   : > { %v2821_v48 = vadd.f32 %v3834_v26, %v4718_v54  ;;  %v3836_v50 = vadd.f32 %v3803_v38, %v4697_v16  ;;  %v2680_v51 = vpop.f32.mrb[11].mxu0 }
 0x1dd   : > { %v2819_v62 = vadd.f32 %v3835_v33, %v4718_v54  ;;  %v3837_v0 = vadd.f32 %v2680_v51, %v4699_v29 }
 0x1de   : > { %v2885_v2 = vadd.f32 %v2853_v32, %v2821_v48  ;;  %v2822_v12 = vadd.f32 %v3836_v50, %v4718_v54 }
 0x1df   : > { %v2883_v14 = vadd.f32 %v2851_v49, %v2819_v62  ;;  %v2820_v52 = vadd.f32 %v3837_v0, %v4718_v54  ;;  %v2865_v49 = vld [vmem:[%s4713_s18 + $0xb0] sm:$0xff]  ;;  %v2863_v0 = vld [vmem:[%s4713_s18 + $0xa0] sm:$0xff] }
 0x1e0   : > { %2917 = vst.msk [vmem:[%s4726_s22 + $0x50] sm:$0xff] %vm318_vm1, %v2885_v2  ;;  %v2886_v5 = vadd.f32 %v2854_v63, %v2822_v12 }
 0x1e1   : > { %2915 = vst.msk [vmem:[%s4726_s22 + $0x40] sm:$0xff] %vm318_vm1, %v2883_v14  ;;  %v2884_v16 = vadd.f32 %v2852_v13, %v2820_v52  ;;  %v3806_v6 = vpop.f32.mrb[12].mxu0  ;;  %v2866_v14 = vld [vmem:[%s4713_s18 + $0xb8] sm:$0xff] }
 0x1e2   : > { %2918 = vst.msk [vmem:[%s4726_s22 + $0x58] sm:$0xff] %vm318_vm1, %v2886_v5  ;;  %v3838_v29 = vadd.f32 %v3806_v6, %v4701_v30  ;;  %v2693_v7 = vpop.f32.mrb[13].mxu0  ;;  %v2864_v6 = vld [vmem:[%s4713_s18 + $0xa8] sm:$0xff] }
 0x1e3   : > { %2916 = vst.msk [vmem:[%s4726_s22 + $0x48] sm:$0xff] %vm318_vm1, %v2884_v16  ;;  %v3839_v24 = vadd.f32 %v2693_v7, %v4703_v34  ;;  %v3807_v25 = vpop.f32.mrb[14].mxu0  ;;  %v2856_v34 = vld [vmem:[%s4713_s18 + $0x68] sm:$0xff] }
 0x1e4   : > { %v2825_v28 = vadd.f32 %v3838_v29, %v4718_v54  ;;  %v3840_v43 = vadd.f32 %v3807_v25, %v4705_v45  ;;  %v2696_v44 = vpop.f32.mrb[15].mxu0 }
 0x1e5   : > { %v2823_v47 = vadd.f32 %v3839_v24, %v4718_v54  ;;  %v3841_v30 = vadd.f32 %v2696_v44, %v4707_v46 }
 0x1e6   : > { %v2889_v60 = vadd.f32 %v2857_v8, %v2825_v28  ;;  %v2826_v4 = vadd.f32 %v3840_v43, %v4718_v54 }
 0x1e7   : > { %v2887_v11 = vadd.f32 %v2855_v31, %v2823_v47  ;;  %v2824_v17 = vadd.f32 %v3841_v30, %v4718_v54 }
 0x1e8   : > { %2921 = vst.msk [vmem:[%s4726_s22 + $0x70] sm:$0xff] %vm318_vm1, %v2889_v60  ;;  %v2890_v18 = vadd.f32 %v2858_v59, %v2826_v4  ;;  %v3674_v45 = vpop.f32.mrb[16].mxu1  ;;  %v2869_v59 = vld [vmem:[%s4713_s18 + $0xd0] sm:$0xff] }
 0x1e9   : > { %2919 = vst.msk [vmem:[%s4726_s22 + $0x60] sm:$0xff] %vm318_vm1, %v2887_v11  ;;  %v2888_v20 = vadd.f32 %v2856_v34, %v2824_v17  ;;  %v3810_v22 = vpop.f32.mrb[16].mxu0  ;;  %v1532_v46 = vpop.f32.mrb[17].mxu1  ;;  %v2867_v11 = vld [vmem:[%s4713_s18 + $0xc0] sm:$0xff] }
 0x1ea   : > { %2922 = vst.msk [vmem:[%s4726_s22 + $0x78] sm:$0xff] %vm318_vm1, %v2890_v18  ;;  %v3842_v23 = vadd.f32 %v3810_v22, %v3674_v45  ;;  %v2709_v35 = vpop.f32.mrb[17].mxu0  ;;  %v3675_v36 = vpop.f32.mrb[18].mxu1 }
 0x1eb   : > { %2920 = vst.msk [vmem:[%s4726_s22 + $0x68] sm:$0xff] %vm318_vm1, %v2888_v20  ;;  %v3843_v40 = vadd.f32 %v2709_v35, %v1532_v46  ;;  %v3811_v41 = vpop.f32.mrb[18].mxu0  ;;  %v1535_v42 = vpop.f32.mrb[19].mxu1  ;;  %v2870_v20 = vld [vmem:[%s4713_s18 + $0xd8] sm:$0xff]  ;;  %v2868_v35 = vld [vmem:[%s4713_s18 + $0xc8] sm:$0xff] }
 0x1ec   : > { %v2829_v56 = vadd.f32 %v3842_v23, %v4718_v54  ;;  %v3844_v21 = vadd.f32 %v3811_v41, %v3675_v36  ;;  %v2712_v58 = vpop.f32.mrb[19].mxu0 }
 0x1ed   : > { %v2827_v39 = vadd.f32 %v3843_v40, %v4718_v54  ;;  %v3845_v61 = vadd.f32 %v2712_v58, %v1535_v42 }
 0x1ee   : > { %v2893_v1 = vadd.f32 %v2861_v37, %v2829_v56  ;;  %v2830_v9 = vadd.f32 %v3844_v21, %v4718_v54 }
 0x1ef   : > { %v2891_v53 = vadd.f32 %v2859_v57, %v2827_v39  ;;  %v2828_v3 = vadd.f32 %v3845_v61, %v4718_v54 }
 0x1f0   : > { %2925 = vst.msk [vmem:[%s4726_s22 + $0x90] sm:$0xff] %vm318_vm1, %v2893_v1  ;;  %v2894_v15 = vadd.f32 %v2862_v55, %v2830_v9  ;;  %v3678_v19 = vpop.f32.mrb[20].mxu1  ;;  %v2873_v55 = vld [vmem:[%s4713_s18 + $0xf0] sm:$0xff] }
 0x1f1   : > { %2923 = vst.msk [vmem:[%s4726_s22 + $0x80] sm:$0xff] %vm318_vm1, %v2891_v53  ;;  %v2892_v26 = vadd.f32 %v2860_v10, %v2828_v3  ;;  %v3814_v27 = vpop.f32.mrb[20].mxu0  ;;  %v1548_v32 = vpop.f32.mrb[21].mxu1  ;;  %v2871_v53 = vld [vmem:[%s4713_s18 + $0xe0] sm:$0xff] }
 0x1f2   : > { %2926 = vst.msk [vmem:[%s4726_s22 + $0x98] sm:$0xff] %vm318_vm1, %v2894_v15  ;;  %v3846_v33 = vadd.f32 %v3814_v27, %v3678_v19  ;;  %v2725_v38 = vpop.f32.mrb[21].mxu0  ;;  %v3679_v48 = vpop.f32.mrb[22].mxu1 }
 0x1f3   : > { %2924 = vst.msk [vmem:[%s4726_s22 + $0x88] sm:$0xff] %vm318_vm1, %v2892_v26  ;;  %v3847_v50 = vadd.f32 %v2725_v38, %v1548_v32  ;;  %v3815_v51 = vpop.f32.mrb[22].mxu0  ;;  %v1551_v62 = vpop.f32.mrb[23].mxu1  ;;  %v2874_v26 = vld [vmem:[%s4713_s18 + $0xf8] sm:$0xff]  ;;  %v2872_v38 = vld [vmem:[%s4713_s18 + $0xe8] sm:$0xff] }
 0x1f4   : > { %v2833_v63 = vadd.f32 %v3846_v33, %v4718_v54  ;;  %v3848_v2 = vadd.f32 %v3815_v51, %v3679_v48  ;;  %v2728_v12 = vpop.f32.mrb[23].mxu0 }
 0x1f5   : > { %v2831_v13 = vadd.f32 %v3847_v50, %v4718_v54  ;;  %v3849_v52 = vadd.f32 %v2728_v12, %v1551_v62 }
 0x1f6   : > { %v2897_v5 = vadd.f32 %v2865_v49, %v2833_v63  ;;  %v2834_v16 = vadd.f32 %v3848_v2, %v4718_v54 }
 0x1f7   : > { %v2895_v29 = vadd.f32 %v2863_v0, %v2831_v13  ;;  %v2832_v7 = vadd.f32 %v3849_v52, %v4718_v54 }
 0x1f8   : > { %2929 = vst.msk [vmem:[%s4726_s22 + $0xb0] sm:$0xff] %vm318_vm1, %v2897_v5  ;;  %v2898_v8 = vadd.f32 %v2866_v14, %v2834_v16  ;;  %v3682_v24 = vpop.f32.mrb[24].mxu1 }
 0x1f9   : > { %2927 = vst.msk [vmem:[%s4726_s22 + $0xa0] sm:$0xff] %vm318_vm1, %v2895_v29  ;;  %v2896_v25 = vadd.f32 %v2864_v6, %v2832_v7  ;;  %v3818_v28 = vpop.f32.mrb[24].mxu0  ;;  %v1564_v31 = vpop.f32.mrb[25].mxu1 }
 0x1fa   : > { %2930 = vst.msk [vmem:[%s4726_s22 + $0xb8] sm:$0xff] %vm318_vm1, %v2898_v8  ;;  %v3850_v43 = vadd.f32 %v3818_v28, %v3682_v24  ;;  %v2741_v44 = vpop.f32.mrb[25].mxu0  ;;  %v3683_v47 = vpop.f32.mrb[26].mxu1 }
 0x1fb   : > { %2928 = vst.msk [vmem:[%s4726_s22 + $0xa8] sm:$0xff] %vm318_vm1, %v2896_v25  ;;  %v3851_v30 = vadd.f32 %v2741_v44, %v1564_v31  ;;  %v3819_v60 = vpop.f32.mrb[26].mxu0  ;;  %v1567_v4 = vpop.f32.mrb[27].mxu1 }
 0x1fc   : > { %v2837_v34 = vadd.f32 %v3850_v43, %v4718_v54  ;;  %v3852_v17 = vadd.f32 %v3819_v60, %v3683_v47  ;;  %v2744_v18 = vpop.f32.mrb[27].mxu0 }
 0x1fd   : > { %v2835_v45 = vadd.f32 %v3851_v30, %v4718_v54  ;;  %v3853_v22 = vadd.f32 %v2744_v18, %v1567_v4 }
 0x1fe   : > { %v2901_v46 = vadd.f32 %v2869_v59, %v2837_v34  ;;  %v2838_v23 = vadd.f32 %v3852_v17, %v4718_v54 }
 0x1ff   : > { %v2899_v36 = vadd.f32 %v2867_v11, %v2835_v45  ;;  %v2836_v37 = vadd.f32 %v3853_v22, %v4718_v54 }
 0x200   : > { %2933 = vst.msk [vmem:[%s4726_s22 + $0xd0] sm:$0xff] %vm318_vm1, %v2901_v46  ;;  %v2902_v40 = vadd.f32 %v2870_v20, %v2838_v23  ;;  %v3686_v41 = vpop.f32.mrb[28].mxu1 }
 0x201   : > { %2931 = vst.msk [vmem:[%s4726_s22 + $0xc0] sm:$0xff] %vm318_vm1, %v2899_v36  ;;  %v2900_v42 = vadd.f32 %v2868_v35, %v2836_v37  ;;  %v3822_v56 = vpop.f32.mrb[28].mxu0  ;;  %v1580_v57 = vpop.f32.mrb[29].mxu1 }
 0x202   : > { %2934 = vst.msk [vmem:[%s4726_s22 + $0xd8] sm:$0xff] %vm318_vm1, %v2902_v40  ;;  %v3854_v21 = vadd.f32 %v3822_v56, %v3686_v41  ;;  %v2757_v58 = vpop.f32.mrb[29].mxu0  ;;  %v3687_v39 = vpop.f32.mrb[30].mxu1 }
 0x203   : > { %2932 = vst.msk [vmem:[%s4726_s22 + $0xc8] sm:$0xff] %vm318_vm1, %v2900_v42  ;;  %v3855_v61 = vadd.f32 %v2757_v58, %v1580_v57  ;;  %v3823_v1 = vpop.f32.mrb[30].mxu0  ;;  %v1583_v9 = vpop.f32.mrb[31].mxu1 }
 0x204   : > { %v2841_v10 = vadd.f32 %v3854_v21, %v4718_v54  ;;  %v3856_v3 = vadd.f32 %v3823_v1, %v3687_v39  ;;  %v2760_v15 = vpop.f32.mrb[31].mxu0 }
 0x205   : > { %v2839_v19 = vadd.f32 %v3855_v61, %v4718_v54  ;;  %v3857_v27 = vadd.f32 %v2760_v15, %v1583_v9 }
 0x206   : > { %v2905_v32 = vadd.f32 %v2873_v55, %v2841_v10  ;;  %v2842_v33 = vadd.f32 %v3856_v3, %v4718_v54 }
 0x207   : > { %v2903_v48 = vadd.f32 %v2871_v53, %v2839_v19  ;;  %v2840_v49 = vadd.f32 %v3857_v27, %v4718_v54 }
 0x208   : > { %2937 = vst.msk [vmem:[%s4726_s22 + $0xf0] sm:$0xff] %vm318_vm1, %v2905_v32  ;;  %v2906_v50 = vadd.f32 %v2874_v26, %v2842_v33 }
 0x209   : > { %2935 = vst.msk [vmem:[%s4726_s22 + $0xe0] sm:$0xff] %vm318_vm1, %v2903_v48  ;;  %v2904_v51 = vadd.f32 %v2872_v38, %v2840_v49 }
 0x20a   : > { %2938 = vst.msk [vmem:[%s4726_s22 + $0xf8] sm:$0xff] %vm318_vm1, %v2906_v50 }
 0x20b   : > { %2936 = vst.msk [vmem:[%s4726_s22 + $0xe8] sm:$0xff] %vm318_vm1, %v2904_v51 }
 0x20c PF: > { %s14_s15 = sadd.s32 1, %s4107_s15  }
 0x20d   : > { %p11_p4 = scmp.ge.s32.totalorder %s14_s15, 4  }
 0x20f   :  { %13 = sbr.rel (!%p11_p4) target bundleno = 1 (0x1), region = 79 }

// kernel: nl_res_group.40
= control target key start
LH: loop header
LB: loop body
LE: loop exit
PB: predicated region body
PF: predicated region fallthrough
CT: control target
= control target key end

     0   :  { %s782_s15 = smov 0   ;;  %s997_s0 = inlined_call_operand.vmem [shape: f32[2,16,16,2], index: 0, kind: input, shape index: {}]   ;;  %s998_s1 = inlined_call_operand.vmem [shape: bf16[1,1,2,4], index: 1, kind: input, shape index: {}]   ;;  %s999_s2 = inlined_call_operand.vmem [shape: f32[1,4], index: 2, kind: input, shape index: {}]   ;;  %s1000_s3 = inlined_call_operand.vmem [shape: f32[2,16,16,4], index: 3, kind: input, shape index: {}]   ;;  %s1001_s4 = inlined_call_operand.vmem [shape: f32[2,16,16,4], index: 4, kind: output, shape index: {}]  }
   0x1 LB: > { %s653_s16 = sadd.s32 4294967295, %s755_s15   ;;  %p657_p0 = scmp.ge.s32.totalorder %s755_s15, 1  ;;  %s755_s15 = sphi %s782_s15, %s14_s15  }
   0x2   : > { %p172_p1 = scmp.lt.s32.totalorder %s755_s15, 3 }
   0x4   : > { %p173_p2 = pnand %p657_p0, %p172_p1 }
   0x5   : > { %v267_v0 = vld [vmem:[%s998_s1] sm:$0x1] (!%p173_p2)  ;;  %vm324_vm0 = vcmask (!%p173_p2), 1040384   ;;  %p203_p3 = scmp.lt.s32.totalorder (!%p173_p2), %s653_s16, 1  ;;  %vm275_vm1 = vcmask (!%p173_p2), 15360   ;;  %vm553_vm2 = vcmask (!%p173_p2), 31744  }
   0x6   : > { %176 = sbr.rel (%p173_p2) target bundleno = 265 (0x109), region = 36  ;;  %739 = vmatprep.subr.msk.bf16.mxu0 (!%p173_p2), %vm324_vm0, %v267_v0  ;;  %740 = vmatprep.subr.msk.bf16.mxu1 (!%p173_p2), %vm324_vm0, %v267_v0  ;;  %v326_v1 = vsel (!%p173_p2), %vm324_vm0, %v267_v0, 0  ;;  %v858_v50 = vld [vmem:[%s999_s2] ss:$0 sm:$0xff] (!%p173_p2) }
   0x7   : > { %704 = vmatpush3.bf16.msra.mxu0 (!%p173_p2), %v326_v1  ;;  %738 = vmatpush3.bf16.msra.mxu1 (!%p173_p2), %v326_v1 }
   0xd   : > { %s1003_s16 = smov (!%p203_p3, %s653_s16), 1 }
   0xe   : > { %s793_s19 = sshll.u32 %s1003_s16, 8 }
   0xf   : > { %s799_s22 = scalar_lea.vmem %s997_s0, %s793_s19  ;;  %s853_s25 = scalar_lea.vmem %s1000_s3, %s793_s19 }
  0x10   : > { %v219_v2 = vld [vmem:[%s799_s22] sm:$0xff]  ;;  %v220_v3 = vld [vmem:[%s799_s22 + $0x8] sm:$0xff]  ;;  %v221_v7 = vld [vmem:[%s799_s22 + $0x10] sm:$0xff]  ;;  %s868_s30 = scalar_lea.vmem %s1001_s4, %s793_s19 }
  0x11   : > { %v235_v4 = vld [vmem:[%s799_s22 + $0x80] sm:$0xff]  ;;  %v251_v5 = vpack.c.bf16 %v220_v3, %v219_v2  ;;  %v236_v6 = vld [vmem:[%s799_s22 + $0x88] sm:$0xff]  ;;  %v222_v8 = vld [vmem:[%s799_s22 + $0x18] sm:$0xff] }
  0x12   : > { %v259_v9 = vpack.c.bf16 %v236_v6, %v235_v4  ;;  %v252_v10 = vpack.c.bf16 %v222_v8, %v221_v7  ;;  %v237_v11 = vld [vmem:[%s799_s22 + $0x90] sm:$0xff]  ;;  %v238_v12 = vld [vmem:[%s799_s22 + $0x98] sm:$0xff]  ;;  %v223_v13 = vld [vmem:[%s799_s22 + $0x20] sm:$0xff] }
  0x13   : > { %705 = vmatprep.mubr.msk.bf16.mxu0 %vm275_vm1, %v251_v5  ;;  %v260_v14 = vpack.c.bf16 %v238_v12, %v237_v11  ;;  %v224_v15 = vld [vmem:[%s799_s22 + $0x28] sm:$0xff]  ;;  %v239_v16 = vld [vmem:[%s799_s22 + $0xa0] sm:$0xff]  ;;  %v225_v20 = vld [vmem:[%s799_s22 + $0x30] sm:$0xff] }
  0x14   : > { %v240_v17 = vld [vmem:[%s799_s22 + $0xa8] sm:$0xff]  ;;  %721 = vmatprep.mubr.msk.bf16.mxu1 %vm275_vm1, %v259_v9  ;;  %706 = vmatmul.mubr.msk.bf16.vlgmr.msra.gmra.mrb[0].mxu0 %vm275_vm1, %v252_v10  ;;  %v253_v18 = vpack.c.bf16 %v224_v15, %v223_v13  ;;  %v226_v21 = vld [vmem:[%s799_s22 + $0x38] sm:$0xff]  ;;  %v241_v22 = vld [vmem:[%s799_s22 + $0xb0] sm:$0xff] }
  0x15   : > { %v261_v19 = vpack.c.bf16 %v240_v17, %v239_v16  ;;  %722 = vmatmul.mubr.msk.bf16.vlgmr.msra.gmra.mrb[0].mxu1 %vm275_vm1, %v260_v14  ;;  %v242_v23 = vld [vmem:[%s799_s22 + $0xb8] sm:$0xff]  ;;  %v227_v24 = vld [vmem:[%s799_s22 + $0x40] sm:$0xff]  ;;  %v228_v25 = vld [vmem:[%s799_s22 + $0x48] sm:$0xff]  ;;  %v254_v28 = vpack.c.bf16 %v226_v21, %v225_v20 }
  0x16   : > { %709 = vmatprep.mubr.msk.bf16.mxu0 %vm275_vm1, %v253_v18  ;;  %v243_v26 = vld [vmem:[%s799_s22 + $0xc0] sm:$0xff]  ;;  %v244_v27 = vld [vmem:[%s799_s22 + $0xc8] sm:$0xff]  ;;  %v262_v29 = vpack.c.bf16 %v242_v23, %v241_v22  ;;  %v255_v30 = vpack.c.bf16 %v228_v25, %v227_v24  ;;  %v229_v32 = vld [vmem:[%s799_s22 + $0x50] sm:$0xff] }
  0x17   : > { %725 = vmatprep.mubr.msk.bf16.mxu1 %vm275_vm1, %v261_v19  ;;  %v263_v31 = vpack.c.bf16 %v244_v27, %v243_v26  ;;  %v230_v33 = vld [vmem:[%s799_s22 + $0x58] sm:$0xff]  ;;  %v245_v34 = vld [vmem:[%s799_s22 + $0xd0] sm:$0xff]  ;;  %v231_v36 = vld [vmem:[%s799_s22 + $0x60] sm:$0xff] }
  0x18   : > { %v246_v35 = vld [vmem:[%s799_s22 + $0xd8] sm:$0xff]  ;;  %v232_v37 = vld [vmem:[%s799_s22 + $0x68] sm:$0xff]  ;;  %v247_v38 = vld [vmem:[%s799_s22 + $0xe0] sm:$0xff]  ;;  %v256_v40 = vpack.c.bf16 %v230_v33, %v229_v32 }
  0x19   : > { %v248_v39 = vld [vmem:[%s799_s22 + $0xe8] sm:$0xff]  ;;  %v264_v41 = vpack.c.bf16 %v246_v35, %v245_v34  ;;  %v257_v42 = vpack.c.bf16 %v232_v37, %v231_v36  ;;  %v233_v44 = vld [vmem:[%s799_s22 + $0x70] sm:$0xff]  ;;  %v234_v45 = vld [vmem:[%s799_s22 + $0x78] sm:$0xff] }
  0x1a   : > { %v265_v43 = vpack.c.bf16 %v248_v39, %v247_v38  ;;  %v249_v46 = vld [vmem:[%s799_s22 + $0xf0] sm:$0xff]  ;;  %v250_v47 = vld [vmem:[%s799_s22 + $0xf8] sm:$0xff]  ;;  %v258_v48 = vpack.c.bf16 %v234_v45, %v233_v44  ;;  %v489_v57 = vld [vmem:[%s853_s25] sm:$0xff] }
  0x1b   : > { %v266_v49 = vpack.c.bf16 %v250_v47, %v249_v46  ;;  %v491_v52 = vld [vmem:[%s853_s25 + $0x10] sm:$0xff]  ;;  %v505_v61 = vld [vmem:[%s853_s25 + $0x80] sm:$0xff]  ;;  %v492_v63 = vld [vmem:[%s853_s25 + $0x18] sm:$0xff] }
  0x1c   : > { %710 = vmatmul.mubr.msk.bf16.gmra.mrb[4].mxu0 %vm275_vm1, %v254_v28  ;;  %v507_v55 = vld [vmem:[%s853_s25 + $0x90] sm:$0xff]  ;;  %v508_v4 = vld [vmem:[%s853_s25 + $0x98] sm:$0xff]  ;;  %v490_v6 = vld [vmem:[%s853_s25 + $0x8] sm:$0xff] }
  0x1d   : > { %726 = vmatmul.mubr.msk.bf16.gmra.mrb[4].mxu1 %vm275_vm1, %v262_v29  ;;  %713 = vmatprep.mubr.msk.bf16.mxu0 %vm275_vm1, %v255_v30  ;;  %v506_v12 = vld [vmem:[%s853_s25 + $0x88] sm:$0xff]  ;;  %v495_v20 = vld [vmem:[%s853_s25 + $0x30] sm:$0xff]  ;;  %v493_v25 = vld [vmem:[%s853_s25 + $0x20] sm:$0xff] }
  0x1e   : > { %729 = vmatprep.mubr.msk.bf16.mxu1 %vm275_vm1, %v263_v31  ;;  %v511_v23 = vld [vmem:[%s853_s25 + $0xb0] sm:$0xff]  ;;  %v509_v29 = vld [vmem:[%s853_s25 + $0xa0] sm:$0xff]  ;;  %v496_v31 = vld [vmem:[%s853_s25 + $0x38] sm:$0xff] }
  0x1f   : > { %v512_v36 = vld [vmem:[%s853_s25 + $0xb8] sm:$0xff]  ;;  %v494_v38 = vld [vmem:[%s853_s25 + $0x28] sm:$0xff] }
  0x20   : > { %v510_v44 = vld [vmem:[%s853_s25 + $0xa8] sm:$0xff] }
  0x24   : > { %714 = vmatmul.mubr.msk.bf16.gmra.mrb[8].mxu0 %vm275_vm1, %v256_v40 }
  0x25   : > { %730 = vmatmul.mubr.msk.bf16.gmra.mrb[8].mxu1 %vm275_vm1, %v264_v41  ;;  %717 = vmatprep.mubr.msk.bf16.mxu0 %vm275_vm1, %v257_v42 }
  0x26   : > { %733 = vmatprep.mubr.msk.bf16.mxu1 %vm275_vm1, %v265_v43 }
  0x2c   : > { %718 = vmatmul.mubr.msk.bf16.gmra.mrb[12].mxu0 %vm275_vm1, %v258_v48 }
  0x2d   : > { %734 = vmatmul.mubr.msk.bf16.gmra.mrb[12].mxu1 %vm275_vm1, %v266_v49 }
  0xe7   : > { %v707_v51 = vpop.f32.mrb[0].mxu0 }
  0xe8   : > { %v371_v53 = vadd.f32 %v707_v51, %v858_v50  ;;  %v723_v54 = vpop.f32.mrb[0].mxu1  ;;  %v362_v56 = vpop.f32.mrb[1].mxu0 }
  0xe9   : > { %v435_v58 = vadd.f32 %v723_v54, %v858_v50  ;;  %v363_v59 = vadd.f32 %v858_v50, %v362_v56  ;;  %v426_v60 = vpop.f32.mrb[1].mxu1  ;;  %v708_v62 = vpop.f32.mrb[2].mxu0  ;;  %v515_v56 = vld [vmem:[%s853_s25 + $0xd0] sm:$0xff] }
  0xea   : > { %v523_v0 = vadd.f32 %v491_v52, %v371_v53  ;;  %v427_v1 = vadd.f32 %v858_v50, %v426_v60  ;;  %v374_v2 = vadd.f32 %v708_v62, %v858_v50  ;;  %v724_v3 = vpop.f32.mrb[2].mxu1  ;;  %v365_v5 = vpop.f32.mrb[3].mxu0  ;;  %v499_v53 = vld [vmem:[%s853_s25 + $0x50] sm:$0xff]  ;;  %v513_v62 = vld [vmem:[%s853_s25 + $0xc0] sm:$0xff] }
  0xeb   : > { %v539_v7 = vadd.f32 %v507_v55, %v435_v58  ;;  %v521_v8 = vadd.f32 %v489_v57, %v363_v59  ;;  %v438_v9 = vadd.f32 %v724_v3, %v858_v50  ;;  %v366_v10 = vadd.f32 %v858_v50, %v365_v5  ;;  %v429_v11 = vpop.f32.mrb[3].mxu1  ;;  %v497_v58 = vld [vmem:[%s853_s25 + $0x40] sm:$0xff]  ;;  %v516_v5 = vld [vmem:[%s853_s25 + $0xd8] sm:$0xff] }
  0xec   : > { %556 = vst.msk [vmem:[%s868_s30 + $0x10] sm:$0xff] %vm553_vm2, %v523_v0  ;;  %v537_v13 = vadd.f32 %v505_v61, %v427_v1  ;;  %v524_v14 = vadd.f32 %v492_v63, %v374_v2  ;;  %v430_v15 = vadd.f32 %v858_v50, %v429_v11  ;;  %v500_v0 = vld [vmem:[%s853_s25 + $0x58] sm:$0xff] }
  0xed   : > { %572 = vst.msk [vmem:[%s868_s30 + $0x90] sm:$0xff] %vm553_vm2, %v539_v7  ;;  %554 = vst.msk [vmem:[%s868_s30] sm:$0xff] %vm553_vm2, %v521_v8  ;;  %v540_v16 = vadd.f32 %v508_v4, %v438_v9  ;;  %v522_v17 = vadd.f32 %v490_v6, %v366_v10  ;;  %v498_v7 = vld [vmem:[%s853_s25 + $0x48] sm:$0xff] }
  0xee   : > { %570 = vst.msk [vmem:[%s868_s30 + $0x80] sm:$0xff] %vm553_vm2, %v537_v13  ;;  %557 = vst.msk [vmem:[%s868_s30 + $0x18] sm:$0xff] %vm553_vm2, %v524_v14  ;;  %v538_v18 = vadd.f32 %v506_v12, %v430_v15  ;;  %v514_v13 = vld [vmem:[%s853_s25 + $0xc8] sm:$0xff] }
  0xef   : > { %573 = vst.msk [vmem:[%s868_s30 + $0x98] sm:$0xff] %vm553_vm2, %v540_v16  ;;  %555 = vst.msk [vmem:[%s868_s30 + $0x8] sm:$0xff] %vm553_vm2, %v522_v17  ;;  %v711_v19 = vpop.f32.mrb[4].mxu0 }
  0xf0   : > { %571 = vst.msk [vmem:[%s868_s30 + $0x88] sm:$0xff] %vm553_vm2, %v538_v18  ;;  %v387_v21 = vadd.f32 %v711_v19, %v858_v50  ;;  %v727_v22 = vpop.f32.mrb[4].mxu1  ;;  %v378_v24 = vpop.f32.mrb[5].mxu0 }
  0xf1   : > { %v451_v26 = vadd.f32 %v727_v22, %v858_v50  ;;  %v379_v27 = vadd.f32 %v858_v50, %v378_v24  ;;  %v442_v28 = vpop.f32.mrb[5].mxu1  ;;  %v712_v30 = vpop.f32.mrb[6].mxu0  ;;  %v519_v24 = vld [vmem:[%s853_s25 + $0xf0] sm:$0xff] }
  0xf2   : > { %v527_v32 = vadd.f32 %v495_v20, %v387_v21  ;;  %v443_v33 = vadd.f32 %v858_v50, %v442_v28  ;;  %v390_v34 = vadd.f32 %v712_v30, %v858_v50  ;;  %v728_v35 = vpop.f32.mrb[6].mxu1  ;;  %v381_v37 = vpop.f32.mrb[7].mxu0  ;;  %v503_v21 = vld [vmem:[%s853_s25 + $0x70] sm:$0xff]  ;;  %v517_v30 = vld [vmem:[%s853_s25 + $0xe0] sm:$0xff] }
  0xf3   : > { %v543_v39 = vadd.f32 %v511_v23, %v451_v26  ;;  %v525_v40 = vadd.f32 %v493_v25, %v379_v27  ;;  %v454_v41 = vadd.f32 %v728_v35, %v858_v50  ;;  %v382_v42 = vadd.f32 %v858_v50, %v381_v37  ;;  %v445_v43 = vpop.f32.mrb[7].mxu1  ;;  %v501_v26 = vld [vmem:[%s853_s25 + $0x60] sm:$0xff]  ;;  %v520_v37 = vld [vmem:[%s853_s25 + $0xf8] sm:$0xff] }
  0xf4   : > { %560 = vst.msk [vmem:[%s868_s30 + $0x30] sm:$0xff] %vm553_vm2, %v527_v32  ;;  %v541_v45 = vadd.f32 %v509_v29, %v443_v33  ;;  %v528_v46 = vadd.f32 %v496_v31, %v390_v34  ;;  %v446_v47 = vadd.f32 %v858_v50, %v445_v43  ;;  %v504_v32 = vld [vmem:[%s853_s25 + $0x78] sm:$0xff] }
  0xf5   : > { %576 = vst.msk [vmem:[%s868_s30 + $0xb0] sm:$0xff] %vm553_vm2, %v543_v39  ;;  %558 = vst.msk [vmem:[%s868_s30 + $0x20] sm:$0xff] %vm553_vm2, %v525_v40  ;;  %v544_v48 = vadd.f32 %v512_v36, %v454_v41  ;;  %v526_v49 = vadd.f32 %v494_v38, %v382_v42  ;;  %v502_v39 = vld [vmem:[%s853_s25 + $0x68] sm:$0xff] }
  0xf6   : > { %574 = vst.msk [vmem:[%s868_s30 + $0xa0] sm:$0xff] %vm553_vm2, %v541_v45  ;;  %561 = vst.msk [vmem:[%s868_s30 + $0x38] sm:$0xff] %vm553_vm2, %v528_v46  ;;  %v542_v51 = vadd.f32 %v510_v44, %v446_v47  ;;  %v518_v45 = vld [vmem:[%s853_s25 + $0xe8] sm:$0xff] }
  0xf7   : > { %577 = vst.msk [vmem:[%s868_s30 + $0xb8] sm:$0xff] %vm553_vm2, %v544_v48  ;;  %559 = vst.msk [vmem:[%s868_s30 + $0x28] sm:$0xff] %vm553_vm2, %v526_v49  ;;  %v715_v52 = vpop.f32.mrb[8].mxu0 }
  0xf8   : > { %575 = vst.msk [vmem:[%s868_s30 + $0xa8] sm:$0xff] %vm553_vm2, %v542_v51  ;;  %v403_v54 = vadd.f32 %v715_v52, %v858_v50  ;;  %v731_v55 = vpop.f32.mrb[8].mxu1  ;;  %v394_v57 = vpop.f32.mrb[9].mxu0 }
  0xf9   : > { %v467_v59 = vadd.f32 %v731_v55, %v858_v50  ;;  %v395_v60 = vadd.f32 %v858_v50, %v394_v57  ;;  %v458_v61 = vpop.f32.mrb[9].mxu1  ;;  %v716_v63 = vpop.f32.mrb[10].mxu0 }
  0xfa   : > { %v531_v1 = vadd.f32 %v499_v53, %v403_v54  ;;  %v459_v2 = vadd.f32 %v858_v50, %v458_v61  ;;  %v406_v3 = vadd.f32 %v716_v63, %v858_v50  ;;  %v732_v4 = vpop.f32.mrb[10].mxu1  ;;  %v397_v6 = vpop.f32.mrb[11].mxu0 }
  0xfb   : > { %v547_v8 = vadd.f32 %v515_v56, %v467_v59  ;;  %v529_v9 = vadd.f32 %v497_v58, %v395_v60  ;;  %v470_v10 = vadd.f32 %v732_v4, %v858_v50  ;;  %v398_v11 = vadd.f32 %v858_v50, %v397_v6  ;;  %v461_v12 = vpop.f32.mrb[11].mxu1 }
  0xfc   : > { %564 = vst.msk [vmem:[%s868_s30 + $0x50] sm:$0xff] %vm553_vm2, %v531_v1  ;;  %v545_v14 = vadd.f32 %v513_v62, %v459_v2  ;;  %v532_v15 = vadd.f32 %v500_v0, %v406_v3  ;;  %v462_v16 = vadd.f32 %v858_v50, %v461_v12 }
  0xfd   : > { %580 = vst.msk [vmem:[%s868_s30 + $0xd0] sm:$0xff] %vm553_vm2, %v547_v8  ;;  %562 = vst.msk [vmem:[%s868_s30 + $0x40] sm:$0xff] %vm553_vm2, %v529_v9  ;;  %v548_v17 = vadd.f32 %v516_v5, %v470_v10  ;;  %v530_v18 = vadd.f32 %v498_v7, %v398_v11 }
  0xfe   : > { %578 = vst.msk [vmem:[%s868_s30 + $0xc0] sm:$0xff] %vm553_vm2, %v545_v14  ;;  %565 = vst.msk [vmem:[%s868_s30 + $0x58] sm:$0xff] %vm553_vm2, %v532_v15  ;;  %v546_v19 = vadd.f32 %v514_v13, %v462_v16 }
  0xff   : > { %581 = vst.msk [vmem:[%s868_s30 + $0xd8] sm:$0xff] %vm553_vm2, %v548_v17  ;;  %563 = vst.msk [vmem:[%s868_s30 + $0x48] sm:$0xff] %vm553_vm2, %v530_v18  ;;  %v719_v20 = vpop.f32.mrb[12].mxu0 }
 0x100   : > { %579 = vst.msk [vmem:[%s868_s30 + $0xc8] sm:$0xff] %vm553_vm2, %v546_v19  ;;  %v419_v22 = vadd.f32 %v719_v20, %v858_v50  ;;  %v735_v23 = vpop.f32.mrb[12].mxu1  ;;  %v410_v25 = vpop.f32.mrb[13].mxu0 }
 0x101   : > { %v483_v27 = vadd.f32 %v735_v23, %v858_v50  ;;  %v411_v28 = vadd.f32 %v858_v50, %v410_v25  ;;  %v474_v29 = vpop.f32.mrb[13].mxu1  ;;  %v720_v31 = vpop.f32.mrb[14].mxu0 }
 0x102   : > { %v535_v33 = vadd.f32 %v503_v21, %v419_v22  ;;  %v475_v34 = vadd.f32 %v858_v50, %v474_v29  ;;  %v422_v35 = vadd.f32 %v720_v31, %v858_v50  ;;  %v736_v36 = vpop.f32.mrb[14].mxu1  ;;  %v413_v38 = vpop.f32.mrb[15].mxu0 }
 0x103   : > { %v551_v40 = vadd.f32 %v519_v24, %v483_v27  ;;  %v533_v41 = vadd.f32 %v501_v26, %v411_v28  ;;  %v486_v42 = vadd.f32 %v736_v36, %v858_v50  ;;  %v414_v43 = vadd.f32 %v858_v50, %v413_v38  ;;  %v477_v44 = vpop.f32.mrb[15].mxu1 }
 0x104   : > { %568 = vst.msk [vmem:[%s868_s30 + $0x70] sm:$0xff] %vm553_vm2, %v535_v33  ;;  %v549_v46 = vadd.f32 %v517_v30, %v475_v34  ;;  %v536_v47 = vadd.f32 %v504_v32, %v422_v35  ;;  %v478_v48 = vadd.f32 %v858_v50, %v477_v44 }
 0x105   : > { %584 = vst.msk [vmem:[%s868_s30 + $0xf0] sm:$0xff] %vm553_vm2, %v551_v40  ;;  %566 = vst.msk [vmem:[%s868_s30 + $0x60] sm:$0xff] %vm553_vm2, %v533_v41  ;;  %v552_v49 = vadd.f32 %v520_v37, %v486_v42  ;;  %v534_v51 = vadd.f32 %v502_v39, %v414_v43 }
 0x106   : > { %582 = vst.msk [vmem:[%s868_s30 + $0xe0] sm:$0xff] %vm553_vm2, %v549_v46  ;;  %569 = vst.msk [vmem:[%s868_s30 + $0x78] sm:$0xff] %vm553_vm2, %v536_v47  ;;  %v550_v52 = vadd.f32 %v518_v45, %v478_v48 }
 0x107   : > { %585 = vst.msk [vmem:[%s868_s30 + $0xf8] sm:$0xff] %vm553_vm2, %v552_v49  ;;  %567 = vst.msk [vmem:[%s868_s30 + $0x68] sm:$0xff] %vm553_vm2, %v534_v51 }
 0x108   : > { %583 = vst.msk [vmem:[%s868_s30 + $0xe8] sm:$0xff] %vm553_vm2, %v550_v52 }
 0x109 PF: > { %s14_s15 = sadd.s32 1, %s755_s15  }
 0x10a   : > { %p11_p4 = scmp.ge.s32.totalorder %s14_s15, 4  }
 0x10c   :  { %13 = sbr.rel (!%p11_p4) target bundleno = 1 (0x1), region = 69 }

// kernel: nl_res_group.43
= control target key start
LH: loop header
LB: loop body
LE: loop exit
PB: predicated region body
PF: predicated region fallthrough
CT: control target
= control target key end

     0   :  { %vm98_vm0 = vcmask 293888   ;;  %vm123_vm1 = vcmask 1041408   ;;  %vm224_vm2 = vcmask 31744   ;;  %s445_s1 = inlined_call_operand.vmem [shape: bf16[36,4], index: 1, kind: input, shape index: {}]   ;;  %s446_s0 = inlined_call_operand.vmem [shape: bf16[128,36], index: 0, kind: input, shape index: {}]   ;;  %s447_s2 = inlined_call_operand.vmem [shape: f32[1,4], index: 2, kind: input, shape index: {}]   ;;  %s448_s3 = inlined_call_operand.vmem [shape: f32[128,4], index: 3, kind: output, shape index: {}]  }
   0x1   :  { %v306_v0 = vld [vmem:[%s445_s1] sm:$0xff]   ;;  %v307_v1 = vld [vmem:[%s445_s1 + $0x8] sm:$0xff]   ;;  %v308_v2 = vld [vmem:[%s445_s1 + $0x10] ss:$0 sps:$4 sm:$0x33]  }
   0x2   :  { %276 = vmatprep.subr.bf16.mxu0 %v306_v0  ;;  %298 = vmatprep.subr.bf16.mxu1 %v306_v0  ;;  %v309_v3 = vld [vmem:[%s446_s0] sm:$0xff]   ;;  %v125_v5 = vsel %vm123_vm1, %v308_v2, 0  ;;  %v311_v6 = vld [vmem:[%s446_s0 + $0x8] sm:$0xff]   ;;  %v313_v8 = vld [vmem:[%s446_s0 + $0x10] sm:$0xff]  }
   0x3   :  { %277 = vmatpush3.bf16.msra.mxu0 %v306_v0  ;;  %301 = vmatpush3.bf16.msra.mxu1 %v306_v0  ;;  %v310_v4 = vld [vmem:[%s446_s0 + $0x20] sm:$0xff]   ;;  %v312_v7 = vld [vmem:[%s446_s0 + $0x28] sm:$0xff]   ;;  %v314_v9 = vld [vmem:[%s446_s0 + $0x30] sm:$0xff]  }
   0x4   :  { %278 = vmatprep.subr.bf16.mxu0 %v307_v1  ;;  %299 = vmatprep.subr.bf16.mxu1 %v307_v1  ;;  %v315_v10 = vld [vmem:[%s446_s0 + $0x18] sm:$0xff]   ;;  %v245_v12 = vld [vmem:[%s447_s2] ss:$0 sm:$0xff] }
   0x5   :  { %282 = vmatprep.mubr.msk.bf16.mxu0 %vm98_vm0, %v309_v3  ;;  %290 = vmatprep.mubr.msk.bf16.mxu1 %vm98_vm0, %v310_v4  ;;  %v316_v11 = vld [vmem:[%s446_s0 + $0x38] sm:$0xff]  }
   0x7   :  { %279 = vmatpush3.bf16.msra.mxu0 %v307_v1  ;;  %302 = vmatpush3.bf16.msra.mxu1 %v307_v1 }
   0x8   :  { %304 = vmatprep.subr.msk.bf16.mxu0 %vm123_vm1, %v308_v2  ;;  %305 = vmatprep.subr.msk.bf16.mxu1 %vm123_vm1, %v308_v2 }
   0xb   :  { %281 = vmatpush3.bf16.msra.mxu0 %v125_v5  ;;  %303 = vmatpush3.bf16.msra.mxu1 %v125_v5 }
   0xe   :  { %283 = vmatmul.mubr.msk.bf16.vlgmr.msra.gmra.mrb[0].mxu0 %vm98_vm0, %v311_v6  ;;  %291 = vmatmul.mubr.msk.bf16.vlgmr.msra.gmra.mrb[0].mxu1 %vm98_vm0, %v312_v7 }
   0xf   :  { %286 = vmatprep.mubr.msk.bf16.mxu0 %vm98_vm0, %v313_v8  ;;  %294 = vmatprep.mubr.msk.bf16.mxu1 %vm98_vm0, %v314_v9 }
  0x16   :  { %287 = vmatmul.mubr.msk.bf16.gmra.mrb[4].mxu0 %vm98_vm0, %v315_v10  ;;  %295 = vmatmul.mubr.msk.bf16.gmra.mrb[4].mxu1 %vm98_vm0, %v316_v11 }
  0xe1   :  { %v284_v13 = vpop.f32.mrb[0].mxu0  ;;  %v292_v14 = vpop.f32.mrb[0].mxu1 }
  0xe2   :  { %v170_v15 = vadd.f32 %v284_v13, %v245_v12  ;;  %v202_v16 = vadd.f32 %v292_v14, %v245_v12  ;;  %v161_v17 = vpop.f32.mrb[1].mxu0  ;;  %v193_v18 = vpop.f32.mrb[1].mxu1 }
  0xe3   :  { %v162_v19 = vadd.f32 %v245_v12, %v161_v17  ;;  %v194_v20 = vadd.f32 %v245_v12, %v193_v18  ;;  %v285_v21 = vpop.f32.mrb[2].mxu0  ;;  %v293_v22 = vpop.f32.mrb[2].mxu1 }
  0xe4   :  { %227 = vst.msk [vmem:[%s448_s3 + $0x10] sm:$0xff] %vm224_vm2, %v170_v15  ;;  %235 = vst.msk [vmem:[%s448_s3 + $0x50] sm:$0xff] %vm224_vm2, %v202_v16  ;;  %v173_v23 = vadd.f32 %v285_v21, %v245_v12  ;;  %v205_v24 = vadd.f32 %v293_v22, %v245_v12  ;;  %v164_v25 = vpop.f32.mrb[3].mxu0  ;;  %v196_v26 = vpop.f32.mrb[3].mxu1 }
  0xe5   :  { %225 = vst.msk [vmem:[%s448_s3] sm:$0xff] %vm224_vm2, %v162_v19  ;;  %233 = vst.msk [vmem:[%s448_s3 + $0x40] sm:$0xff] %vm224_vm2, %v194_v20  ;;  %v165_v27 = vadd.f32 %v245_v12, %v164_v25  ;;  %v197_v28 = vadd.f32 %v245_v12, %v196_v26 }
  0xe6   :  { %228 = vst.msk [vmem:[%s448_s3 + $0x18] sm:$0xff] %vm224_vm2, %v173_v23  ;;  %236 = vst.msk [vmem:[%s448_s3 + $0x58] sm:$0xff] %vm224_vm2, %v205_v24 }
  0xe7   :  { %226 = vst.msk [vmem:[%s448_s3 + $0x8] sm:$0xff] %vm224_vm2, %v165_v27  ;;  %234 = vst.msk [vmem:[%s448_s3 + $0x48] sm:$0xff] %vm224_vm2, %v197_v28 }
  0xe9   :  { %v288_v29 = vpop.f32.mrb[4].mxu0  ;;  %v296_v30 = vpop.f32.mrb[4].mxu1 }
  0xea   :  { %v186_v31 = vadd.f32 %v288_v29, %v245_v12  ;;  %v218_v32 = vadd.f32 %v296_v30, %v245_v12  ;;  %v177_v33 = vpop.f32.mrb[5].mxu0  ;;  %v209_v34 = vpop.f32.mrb[5].mxu1 }
  0xeb   :  { %v178_v35 = vadd.f32 %v245_v12, %v177_v33  ;;  %v210_v36 = vadd.f32 %v245_v12, %v209_v34  ;;  %v289_v37 = vpop.f32.mrb[6].mxu0  ;;  %v297_v38 = vpop.f32.mrb[6].mxu1 }
  0xec   :  { %231 = vst.msk [vmem:[%s448_s3 + $0x30] sm:$0xff] %vm224_vm2, %v186_v31  ;;  %239 = vst.msk [vmem:[%s448_s3 + $0x70] sm:$0xff] %vm224_vm2, %v218_v32  ;;  %v189_v39 = vadd.f32 %v289_v37, %v245_v12  ;;  %v221_v40 = vadd.f32 %v297_v38, %v245_v12  ;;  %v180_v41 = vpop.f32.mrb[7].mxu0  ;;  %v212_v42 = vpop.f32.mrb[7].mxu1 }
  0xed   :  { %229 = vst.msk [vmem:[%s448_s3 + $0x20] sm:$0xff] %vm224_vm2, %v178_v35  ;;  %237 = vst.msk [vmem:[%s448_s3 + $0x60] sm:$0xff] %vm224_vm2, %v210_v36  ;;  %v181_v43 = vadd.f32 %v245_v12, %v180_v41  ;;  %v213_v44 = vadd.f32 %v245_v12, %v212_v42 }
  0xee   :  { %232 = vst.msk [vmem:[%s448_s3 + $0x38] sm:$0xff] %vm224_vm2, %v189_v39  ;;  %240 = vst.msk [vmem:[%s448_s3 + $0x78] sm:$0xff] %vm224_vm2, %v221_v40 }
  0xef   :  { %230 = vst.msk [vmem:[%s448_s3 + $0x28] sm:$0xff] %vm224_vm2, %v181_v43  ;;  %238 = vst.msk [vmem:[%s448_s3 + $0x68] sm:$0xff] %vm224_vm2, %v213_v44 }

// kernel: nl_res_group.44
= control target key start
LH: loop header
LB: loop body
LE: loop exit
PB: predicated region body
PF: predicated region fallthrough
CT: control target
= control target key end

     0   :  { %s1515_s12 = smov 0   ;;  %s1712_s0 = inlined_call_operand.vmem [shape: f32[2,10,10,4], index: 0, kind: input, shape index: {}]   ;;  %s1713_s1 = inlined_call_operand.vmem [shape: bf16[3,3,4,4], index: 1, kind: input, shape index: {}]   ;;  %s1714_s2 = inlined_call_operand.vmem [shape: f32[1,4], index: 2, kind: input, shape index: {}]   ;;  %s1715_s3 = inlined_call_operand.vmem [shape: f32[2,8,8,4], index: 3, kind: output, shape index: {}]  }
   0x1 LB: > { %s1163_s13 = sadd.s32 4294967295, %s1493_s12   ;;  %p1167_p0 = scmp.ge.s32.totalorder %s1493_s12, 1  ;;  %s1493_s12 = sphi %s1515_s12, %s13_s12  }
   0x2   : > { %p137_p1 = scmp.lt.s32.totalorder %s1493_s12, 3 }
   0x4   : > { %p138_p2 = pnand %p1167_p0, %p137_p1 }
   0x5   : > { %v1171_v0 = vld [vmem:[%s1713_s1 + $0x2] sm:$0x3] (!%p138_p2)  ;;  %vm212_vm0 = vcmask (!%p138_p2), 1041408   ;;  %v1529_v1 = vld [vmem:[%s1713_s1 + $0x8] sm:$0x3] (!%p138_p2)  ;;  %p161_p3 = scmp.lt.s32.totalorder (!%p138_p2), %s1163_s13, 1 }
   0x6   : > { %141 = sbr.rel (%p138_p2) target bundleno = 312 (0x138), region = 32  ;;  %1468 = vmatprep.subr.msk.bf16.mxu1 (!%p138_p2), %vm212_vm0, %v1171_v0  ;;  %1472 = vmatprep.subr.msk.bf16.mxu0 (!%p138_p2), %vm212_vm0, %v1529_v1  ;;  %v214_v2 = vsel (!%p138_p2), %vm212_vm0, %v1171_v0, 0  ;;  %v1537_v3 = vsel (!%p138_p2), %vm212_vm0, %v1529_v1, 0  ;;  %v184_v4 = vld [vmem:[%s1713_s1] sm:$0x3] (!%p138_p2)  ;;  %vm199_vm1 = vcmask (!%p138_p2), 31744  }
   0x7   : > { %1313 = vmatpush3.bf16.msra.mxu1 (!%p138_p2), %v214_v2  ;;  %1353 = vmatpush3.bf16.msra.mxu0 (!%p138_p2), %v1537_v3  ;;  %v1219_v5 = vld [vmem:[%s1713_s1 + $0xa] sm:$0x3] (!%p138_p2)  ;;  %v294_v12 = vsel (!%p138_p2), %vm212_vm0, %v184_v4, 0  ;;  %v1232_v22 = vld [vmem:[%s1713_s1 + $0xc] sm:$0x3] (!%p138_p2) }
   0x8   : > { %1469 = vmatprep.subr.msk.bf16.mxu1 (!%p138_p2), %vm212_vm0, %v184_v4  ;;  %1474 = vmatprep.subr.msk.bf16.mxu0 (!%p138_p2), %vm212_vm0, %v1219_v5  ;;  %v695_v17 = vsel (!%p138_p2), %vm212_vm0, %v1219_v5, 0  ;;  %v1180_v23 = vld [vmem:[%s1713_s1 + $0x4] sm:$0x3] (!%p138_p2)  ;;  %v798_v38 = vsel (!%p138_p2), %vm212_vm0, %v1232_v22, 0  ;;  %v1245_v41 = vld [vmem:[%s1713_s1 + $0xe] sm:$0x3] (!%p138_p2) }
   0x9   : > { %v388_v46 = vsel (!%p138_p2), %vm212_vm0, %v1180_v23, 0  ;;  %v1193_v47 = vld [vmem:[%s1713_s1 + $0x6] sm:$0x3] (!%p138_p2)  ;;  %v900_v54 = vsel (!%p138_p2), %vm212_vm0, %v1245_v41, 0  ;;  %v1258_v55 = vld [vmem:[%s1713_s1 + $0x10] sm:$0x3] (!%p138_p2) }
   0xa   : > { %v491_v60 = vsel (!%p138_p2), %vm212_vm0, %v1193_v47, 0  ;;  %v1002_v0 = vsel (!%p138_p2), %vm212_vm0, %v1258_v55, 0 }
   0xd   : > { %s1717_s13 = smov (!%p161_p3, %s1163_s13), 1 }
   0xe   : > { %s1478_s22 = smul.u32 160, %s1717_s13  ;;  %s1266_s11 = sshll.u32 %s1717_s13, 6 }
   0xf   : > { %s1691_s16 = scalar_lea.vmem %s1715_s3, %s1266_s11 }
  0x10   : > { %s1554_s25 = scalar_lea.vmem %s1712_s0, %s1478_s22 }
  0x11   : > { %v185_v6 = vld [vmem:[%s1554_s25 + $0x1] sm:$0xff]  ;;  %v186_v7 = vld [vmem:[%s1554_s25 + $0x11] sm:$0xff] }
  0x12   : > { %v1199_v8 = vld [vmem:[%s1554_s25 + $0x21] sm:$0xff]  ;;  %v193_v9 = vpack.c.bf16 %v186_v7, %v185_v6  ;;  %v188_v11 = vld [vmem:[%s1554_s25 + $0x31] sm:$0xff] }
  0x13   : > { %v574_v10 = vpack.c.bf16 %v1199_v8, %v186_v7  ;;  %v1201_v13 = vld [vmem:[%s1554_s25 + $0x41] sm:$0xff]  ;;  %v1563_v14 = vld [vmem:[%s1554_s25 + $0x51] sm:$0xff]  ;;  %v1565_v15 = vpack.c.bf16 %v188_v11, %v1199_v8 }
  0x14   : > { %v575_v16 = vpack.c.bf16 %v1201_v13, %v188_v11  ;;  %v1569_v18 = vpack.c.bf16 %v1563_v14, %v1201_v13  ;;  %v1211_v19 = vld [vmem:[%s1554_s25 + $0x12] sm:$0xff]  ;;  %1314 = vmatprep.mubr.msk.bf16.mxu1 %vm199_vm1, %v193_v9  ;;  %v1212_v20 = vld [vmem:[%s1554_s25 + $0x22] sm:$0xff] }
  0x15   : > { %1354 = vmatprep.mubr.msk.bf16.mxu0 %vm199_vm1, %v574_v10  ;;  %1315 = vmatmul.mubr.msk.bf16.vlgmr.msra.gmra.mrb[0].mxu1 %vm199_vm1, %v1565_v15  ;;  %v676_v21 = vpack.c.bf16 %v1212_v20, %v1211_v19  ;;  %v1585_v24 = vld [vmem:[%s1554_s25 + $0x61] sm:$0xff]  ;;  %v1588_v25 = vld [vmem:[%s1554_s25 + $0x71] sm:$0xff] }
  0x16   : > { %1355 = vmatmul.mubr.msk.bf16.vlgmr.msra.gmra.mrb[0].mxu0 %vm199_vm1, %v575_v16  ;;  %1323 = vmatpush3.bf16.msra.mxu1 %v294_v12  ;;  %v172_v26 = vld [vmem:[%s1554_s25] sm:$0xff]  ;;  %v1595_v27 = vld [vmem:[%s1554_s25 + $0x10] sm:$0xff]  ;;  %v1601_v28 = vpack.c.bf16 %v1588_v25, %v1585_v24  ;;  %v576_v8 = vpack.c.bf16 %v1585_v24, %v1563_v14 }
  0x17   : > { %1363 = vmatpush3.bf16.msra.mxu0 %v695_v17  ;;  %1318 = vmatprep.mubr.msk.bf16.mxu1 %vm199_vm1, %v1569_v18  ;;  %v1213_v29 = vld [vmem:[%s1554_s25 + $0x32] sm:$0xff]  ;;  %v1214_v30 = vld [vmem:[%s1554_s25 + $0x42] sm:$0xff]  ;;  %v180_v31 = vpack.c.bf16 %v1595_v27, %v172_v26  ;;  %v1263_v16 = vld [vmem:[%s1714_s2] ss:$0 sm:$0xff] }
  0x18   : > { %1364 = vmatprep.mubr.msk.bf16.mxu0 %vm199_vm1, %v676_v21  ;;  %1475 = vmatprep.subr.msk.bf16.mxu0 %vm212_vm0, %v1232_v22  ;;  %v1215_v32 = vld [vmem:[%s1554_s25 + $0x52] sm:$0xff]  ;;  %v1216_v33 = vld [vmem:[%s1554_s25 + $0x62] sm:$0xff]  ;;  %v677_v34 = vpack.c.bf16 %v1214_v30, %v1213_v29  ;;  %v370_v56 = vpack.c.bf16 %v1213_v29, %v1212_v20 }
  0x19   : > { %1470 = vmatprep.subr.msk.bf16.mxu1 %vm212_vm0, %v1180_v23  ;;  %v174_v35 = vld [vmem:[%s1554_s25 + $0x20] sm:$0xff]  ;;  %v175_v36 = vld [vmem:[%s1554_s25 + $0x30] sm:$0xff]  ;;  %v678_v37 = vpack.c.bf16 %v1216_v33, %v1215_v32  ;;  %v371_v59 = vpack.c.bf16 %v1215_v32, %v1214_v30 }
  0x1a   : > { %v176_v39 = vld [vmem:[%s1554_s25 + $0x40] sm:$0xff]  ;;  %v177_v40 = vld [vmem:[%s1554_s25 + $0x50] sm:$0xff]  ;;  %v181_v42 = vpack.c.bf16 %v175_v36, %v174_v35  ;;  %v472_v63 = vpack.c.bf16 %v174_v35, %v1595_v27 }
  0x1b   : > { %v1217_v43 = vld [vmem:[%s1554_s25 + $0x72] sm:$0xff]  ;;  %v1623_v44 = vld [vmem:[%s1554_s25 + $0x82] sm:$0xff]  ;;  %v182_v45 = vpack.c.bf16 %v177_v40, %v176_v39  ;;  %v473_v2 = vpack.c.bf16 %v176_v39, %v175_v36 }
  0x1c   : > { %v679_v48 = vpack.c.bf16 %v1623_v44, %v1217_v43  ;;  %v178_v49 = vld [vmem:[%s1554_s25 + $0x60] sm:$0xff]  ;;  %v179_v50 = vld [vmem:[%s1554_s25 + $0x70] sm:$0xff]  ;;  %v372_v62 = vpack.c.bf16 %v1217_v43, %v1216_v33 }
  0x1d   : > { %1319 = vmatmul.mubr.msk.bf16.gmra.mrb[4].mxu1 %vm199_vm1, %v1601_v28  ;;  %v361_v51 = vld [vmem:[%s1554_s25 + $0x2] sm:$0xff]  ;;  %v183_v52 = vpack.c.bf16 %v179_v50, %v178_v49  ;;  %v1231_v58 = vld [vmem:[%s1554_s25 + $0x90] sm:$0xff]  ;;  %v474_v5 = vpack.c.bf16 %v178_v49, %v177_v40 }
  0x1e   : > { %1324 = vmatprep.mubr.msk.bf16.mxu1 %vm199_vm1, %v180_v31  ;;  %v369_v53 = vpack.c.bf16 %v1211_v19, %v361_v51  ;;  %v1230_v57 = vld [vmem:[%s1554_s25 + $0x80] sm:$0xff]  ;;  %v1244_v4 = vld [vmem:[%s1554_s25 + $0x91] sm:$0xff] }
  0x1f   : > { %v782_v61 = vpack.c.bf16 %v1231_v58, %v1230_v57  ;;  %v475_v7 = vpack.c.bf16 %v1230_v57, %v179_v50 }
  0x22   : > { %1365 = vmatmul.mubr.msk.bf16.vlgmr.msra.gmra.mrb[0].mxu0 %vm199_vm1, %v677_v34 }
  0x23   : > { %1373 = vmatpush3.bf16.msra.mxu0 %v798_v38  ;;  %1368 = vmatprep.mubr.msk.bf16.mxu0 %vm199_vm1, %v678_v37 }
  0x24   : > { %1476 = vmatprep.subr.msk.bf16.mxu0 %vm212_vm0, %v1245_v41 }
  0x25   : > { %1325 = vmatmul.mubr.msk.bf16.vlgmr.msra.gmra.mrb[0].mxu1 %vm199_vm1, %v181_v42 }
  0x26   : > { %1333 = vmatpush3.bf16.msra.mxu1 %v388_v46  ;;  %1328 = vmatprep.mubr.msk.bf16.mxu1 %vm199_vm1, %v182_v45 }
  0x27   : > { %1471 = vmatprep.subr.msk.bf16.mxu1 %vm212_vm0, %v1193_v47 }
  0x2a   : > { %1369 = vmatmul.mubr.msk.bf16.gmra.mrb[4].mxu0 %vm199_vm1, %v679_v48 }
  0x2b   : > { %1374 = vmatprep.mubr.msk.bf16.mxu0 %vm199_vm1, %v181_v42 }
  0x2d   : > { %1329 = vmatmul.mubr.msk.bf16.gmra.mrb[4].mxu1 %vm199_vm1, %v183_v52 }
  0x2e   : > { %1334 = vmatprep.mubr.msk.bf16.mxu1 %vm199_vm1, %v369_v53 }
  0x32   : > { %1375 = vmatmul.mubr.msk.bf16.vlgmr.msra.gmra.mrb[0].mxu0 %vm199_vm1, %v182_v45 }
  0x33   : > { %1383 = vmatpush3.bf16.msra.mxu0 %v900_v54  ;;  %1378 = vmatprep.mubr.msk.bf16.mxu0 %vm199_vm1, %v183_v52 }
  0x34   : > { %1477 = vmatprep.subr.msk.bf16.mxu0 %vm212_vm0, %v1258_v55 }
  0x35   : > { %1335 = vmatmul.mubr.msk.bf16.vlgmr.msra.gmra.mrb[0].mxu1 %vm199_vm1, %v370_v56 }
  0x36   : > { %1343 = vmatpush3.bf16.msra.mxu1 %v491_v60  ;;  %1338 = vmatprep.mubr.msk.bf16.mxu1 %vm199_vm1, %v371_v59 }
  0x37   : > { %1473 = vmatprep.subr.msk.bf16.mxu1 %vm212_vm0, %v1529_v1  ;;  %v1243_v1 = vld [vmem:[%s1554_s25 + $0x81] sm:$0xff] }
  0x38   : > { %v884_v6 = vpack.c.bf16 %v1244_v4, %v1243_v1  ;;  %v577_v9 = vpack.c.bf16 %v1243_v1, %v1588_v25 }
  0x3a   : > { %1379 = vmatmul.mubr.msk.bf16.gmra.mrb[4].mxu0 %vm199_vm1, %v782_v61 }
  0x3b   : > { %1384 = vmatprep.mubr.msk.bf16.mxu0 %vm199_vm1, %v1565_v15 }
  0x3d   : > { %1339 = vmatmul.mubr.msk.bf16.gmra.mrb[4].mxu1 %vm199_vm1, %v372_v62 }
  0x3e   : > { %1344 = vmatprep.mubr.msk.bf16.mxu1 %vm199_vm1, %v472_v63 }
  0x42   : > { %1385 = vmatmul.mubr.msk.bf16.vlgmr.msra.gmra.mrb[0].mxu0 %vm199_vm1, %v1569_v18 }
  0x43   : > { %1393 = vmatpush3.bf16.msra.mxu0 %v1002_v0  ;;  %1388 = vmatprep.mubr.msk.bf16.mxu0 %vm199_vm1, %v1601_v28 }
  0x45   : > { %1345 = vmatmul.mubr.msk.bf16.vlgmr.msra.gmra.mrb[0].mxu1 %vm199_vm1, %v473_v2 }
  0x46   : > { %1403 = vmatpush3.bf16.msra.mxu1 %v1537_v3  ;;  %1348 = vmatprep.mubr.msk.bf16.mxu1 %vm199_vm1, %v474_v5  ;;  %v1257_v3 = vld [vmem:[%s1554_s25 + $0x92] sm:$0xff] }
  0x47   : > { %v986_v10 = vpack.c.bf16 %v1257_v3, %v1623_v44 }
  0x4a   : > { %1389 = vmatmul.mubr.msk.bf16.gmra.mrb[4].mxu0 %vm199_vm1, %v884_v6 }
  0x4b   : > { %1394 = vmatprep.mubr.msk.bf16.mxu0 %vm199_vm1, %v370_v56 }
  0x4d   : > { %1349 = vmatmul.mubr.msk.bf16.gmra.mrb[4].mxu1 %vm199_vm1, %v475_v7 }
  0x4e   : > { %1358 = vmatprep.mubr.msk.bf16.mxu1 %vm199_vm1, %v576_v8 }
  0x52   : > { %1395 = vmatmul.mubr.msk.bf16.vlgmr.msra.gmra.mrb[0].mxu0 %vm199_vm1, %v371_v59 }
  0x53   : > { %1398 = vmatprep.mubr.msk.bf16.mxu0 %vm199_vm1, %v372_v62 }
  0x59   : > { %1359 = vmatmul.mubr.msk.bf16.vlgmr.msra.gmra.mrb[4].mxu1 %vm199_vm1, %v577_v9 }
  0x5a   : > { %1399 = vmatmul.mubr.msk.bf16.gmra.mrb[4].mxu0 %vm199_vm1, %v986_v10 }
 0x118   : > { %v1346_v11 = vpop.f32.mrb[0].mxu1 }
 0x119   : > { %v527_v12 = vpop.f32.mrb[1].mxu1 }
 0x11a   : > { %v1347_v13 = vpop.f32.mrb[2].mxu1 }
 0x11b   : > { %v530_v14 = vpop.f32.mrb[3].mxu1 }
 0x125   : > { %v1396_v15 = vpop.f32.mrb[0].mxu0 }
 0x126   : > { %v1404_v17 = vadd.f32 %v1396_v15, %v1346_v11  ;;  %v1038_v18 = vpop.f32.mrb[1].mxu0 }
 0x127   : > { %v1405_v19 = vadd.f32 %v1038_v18, %v527_v12  ;;  %v1397_v20 = vpop.f32.mrb[2].mxu0 }
 0x128   : > { %v1086_v21 = vadd.f32 %v1404_v17, %v1263_v16  ;;  %v1406_v22 = vadd.f32 %v1397_v20, %v1347_v13  ;;  %v1041_v23 = vpop.f32.mrb[3].mxu0 }
 0x129   : > { %v1084_v24 = vadd.f32 %v1405_v19, %v1263_v16  ;;  %v1407_v25 = vadd.f32 %v1041_v23, %v530_v14 }
 0x12a   : > { %v1094_v26 = vmax.f32 %v1086_v21, 0.0  ;;  %v1087_v27 = vadd.f32 %v1406_v22, %v1263_v16 }
 0x12b   : > { %v1092_v28 = vmax.f32 %v1084_v24, 0.0  ;;  %v1085_v29 = vadd.f32 %v1407_v25, %v1263_v16 }
 0x12c   : > { %1102 = vst.msk [vmem:[%s1691_s16 + $0x10] sm:$0xff] %vm199_vm1, %v1094_v26  ;;  %v1095_v30 = vmax.f32 %v1087_v27, 0.0  ;;  %v1360_v32 = vpop.f32.mrb[4].mxu1 }
 0x12d   : > { %1100 = vst.msk [vmem:[%s1691_s16] sm:$0xff] %vm199_vm1, %v1092_v28  ;;  %v1093_v31 = vmax.f32 %v1085_v29, 0.0  ;;  %v1400_v33 = vpop.f32.mrb[4].mxu0  ;;  %v645_v35 = vpop.f32.mrb[5].mxu1 }
 0x12e   : > { %1103 = vst.msk [vmem:[%s1691_s16 + $0x18] sm:$0xff] %vm199_vm1, %v1095_v30  ;;  %v1408_v34 = vadd.f32 %v1400_v33, %v1360_v32  ;;  %v1054_v36 = vpop.f32.mrb[5].mxu0  ;;  %v1361_v38 = vpop.f32.mrb[6].mxu1 }
 0x12f   : > { %1101 = vst.msk [vmem:[%s1691_s16 + $0x8] sm:$0xff] %vm199_vm1, %v1093_v31  ;;  %v1409_v37 = vadd.f32 %v1054_v36, %v645_v35  ;;  %v1401_v39 = vpop.f32.mrb[6].mxu0  ;;  %v648_v42 = vpop.f32.mrb[7].mxu1 }
 0x130   : > { %v1090_v40 = vadd.f32 %v1408_v34, %v1263_v16  ;;  %v1410_v41 = vadd.f32 %v1401_v39, %v1361_v38  ;;  %v1057_v43 = vpop.f32.mrb[7].mxu0 }
 0x131   : > { %v1088_v44 = vadd.f32 %v1409_v37, %v1263_v16  ;;  %v1411_v45 = vadd.f32 %v1057_v43, %v648_v42 }
 0x132   : > { %v1098_v46 = vmax.f32 %v1090_v40, 0.0  ;;  %v1091_v47 = vadd.f32 %v1410_v41, %v1263_v16 }
 0x133   : > { %v1096_v48 = vmax.f32 %v1088_v44, 0.0  ;;  %v1089_v49 = vadd.f32 %v1411_v45, %v1263_v16 }
 0x134   : > { %1106 = vst.msk [vmem:[%s1691_s16 + $0x30] sm:$0xff] %vm199_vm1, %v1098_v46  ;;  %v1099_v50 = vmax.f32 %v1091_v47, 0.0 }
 0x135   : > { %1104 = vst.msk [vmem:[%s1691_s16 + $0x20] sm:$0xff] %vm199_vm1, %v1096_v48  ;;  %v1097_v51 = vmax.f32 %v1089_v49, 0.0 }
 0x136   : > { %1107 = vst.msk [vmem:[%s1691_s16 + $0x38] sm:$0xff] %vm199_vm1, %v1099_v50 }
 0x137   : > { %1105 = vst.msk [vmem:[%s1691_s16 + $0x28] sm:$0xff] %vm199_vm1, %v1097_v51 }
 0x138 PF: > { %s13_s12 = sadd.s32 1, %s1493_s12  }
 0x139   : > { %p10_p4 = scmp.ge.s32.totalorder %s13_s12, 4  }
 0x13b   :  { %12 = sbr.rel (!%p10_p4) target bundleno = 1 (0x1), region = 72 }

// kernel: nl_res_group.45
= control target key start
LH: loop header
LB: loop body
LE: loop exit
PB: predicated region body
PF: predicated region fallthrough
CT: control target
= control target key end

     0   :  { %s1590_s15 = smov 0   ;;  %s1800_s0 = inlined_call_operand.vmem [shape: f32[2,10,10,4], index: 0, kind: input, shape index: {}]   ;;  %s1801_s1 = inlined_call_operand.vmem [shape: bf16[3,3,4,4], index: 1, kind: input, shape index: {}]   ;;  %s1802_s2 = inlined_call_operand.vmem [shape: f32[1,4], index: 2, kind: input, shape index: {}]   ;;  %s1803_s3 = inlined_call_operand.vmem [shape: f32[2,8,8,4], index: 3, kind: input, shape index: {}]   ;;  %s1804_s4 = inlined_call_operand.vmem [shape: f32[2,8,8,4], index: 4, kind: output, shape index: {}]  }
   0x1 LB: > { %s1230_s16 = sadd.s32 4294967295, %s1563_s15   ;;  %p1234_p0 = scmp.ge.s32.totalorder %s1563_s15, 1  ;;  %s1563_s15 = sphi %s1590_s15, %s14_s15  }
   0x2   : > { %p172_p1 = scmp.lt.s32.totalorder %s1563_s15, 3 }
   0x4   : > { %p173_p2 = pnand %p1234_p0, %p172_p1 }
   0x5   : > { %v1240_v0 = vld [vmem:[%s1801_s1 + $0x2] sm:$0x3] (!%p173_p2)  ;;  %vm259_vm0 = vcmask (!%p173_p2), 1041408   ;;  %v1604_v1 = vld [vmem:[%s1801_s1 + $0x8] sm:$0x3] (!%p173_p2)  ;;  %p203_p3 = scmp.lt.s32.totalorder (!%p173_p2), %s1230_s16, 1 }
   0x6   : > { %176 = sbr.rel (%p173_p2) target bundleno = 312 (0x138), region = 36  ;;  %1538 = vmatprep.subr.msk.bf16.mxu1 (!%p173_p2), %vm259_vm0, %v1240_v0  ;;  %1542 = vmatprep.subr.msk.bf16.mxu0 (!%p173_p2), %vm259_vm0, %v1604_v1  ;;  %v261_v2 = vsel (!%p173_p2), %vm259_vm0, %v1240_v0, 0  ;;  %v1612_v3 = vsel (!%p173_p2), %vm259_vm0, %v1604_v1, 0  ;;  %v231_v4 = vld [vmem:[%s1801_s1] sm:$0x3] (!%p173_p2)  ;;  %vm246_vm1 = vcmask (!%p173_p2), 31744  }
   0x7   : > { %1383 = vmatpush3.bf16.msra.mxu1 (!%p173_p2), %v261_v2  ;;  %1423 = vmatpush3.bf16.msra.mxu0 (!%p173_p2), %v1612_v3  ;;  %v1288_v5 = vld [vmem:[%s1801_s1 + $0xa] sm:$0x3] (!%p173_p2)  ;;  %v341_v12 = vsel (!%p173_p2), %vm259_vm0, %v231_v4, 0  ;;  %v1301_v22 = vld [vmem:[%s1801_s1 + $0xc] sm:$0x3] (!%p173_p2) }
   0x8   : > { %1539 = vmatprep.subr.msk.bf16.mxu1 (!%p173_p2), %vm259_vm0, %v231_v4  ;;  %1544 = vmatprep.subr.msk.bf16.mxu0 (!%p173_p2), %vm259_vm0, %v1288_v5  ;;  %v742_v17 = vsel (!%p173_p2), %vm259_vm0, %v1288_v5, 0  ;;  %v1249_v23 = vld [vmem:[%s1801_s1 + $0x4] sm:$0x3] (!%p173_p2)  ;;  %v845_v38 = vsel (!%p173_p2), %vm259_vm0, %v1301_v22, 0  ;;  %v1314_v41 = vld [vmem:[%s1801_s1 + $0xe] sm:$0x3] (!%p173_p2) }
   0x9   : > { %v435_v46 = vsel (!%p173_p2), %vm259_vm0, %v1249_v23, 0  ;;  %v1262_v47 = vld [vmem:[%s1801_s1 + $0x6] sm:$0x3] (!%p173_p2)  ;;  %v947_v54 = vsel (!%p173_p2), %vm259_vm0, %v1314_v41, 0  ;;  %v1327_v55 = vld [vmem:[%s1801_s1 + $0x10] sm:$0x3] (!%p173_p2) }
   0xa   : > { %v538_v60 = vsel (!%p173_p2), %vm259_vm0, %v1262_v47, 0  ;;  %v1049_v0 = vsel (!%p173_p2), %vm259_vm0, %v1327_v55, 0 }
   0xd   : > { %s1806_s16 = smov (!%p203_p3, %s1230_s16), 1 }
   0xe   : > { %s1548_s25 = smul.u32 160, %s1806_s16  ;;  %s1335_s13 = sshll.u32 %s1806_s16, 6 }
   0xf   : > { %s1763_s18 = scalar_lea.vmem %s1803_s3, %s1335_s13  ;;  %s1773_s22 = scalar_lea.vmem %s1804_s4, %s1335_s13 }
  0x10   : > { %s1629_s28 = scalar_lea.vmem %s1800_s0, %s1548_s25 }
  0x11   : > { %v232_v6 = vld [vmem:[%s1629_s28 + $0x1] sm:$0xff]  ;;  %v233_v7 = vld [vmem:[%s1629_s28 + $0x11] sm:$0xff] }
  0x12   : > { %v1268_v8 = vld [vmem:[%s1629_s28 + $0x21] sm:$0xff]  ;;  %v240_v9 = vpack.c.bf16 %v233_v7, %v232_v6  ;;  %v235_v11 = vld [vmem:[%s1629_s28 + $0x31] sm:$0xff] }
  0x13   : > { %v621_v10 = vpack.c.bf16 %v1268_v8, %v233_v7  ;;  %v1270_v13 = vld [vmem:[%s1629_s28 + $0x41] sm:$0xff]  ;;  %v1638_v14 = vld [vmem:[%s1629_s28 + $0x51] sm:$0xff]  ;;  %v1640_v15 = vpack.c.bf16 %v235_v11, %v1268_v8 }
  0x14   : > { %v622_v16 = vpack.c.bf16 %v1270_v13, %v235_v11  ;;  %v1644_v18 = vpack.c.bf16 %v1638_v14, %v1270_v13  ;;  %v1280_v19 = vld [vmem:[%s1629_s28 + $0x12] sm:$0xff]  ;;  %1384 = vmatprep.mubr.msk.bf16.mxu1 %vm246_vm1, %v240_v9  ;;  %v1281_v20 = vld [vmem:[%s1629_s28 + $0x22] sm:$0xff] }
  0x15   : > { %1424 = vmatprep.mubr.msk.bf16.mxu0 %vm246_vm1, %v621_v10  ;;  %1385 = vmatmul.mubr.msk.bf16.vlgmr.msra.gmra.mrb[0].mxu1 %vm246_vm1, %v1640_v15  ;;  %v723_v21 = vpack.c.bf16 %v1281_v20, %v1280_v19  ;;  %v1660_v24 = vld [vmem:[%s1629_s28 + $0x61] sm:$0xff]  ;;  %v1663_v25 = vld [vmem:[%s1629_s28 + $0x71] sm:$0xff] }
  0x16   : > { %1425 = vmatmul.mubr.msk.bf16.vlgmr.msra.gmra.mrb[0].mxu0 %vm246_vm1, %v622_v16  ;;  %1393 = vmatpush3.bf16.msra.mxu1 %v341_v12  ;;  %v219_v26 = vld [vmem:[%s1629_s28] sm:$0xff]  ;;  %v1670_v27 = vld [vmem:[%s1629_s28 + $0x10] sm:$0xff]  ;;  %v1676_v28 = vpack.c.bf16 %v1663_v25, %v1660_v24  ;;  %v623_v8 = vpack.c.bf16 %v1660_v24, %v1638_v14 }
  0x17   : > { %1433 = vmatpush3.bf16.msra.mxu0 %v742_v17  ;;  %1388 = vmatprep.mubr.msk.bf16.mxu1 %vm246_vm1, %v1644_v18  ;;  %v1282_v29 = vld [vmem:[%s1629_s28 + $0x32] sm:$0xff]  ;;  %v1283_v30 = vld [vmem:[%s1629_s28 + $0x42] sm:$0xff]  ;;  %v227_v31 = vpack.c.bf16 %v1670_v27, %v219_v26  ;;  %v1332_v16 = vld [vmem:[%s1802_s2] ss:$0 sm:$0xff] }
  0x18   : > { %1434 = vmatprep.mubr.msk.bf16.mxu0 %vm246_vm1, %v723_v21  ;;  %1545 = vmatprep.subr.msk.bf16.mxu0 %vm259_vm0, %v1301_v22  ;;  %v1284_v32 = vld [vmem:[%s1629_s28 + $0x52] sm:$0xff]  ;;  %v1285_v33 = vld [vmem:[%s1629_s28 + $0x62] sm:$0xff]  ;;  %v724_v34 = vpack.c.bf16 %v1283_v30, %v1282_v29  ;;  %v417_v56 = vpack.c.bf16 %v1282_v29, %v1281_v20 }
  0x19   : > { %1540 = vmatprep.subr.msk.bf16.mxu1 %vm259_vm0, %v1249_v23  ;;  %v221_v35 = vld [vmem:[%s1629_s28 + $0x20] sm:$0xff]  ;;  %v222_v36 = vld [vmem:[%s1629_s28 + $0x30] sm:$0xff]  ;;  %v725_v37 = vpack.c.bf16 %v1285_v33, %v1284_v32  ;;  %v418_v59 = vpack.c.bf16 %v1284_v32, %v1283_v30 }
  0x1a   : > { %v223_v39 = vld [vmem:[%s1629_s28 + $0x40] sm:$0xff]  ;;  %v224_v40 = vld [vmem:[%s1629_s28 + $0x50] sm:$0xff]  ;;  %v228_v42 = vpack.c.bf16 %v222_v36, %v221_v35  ;;  %v519_v63 = vpack.c.bf16 %v221_v35, %v1670_v27  ;;  %v1142_v27 = vld [vmem:[%s1763_s18 + $0x18] sm:$0xff] }
  0x1b   : > { %v1286_v43 = vld [vmem:[%s1629_s28 + $0x72] sm:$0xff]  ;;  %v1698_v44 = vld [vmem:[%s1629_s28 + $0x82] sm:$0xff]  ;;  %v229_v45 = vpack.c.bf16 %v224_v40, %v223_v39  ;;  %v520_v2 = vpack.c.bf16 %v223_v39, %v222_v36 }
  0x1c   : > { %v726_v48 = vpack.c.bf16 %v1698_v44, %v1286_v43  ;;  %v225_v49 = vld [vmem:[%s1629_s28 + $0x60] sm:$0xff]  ;;  %v226_v50 = vld [vmem:[%s1629_s28 + $0x70] sm:$0xff]  ;;  %v419_v62 = vpack.c.bf16 %v1286_v43, %v1285_v33 }
  0x1d   : > { %1389 = vmatmul.mubr.msk.bf16.gmra.mrb[4].mxu1 %vm246_vm1, %v1676_v28  ;;  %v408_v51 = vld [vmem:[%s1629_s28 + $0x2] sm:$0xff]  ;;  %v230_v52 = vpack.c.bf16 %v226_v50, %v225_v49  ;;  %v1300_v58 = vld [vmem:[%s1629_s28 + $0x90] sm:$0xff]  ;;  %v521_v5 = vpack.c.bf16 %v225_v49, %v224_v40 }
  0x1e   : > { %1394 = vmatprep.mubr.msk.bf16.mxu1 %vm246_vm1, %v227_v31  ;;  %v416_v53 = vpack.c.bf16 %v1280_v19, %v408_v51  ;;  %v1299_v57 = vld [vmem:[%s1629_s28 + $0x80] sm:$0xff]  ;;  %v1313_v4 = vld [vmem:[%s1629_s28 + $0x91] sm:$0xff]  ;;  %v1140_v31 = vld [vmem:[%s1763_s18 + $0x8] sm:$0xff] }
  0x1f   : > { %v829_v61 = vpack.c.bf16 %v1300_v58, %v1299_v57  ;;  %v522_v7 = vpack.c.bf16 %v1299_v57, %v226_v50  ;;  %v1141_v19 = vld [vmem:[%s1763_s18 + $0x10] sm:$0xff]  ;;  %v1139_v23 = vld [vmem:[%s1763_s18] sm:$0xff]  ;;  %v1146_v51 = vld [vmem:[%s1763_s18 + $0x38] sm:$0xff] }
  0x22   : > { %1435 = vmatmul.mubr.msk.bf16.vlgmr.msra.gmra.mrb[0].mxu0 %vm246_vm1, %v724_v34 }
  0x23   : > { %1443 = vmatpush3.bf16.msra.mxu0 %v845_v38  ;;  %1438 = vmatprep.mubr.msk.bf16.mxu0 %vm246_vm1, %v725_v37 }
  0x24   : > { %1546 = vmatprep.subr.msk.bf16.mxu0 %vm259_vm0, %v1314_v41  ;;  %v1145_v41 = vld [vmem:[%s1763_s18 + $0x30] sm:$0xff] }
  0x25   : > { %1395 = vmatmul.mubr.msk.bf16.vlgmr.msra.gmra.mrb[0].mxu1 %vm246_vm1, %v228_v42 }
  0x26   : > { %1403 = vmatpush3.bf16.msra.mxu1 %v435_v46  ;;  %1398 = vmatprep.mubr.msk.bf16.mxu1 %vm246_vm1, %v229_v45  ;;  %v1143_v46 = vld [vmem:[%s1763_s18 + $0x20] sm:$0xff] }
  0x27   : > { %1541 = vmatprep.subr.msk.bf16.mxu1 %vm259_vm0, %v1262_v47 }
  0x2a   : > { %1439 = vmatmul.mubr.msk.bf16.gmra.mrb[4].mxu0 %vm246_vm1, %v726_v48 }
  0x2b   : > { %1444 = vmatprep.mubr.msk.bf16.mxu0 %vm246_vm1, %v228_v42 }
  0x2d   : > { %1399 = vmatmul.mubr.msk.bf16.gmra.mrb[4].mxu1 %vm246_vm1, %v230_v52 }
  0x2e   : > { %1404 = vmatprep.mubr.msk.bf16.mxu1 %vm246_vm1, %v416_v53 }
  0x32   : > { %1445 = vmatmul.mubr.msk.bf16.vlgmr.msra.gmra.mrb[0].mxu0 %vm246_vm1, %v229_v45 }
  0x33   : > { %1453 = vmatpush3.bf16.msra.mxu0 %v947_v54  ;;  %1448 = vmatprep.mubr.msk.bf16.mxu0 %vm246_vm1, %v230_v52 }
  0x34   : > { %1547 = vmatprep.subr.msk.bf16.mxu0 %vm259_vm0, %v1327_v55  ;;  %v1144_v55 = vld [vmem:[%s1763_s18 + $0x28] sm:$0xff] }
  0x35   : > { %1405 = vmatmul.mubr.msk.bf16.vlgmr.msra.gmra.mrb[0].mxu1 %vm246_vm1, %v417_v56 }
  0x36   : > { %1413 = vmatpush3.bf16.msra.mxu1 %v538_v60  ;;  %1408 = vmatprep.mubr.msk.bf16.mxu1 %vm246_vm1, %v418_v59 }
  0x37   : > { %1543 = vmatprep.subr.msk.bf16.mxu1 %vm259_vm0, %v1604_v1  ;;  %v1312_v1 = vld [vmem:[%s1629_s28 + $0x81] sm:$0xff] }
  0x38   : > { %v931_v6 = vpack.c.bf16 %v1313_v4, %v1312_v1  ;;  %v624_v9 = vpack.c.bf16 %v1312_v1, %v1663_v25 }
  0x3a   : > { %1449 = vmatmul.mubr.msk.bf16.gmra.mrb[4].mxu0 %vm246_vm1, %v829_v61 }
  0x3b   : > { %1454 = vmatprep.mubr.msk.bf16.mxu0 %vm246_vm1, %v1640_v15 }
  0x3d   : > { %1409 = vmatmul.mubr.msk.bf16.gmra.mrb[4].mxu1 %vm246_vm1, %v419_v62 }
  0x3e   : > { %1414 = vmatprep.mubr.msk.bf16.mxu1 %vm246_vm1, %v519_v63 }
  0x42   : > { %1455 = vmatmul.mubr.msk.bf16.vlgmr.msra.gmra.mrb[0].mxu0 %vm246_vm1, %v1644_v18 }
  0x43   : > { %1463 = vmatpush3.bf16.msra.mxu0 %v1049_v0  ;;  %1458 = vmatprep.mubr.msk.bf16.mxu0 %vm246_vm1, %v1676_v28 }
  0x45   : > { %1415 = vmatmul.mubr.msk.bf16.vlgmr.msra.gmra.mrb[0].mxu1 %vm246_vm1, %v520_v2 }
  0x46   : > { %1473 = vmatpush3.bf16.msra.mxu1 %v1612_v3  ;;  %1418 = vmatprep.mubr.msk.bf16.mxu1 %vm246_vm1, %v521_v5  ;;  %v1326_v3 = vld [vmem:[%s1629_s28 + $0x92] sm:$0xff] }
  0x47   : > { %v1033_v10 = vpack.c.bf16 %v1326_v3, %v1698_v44 }
  0x4a   : > { %1459 = vmatmul.mubr.msk.bf16.gmra.mrb[4].mxu0 %vm246_vm1, %v931_v6 }
  0x4b   : > { %1464 = vmatprep.mubr.msk.bf16.mxu0 %vm246_vm1, %v417_v56 }
  0x4d   : > { %1419 = vmatmul.mubr.msk.bf16.gmra.mrb[4].mxu1 %vm246_vm1, %v522_v7 }
  0x4e   : > { %1428 = vmatprep.mubr.msk.bf16.mxu1 %vm246_vm1, %v623_v8 }
  0x52   : > { %1465 = vmatmul.mubr.msk.bf16.vlgmr.msra.gmra.mrb[0].mxu0 %vm246_vm1, %v418_v59 }
  0x53   : > { %1468 = vmatprep.mubr.msk.bf16.mxu0 %vm246_vm1, %v419_v62 }
  0x59   : > { %1429 = vmatmul.mubr.msk.bf16.vlgmr.msra.gmra.mrb[4].mxu1 %vm246_vm1, %v624_v9 }
  0x5a   : > { %1469 = vmatmul.mubr.msk.bf16.gmra.mrb[4].mxu0 %vm246_vm1, %v1033_v10 }
 0x118   : > { %v1416_v11 = vpop.f32.mrb[0].mxu1 }
 0x119   : > { %v574_v12 = vpop.f32.mrb[1].mxu1 }
 0x11a   : > { %v1417_v13 = vpop.f32.mrb[2].mxu1 }
 0x11b   : > { %v577_v14 = vpop.f32.mrb[3].mxu1 }
 0x125   : > { %v1466_v15 = vpop.f32.mrb[0].mxu0 }
 0x126   : > { %v1474_v17 = vadd.f32 %v1466_v15, %v1416_v11  ;;  %v1085_v18 = vpop.f32.mrb[1].mxu0 }
 0x127   : > { %v1475_v20 = vadd.f32 %v1085_v18, %v574_v12  ;;  %v1467_v21 = vpop.f32.mrb[2].mxu0 }
 0x128   : > { %v1133_v22 = vadd.f32 %v1474_v17, %v1332_v16  ;;  %v1476_v24 = vadd.f32 %v1467_v21, %v1417_v13  ;;  %v1088_v25 = vpop.f32.mrb[3].mxu0 }
 0x129   : > { %v1131_v26 = vadd.f32 %v1475_v20, %v1332_v16  ;;  %v1477_v28 = vadd.f32 %v1088_v25, %v577_v14 }
 0x12a   : > { %v1149_v29 = vadd.f32 %v1141_v19, %v1133_v22  ;;  %v1134_v30 = vadd.f32 %v1476_v24, %v1332_v16 }
 0x12b   : > { %v1147_v32 = vadd.f32 %v1139_v23, %v1131_v26  ;;  %v1132_v33 = vadd.f32 %v1477_v28, %v1332_v16 }
 0x12c   : > { %1157 = vst.msk [vmem:[%s1773_s22 + $0x10] sm:$0xff] %vm246_vm1, %v1149_v29  ;;  %v1150_v34 = vadd.f32 %v1142_v27, %v1134_v30  ;;  %v1430_v36 = vpop.f32.mrb[4].mxu1 }
 0x12d   : > { %1155 = vst.msk [vmem:[%s1773_s22] sm:$0xff] %vm246_vm1, %v1147_v32  ;;  %v1148_v35 = vadd.f32 %v1140_v31, %v1132_v33  ;;  %v1470_v37 = vpop.f32.mrb[4].mxu0  ;;  %v692_v39 = vpop.f32.mrb[5].mxu1 }
 0x12e   : > { %1158 = vst.msk [vmem:[%s1773_s22 + $0x18] sm:$0xff] %vm246_vm1, %v1150_v34  ;;  %v1478_v38 = vadd.f32 %v1470_v37, %v1430_v36  ;;  %v1101_v40 = vpop.f32.mrb[5].mxu0  ;;  %v1431_v43 = vpop.f32.mrb[6].mxu1 }
 0x12f   : > { %1156 = vst.msk [vmem:[%s1773_s22 + $0x8] sm:$0xff] %vm246_vm1, %v1148_v35  ;;  %v1479_v42 = vadd.f32 %v1101_v40, %v692_v39  ;;  %v1471_v44 = vpop.f32.mrb[6].mxu0  ;;  %v695_v48 = vpop.f32.mrb[7].mxu1 }
 0x130   : > { %v1137_v45 = vadd.f32 %v1478_v38, %v1332_v16  ;;  %v1480_v47 = vadd.f32 %v1471_v44, %v1431_v43  ;;  %v1104_v49 = vpop.f32.mrb[7].mxu0 }
 0x131   : > { %v1135_v50 = vadd.f32 %v1479_v42, %v1332_v16  ;;  %v1481_v52 = vadd.f32 %v1104_v49, %v695_v48 }
 0x132   : > { %v1153_v53 = vadd.f32 %v1145_v41, %v1137_v45  ;;  %v1138_v54 = vadd.f32 %v1480_v47, %v1332_v16 }
 0x133   : > { %v1151_v56 = vadd.f32 %v1143_v46, %v1135_v50  ;;  %v1136_v57 = vadd.f32 %v1481_v52, %v1332_v16 }
 0x134   : > { %1161 = vst.msk [vmem:[%s1773_s22 + $0x30] sm:$0xff] %vm246_vm1, %v1153_v53  ;;  %v1154_v58 = vadd.f32 %v1146_v51, %v1138_v54 }
 0x135   : > { %1159 = vst.msk [vmem:[%s1773_s22 + $0x20] sm:$0xff] %vm246_vm1, %v1151_v56  ;;  %v1152_v59 = vadd.f32 %v1144_v55, %v1136_v57 }
 0x136   : > { %1162 = vst.msk [vmem:[%s1773_s22 + $0x38] sm:$0xff] %vm246_vm1, %v1154_v58 }
 0x137   : > { %1160 = vst.msk [vmem:[%s1773_s22 + $0x28] sm:$0xff] %vm246_vm1, %v1152_v59 }
 0x138 PF: > { %s14_s15 = sadd.s32 1, %s1563_s15  }
 0x139   : > { %p11_p4 = scmp.ge.s32.totalorder %s14_s15, 4  }
 0x13b   :  { %13 = sbr.rel (!%p11_p4) target bundleno = 1 (0x1), region = 79 }

// kernel: nl_res_group.54
= control target key start
LH: loop header
LB: loop body
LE: loop exit
PB: predicated region body
PF: predicated region fallthrough
CT: control target
= control target key end

     0   :  { %s1264_s18 = smov 0   ;;  %s1550_s0 = inlined_call_operand.vmem [shape: f32[2,16,16,4], index: 0, kind: input, shape index: {}]   ;;  %s1551_s1 = inlined_call_operand.vmem [shape: bf16[1,1,4,4], index: 1, kind: input, shape index: {}]   ;;  %s1552_s2 = inlined_call_operand.vmem [shape: f32[1,4], index: 2, kind: input, shape index: {}]   ;;  %s1553_s3 = inlined_call_operand.vmem [shape: f32[2,16,16,4], index: 3, kind: input, shape index: {}]   ;;  %s1554_s4 = inlined_call_operand.vmem [shape: f32[2,16,16,4], index: 4, kind: input, shape index: {}]   ;;  %s1555_s5 = inlined_call_operand.vmem [shape: f32[2,16,16,4], index: 5, kind: output, shape index: {}]  }
   0x1 LB: > { %s967_s19 = sadd.s32 4294967295, %s1232_s18   ;;  %p971_p0 = scmp.ge.s32.totalorder %s1232_s18, 1  ;;  %s1232_s18 = sphi %s1264_s18, %s15_s18  }
   0x2   : > { %p207_p1 = scmp.lt.s32.totalorder %s1232_s18, 3 }
   0x4   : > { %p208_p2 = pnand %p971_p0, %p207_p1 }
   0x5   : > { %v314_v0 = vld [vmem:[%s1551_s1] sm:$0x3] (!%p208_p2)  ;;  %vm371_vm0 = vcmask (!%p208_p2), 1041408   ;;  %p245_p3 = scmp.lt.s32.totalorder (!%p208_p2), %s967_s19, 1  ;;  %vm322_vm1 = vcmask (!%p208_p2), 31744  }
   0x6   : > { %211 = sbr.rel (%p208_p2) target bundleno = 324 (0x144), region = 40  ;;  %1088 = vmatprep.subr.msk.bf16.mxu0 (!%p208_p2), %vm371_vm0, %v314_v0  ;;  %1089 = vmatprep.subr.msk.bf16.mxu1 (!%p208_p2), %vm371_vm0, %v314_v0  ;;  %v373_v1 = vsel (!%p208_p2), %vm371_vm0, %v314_v0, 0  ;;  %v1334_v50 = vld [vmem:[%s1552_s2] ss:$0 sm:$0xff] (!%p208_p2) }
   0x7   : > { %1053 = vmatpush3.bf16.msra.mxu0 (!%p208_p2), %v373_v1  ;;  %1087 = vmatpush3.bf16.msra.mxu1 (!%p208_p2), %v373_v1 }
   0xd   : > { %s1557_s19 = smov (!%p245_p3, %s967_s19), 1 }
   0xe   : > { %s1275_s22 = sshll.u32 %s1557_s19, 8 }
   0xf   : > { %s1281_s25 = scalar_lea.vmem %s1550_s0, %s1275_s22  ;;  %s1360_s30 = scalar_lea.vmem %s1553_s3, %s1275_s22 }
  0x10   : > { %v266_v2 = vld [vmem:[%s1281_s25] sm:$0xff]  ;;  %v267_v3 = vld [vmem:[%s1281_s25 + $0x8] sm:$0xff]  ;;  %v268_v7 = vld [vmem:[%s1281_s25 + $0x10] sm:$0xff]  ;;  %s1367_s8 = scalar_lea.vmem %s1554_s4, %s1275_s22  ;;  %s1403_s11 = scalar_lea.vmem %s1555_s5, %s1275_s22 }
  0x11   : > { %v282_v4 = vld [vmem:[%s1281_s25 + $0x80] sm:$0xff]  ;;  %v298_v5 = vpack.c.bf16 %v267_v3, %v266_v2  ;;  %v283_v6 = vld [vmem:[%s1281_s25 + $0x88] sm:$0xff]  ;;  %v269_v8 = vld [vmem:[%s1281_s25 + $0x18] sm:$0xff] }
  0x12   : > { %v306_v9 = vpack.c.bf16 %v283_v6, %v282_v4  ;;  %v299_v10 = vpack.c.bf16 %v269_v8, %v268_v7  ;;  %v284_v11 = vld [vmem:[%s1281_s25 + $0x90] sm:$0xff]  ;;  %v285_v12 = vld [vmem:[%s1281_s25 + $0x98] sm:$0xff]  ;;  %v270_v13 = vld [vmem:[%s1281_s25 + $0x20] sm:$0xff] }
  0x13   : > { %1054 = vmatprep.mubr.msk.bf16.mxu0 %vm322_vm1, %v298_v5  ;;  %v307_v14 = vpack.c.bf16 %v285_v12, %v284_v11  ;;  %v271_v15 = vld [vmem:[%s1281_s25 + $0x28] sm:$0xff]  ;;  %v286_v16 = vld [vmem:[%s1281_s25 + $0xa0] sm:$0xff]  ;;  %v272_v20 = vld [vmem:[%s1281_s25 + $0x30] sm:$0xff] }
  0x14   : > { %v287_v17 = vld [vmem:[%s1281_s25 + $0xa8] sm:$0xff]  ;;  %1070 = vmatprep.mubr.msk.bf16.mxu1 %vm322_vm1, %v306_v9  ;;  %1055 = vmatmul.mubr.msk.bf16.vlgmr.msra.gmra.mrb[0].mxu0 %vm322_vm1, %v299_v10  ;;  %v300_v18 = vpack.c.bf16 %v271_v15, %v270_v13  ;;  %v273_v21 = vld [vmem:[%s1281_s25 + $0x38] sm:$0xff]  ;;  %v288_v22 = vld [vmem:[%s1281_s25 + $0xb0] sm:$0xff] }
  0x15   : > { %v308_v19 = vpack.c.bf16 %v287_v17, %v286_v16  ;;  %1071 = vmatmul.mubr.msk.bf16.vlgmr.msra.gmra.mrb[0].mxu1 %vm322_vm1, %v307_v14  ;;  %v289_v23 = vld [vmem:[%s1281_s25 + $0xb8] sm:$0xff]  ;;  %v274_v24 = vld [vmem:[%s1281_s25 + $0x40] sm:$0xff]  ;;  %v275_v25 = vld [vmem:[%s1281_s25 + $0x48] sm:$0xff]  ;;  %v301_v28 = vpack.c.bf16 %v273_v21, %v272_v20 }
  0x16   : > { %1058 = vmatprep.mubr.msk.bf16.mxu0 %vm322_vm1, %v300_v18  ;;  %v290_v26 = vld [vmem:[%s1281_s25 + $0xc0] sm:$0xff]  ;;  %v291_v27 = vld [vmem:[%s1281_s25 + $0xc8] sm:$0xff]  ;;  %v309_v29 = vpack.c.bf16 %v289_v23, %v288_v22  ;;  %v302_v30 = vpack.c.bf16 %v275_v25, %v274_v24  ;;  %v276_v32 = vld [vmem:[%s1281_s25 + $0x50] sm:$0xff] }
  0x17   : > { %1074 = vmatprep.mubr.msk.bf16.mxu1 %vm322_vm1, %v308_v19  ;;  %v310_v31 = vpack.c.bf16 %v291_v27, %v290_v26  ;;  %v277_v33 = vld [vmem:[%s1281_s25 + $0x58] sm:$0xff]  ;;  %v292_v34 = vld [vmem:[%s1281_s25 + $0xd0] sm:$0xff]  ;;  %v278_v36 = vld [vmem:[%s1281_s25 + $0x60] sm:$0xff] }
  0x18   : > { %v293_v35 = vld [vmem:[%s1281_s25 + $0xd8] sm:$0xff]  ;;  %v279_v37 = vld [vmem:[%s1281_s25 + $0x68] sm:$0xff]  ;;  %v294_v38 = vld [vmem:[%s1281_s25 + $0xe0] sm:$0xff]  ;;  %v303_v40 = vpack.c.bf16 %v277_v33, %v276_v32 }
  0x19   : > { %v295_v39 = vld [vmem:[%s1281_s25 + $0xe8] sm:$0xff]  ;;  %v311_v41 = vpack.c.bf16 %v293_v35, %v292_v34  ;;  %v304_v42 = vpack.c.bf16 %v279_v37, %v278_v36  ;;  %v280_v44 = vld [vmem:[%s1281_s25 + $0x70] sm:$0xff]  ;;  %v281_v45 = vld [vmem:[%s1281_s25 + $0x78] sm:$0xff] }
  0x1a   : > { %v312_v43 = vpack.c.bf16 %v295_v39, %v294_v38  ;;  %v296_v46 = vld [vmem:[%s1281_s25 + $0xf0] sm:$0xff]  ;;  %v297_v47 = vld [vmem:[%s1281_s25 + $0xf8] sm:$0xff]  ;;  %v305_v48 = vpack.c.bf16 %v281_v45, %v280_v44 }
  0x1b   : > { %v313_v49 = vpack.c.bf16 %v297_v47, %v296_v46 }
  0x1c   : > { %1059 = vmatmul.mubr.msk.bf16.gmra.mrb[4].mxu0 %vm322_vm1, %v301_v28 }
  0x1d   : > { %1075 = vmatmul.mubr.msk.bf16.gmra.mrb[4].mxu1 %vm322_vm1, %v309_v29  ;;  %1062 = vmatprep.mubr.msk.bf16.mxu0 %vm322_vm1, %v302_v30 }
  0x1e   : > { %1078 = vmatprep.mubr.msk.bf16.mxu1 %vm322_vm1, %v310_v31 }
  0x24   : > { %1063 = vmatmul.mubr.msk.bf16.gmra.mrb[8].mxu0 %vm322_vm1, %v303_v40 }
  0x25   : > { %1079 = vmatmul.mubr.msk.bf16.gmra.mrb[8].mxu1 %vm322_vm1, %v311_v41  ;;  %1066 = vmatprep.mubr.msk.bf16.mxu0 %vm322_vm1, %v304_v42 }
  0x26   : > { %1082 = vmatprep.mubr.msk.bf16.mxu1 %vm322_vm1, %v312_v43 }
  0x2c   : > { %1067 = vmatmul.mubr.msk.bf16.gmra.mrb[12].mxu0 %vm322_vm1, %v305_v48 }
  0x2d   : > { %1083 = vmatmul.mubr.msk.bf16.gmra.mrb[12].mxu1 %vm322_vm1, %v313_v49 }
  0xe7   : > { %v1056_v51 = vpop.f32.mrb[0].mxu0 }
  0xe8   : > { %v418_v52 = vadd.f32 %v1056_v51, %v1334_v50  ;;  %v1072_v53 = vpop.f32.mrb[0].mxu1  ;;  %v409_v54 = vpop.f32.mrb[1].mxu0 }
  0xe9   : > { %v482_v55 = vadd.f32 %v1072_v53, %v1334_v50  ;;  %v410_v56 = vadd.f32 %v1334_v50, %v409_v54  ;;  %v473_v57 = vpop.f32.mrb[1].mxu1  ;;  %v1057_v58 = vpop.f32.mrb[2].mxu0 }
  0xea   : > { %v999_v59 = vmul.f32 -1.442695, %v418_v52  ;;  %v474_v60 = vadd.f32 %v1334_v50, %v473_v57  ;;  %v421_v61 = vadd.f32 %v1057_v58, %v1334_v50  ;;  %v1073_v62 = vpop.f32.mrb[2].mxu1  ;;  %v412_v63 = vpop.f32.mrb[3].mxu0 }
  0xeb   : > { %v1015_v0 = vmul.f32 -1.442695, %v482_v55  ;;  %v997_v1 = vmul.f32 -1.442695, %v410_v56  ;;  %v485_v2 = vadd.f32 %v1073_v62, %v1334_v50  ;;  %v413_v3 = vadd.f32 %v1334_v50, %v412_v63  ;;  %v476_v4 = vpop.f32.mrb[3].mxu1 }
  0xec   : > { %1098 = vpow2.f32 %v999_v59  ;;  %v1013_v5 = vmul.f32 -1.442695, %v474_v60  ;;  %v1000_v6 = vmul.f32 -1.442695, %v421_v61  ;;  %v477_v7 = vadd.f32 %v1334_v50, %v476_v4 }
  0xed   : > { %1100 = vpow2.f32 %v1015_v0  ;;  %v1016_v8 = vmul.f32 -1.442695, %v485_v2  ;;  %v998_v9 = vmul.f32 -1.442695, %v413_v3  ;;  %v538_v0 = vld [vmem:[%s1360_s30 + $0x10] sm:$0xff] }
  0xee   : > { %1102 = vpow2.f32 %v997_v1  ;;  %v1014_v10 = vmul.f32 -1.442695, %v477_v7  ;;  %v570_v7 = vld [vmem:[%s1367_s8 + $0x10] sm:$0xff] }
  0xef   : > { %1104 = vpow2.f32 %v1013_v5  ;;  %v1060_v11 = vpop.f32.mrb[4].mxu0 }
  0xf0   : > { %1106 = vpow2.f32 %v1000_v6  ;;  %v434_v12 = vadd.f32 %v1060_v11, %v1334_v50  ;;  %v1076_v13 = vpop.f32.mrb[4].mxu1  ;;  %v425_v14 = vpop.f32.mrb[5].mxu0 }
  0xf1   : > { %1108 = vpow2.f32 %v1016_v8  ;;  %v498_v15 = vadd.f32 %v1076_v13, %v1334_v50  ;;  %v426_v16 = vadd.f32 %v1334_v50, %v425_v14  ;;  %v489_v17 = vpop.f32.mrb[5].mxu1  ;;  %v1061_v18 = vpop.f32.mrb[6].mxu0  ;;  %v554_v8 = vld [vmem:[%s1360_s30 + $0x90] sm:$0xff] }
  0xf2   : > { %1110 = vpow2.f32 %v998_v9  ;;  %v1003_v19 = vmul.f32 -1.442695, %v434_v12  ;;  %v490_v20 = vadd.f32 %v1334_v50, %v489_v17  ;;  %v437_v21 = vadd.f32 %v1061_v18, %v1334_v50  ;;  %v1077_v22 = vpop.f32.mrb[6].mxu1  ;;  %v428_v23 = vpop.f32.mrb[7].mxu0 }
  0xf3   : > { %1112 = vpow2.f32 %v1014_v10  ;;  %v1019_v24 = vmul.f32 -1.442695, %v498_v15  ;;  %v1001_v25 = vmul.f32 -1.442695, %v426_v16  ;;  %v492_v26 = vpop.f32.mrb[7].mxu1  ;;  %v501_v51 = vadd.f32 %v1077_v22, %v1334_v50  ;;  %v536_v15 = vld [vmem:[%s1360_s30] sm:$0xff] }
  0xf4   : > { %1114 = vpow2.f32 %v1003_v19  ;;  %v1017_v27 = vmul.f32 -1.442695, %v490_v20  ;;  %v1004_v28 = vmul.f32 -1.442695, %v437_v21  ;;  %v429_v54 = vadd.f32 %v1334_v50, %v428_v23 }
  0xf5   : > { %1116 = vpow2.f32 %v1019_v24  ;;  %v493_v57 = vadd.f32 %v1334_v50, %v492_v26  ;;  %v1020_v2 = vmul.f32 -1.442695, %v501_v51  ;;  %v537_v51 = vld [vmem:[%s1360_s30 + $0x8] sm:$0xff] }
  0xf6   : > { %v1099_v29 = vpop.eup %1098  ;;  %1118 = vpow2.f32 %v1001_v25  ;;  %v1002_v10 = vmul.f32 -1.442695, %v429_v54 }
  0xf7   : > { %v1101_v30 = vpop.eup %1100  ;;  %v698_v31 = vadd.f32 1.0, %v1099_v29  ;;  %1120 = vpow2.f32 %v1017_v27  ;;  %v1064_v32 = vpop.f32.mrb[8].mxu0  ;;  %v1018_v17 = vmul.f32 -1.442695, %v493_v57  ;;  %v552_v29 = vld [vmem:[%s1360_s30 + $0x80] sm:$0xff] }
  0xf8   : > { %v1103_v33 = vpop.eup %1102  ;;  %v714_v34 = vadd.f32 1.0, %v1101_v30  ;;  %1122 = vpow2.f32 %v1004_v28  ;;  %v1080_v35 = vpop.f32.mrb[8].mxu1  ;;  %v450_v60 = vadd.f32 %v1064_v32, %v1334_v50  ;;  %v586_v28 = vld [vmem:[%s1367_s8 + $0x90] sm:$0xff] }
  0xf9   : > { %v441_v36 = vpop.f32.mrb[9].mxu0  ;;  %v1105_v37 = vpop.eup %1104  ;;  %1124 = vrcp.f32 %v698_v31  ;;  %v696_v38 = vadd.f32 1.0, %v1103_v33  ;;  %v514_v61 = vadd.f32 %v1080_v35, %v1334_v50  ;;  %v539_v35 = vld [vmem:[%s1360_s30 + $0x18] sm:$0xff] }
  0xfa   : > { %v505_v39 = vpop.f32.mrb[9].mxu1  ;;  %v1065_v40 = vpop.f32.mrb[10].mxu0  ;;  %1126 = vrcp.f32 %v714_v34  ;;  %v712_v42 = vadd.f32 1.0, %v1105_v37  ;;  %v442_v3 = vadd.f32 %v1334_v50, %v441_v36  ;;  %v1007_v23 = vmul.f32 -1.442695, %v450_v60  ;;  %v568_v34 = vld [vmem:[%s1367_s8] sm:$0xff] }
  0xfb   : > { %v1107_v41 = vpop.eup %1106  ;;  %v1349_v43 = vpop.f32.mrb[10].mxu1  ;;  %1128 = vrcp.f32 %v696_v38  ;;  %v506_v11 = vadd.f32 %v1334_v50, %v505_v39  ;;  %v453_v18 = vadd.f32 %v1065_v40, %v1334_v50  ;;  %v1023_v24 = vmul.f32 -1.442695, %v514_v61  ;;  %v569_v61 = vld [vmem:[%s1367_s8 + $0x8] sm:$0xff] }
  0xfc   : > { %v1351_v44 = vpop.f32.mrb[11].mxu0  ;;  %v1109_v45 = vpop.eup %1108  ;;  %v699_v46 = vadd.f32 1.0, %v1107_v41  ;;  %1130 = vrcp.f32 %v712_v42  ;;  %v1005_v30 = vmul.f32 -1.442695, %v442_v3  ;;  %v517_v31 = vadd.f32 %v1349_v43, %v1334_v50  ;;  %v584_v41 = vld [vmem:[%s1367_s8 + $0x80] sm:$0xff]  ;;  %v555_v42 = vld [vmem:[%s1360_s30 + $0x98] sm:$0xff] }
  0xfd   : > { %v1353_v47 = vpop.f32.mrb[11].mxu1  ;;  %v1111_v48 = vpop.eup %1110  ;;  %v715_v49 = vadd.f32 1.0, %v1109_v45  ;;  %v1021_v36 = vmul.f32 -1.442695, %v506_v11  ;;  %v445_v37 = vadd.f32 %v1334_v50, %v1351_v44  ;;  %v1008_v43 = vmul.f32 -1.442695, %v453_v18 }
  0xfe   : > { %v1113_v52 = vpop.eup %1112  ;;  %1132 = vrcp.f32 %v699_v46  ;;  %v697_v53 = vadd.f32 1.0, %v1111_v48  ;;  %v509_v44 = vadd.f32 %v1334_v50, %v1353_v47  ;;  %v1024_v57 = vmul.f32 -1.442695, %v517_v31  ;;  %v542_v47 = vld [vmem:[%s1360_s30 + $0x30] sm:$0xff]  ;;  %v585_v3 = vld [vmem:[%s1367_s8 + $0x88] sm:$0xff]  ;;  %v540_v11 = vld [vmem:[%s1360_s30 + $0x20] sm:$0xff] }
  0xff   : > { %v1115_v55 = vpop.eup %1114  ;;  %1134 = vrcp.f32 %v715_v49  ;;  %v713_v56 = vadd.f32 1.0, %v1113_v52  ;;  %v1372_v62 = vpop.f32.mrb[12].mxu0  ;;  %v571_v49 = vld [vmem:[%s1367_s8 + $0x18] sm:$0xff]  ;;  %v590_v18 = vld [vmem:[%s1367_s8 + $0xb0] sm:$0xff] }
 0x100   : > { %v1117_v58 = vpop.eup %1116  ;;  %1136 = vrcp.f32 %v697_v53  ;;  %v702_v59 = vadd.f32 1.0, %v1115_v55  ;;  %v1376_v4 = vpop.f32.mrb[12].mxu1  ;;  %v587_v55 = vld [vmem:[%s1367_s8 + $0x98] sm:$0xff] }
 0x101   : > { %v1119_v63 = vpop.eup %1118  ;;  %1138 = vrcp.f32 %v713_v56  ;;  %v718_v1 = vadd.f32 1.0, %v1117_v58  ;;  %v1378_v5 = vpop.f32.mrb[13].mxu0  ;;  %v553_v56 = vld [vmem:[%s1360_s30 + $0x88] sm:$0xff] }
 0x102   : > { %v1121_v6 = vpop.eup %1120  ;;  %1140 = vrcp.f32 %v702_v59  ;;  %v700_v9 = vadd.f32 1.0, %v1119_v63  ;;  %v1383_v12 = vpop.f32.mrb[13].mxu1  ;;  %v466_v63 = vadd.f32 %v1372_v62, %v1334_v50 }
 0x103   : > { %v1385_v13 = vpop.f32.mrb[14].mxu0  ;;  %v1123_v14 = vpop.eup %1122  ;;  %1142 = vrcp.f32 %v718_v1  ;;  %v716_v16 = vadd.f32 1.0, %v1121_v6  ;;  %v558_v6 = vld [vmem:[%s1360_s30 + $0xb0] sm:$0xff] }
 0x104   : > { %v1389_v19 = vpop.f32.mrb[14].mxu1  ;;  %v1391_v20 = vpop.f32.mrb[15].mxu0  ;;  %1144 = vrcp.f32 %v700_v9  ;;  %v703_v22 = vadd.f32 1.0, %v1123_v14  ;;  %v1006_v14 = vmul.f32 -1.442695, %v445_v37  ;;  %v575_v37 = vld [vmem:[%s1367_s8 + $0x38] sm:$0xff] }
 0x105   : > { %v1125_v21 = vpop.eup %1124  ;;  %v1393_v25 = vpop.f32.mrb[15].mxu1  ;;  %1146 = vrcp.f32 %v716_v16 }
 0x106   : > { %v1127_v26 = vpop.eup %1126  ;;  %v794_v27 = vmul.f32 %v1125_v21, %v538_v0  ;;  %1148 = vrcp.f32 %v703_v22  ;;  %v1022_v21 = vmul.f32 -1.442695, %v509_v44 }
 0x107   : > { %v1129_v32 = vpop.eup %1128  ;;  %v810_v33 = vmul.f32 %v1127_v26, %v554_v8  ;;  %1150 = vpow2.f32 %v1020_v2  ;;  %v572_v26 = vld [vmem:[%s1367_s8 + $0x20] sm:$0xff] }
 0x108   : > { %v1131_v38 = vpop.eup %1130  ;;  %v826_v39 = vadd.f32 %v794_v27, %v570_v7  ;;  %v792_v40 = vmul.f32 %v1129_v32, %v536_v15  ;;  %1152 = vpow2.f32 %v1002_v10  ;;  %v530_v7 = vadd.f32 %v1376_v4, %v1334_v50  ;;  %v574_v10 = vld [vmem:[%s1367_s8 + $0x30] sm:$0xff]  ;;  %v556_v4 = vld [vmem:[%s1360_s30 + $0xa0] sm:$0xff]  ;;  %v543_v27 = vld [vmem:[%s1360_s30 + $0x38] sm:$0xff] }
 0x109   : > { %v1133_v45 = vpop.eup %1132  ;;  %v842_v46 = vadd.f32 %v810_v33, %v586_v28  ;;  %v808_v48 = vmul.f32 %v1131_v38, %v552_v29  ;;  %1154 = vpow2.f32 %v1018_v17  ;;  %v1011_v28 = vmul.f32 -1.442695, %v466_v63  ;;  %v588_v32 = vld [vmem:[%s1367_s8 + $0xa0] sm:$0xff] }
 0x10a   : > { %v1135_v52 = vpop.eup %1134  ;;  %858 = vst.msk [vmem:[%s1403_s11 + $0x10] sm:$0xff] %vm322_vm1, %v826_v39  ;;  %v824_v53 = vadd.f32 %v792_v40, %v568_v34  ;;  %v795_v54 = vmul.f32 %v1133_v45, %v539_v35  ;;  %1156 = vpow2.f32 %v1007_v23  ;;  %v1027_v33 = vmul.f32 -1.442695, %v530_v7  ;;  %v559_v7 = vld [vmem:[%s1360_s30 + $0xb8] sm:$0xff] }
 0x10b   : > { %v1137_v58 = vpop.eup %1136  ;;  %874 = vst.msk [vmem:[%s1403_s11 + $0x90] sm:$0xff] %vm322_vm1, %v842_v46  ;;  %v840_v59 = vadd.f32 %v808_v48, %v584_v41  ;;  %v811_v60 = vmul.f32 %v1135_v52, %v555_v42  ;;  %1158 = vpow2.f32 %v1023_v24 }
 0x10c   : > { %v1139_v0 = vpop.eup %1138  ;;  %856 = vst.msk [vmem:[%s1403_s11] sm:$0xff] %vm322_vm1, %v824_v53  ;;  %v827_v1 = vadd.f32 %v795_v54, %v571_v49  ;;  %v793_v2 = vmul.f32 %v1137_v58, %v537_v51  ;;  %1160 = vpow2.f32 %v1005_v30 }
 0x10d   : > { %v1141_v8 = vpop.eup %1140  ;;  %872 = vst.msk [vmem:[%s1403_s11 + $0x80] sm:$0xff] %vm322_vm1, %v840_v59  ;;  %v843_v9 = vadd.f32 %v811_v60, %v587_v55  ;;  %v809_v62 = vmul.f32 %v1139_v0, %v553_v56  ;;  %1162 = vpow2.f32 %v1021_v36  ;;  %v522_v0 = vadd.f32 %v1334_v50, %v1383_v12 }
 0x10e   : > { %v1143_v15 = vpop.eup %1142  ;;  %859 = vst.msk [vmem:[%s1403_s11 + $0x18] sm:$0xff] %vm322_vm1, %v827_v1  ;;  %v825_v16 = vadd.f32 %v793_v2, %v569_v61  ;;  %v798_v17 = vmul.f32 %v1141_v8, %v542_v47  ;;  %1164 = vpow2.f32 %v1008_v43  ;;  %v458_v61 = vadd.f32 %v1334_v50, %v1378_v5 }
 0x10f   : > { %v1145_v22 = vpop.eup %1144  ;;  %875 = vst.msk [vmem:[%s1403_s11 + $0x98] sm:$0xff] %vm322_vm1, %v843_v9  ;;  %v841_v23 = vadd.f32 %v809_v62, %v585_v3  ;;  %v814_v24 = vmul.f32 %v1143_v15, %v558_v6  ;;  %1166 = vpow2.f32 %v1024_v57  ;;  %v469_v3 = vadd.f32 %v1385_v13, %v1334_v50  ;;  %v541_v62 = vld [vmem:[%s1360_s30 + $0x28] sm:$0xff]  ;;  %v591_v13 = vld [vmem:[%s1367_s8 + $0xb8] sm:$0xff] }
 0x110   : > { %v1147_v29 = vpop.eup %1146  ;;  %857 = vst.msk [vmem:[%s1403_s11 + $0x8] sm:$0xff] %vm322_vm1, %v825_v16  ;;  %v830_v30 = vadd.f32 %v798_v17, %v574_v10  ;;  %v796_v31 = vmul.f32 %v1145_v22, %v540_v11  ;;  %1168 = vpow2.f32 %v1006_v14  ;;  %v533_v5 = vadd.f32 %v1389_v19, %v1334_v50  ;;  %v557_v15 = vld [vmem:[%s1360_s30 + $0xa8] sm:$0xff]  ;;  %v546_v22 = vld [vmem:[%s1360_s30 + $0x50] sm:$0xff] }
 0x111   : > { %v1149_v34 = vpop.eup %1148  ;;  %873 = vst.msk [vmem:[%s1403_s11 + $0x88] sm:$0xff] %vm322_vm1, %v841_v23  ;;  %v846_v35 = vadd.f32 %v814_v24, %v590_v18  ;;  %v812_v36 = vmul.f32 %v1147_v29, %v556_v4  ;;  %1170 = vpow2.f32 %v1022_v21  ;;  %v1009_v10 = vmul.f32 -1.442695, %v458_v61  ;;  %v573_v21 = vld [vmem:[%s1367_s8 + $0x28] sm:$0xff] }
 0x112   : > { %v1151_v38 = vpop.eup %1150  ;;  %862 = vst.msk [vmem:[%s1403_s11 + $0x30] sm:$0xff] %vm322_vm1, %v830_v30  ;;  %v828_v39 = vadd.f32 %v796_v31, %v572_v26  ;;  %v799_v40 = vmul.f32 %v1149_v34, %v543_v27  ;;  %1172 = vpow2.f32 %v1011_v28  ;;  %v461_v11 = vadd.f32 %v1334_v50, %v1391_v20  ;;  %v589_v26 = vld [vmem:[%s1367_s8 + $0xa8] sm:$0xff]  ;;  %v562_v27 = vld [vmem:[%s1360_s30 + $0xd0] sm:$0xff]  ;;  %v544_v31 = vld [vmem:[%s1360_s30 + $0x40] sm:$0xff] }
 0x113   : > { %v1153_v41 = vpop.eup %1152  ;;  %878 = vst.msk [vmem:[%s1403_s11 + $0xb0] sm:$0xff] %vm322_vm1, %v846_v35  ;;  %v844_v42 = vadd.f32 %v812_v36, %v588_v32  ;;  %v719_v43 = vadd.f32 1.0, %v1151_v38  ;;  %1174 = vpow2.f32 %v1027_v33  ;;  %v1025_v17 = vmul.f32 -1.442695, %v522_v0  ;;  %v594_v36 = vld [vmem:[%s1367_s8 + $0xd0] sm:$0xff]  ;;  %v577_v0 = vld [vmem:[%s1367_s8 + $0x48] sm:$0xff] }
 0x114   : > { %v1155_v45 = vpop.eup %1154  ;;  %860 = vst.msk [vmem:[%s1403_s11 + $0x20] sm:$0xff] %vm322_vm1, %v828_v39  ;;  %v831_v46 = vadd.f32 %v799_v40, %v575_v37  ;;  %v701_v48 = vadd.f32 1.0, %v1153_v41  ;;  %v525_v19 = vadd.f32 %v1334_v50, %v1393_v25  ;;  %v1012_v23 = vmul.f32 -1.442695, %v469_v3  ;;  %v578_v25 = vld [vmem:[%s1367_s8 + $0x50] sm:$0xff]  ;;  %v560_v37 = vld [vmem:[%s1360_s30 + $0xc0] sm:$0xff] }
 0x115   : > { %v1157_v49 = vpop.eup %1156  ;;  %876 = vst.msk [vmem:[%s1403_s11 + $0xa0] sm:$0xff] %vm322_vm1, %v844_v42  ;;  %1176 = vrcp.f32 %v719_v43  ;;  %v717_v51 = vadd.f32 1.0, %v1155_v45  ;;  %v1028_v28 = vmul.f32 -1.442695, %v533_v5  ;;  %v1010_v32 = vmul.f32 -1.442695, %v461_v11 }
 0x116   : > { %v1159_v44 = vpop.eup %1158  ;;  %863 = vst.msk [vmem:[%s1403_s11 + $0x38] sm:$0xff] %vm322_vm1, %v831_v46  ;;  %1178 = vrcp.f32 %v701_v48  ;;  %v706_v52 = vadd.f32 1.0, %v1157_v49  ;;  %v1026_v38 = vmul.f32 -1.442695, %v525_v19  ;;  %v576_v42 = vld [vmem:[%s1367_s8 + $0x40] sm:$0xff]  ;;  %v547_v43 = vld [vmem:[%s1360_s30 + $0x58] sm:$0xff] }
 0x117   : > { %v1161_v53 = vpop.eup %1160  ;;  %1180 = vrcp.f32 %v717_v51  ;;  %v722_v54 = vadd.f32 1.0, %v1159_v44  ;;  %v592_v49 = vld [vmem:[%s1367_s8 + $0xc0] sm:$0xff]  ;;  %v563_v51 = vld [vmem:[%s1360_s30 + $0xd8] sm:$0xff] }
 0x118   : > { %v1163_v55 = vpop.eup %1162  ;;  %1182 = vrcp.f32 %v706_v52  ;;  %v704_v56 = vadd.f32 1.0, %v1161_v53 }
 0x119   : > { %v1165_v57 = vpop.eup %1164  ;;  %1184 = vrcp.f32 %v722_v54  ;;  %v720_v58 = vadd.f32 1.0, %v1163_v55  ;;  %v579_v54 = vld [vmem:[%s1367_s8 + $0x58] sm:$0xff]  ;;  %v545_v55 = vld [vmem:[%s1360_s30 + $0x48] sm:$0xff] }
 0x11a   : > { %v1167_v59 = vpop.eup %1166  ;;  %1186 = vrcp.f32 %v704_v56  ;;  %v707_v60 = vadd.f32 1.0, %v1165_v57 }
 0x11b   : > { %v1169_v47 = vpop.eup %1168  ;;  %1188 = vrcp.f32 %v720_v58  ;;  %v723_v63 = vadd.f32 1.0, %v1167_v59  ;;  %v595_v59 = vld [vmem:[%s1367_s8 + $0xd8] sm:$0xff] }
 0x11c   : > { %v1171_v1 = vpop.eup %1170  ;;  %1190 = vrcp.f32 %v707_v60  ;;  %v705_v2 = vadd.f32 1.0, %v1169_v47  ;;  %v561_v60 = vld [vmem:[%s1360_s30 + $0xc8] sm:$0xff] }
 0x11d   : > { %v1173_v6 = vpop.eup %1172  ;;  %1192 = vrcp.f32 %v723_v63  ;;  %v721_v8 = vadd.f32 1.0, %v1171_v1  ;;  %v550_v1 = vld [vmem:[%s1360_s30 + $0x70] sm:$0xff] }
 0x11e   : > { %v1175_v9 = vpop.eup %1174  ;;  %1194 = vrcp.f32 %v705_v2  ;;  %v710_v12 = vadd.f32 1.0, %v1173_v6 }
 0x11f   : > { %v1177_v14 = vpop.eup %1176  ;;  %1196 = vrcp.f32 %v721_v8  ;;  %v726_v16 = vadd.f32 1.0, %v1175_v9  ;;  %v566_v8 = vld [vmem:[%s1360_s30 + $0xf0] sm:$0xff] }
 0x120   : > { %v1179_v18 = vpop.eup %1178  ;;  %v815_v4 = vmul.f32 %v1177_v14, %v559_v7  ;;  %1198 = vrcp.f32 %v710_v12  ;;  %v593_v7 = vld [vmem:[%s1367_s8 + $0xc8] sm:$0xff]  ;;  %v582_v12 = vld [vmem:[%s1367_s8 + $0x70] sm:$0xff] }
 0x121   : > { %v1181_v20 = vpop.eup %1180  ;;  %v797_v24 = vmul.f32 %v1179_v18, %v541_v62  ;;  %1200 = vrcp.f32 %v726_v16 }
 0x122   : > { %v1183_v29 = vpop.eup %1182  ;;  %v847_v30 = vadd.f32 %v815_v4, %v591_v13  ;;  %v813_v50 = vmul.f32 %v1181_v20, %v557_v15  ;;  %1202 = vpow2.f32 %v1009_v10  ;;  %v598_v13 = vld [vmem:[%s1367_s8 + $0xf0] sm:$0xff] }
 0x123   : > { %v1185_v33 = vpop.eup %1184  ;;  %v829_v34 = vadd.f32 %v797_v24, %v573_v21  ;;  %v802_v35 = vmul.f32 %v1183_v29, %v546_v22  ;;  %1204 = vpow2.f32 %v1025_v17 }
 0x124   : > { %v1187_v39 = vpop.eup %1186  ;;  %879 = vst.msk [vmem:[%s1403_s11 + $0xb8] sm:$0xff] %vm322_vm1, %v847_v30  ;;  %v845_v40 = vadd.f32 %v813_v50, %v589_v26  ;;  %v818_v41 = vmul.f32 %v1185_v33, %v562_v27  ;;  %1206 = vpow2.f32 %v1012_v23  ;;  %v548_v50 = vld [vmem:[%s1360_s30 + $0x60] sm:$0xff]  ;;  %v551_v33 = vld [vmem:[%s1360_s30 + $0x78] sm:$0xff] }
 0x125   : > { %v1189_v45 = vpop.eup %1188  ;;  %861 = vst.msk [vmem:[%s1403_s11 + $0x28] sm:$0xff] %vm322_vm1, %v829_v34  ;;  %v834_v46 = vadd.f32 %v802_v35, %v578_v25  ;;  %v800_v48 = vmul.f32 %v1187_v39, %v544_v31  ;;  %1208 = vpow2.f32 %v1028_v28  ;;  %v564_v25 = vld [vmem:[%s1360_s30 + $0xe0] sm:$0xff] }
 0x126   : > { %v1191_v44 = vpop.eup %1190  ;;  %877 = vst.msk [vmem:[%s1403_s11 + $0xa8] sm:$0xff] %vm322_vm1, %v845_v40  ;;  %v850_v52 = vadd.f32 %v818_v41, %v594_v36  ;;  %v816_v53 = vmul.f32 %v1189_v45, %v560_v37  ;;  %1210 = vpow2.f32 %v1010_v32  ;;  %v580_v32 = vld [vmem:[%s1367_s8 + $0x60] sm:$0xff]  ;;  %v567_v37 = vld [vmem:[%s1360_s30 + $0xf8] sm:$0xff]  ;;  %v549_v41 = vld [vmem:[%s1360_s30 + $0x68] sm:$0xff] }
 0x127   : > { %v1193_v56 = vpop.eup %1192  ;;  %866 = vst.msk [vmem:[%s1403_s11 + $0x50] sm:$0xff] %vm322_vm1, %v834_v46  ;;  %v832_v57 = vadd.f32 %v800_v48, %v576_v42  ;;  %v803_v58 = vmul.f32 %v1191_v44, %v547_v43  ;;  %1212 = vpow2.f32 %v1026_v38  ;;  %v596_v36 = vld [vmem:[%s1367_s8 + $0xe0] sm:$0xff]  ;;  %v583_v40 = vld [vmem:[%s1367_s8 + $0x78] sm:$0xff]  ;;  %v565_v48 = vld [vmem:[%s1360_s30 + $0xe8] sm:$0xff] }
 0x128   : > { %v1195_v61 = vpop.eup %1194  ;;  %882 = vst.msk [vmem:[%s1403_s11 + $0xd0] sm:$0xff] %vm322_vm1, %v850_v52  ;;  %v848_v47 = vadd.f32 %v816_v53, %v592_v49  ;;  %v819_v63 = vmul.f32 %v1193_v56, %v563_v51  ;;  %v599_v46 = vld [vmem:[%s1367_s8 + $0xf8] sm:$0xff]  ;;  %v581_v52 = vld [vmem:[%s1367_s8 + $0x68] sm:$0xff] }
 0x129   : > { %v1197_v2 = vpop.eup %1196  ;;  %864 = vst.msk [vmem:[%s1403_s11 + $0x40] sm:$0xff] %vm322_vm1, %v832_v57  ;;  %v835_v3 = vadd.f32 %v803_v58, %v579_v54  ;;  %v801_v6 = vmul.f32 %v1195_v61, %v545_v55  ;;  %v597_v56 = vld [vmem:[%s1367_s8 + $0xe8] sm:$0xff] }
 0x12a   : > { %v1199_v5 = vpop.eup %1198  ;;  %880 = vst.msk [vmem:[%s1403_s11 + $0xc0] sm:$0xff] %vm322_vm1, %v848_v47  ;;  %v851_v9 = vadd.f32 %v819_v63, %v595_v59  ;;  %v817_v62 = vmul.f32 %v1197_v2, %v561_v60 }
 0x12b   : > { %v1201_v10 = vpop.eup %1200  ;;  %867 = vst.msk [vmem:[%s1403_s11 + $0x58] sm:$0xff] %vm322_vm1, %v835_v3  ;;  %v833_v11 = vadd.f32 %v801_v6, %v577_v0  ;;  %v806_v14 = vmul.f32 %v1199_v5, %v550_v1 }
 0x12c   : > { %v1203_v15 = vpop.eup %1202  ;;  %883 = vst.msk [vmem:[%s1403_s11 + $0xd8] sm:$0xff] %vm322_vm1, %v851_v9  ;;  %v849_v16 = vadd.f32 %v817_v62, %v593_v7  ;;  %v822_v17 = vmul.f32 %v1201_v10, %v566_v8 }
 0x12d   : > { %v1205_v19 = vpop.eup %1204  ;;  %865 = vst.msk [vmem:[%s1403_s11 + $0x48] sm:$0xff] %vm322_vm1, %v833_v11  ;;  %v838_v18 = vadd.f32 %v806_v14, %v582_v12  ;;  %v708_v4 = vadd.f32 1.0, %v1203_v15 }
 0x12e   : > { %v1207_v21 = vpop.eup %1206  ;;  %881 = vst.msk [vmem:[%s1403_s11 + $0xc8] sm:$0xff] %vm322_vm1, %v849_v16  ;;  %v854_v22 = vadd.f32 %v822_v17, %v598_v13  ;;  %v724_v23 = vadd.f32 1.0, %v1205_v19 }
 0x12f   : > { %v1209_v20 = vpop.eup %1208  ;;  %870 = vst.msk [vmem:[%s1403_s11 + $0x70] sm:$0xff] %vm322_vm1, %v838_v18  ;;  %1214 = vrcp.f32 %v708_v4  ;;  %v711_v24 = vadd.f32 1.0, %v1207_v21 }
 0x130   : > { %v1211_v26 = vpop.eup %1210  ;;  %886 = vst.msk [vmem:[%s1403_s11 + $0xf0] sm:$0xff] %vm322_vm1, %v854_v22  ;;  %1216 = vrcp.f32 %v724_v23  ;;  %v727_v27 = vadd.f32 1.0, %v1209_v20 }
 0x131   : > { %v1213_v28 = vpop.eup %1212  ;;  %1218 = vrcp.f32 %v711_v24  ;;  %v709_v29 = vadd.f32 1.0, %v1211_v26 }
 0x132   : > { %1220 = vrcp.f32 %v727_v27  ;;  %v725_v30 = vadd.f32 1.0, %v1213_v28 }
 0x133   : > { %1222 = vrcp.f32 %v709_v29 }
 0x134   : > { %1224 = vrcp.f32 %v725_v30 }
 0x139   : > { %v1215_v31 = vpop.eup %1214 }
 0x13a   : > { %v1217_v34 = vpop.eup %1216  ;;  %v804_v35 = vmul.f32 %v1215_v31, %v548_v50 }
 0x13b   : > { %v1219_v38 = vpop.eup %1218  ;;  %v820_v39 = vmul.f32 %v1217_v34, %v564_v25 }
 0x13c   : > { %v1221_v42 = vpop.eup %1220  ;;  %v836_v43 = vadd.f32 %v804_v35, %v580_v32  ;;  %v807_v45 = vmul.f32 %v1219_v38, %v551_v33 }
 0x13d   : > { %v1223_v49 = vpop.eup %1222  ;;  %v852_v51 = vadd.f32 %v820_v39, %v596_v36  ;;  %v823_v44 = vmul.f32 %v1221_v42, %v567_v37 }
 0x13e   : > { %v1225_v53 = vpop.eup %1224  ;;  %868 = vst.msk [vmem:[%s1403_s11 + $0x60] sm:$0xff] %vm322_vm1, %v836_v43  ;;  %v839_v54 = vadd.f32 %v807_v45, %v583_v40  ;;  %v805_v55 = vmul.f32 %v1223_v49, %v549_v41 }
 0x13f   : > { %884 = vst.msk [vmem:[%s1403_s11 + $0xe0] sm:$0xff] %vm322_vm1, %v852_v51  ;;  %v855_v57 = vadd.f32 %v823_v44, %v599_v46  ;;  %v821_v58 = vmul.f32 %v1225_v53, %v565_v48 }
 0x140   : > { %871 = vst.msk [vmem:[%s1403_s11 + $0x78] sm:$0xff] %vm322_vm1, %v839_v54  ;;  %v837_v59 = vadd.f32 %v805_v55, %v581_v52 }
 0x141   : > { %887 = vst.msk [vmem:[%s1403_s11 + $0xf8] sm:$0xff] %vm322_vm1, %v855_v57  ;;  %v853_v60 = vadd.f32 %v821_v58, %v597_v56 }
 0x142   : > { %869 = vst.msk [vmem:[%s1403_s11 + $0x68] sm:$0xff] %vm322_vm1, %v837_v59 }
 0x143   : > { %885 = vst.msk [vmem:[%s1403_s11 + $0xe8] sm:$0xff] %vm322_vm1, %v853_v60 }
 0x144 PF: > { %s15_s18 = sadd.s32 1, %s1232_s18  }
 0x145   : > { %p12_p4 = scmp.ge.s32.totalorder %s15_s18, 4  }
 0x147   :  { %14 = sbr.rel (!%p12_p4) target bundleno = 1 (0x1), region = 76 }

// kernel: nl_res_group.59
= control target key start
LH: loop header
LB: loop body
LE: loop exit
PB: predicated region body
PF: predicated region fallthrough
CT: control target
= control target key end

     0   :  { %s4003_s12 = smov 0   ;;  %s4674_s0 = inlined_call_operand.vmem [shape: f32[2,18,18,4], index: 0, kind: input, shape index: {}]   ;;  %s4675_s1 = inlined_call_operand.vmem [shape: bf16[3,3,4,4], index: 1, kind: input, shape index: {}]   ;;  %s4676_s2 = inlined_call_operand.vmem [shape: f32[1,4], index: 2, kind: input, shape index: {}]   ;;  %s4677_s3 = inlined_call_operand.vmem [shape: f32[2,16,16,4], index: 3, kind: output, shape index: {}]  }
   0x1 LB: > { %s2883_s13 = sadd.s32 4294967295, %s3981_s12   ;;  %p2887_p0 = scmp.ge.s32.totalorder %s3981_s12, 1  ;;  %s3981_s12 = sphi %s4003_s12, %s13_s12  }
   0x2   : > { %p137_p1 = scmp.lt.s32.totalorder %s3981_s12, 3 }
   0x4   : > { %p138_p2 = pnand %p2887_p0, %p137_p1 }
   0x5   : > { %v2891_v0 = vld [vmem:[%s4675_s1 + $0x2] sm:$0x3] (!%p138_p2)  ;;  %vm320_vm0 = vcmask (!%p138_p2), 1041408   ;;  %v4017_v1 = vld [vmem:[%s4675_s1 + $0x8] sm:$0x3] (!%p138_p2)  ;;  %p161_p3 = scmp.lt.s32.totalorder (!%p138_p2), %s2883_s13, 1 }
   0x6   : > { %141 = sbr.rel (%p138_p2) target bundleno = 522 (0x20a), region = 32  ;;  %3956 = vmatprep.subr.msk.bf16.mxu1 (!%p138_p2), %vm320_vm0, %v2891_v0  ;;  %3960 = vmatprep.subr.msk.bf16.mxu0 (!%p138_p2), %vm320_vm0, %v4017_v1  ;;  %v322_v2 = vsel (!%p138_p2), %vm320_vm0, %v2891_v0, 0  ;;  %v4025_v3 = vsel (!%p138_p2), %vm320_vm0, %v4017_v1, 0  ;;  %v220_v4 = vld [vmem:[%s4675_s1] sm:$0x3] (!%p138_p2)  ;;  %vm271_vm1 = vcmask (!%p138_p2), 31744  }
   0x7   : > { %3393 = vmatpush3.bf16.msra.mxu1 (!%p138_p2), %v322_v2  ;;  %3529 = vmatpush3.bf16.msra.mxu0 (!%p138_p2), %v4025_v3  ;;  %v3071_v5 = vld [vmem:[%s4675_s1 + $0xa] sm:$0x3] (!%p138_p2)  ;;  %v534_v14 = vsel (!%p138_p2), %vm320_vm0, %v220_v4, 0  ;;  %v3120_v20 = vld [vmem:[%s4675_s1 + $0xc] sm:$0x3] (!%p138_p2) }
   0x8   : > { %3957 = vmatprep.subr.msk.bf16.mxu1 (!%p138_p2), %vm320_vm0, %v220_v4  ;;  %3962 = vmatprep.subr.msk.bf16.mxu0 (!%p138_p2), %vm320_vm0, %v3071_v5  ;;  %v1679_v18 = vsel (!%p138_p2), %vm320_vm0, %v3071_v5, 0  ;;  %v4069_v21 = vld [vmem:[%s4675_s1 + $0x4] sm:$0x3] (!%p138_p2)  ;;  %v1974_v52 = vsel (!%p138_p2), %vm320_vm0, %v3120_v20, 0  ;;  %v4148_v53 = vld [vmem:[%s4675_s1 + $0xe] sm:$0x3] (!%p138_p2) }
   0xd   : > { %s4679_s13 = smov (!%p161_p3, %s2883_s13), 1 }
   0xe   : > { %s3966_s22 = smul.u32 432, %s4679_s13  ;;  %s3238_s9 = sshll.u32 %s4679_s13, 8 }
   0xf   : > { %s4573_s16 = scalar_lea.vmem %s4677_s3, %s3238_s9 }
  0x10   : > { %s4042_s25 = scalar_lea.vmem %s4674_s0, %s3966_s22 }
  0x11   : > { %v221_v6 = vld [vmem:[%s4042_s25 + $0x1] sm:$0xff]  ;;  %v222_v7 = vld [vmem:[%s4042_s25 + $0x9] sm:$0xff]  ;;  %v2990_v8 = vld [vmem:[%s4042_s25 + $0x19] sm:$0xff] }
  0x12   : > { %v253_v9 = vpack.c.bf16 %v222_v7, %v221_v6  ;;  %v2991_v10 = vld [vmem:[%s4042_s25 + $0x21] sm:$0xff]  ;;  %v2992_v11 = vld [vmem:[%s4042_s25 + $0x31] sm:$0xff]  ;;  %v2993_v12 = vld [vmem:[%s4042_s25 + $0x39] sm:$0xff] }
  0x13   : > { %v1318_v13 = vpack.c.bf16 %v2991_v10, %v2990_v8  ;;  %v4051_v15 = vpack.c.bf16 %v2993_v12, %v2992_v11  ;;  %v2994_v16 = vld [vmem:[%s4042_s25 + $0x49] sm:$0xff]  ;;  %v2995_v17 = vld [vmem:[%s4042_s25 + $0x51] sm:$0xff]  ;;  %v2996_v22 = vld [vmem:[%s4042_s25 + $0x61] sm:$0xff] }
  0x14   : > { %3394 = vmatprep.mubr.msk.bf16.mxu1 %vm271_vm1, %v253_v9  ;;  %v4057_v19 = vpack.c.bf16 %v2995_v17, %v2994_v16  ;;  %v2997_v23 = vld [vmem:[%s4042_s25 + $0x69] sm:$0xff]  ;;  %v2998_v24 = vld [vmem:[%s4042_s25 + $0x79] sm:$0xff]  ;;  %v2999_v25 = vld [vmem:[%s4042_s25 + $0x81] sm:$0xff] }
  0x15   : > { %3530 = vmatprep.mubr.msk.bf16.mxu0 %vm271_vm1, %v1318_v13  ;;  %3395 = vmatmul.mubr.msk.bf16.vlgmr.msra.gmra.mrb[0].mxu1 %vm271_vm1, %v1318_v13  ;;  %v4082_v26 = vpack.c.bf16 %v2997_v23, %v2996_v22  ;;  %v4084_v27 = vpack.c.bf16 %v2999_v25, %v2998_v24  ;;  %v3000_v28 = vld [vmem:[%s4042_s25 + $0x91] sm:$0xff]  ;;  %v3001_v29 = vld [vmem:[%s4042_s25 + $0x99] sm:$0xff]  ;;  %v3002_v30 = vld [vmem:[%s4042_s25 + $0xa9] sm:$0xff] }
  0x16   : > { %3427 = vmatpush3.bf16.msra.mxu1 %v534_v14  ;;  %3531 = vmatmul.mubr.msk.bf16.vlgmr.msra.gmra.mrb[0].mxu0 %vm271_vm1, %v4051_v15  ;;  %v3003_v31 = vld [vmem:[%s4042_s25 + $0xb1] sm:$0xff]  ;;  %v4098_v32 = vpack.c.bf16 %v3001_v29, %v3000_v28  ;;  %v3004_v34 = vld [vmem:[%s4042_s25 + $0xc1] sm:$0xff]  ;;  %v3005_v35 = vld [vmem:[%s4042_s25 + $0xc9] sm:$0xff] }
  0x17   : > { %3563 = vmatpush3.bf16.msra.mxu0 %v1679_v18  ;;  %3398 = vmatprep.mubr.msk.bf16.mxu1 %vm271_vm1, %v4051_v15  ;;  %v4100_v33 = vpack.c.bf16 %v3003_v31, %v3002_v30  ;;  %v3039_v36 = vld [vmem:[%s4042_s25 + $0x1a] sm:$0xff]  ;;  %v3040_v37 = vld [vmem:[%s4042_s25 + $0x22] sm:$0xff]  ;;  %v4114_v38 = vpack.c.bf16 %v3005_v35, %v3004_v34  ;;  %v3041_v42 = vld [vmem:[%s4042_s25 + $0x32] sm:$0xff] }
  0x18   : > { %3534 = vmatprep.mubr.msk.bf16.mxu0 %vm271_vm1, %v4057_v19  ;;  %3963 = vmatprep.subr.msk.bf16.mxu0 %vm320_vm0, %v3120_v20  ;;  %v4116_v39 = vpack.c.bf16 %v3040_v37, %v3039_v36  ;;  %v239_v40 = vld [vmem:[%s4042_s25 + $0xd9] sm:$0xff]  ;;  %v240_v41 = vld [vmem:[%s4042_s25 + $0xe1] sm:$0xff]  ;;  %v241_v44 = vld [vmem:[%s4042_s25 + $0xf1] sm:$0xff] }
  0x19   : > { %3958 = vmatprep.subr.msk.bf16.mxu1 %vm320_vm0, %v4069_v21  ;;  %v3042_v43 = vld [vmem:[%s4042_s25 + $0x3a] sm:$0xff]  ;;  %v3043_v46 = vld [vmem:[%s4042_s25 + $0x4a] sm:$0xff]  ;;  %v3044_v47 = vld [vmem:[%s4042_s25 + $0x52] sm:$0xff]  ;;  %v4134_v48 = vpack.c.bf16 %v240_v41, %v239_v40 }
  0x1a   : > { %v242_v45 = vld [vmem:[%s4042_s25 + $0xf9] sm:$0xff]  ;;  %v4136_v49 = vpack.c.bf16 %v3042_v43, %v3041_v42  ;;  %v4140_v51 = vpack.c.bf16 %v3044_v47, %v3043_v46  ;;  %v243_v54 = vld [vmem:[%s4042_s25 + $0x109] sm:$0xff]  ;;  %v244_v55 = vld [vmem:[%s4042_s25 + $0x111] sm:$0xff]  ;;  %v796_v47 = vsel %vm320_vm0, %v4069_v21, 0 }
  0x1b   : > { %v4138_v50 = vpack.c.bf16 %v242_v45, %v241_v44  ;;  %v3045_v56 = vld [vmem:[%s4042_s25 + $0x62] sm:$0xff]  ;;  %v3046_v57 = vld [vmem:[%s4042_s25 + $0x6a] sm:$0xff]  ;;  %v3047_v60 = vld [vmem:[%s4042_s25 + $0x7a] sm:$0xff]  ;;  %v4166_v62 = vpack.c.bf16 %v244_v55, %v243_v54 }
  0x1c   : > { %v245_v58 = vld [vmem:[%s4042_s25 + $0x121] sm:$0xff]  ;;  %v246_v59 = vld [vmem:[%s4042_s25 + $0x129] sm:$0xff]  ;;  %v4168_v63 = vpack.c.bf16 %v3046_v57, %v3045_v56  ;;  %v247_v4 = vld [vmem:[%s4042_s25 + $0x139] sm:$0xff] }
  0x1d   : > { %3399 = vmatmul.mubr.msk.bf16.gmra.mrb[4].mxu1 %vm271_vm1, %v4057_v19  ;;  %v3048_v61 = vld [vmem:[%s4042_s25 + $0x82] sm:$0xff]  ;;  %v4170_v0 = vpack.c.bf16 %v246_v59, %v245_v58  ;;  %v3049_v6 = vld [vmem:[%s4042_s25 + $0x92] sm:$0xff]  ;;  %v3050_v7 = vld [vmem:[%s4042_s25 + $0x9a] sm:$0xff] }
  0x1e   : > { %3535 = vmatmul.mubr.msk.bf16.gmra.mrb[4].mxu0 %vm271_vm1, %v4082_v26  ;;  %3402 = vmatprep.mubr.msk.bf16.mxu1 %vm271_vm1, %v4082_v26  ;;  %v4172_v2 = vpack.c.bf16 %v3048_v61, %v3047_v60  ;;  %v248_v5 = vld [vmem:[%s4042_s25 + $0x141] sm:$0xff]  ;;  %v249_v8 = vld [vmem:[%s4042_s25 + $0x151] sm:$0xff]  ;;  %v250_v9 = vld [vmem:[%s4042_s25 + $0x159] sm:$0xff]  ;;  %v4192_v13 = vpack.c.bf16 %v3050_v7, %v3049_v6 }
  0x1f   : > { %3538 = vmatprep.mubr.msk.bf16.mxu0 %vm271_vm1, %v4084_v27  ;;  %v3051_v10 = vld [vmem:[%s4042_s25 + $0xaa] sm:$0xff]  ;;  %v3052_v11 = vld [vmem:[%s4042_s25 + $0xb2] sm:$0xff]  ;;  %v4190_v12 = vpack.c.bf16 %v248_v5, %v247_v4  ;;  %v4194_v14 = vpack.c.bf16 %v250_v9, %v249_v8  ;;  %v3053_v20 = vld [vmem:[%s4042_s25 + $0xc2] sm:$0xff] }
  0x20   : > { %v4196_v16 = vpack.c.bf16 %v3052_v11, %v3051_v10  ;;  %v251_v17 = vld [vmem:[%s4042_s25 + $0x169] sm:$0xff]  ;;  %v252_v18 = vld [vmem:[%s4042_s25 + $0x171] sm:$0xff]  ;;  %v172_v23 = vld [vmem:[%s4042_s25] sm:$0xff] }
  0x21   : > { %v3054_v22 = vld [vmem:[%s4042_s25 + $0xca] sm:$0xff]  ;;  %v3055_v25 = vld [vmem:[%s4042_s25 + $0xda] sm:$0xff]  ;;  %v3056_v28 = vld [vmem:[%s4042_s25 + $0xe2] sm:$0xff]  ;;  %v4214_v29 = vpack.c.bf16 %v252_v18, %v251_v17 }
  0x22   : > { %v173_v24 = vld [vmem:[%s4042_s25 + $0x8] sm:$0xff]  ;;  %v4216_v30 = vpack.c.bf16 %v3054_v22, %v3053_v20  ;;  %v4218_v34 = vpack.c.bf16 %v3056_v28, %v3055_v25  ;;  %v174_v35 = vld [vmem:[%s4042_s25 + $0x18] sm:$0xff]  ;;  %v175_v36 = vld [vmem:[%s4042_s25 + $0x20] sm:$0xff] }
  0x23   : > { %v204_v31 = vpack.c.bf16 %v173_v24, %v172_v23  ;;  %v3057_v37 = vld [vmem:[%s4042_s25 + $0xf2] sm:$0xff]  ;;  %v3058_v40 = vld [vmem:[%s4042_s25 + $0xfa] sm:$0xff]  ;;  %v3059_v43 = vld [vmem:[%s4042_s25 + $0x10a] sm:$0xff]  ;;  %v4235_v45 = vpack.c.bf16 %v175_v36, %v174_v35 }
  0x24   : > { %v176_v41 = vld [vmem:[%s4042_s25 + $0x30] sm:$0xff]  ;;  %v177_v42 = vld [vmem:[%s4042_s25 + $0x38] sm:$0xff]  ;;  %v4237_v46 = vpack.c.bf16 %v3058_v40, %v3057_v37  ;;  %v4250_v55 = vld [vmem:[%s4675_s1 + $0x6] sm:$0x3] }
  0x25   : > { %3403 = vmatmul.mubr.msk.bf16.gmra.mrb[8].mxu1 %vm271_vm1, %v4084_v27  ;;  %v3060_v44 = vld [vmem:[%s4042_s25 + $0x112] sm:$0xff]  ;;  %v178_v56 = vld [vmem:[%s4042_s25 + $0x48] sm:$0xff]  ;;  %v180_v59 = vld [vmem:[%s4042_s25 + $0x60] sm:$0xff] }
  0x26   : > { %3539 = vmatmul.mubr.msk.bf16.gmra.mrb[8].mxu0 %vm271_vm1, %v4098_v32  ;;  %3406 = vmatprep.mubr.msk.bf16.mxu1 %vm271_vm1, %v4098_v32  ;;  %v4243_v54 = vpack.c.bf16 %v3060_v44, %v3059_v43  ;;  %v179_v57 = vld [vmem:[%s4042_s25 + $0x50] sm:$0xff]  ;;  %v3061_v21 = vld [vmem:[%s4042_s25 + $0x122] sm:$0xff]  ;;  %v3063_v61 = vld [vmem:[%s4042_s25 + $0x13a] sm:$0xff] }
  0x27   : > { %3542 = vmatprep.mubr.msk.bf16.mxu0 %vm271_vm1, %v4100_v33  ;;  %v3062_v58 = vld [vmem:[%s4042_s25 + $0x12a] sm:$0xff]  ;;  %v3064_v4 = vld [vmem:[%s4042_s25 + $0x142] sm:$0xff]  ;;  %v4268_v5 = vpack.c.bf16 %v179_v57, %v178_v56  ;;  %v182_v9 = vld [vmem:[%s4042_s25 + $0x78] sm:$0xff] }
  0x28   : > { %v181_v60 = vld [vmem:[%s4042_s25 + $0x68] sm:$0xff]  ;;  %v4270_v6 = vpack.c.bf16 %v3062_v58, %v3061_v21  ;;  %v4274_v8 = vpack.c.bf16 %v3064_v4, %v3063_v61  ;;  %v183_v10 = vld [vmem:[%s4042_s25 + $0x80] sm:$0xff]  ;;  %v3065_v11 = vld [vmem:[%s4042_s25 + $0x152] sm:$0xff]  ;;  %v2268_v61 = vsel %vm320_vm0, %v4148_v53, 0 }
  0x29   : > { %v4272_v7 = vpack.c.bf16 %v181_v60, %v180_v59  ;;  %v3066_v17 = vld [vmem:[%s4042_s25 + $0x15a] sm:$0xff]  ;;  %v184_v18 = vld [vmem:[%s4042_s25 + $0x90] sm:$0xff]  ;;  %v4292_v24 = vpack.c.bf16 %v183_v10, %v182_v9  ;;  %v186_v35 = vld [vmem:[%s4042_s25 + $0xa8] sm:$0xff] }
  0x2a   : > { %v185_v20 = vld [vmem:[%s4042_s25 + $0x98] sm:$0xff]  ;;  %v3067_v22 = vld [vmem:[%s4042_s25 + $0x16a] sm:$0xff]  ;;  %v4294_v25 = vpack.c.bf16 %v3066_v17, %v3065_v11  ;;  %v3069_v37 = vld [vmem:[%s4042_s25 + $0x182] sm:$0xff] }
  0x2b   : > { %v3068_v23 = vld [vmem:[%s4042_s25 + $0x172] sm:$0xff]  ;;  %v4296_v28 = vpack.c.bf16 %v185_v20, %v184_v18  ;;  %v3070_v40 = vld [vmem:[%s4042_s25 + $0x18a] sm:$0xff]  ;;  %v191_v57 = vld [vmem:[%s4042_s25 + $0xe0] sm:$0xff] }
  0x2c   : > { %v187_v36 = vld [vmem:[%s4042_s25 + $0xb0] sm:$0xff]  ;;  %v4316_v44 = vpack.c.bf16 %v3070_v40, %v3069_v37  ;;  %v190_v56 = vld [vmem:[%s4042_s25 + $0xd8] sm:$0xff]  ;;  %v194_v9 = vld [vmem:[%s4042_s25 + $0x108] sm:$0xff] }
  0x2d   : > { %3407 = vmatmul.mubr.msk.bf16.gmra.mrb[12].mxu1 %vm271_vm1, %v4100_v33  ;;  %v4314_v43 = vpack.c.bf16 %v187_v36, %v186_v35  ;;  %v192_v21 = vld [vmem:[%s4042_s25 + $0xf0] sm:$0xff]  ;;  %v193_v58 = vld [vmem:[%s4042_s25 + $0xf8] sm:$0xff]  ;;  %v4332_v59 = vpack.c.bf16 %v191_v57, %v190_v56  ;;  %v197_v11 = vld [vmem:[%s4042_s25 + $0x128] sm:$0xff] }
  0x2e   : > { %3543 = vmatmul.mubr.msk.bf16.gmra.mrb[12].mxu0 %vm271_vm1, %v4114_v38  ;;  %3410 = vmatprep.mubr.msk.bf16.mxu1 %vm271_vm1, %v4114_v38  ;;  %v4334_v60 = vpack.c.bf16 %v193_v58, %v192_v21  ;;  %v3218_v4 = vld [vmem:[%s4675_s1 + $0x10] sm:$0x3]  ;;  %v198_v20 = vld [vmem:[%s4042_s25 + $0x138] sm:$0xff]  ;;  %v202_v40 = vld [vmem:[%s4042_s25 + $0x168] sm:$0xff]  ;;  %v1091_v58 = vsel %vm320_vm0, %v4250_v55, 0 }
  0x2f   : > { %3564 = vmatprep.mubr.msk.bf16.mxu0 %vm271_vm1, %v4116_v39  ;;  %v195_v10 = vld [vmem:[%s4042_s25 + $0x110] sm:$0xff]  ;;  %v201_v35 = vld [vmem:[%s4042_s25 + $0x158] sm:$0xff] }
  0x30   : > { %v4354_v17 = vpack.c.bf16 %v195_v10, %v194_v9  ;;  %v698_v56 = vld [vmem:[%s4042_s25 + $0xa] sm:$0xff]  ;;  %v3119_v9 = vld [vmem:[%s4042_s25 + $0x1a0] sm:$0xff] }
  0x35   : > { %3411 = vmatmul.mubr.msk.bf16.gmra.mrb[16].mxu1 %vm271_vm1, %v4134_v48 }
  0x36   : > { %3565 = vmatmul.mubr.msk.bf16.vlgmr.msra.gmra.mrb[0].mxu0 %vm271_vm1, %v4136_v49  ;;  %3414 = vmatprep.mubr.msk.bf16.mxu1 %vm271_vm1, %v4138_v50 }
  0x37   : > { %3597 = vmatpush3.bf16.msra.mxu0 %v1974_v52  ;;  %3568 = vmatprep.mubr.msk.bf16.mxu0 %vm271_vm1, %v4140_v51  ;;  %v4241_v52 = vpack.c.bf16 %v177_v42, %v176_v41  ;;  %v188_v41 = vld [vmem:[%s4042_s25 + $0xc0] sm:$0xff]  ;;  %v189_v42 = vld [vmem:[%s4042_s25 + $0xc8] sm:$0xff] }
  0x38   : > { %3964 = vmatprep.subr.msk.bf16.mxu0 %vm320_vm0, %v4148_v53  ;;  %v196_v53 = vld [vmem:[%s4042_s25 + $0x120] sm:$0xff] }
  0x39   : > { %v4356_v18 = vpack.c.bf16 %v197_v11, %v196_v53  ;;  %v2562_v53 = vsel %vm320_vm0, %v3218_v4, 0 }
  0x3d   : > { %3415 = vmatmul.mubr.msk.bf16.gmra.mrb[20].mxu1 %vm271_vm1, %v4166_v62 }
  0x3e   : > { %3569 = vmatmul.mubr.msk.bf16.gmra.mrb[4].mxu0 %vm271_vm1, %v4168_v63  ;;  %3418 = vmatprep.mubr.msk.bf16.mxu1 %vm271_vm1, %v4170_v0 }
  0x3f   : > { %3572 = vmatprep.mubr.msk.bf16.mxu0 %vm271_vm1, %v4172_v2 }
  0x45   : > { %3419 = vmatmul.mubr.msk.bf16.gmra.mrb[24].mxu1 %vm271_vm1, %v4190_v12 }
  0x46   : > { %3573 = vmatmul.mubr.msk.bf16.gmra.mrb[8].mxu0 %vm271_vm1, %v4192_v13  ;;  %3422 = vmatprep.mubr.msk.bf16.mxu1 %vm271_vm1, %v4194_v14 }
  0x47   : > { %3576 = vmatprep.mubr.msk.bf16.mxu0 %vm271_vm1, %v4196_v16 }
  0x4d   : > { %3423 = vmatmul.mubr.msk.bf16.gmra.mrb[28].mxu1 %vm271_vm1, %v4214_v29 }
  0x4e   : > { %3577 = vmatmul.mubr.msk.bf16.gmra.mrb[12].mxu0 %vm271_vm1, %v4216_v30  ;;  %3428 = vmatprep.mubr.msk.bf16.mxu1 %vm271_vm1, %v204_v31  ;;  %v4298_v31 = vpack.c.bf16 %v3068_v23, %v3067_v22  ;;  %v199_v22 = vld [vmem:[%s4042_s25 + $0x140] sm:$0xff]  ;;  %v200_v23 = vld [vmem:[%s4042_s25 + $0x150] sm:$0xff] }
  0x4f   : > { %3580 = vmatprep.mubr.msk.bf16.mxu0 %vm271_vm1, %v4218_v34  ;;  %v4370_v36 = vpack.c.bf16 %v199_v22, %v198_v20  ;;  %v4372_v37 = vpack.c.bf16 %v201_v35, %v200_v23 }
  0x55   : > { %3429 = vmatmul.mubr.msk.bf16.vlgmr.msra.gmra.mrb[0].mxu1 %vm271_vm1, %v4235_v45 }
  0x56   : > { %3461 = vmatpush3.bf16.msra.mxu1 %v796_v47  ;;  %3581 = vmatmul.mubr.msk.bf16.gmra.mrb[16].mxu0 %vm271_vm1, %v4237_v46  ;;  %v4318_v47 = vpack.c.bf16 %v189_v42, %v188_v41  ;;  %v203_v41 = vld [vmem:[%s4042_s25 + $0x170] sm:$0xff]  ;;  %v697_v42 = vld [vmem:[%s4042_s25 + $0x2] sm:$0xff] }
  0x57   : > { %3432 = vmatprep.mubr.msk.bf16.mxu1 %vm271_vm1, %v4241_v52  ;;  %3584 = vmatprep.mubr.msk.bf16.mxu0 %vm271_vm1, %v4243_v54  ;;  %v4386_v57 = vpack.c.bf16 %v203_v41, %v202_v40  ;;  %v729_v21 = vpack.c.bf16 %v698_v56, %v697_v42 }
  0x58   : > { %3959 = vmatprep.subr.msk.bf16.mxu1 %vm320_vm0, %v4250_v55  ;;  %v3117_v55 = vld [vmem:[%s4042_s25 + $0x188] sm:$0xff] }
  0x5d   : > { %3433 = vmatmul.mubr.msk.bf16.gmra.mrb[4].mxu1 %vm271_vm1, %v4268_v5 }
  0x5e   : > { %3585 = vmatmul.mubr.msk.bf16.gmra.mrb[20].mxu0 %vm271_vm1, %v4270_v6  ;;  %3436 = vmatprep.mubr.msk.bf16.mxu1 %vm271_vm1, %v4272_v7 }
  0x5f   : > { %3588 = vmatprep.mubr.msk.bf16.mxu0 %vm271_vm1, %v4274_v8 }
  0x65   : > { %3437 = vmatmul.mubr.msk.bf16.gmra.mrb[8].mxu1 %vm271_vm1, %v4292_v24 }
  0x66   : > { %3589 = vmatmul.mubr.msk.bf16.gmra.mrb[24].mxu0 %vm271_vm1, %v4294_v25  ;;  %3440 = vmatprep.mubr.msk.bf16.mxu1 %vm271_vm1, %v4296_v28 }
  0x67   : > { %3592 = vmatprep.mubr.msk.bf16.mxu0 %vm271_vm1, %v4298_v31 }
  0x6d   : > { %3441 = vmatmul.mubr.msk.bf16.gmra.mrb[12].mxu1 %vm271_vm1, %v4314_v43 }
  0x6e   : > { %3593 = vmatmul.mubr.msk.bf16.gmra.mrb[28].mxu0 %vm271_vm1, %v4316_v44  ;;  %3444 = vmatprep.mubr.msk.bf16.mxu1 %vm271_vm1, %v4318_v47 }
  0x6f   : > { %3598 = vmatprep.mubr.msk.bf16.mxu0 %vm271_vm1, %v4241_v52 }
  0x75   : > { %3445 = vmatmul.mubr.msk.bf16.gmra.mrb[16].mxu1 %vm271_vm1, %v4332_v59 }
  0x76   : > { %3599 = vmatmul.mubr.msk.bf16.vlgmr.msra.gmra.mrb[0].mxu0 %vm271_vm1, %v4268_v5  ;;  %3448 = vmatprep.mubr.msk.bf16.mxu1 %vm271_vm1, %v4334_v60 }
  0x77   : > { %3631 = vmatpush3.bf16.msra.mxu0 %v2268_v61  ;;  %3602 = vmatprep.mubr.msk.bf16.mxu0 %vm271_vm1, %v4272_v7 }
  0x78   : > { %3965 = vmatprep.subr.msk.bf16.mxu0 %vm320_vm0, %v3218_v4 }
  0x7d   : > { %3449 = vmatmul.mubr.msk.bf16.gmra.mrb[20].mxu1 %vm271_vm1, %v4354_v17 }
  0x7e   : > { %3603 = vmatmul.mubr.msk.bf16.gmra.mrb[4].mxu0 %vm271_vm1, %v4292_v24  ;;  %3452 = vmatprep.mubr.msk.bf16.mxu1 %vm271_vm1, %v4356_v18 }
  0x7f   : > { %3606 = vmatprep.mubr.msk.bf16.mxu0 %vm271_vm1, %v4296_v28 }
  0x85   : > { %3453 = vmatmul.mubr.msk.bf16.gmra.mrb[24].mxu1 %vm271_vm1, %v4370_v36 }
  0x86   : > { %3607 = vmatmul.mubr.msk.bf16.gmra.mrb[8].mxu0 %vm271_vm1, %v4314_v43  ;;  %3456 = vmatprep.mubr.msk.bf16.mxu1 %vm271_vm1, %v4372_v37 }
  0x87   : > { %3610 = vmatprep.mubr.msk.bf16.mxu0 %vm271_vm1, %v4318_v47 }
  0x8d   : > { %3457 = vmatmul.mubr.msk.bf16.gmra.mrb[28].mxu1 %vm271_vm1, %v4386_v57 }
  0x8e   : > { %3611 = vmatmul.mubr.msk.bf16.gmra.mrb[12].mxu0 %vm271_vm1, %v4332_v59  ;;  %3462 = vmatprep.mubr.msk.bf16.mxu1 %vm271_vm1, %v729_v21 }
  0x8f   : > { %3614 = vmatprep.mubr.msk.bf16.mxu0 %vm271_vm1, %v4334_v60 }
  0x95   : > { %3463 = vmatmul.mubr.msk.bf16.vlgmr.msra.gmra.mrb[0].mxu1 %vm271_vm1, %v4116_v39  ;;  %v3116_v39 = vld [vmem:[%s4042_s25 + $0x180] sm:$0xff] }
  0x96   : > { %3495 = vmatpush3.bf16.msra.mxu1 %v1091_v58  ;;  %3615 = vmatmul.mubr.msk.bf16.gmra.mrb[16].mxu0 %vm271_vm1, %v4354_v17  ;;  %v4417_v61 = vpack.c.bf16 %v3117_v55, %v3116_v39 }
  0x97   : > { %3466 = vmatprep.mubr.msk.bf16.mxu1 %vm271_vm1, %v4136_v49  ;;  %3618 = vmatprep.mubr.msk.bf16.mxu0 %vm271_vm1, %v4356_v18 }
  0x98   : > { %3961 = vmatprep.subr.msk.bf16.mxu1 %vm320_vm0, %v4017_v1  ;;  %v3118_v1 = vld [vmem:[%s4042_s25 + $0x198] sm:$0xff] }
  0x99   : > { %v1922_v10 = vpack.c.bf16 %v3119_v9, %v3118_v1 }
  0x9d   : > { %3467 = vmatmul.mubr.msk.bf16.gmra.mrb[4].mxu1 %vm271_vm1, %v4140_v51 }
  0x9e   : > { %3619 = vmatmul.mubr.msk.bf16.gmra.mrb[20].mxu0 %vm271_vm1, %v4370_v36  ;;  %3470 = vmatprep.mubr.msk.bf16.mxu1 %vm271_vm1, %v4168_v63 }
  0x9f   : > { %3622 = vmatprep.mubr.msk.bf16.mxu0 %vm271_vm1, %v4372_v37 }
  0xa5   : > { %3471 = vmatmul.mubr.msk.bf16.gmra.mrb[8].mxu1 %vm271_vm1, %v4172_v2 }
  0xa6   : > { %3623 = vmatmul.mubr.msk.bf16.gmra.mrb[24].mxu0 %vm271_vm1, %v4386_v57  ;;  %3474 = vmatprep.mubr.msk.bf16.mxu1 %vm271_vm1, %v4192_v13 }
  0xa7   : > { %3626 = vmatprep.mubr.msk.bf16.mxu0 %vm271_vm1, %v4417_v61 }
  0xad   : > { %3475 = vmatmul.mubr.msk.bf16.gmra.mrb[12].mxu1 %vm271_vm1, %v4196_v16 }
  0xae   : > { %3627 = vmatmul.mubr.msk.bf16.gmra.mrb[28].mxu0 %vm271_vm1, %v1922_v10  ;;  %3478 = vmatprep.mubr.msk.bf16.mxu1 %vm271_vm1, %v4216_v30 }
  0xaf   : > { %3632 = vmatprep.mubr.msk.bf16.mxu0 %vm271_vm1, %v4051_v15  ;;  %v3166_v15 = vld [vmem:[%s4042_s25 + $0x189] sm:$0xff] }
  0xb5   : > { %3479 = vmatmul.mubr.msk.bf16.gmra.mrb[16].mxu1 %vm271_vm1, %v4218_v34 }
  0xb6   : > { %3633 = vmatmul.mubr.msk.bf16.vlgmr.msra.gmra.mrb[0].mxu0 %vm271_vm1, %v4057_v19  ;;  %3482 = vmatprep.mubr.msk.bf16.mxu1 %vm271_vm1, %v4237_v46 }
  0xb7   : > { %3665 = vmatpush3.bf16.msra.mxu0 %v2562_v53  ;;  %3636 = vmatprep.mubr.msk.bf16.mxu0 %vm271_vm1, %v4082_v26  ;;  %v3167_v26 = vld [vmem:[%s4042_s25 + $0x199] sm:$0xff] }
  0xbd   : > { %3483 = vmatmul.mubr.msk.bf16.gmra.mrb[20].mxu1 %vm271_vm1, %v4243_v54 }
  0xbe   : > { %3637 = vmatmul.mubr.msk.bf16.gmra.mrb[4].mxu0 %vm271_vm1, %v4084_v27  ;;  %3486 = vmatprep.mubr.msk.bf16.mxu1 %vm271_vm1, %v4270_v6  ;;  %v3168_v27 = vld [vmem:[%s4042_s25 + $0x1a1] sm:$0xff] }
  0xbf   : > { %3640 = vmatprep.mubr.msk.bf16.mxu0 %vm271_vm1, %v4098_v32  ;;  %v2216_v32 = vpack.c.bf16 %v3168_v27, %v3167_v26 }
  0xc5   : > { %3487 = vmatmul.mubr.msk.bf16.gmra.mrb[24].mxu1 %vm271_vm1, %v4274_v8 }
  0xc6   : > { %3641 = vmatmul.mubr.msk.bf16.gmra.mrb[8].mxu0 %vm271_vm1, %v4100_v33  ;;  %3490 = vmatprep.mubr.msk.bf16.mxu1 %vm271_vm1, %v4294_v25  ;;  %v3216_v33 = vld [vmem:[%s4042_s25 + $0x19a] sm:$0xff] }
  0xc7   : > { %3644 = vmatprep.mubr.msk.bf16.mxu0 %vm271_vm1, %v4114_v38  ;;  %v3217_v38 = vld [vmem:[%s4042_s25 + $0x1a2] sm:$0xff] }
  0xcd   : > { %3491 = vmatmul.mubr.msk.bf16.gmra.mrb[28].mxu1 %vm271_vm1, %v4298_v31 }
  0xce   : > { %3645 = vmatmul.mubr.msk.bf16.gmra.mrb[12].mxu0 %vm271_vm1, %v4134_v48  ;;  %3496 = vmatprep.mubr.msk.bf16.mxu1 %vm271_vm1, %v4235_v45 }
  0xcf   : > { %3648 = vmatprep.mubr.msk.bf16.mxu0 %vm271_vm1, %v4138_v50 }
  0xd5   : > { %3497 = vmatmul.mubr.msk.bf16.vlgmr.msra.gmra.mrb[0].mxu1 %vm271_vm1, %v4241_v52 }
  0xd6   : > { %3699 = vmatpush3.bf16.msra.mxu1 %v4025_v3  ;;  %3649 = vmatmul.mubr.msk.bf16.gmra.mrb[16].mxu0 %vm271_vm1, %v4166_v62  ;;  %v3165_v3 = vld [vmem:[%s4042_s25 + $0x181] sm:$0xff] }
  0xd7   : > { %3500 = vmatprep.mubr.msk.bf16.mxu1 %vm271_vm1, %v4268_v5  ;;  %3652 = vmatprep.mubr.msk.bf16.mxu0 %vm271_vm1, %v4170_v0  ;;  %v2215_v19 = vpack.c.bf16 %v3166_v15, %v3165_v3 }
  0xdd   : > { %3501 = vmatmul.mubr.msk.bf16.gmra.mrb[4].mxu1 %vm271_vm1, %v4272_v7 }
  0xde   : > { %3653 = vmatmul.mubr.msk.bf16.gmra.mrb[20].mxu0 %vm271_vm1, %v4190_v12  ;;  %3504 = vmatprep.mubr.msk.bf16.mxu1 %vm271_vm1, %v4292_v24 }
  0xdf   : > { %3656 = vmatprep.mubr.msk.bf16.mxu0 %vm271_vm1, %v4194_v14 }
  0xe5   : > { %3505 = vmatmul.mubr.msk.bf16.gmra.mrb[8].mxu1 %vm271_vm1, %v4296_v28 }
  0xe6   : > { %3657 = vmatmul.mubr.msk.bf16.gmra.mrb[24].mxu0 %vm271_vm1, %v4214_v29  ;;  %3508 = vmatprep.mubr.msk.bf16.mxu1 %vm271_vm1, %v4314_v43 }
  0xe7   : > { %3660 = vmatprep.mubr.msk.bf16.mxu0 %vm271_vm1, %v2215_v19 }
  0xed   : > { %3509 = vmatmul.mubr.msk.bf16.gmra.mrb[12].mxu1 %vm271_vm1, %v4318_v47 }
  0xee   : > { %3661 = vmatmul.mubr.msk.bf16.gmra.mrb[28].mxu0 %vm271_vm1, %v2216_v32  ;;  %3512 = vmatprep.mubr.msk.bf16.mxu1 %vm271_vm1, %v4332_v59 }
  0xef   : > { %3666 = vmatprep.mubr.msk.bf16.mxu0 %vm271_vm1, %v4136_v49 }
  0xf5   : > { %3513 = vmatmul.mubr.msk.bf16.gmra.mrb[16].mxu1 %vm271_vm1, %v4334_v60 }
  0xf6   : > { %3667 = vmatmul.mubr.msk.bf16.vlgmr.msra.gmra.mrb[0].mxu0 %vm271_vm1, %v4140_v51  ;;  %3516 = vmatprep.mubr.msk.bf16.mxu1 %vm271_vm1, %v4354_v17 }
  0xf7   : > { %3670 = vmatprep.mubr.msk.bf16.mxu0 %vm271_vm1, %v4168_v63 }
  0xfd   : > { %3517 = vmatmul.mubr.msk.bf16.gmra.mrb[20].mxu1 %vm271_vm1, %v4356_v18 }
  0xfe   : > { %3671 = vmatmul.mubr.msk.bf16.gmra.mrb[4].mxu0 %vm271_vm1, %v4172_v2  ;;  %3520 = vmatprep.mubr.msk.bf16.mxu1 %vm271_vm1, %v4370_v36 }
  0xff   : > { %3674 = vmatprep.mubr.msk.bf16.mxu0 %vm271_vm1, %v4192_v13 }
 0x105   : > { %3521 = vmatmul.mubr.msk.bf16.gmra.mrb[24].mxu1 %vm271_vm1, %v4372_v37 }
 0x106   : > { %3675 = vmatmul.mubr.msk.bf16.gmra.mrb[8].mxu0 %vm271_vm1, %v4196_v16  ;;  %3524 = vmatprep.mubr.msk.bf16.mxu1 %vm271_vm1, %v4386_v57 }
 0x107   : > { %3678 = vmatprep.mubr.msk.bf16.mxu0 %vm271_vm1, %v4216_v30 }
 0x10d   : > { %3525 = vmatmul.mubr.msk.bf16.gmra.mrb[28].mxu1 %vm271_vm1, %v4417_v61 }
 0x10e   : > { %3679 = vmatmul.mubr.msk.bf16.gmra.mrb[12].mxu0 %vm271_vm1, %v4218_v34  ;;  %3546 = vmatprep.mubr.msk.bf16.mxu1 %vm271_vm1, %v4134_v48  ;;  %v2510_v48 = vpack.c.bf16 %v3217_v38, %v3216_v33 }
 0x10f   : > { %3682 = vmatprep.mubr.msk.bf16.mxu0 %vm271_vm1, %v4237_v46 }
 0x115   : > { %3547 = vmatmul.mubr.msk.bf16.vlgmr.msra.gmra.mrb[16].mxu1 %vm271_vm1, %v4138_v50 }
 0x116   : > { %3683 = vmatmul.mubr.msk.bf16.gmra.mrb[16].mxu0 %vm271_vm1, %v4243_v54  ;;  %3550 = vmatprep.mubr.msk.bf16.mxu1 %vm271_vm1, %v4166_v62  ;;  %v4568_v54 = vld [vmem:[%s4676_s2] ss:$0 sm:$0xff] }
 0x117   : > { %3686 = vmatprep.mubr.msk.bf16.mxu0 %vm271_vm1, %v4270_v6 }
 0x11d   : > { %3551 = vmatmul.mubr.msk.bf16.gmra.mrb[20].mxu1 %vm271_vm1, %v4170_v0 }
 0x11e   : > { %3687 = vmatmul.mubr.msk.bf16.gmra.mrb[20].mxu0 %vm271_vm1, %v4274_v8  ;;  %3554 = vmatprep.mubr.msk.bf16.mxu1 %vm271_vm1, %v4190_v12 }
 0x11f   : > { %3690 = vmatprep.mubr.msk.bf16.mxu0 %vm271_vm1, %v4294_v25 }
 0x125   : > { %3555 = vmatmul.mubr.msk.bf16.gmra.mrb[24].mxu1 %vm271_vm1, %v4194_v14 }
 0x126   : > { %3691 = vmatmul.mubr.msk.bf16.gmra.mrb[24].mxu0 %vm271_vm1, %v4298_v31  ;;  %3558 = vmatprep.mubr.msk.bf16.mxu1 %vm271_vm1, %v4214_v29 }
 0x127   : > { %3694 = vmatprep.mubr.msk.bf16.mxu0 %vm271_vm1, %v4316_v44 }
 0x12d   : > { %3559 = vmatmul.mubr.msk.bf16.gmra.mrb[28].mxu1 %vm271_vm1, %v2215_v19 }
 0x12e   : > { %3695 = vmatmul.mubr.msk.bf16.gmra.mrb[28].mxu0 %vm271_vm1, %v2510_v48 }
 0x1a8   : > { %v3498_v49 = vpop.f32.mrb[0].mxu1 }
 0x1a9   : > { %v1127_v50 = vpop.f32.mrb[1].mxu1 }
 0x1aa   : > { %v3499_v51 = vpop.f32.mrb[2].mxu1 }
 0x1ab   : > { %v1130_v62 = vpop.f32.mrb[3].mxu1 }
 0x1b0   : > { %v3502_v63 = vpop.f32.mrb[4].mxu1 }
 0x1b1   : > { %v1143_v0 = vpop.f32.mrb[5].mxu1 }
 0x1b2   : > { %v3503_v2 = vpop.f32.mrb[6].mxu1 }
 0x1b3   : > { %v1146_v12 = vpop.f32.mrb[7].mxu1 }
 0x1b8   : > { %v3506_v13 = vpop.f32.mrb[8].mxu1 }
 0x1b9   : > { %v1159_v14 = vpop.f32.mrb[9].mxu1 }
 0x1ba   : > { %v3507_v16 = vpop.f32.mrb[10].mxu1 }
 0x1bb   : > { %v1162_v29 = vpop.f32.mrb[11].mxu1 }
 0x1c0   : > { %v3510_v30 = vpop.f32.mrb[12].mxu1 }
 0x1c1   : > { %v1175_v34 = vpop.f32.mrb[13].mxu1 }
 0x1c2   : > { %v3511_v45 = vpop.f32.mrb[14].mxu1 }
 0x1c3   : > { %v1178_v46 = vpop.f32.mrb[15].mxu1 }
 0x1c9   : > { %v3668_v52 = vpop.f32.mrb[0].mxu0 }
 0x1ca   : > { %v3700_v5 = vadd.f32 %v3668_v52, %v3498_v49  ;;  %v2598_v6 = vpop.f32.mrb[1].mxu0 }
 0x1cb   : > { %v3701_v7 = vadd.f32 %v2598_v6, %v1127_v50  ;;  %v3669_v8 = vpop.f32.mrb[2].mxu0 }
 0x1cc   : > { %v2766_v24 = vadd.f32 %v3700_v5, %v4568_v54  ;;  %v3702_v25 = vadd.f32 %v3669_v8, %v3499_v51  ;;  %v2601_v28 = vpop.f32.mrb[3].mxu0 }
 0x1cd   : > { %v2764_v31 = vadd.f32 %v3701_v7, %v4568_v54  ;;  %v3703_v43 = vadd.f32 %v2601_v28, %v1130_v62 }
 0x1ce   : > { %2798 = vst.msk [vmem:[%s4573_s16 + $0x10] sm:$0xff] %vm271_vm1, %v2766_v24  ;;  %v2767_v44 = vadd.f32 %v3702_v25, %v4568_v54 }
 0x1cf   : > { %2796 = vst.msk [vmem:[%s4573_s16] sm:$0xff] %vm271_vm1, %v2764_v31  ;;  %v2765_v47 = vadd.f32 %v3703_v43, %v4568_v54 }
 0x1d0   : > { %2799 = vst.msk [vmem:[%s4573_s16 + $0x18] sm:$0xff] %vm271_vm1, %v2767_v44 }
 0x1d1   : > { %2797 = vst.msk [vmem:[%s4573_s16 + $0x8] sm:$0xff] %vm271_vm1, %v2765_v47  ;;  %v3672_v59 = vpop.f32.mrb[4].mxu0 }
 0x1d2   : > { %v3704_v60 = vadd.f32 %v3672_v59, %v3502_v63  ;;  %v2614_v4 = vpop.f32.mrb[5].mxu0 }
 0x1d3   : > { %v3705_v11 = vadd.f32 %v2614_v4, %v1143_v0  ;;  %v3673_v17 = vpop.f32.mrb[6].mxu0 }
 0x1d4   : > { %v2770_v18 = vadd.f32 %v3704_v60, %v4568_v54  ;;  %v3706_v20 = vadd.f32 %v3673_v17, %v3503_v2  ;;  %v2617_v22 = vpop.f32.mrb[7].mxu0 }
 0x1d5   : > { %v2768_v23 = vadd.f32 %v3705_v11, %v4568_v54  ;;  %v3707_v35 = vadd.f32 %v2617_v22, %v1146_v12 }
 0x1d6   : > { %2802 = vst.msk [vmem:[%s4573_s16 + $0x30] sm:$0xff] %vm271_vm1, %v2770_v18  ;;  %v2771_v36 = vadd.f32 %v3706_v20, %v4568_v54 }
 0x1d7   : > { %2800 = vst.msk [vmem:[%s4573_s16 + $0x20] sm:$0xff] %vm271_vm1, %v2768_v23  ;;  %v2769_v37 = vadd.f32 %v3707_v35, %v4568_v54 }
 0x1d8   : > { %2803 = vst.msk [vmem:[%s4573_s16 + $0x38] sm:$0xff] %vm271_vm1, %v2771_v36 }
 0x1d9   : > { %2801 = vst.msk [vmem:[%s4573_s16 + $0x28] sm:$0xff] %vm271_vm1, %v2769_v37  ;;  %v3676_v40 = vpop.f32.mrb[8].mxu0 }
 0x1da   : > { %v3708_v41 = vadd.f32 %v3676_v40, %v3506_v13  ;;  %v2630_v42 = vpop.f32.mrb[9].mxu0 }
 0x1db   : > { %v3709_v56 = vadd.f32 %v2630_v42, %v1159_v14  ;;  %v3677_v57 = vpop.f32.mrb[10].mxu0 }
 0x1dc   : > { %v2774_v21 = vadd.f32 %v3708_v41, %v4568_v54  ;;  %v3710_v58 = vadd.f32 %v3677_v57, %v3507_v16  ;;  %v2633_v39 = vpop.f32.mrb[11].mxu0 }
 0x1dd   : > { %v2772_v55 = vadd.f32 %v3709_v56, %v4568_v54  ;;  %v3711_v61 = vadd.f32 %v2633_v39, %v1162_v29 }
 0x1de   : > { %2806 = vst.msk [vmem:[%s4573_s16 + $0x50] sm:$0xff] %vm271_vm1, %v2774_v21  ;;  %v2775_v1 = vadd.f32 %v3710_v58, %v4568_v54 }
 0x1df   : > { %2804 = vst.msk [vmem:[%s4573_s16 + $0x40] sm:$0xff] %vm271_vm1, %v2772_v55  ;;  %v2773_v9 = vadd.f32 %v3711_v61, %v4568_v54 }
 0x1e0   : > { %2807 = vst.msk [vmem:[%s4573_s16 + $0x58] sm:$0xff] %vm271_vm1, %v2775_v1 }
 0x1e1   : > { %2805 = vst.msk [vmem:[%s4573_s16 + $0x48] sm:$0xff] %vm271_vm1, %v2773_v9  ;;  %v3680_v10 = vpop.f32.mrb[12].mxu0 }
 0x1e2   : > { %v3712_v53 = vadd.f32 %v3680_v10, %v3510_v30  ;;  %v2646_v3 = vpop.f32.mrb[13].mxu0 }
 0x1e3   : > { %v3713_v15 = vadd.f32 %v2646_v3, %v1175_v34  ;;  %v3681_v19 = vpop.f32.mrb[14].mxu0 }
 0x1e4   : > { %v2778_v26 = vadd.f32 %v3712_v53, %v4568_v54  ;;  %v3714_v27 = vadd.f32 %v3681_v19, %v3511_v45  ;;  %v2649_v32 = vpop.f32.mrb[15].mxu0 }
 0x1e5   : > { %v2776_v33 = vadd.f32 %v3713_v15, %v4568_v54  ;;  %v3715_v38 = vadd.f32 %v2649_v32, %v1178_v46 }
 0x1e6   : > { %2810 = vst.msk [vmem:[%s4573_s16 + $0x70] sm:$0xff] %vm271_vm1, %v2778_v26  ;;  %v2779_v48 = vadd.f32 %v3714_v27, %v4568_v54 }
 0x1e7   : > { %2808 = vst.msk [vmem:[%s4573_s16 + $0x60] sm:$0xff] %vm271_vm1, %v2776_v33  ;;  %v2777_v49 = vadd.f32 %v3715_v38, %v4568_v54 }
 0x1e8   : > { %2811 = vst.msk [vmem:[%s4573_s16 + $0x78] sm:$0xff] %vm271_vm1, %v2779_v48  ;;  %v3548_v50 = vpop.f32.mrb[16].mxu1 }
 0x1e9   : > { %2809 = vst.msk [vmem:[%s4573_s16 + $0x68] sm:$0xff] %vm271_vm1, %v2777_v49  ;;  %v3684_v51 = vpop.f32.mrb[16].mxu0  ;;  %v1485_v62 = vpop.f32.mrb[17].mxu1 }
 0x1ea   : > { %v3716_v63 = vadd.f32 %v3684_v51, %v3548_v50  ;;  %v2662_v0 = vpop.f32.mrb[17].mxu0  ;;  %v3549_v2 = vpop.f32.mrb[18].mxu1 }
 0x1eb   : > { %v3717_v12 = vadd.f32 %v2662_v0, %v1485_v62  ;;  %v3685_v13 = vpop.f32.mrb[18].mxu0  ;;  %v1488_v14 = vpop.f32.mrb[19].mxu1 }
 0x1ec   : > { %v2782_v16 = vadd.f32 %v3716_v63, %v4568_v54  ;;  %v3718_v29 = vadd.f32 %v3685_v13, %v3549_v2  ;;  %v2665_v30 = vpop.f32.mrb[19].mxu0 }
 0x1ed   : > { %v2780_v34 = vadd.f32 %v3717_v12, %v4568_v54  ;;  %v3719_v45 = vadd.f32 %v2665_v30, %v1488_v14 }
 0x1ee   : > { %2814 = vst.msk [vmem:[%s4573_s16 + $0x90] sm:$0xff] %vm271_vm1, %v2782_v16  ;;  %v2783_v46 = vadd.f32 %v3718_v29, %v4568_v54 }
 0x1ef   : > { %2812 = vst.msk [vmem:[%s4573_s16 + $0x80] sm:$0xff] %vm271_vm1, %v2780_v34  ;;  %v2781_v52 = vadd.f32 %v3719_v45, %v4568_v54 }
 0x1f0   : > { %2815 = vst.msk [vmem:[%s4573_s16 + $0x98] sm:$0xff] %vm271_vm1, %v2783_v46  ;;  %v3552_v5 = vpop.f32.mrb[20].mxu1 }
 0x1f1   : > { %2813 = vst.msk [vmem:[%s4573_s16 + $0x88] sm:$0xff] %vm271_vm1, %v2781_v52  ;;  %v3688_v6 = vpop.f32.mrb[20].mxu0  ;;  %v1501_v7 = vpop.f32.mrb[21].mxu1 }
 0x1f2   : > { %v3720_v8 = vadd.f32 %v3688_v6, %v3552_v5  ;;  %v2678_v24 = vpop.f32.mrb[21].mxu0  ;;  %v3553_v25 = vpop.f32.mrb[22].mxu1 }
 0x1f3   : > { %v3721_v28 = vadd.f32 %v2678_v24, %v1501_v7  ;;  %v3689_v31 = vpop.f32.mrb[22].mxu0  ;;  %v1504_v43 = vpop.f32.mrb[23].mxu1 }
 0x1f4   : > { %v2786_v44 = vadd.f32 %v3720_v8, %v4568_v54  ;;  %v3722_v47 = vadd.f32 %v3689_v31, %v3553_v25  ;;  %v2681_v59 = vpop.f32.mrb[23].mxu0 }
 0x1f5   : > { %v2784_v60 = vadd.f32 %v3721_v28, %v4568_v54  ;;  %v3723_v4 = vadd.f32 %v2681_v59, %v1504_v43 }
 0x1f6   : > { %2818 = vst.msk [vmem:[%s4573_s16 + $0xb0] sm:$0xff] %vm271_vm1, %v2786_v44  ;;  %v2787_v11 = vadd.f32 %v3722_v47, %v4568_v54 }
 0x1f7   : > { %2816 = vst.msk [vmem:[%s4573_s16 + $0xa0] sm:$0xff] %vm271_vm1, %v2784_v60  ;;  %v2785_v17 = vadd.f32 %v3723_v4, %v4568_v54 }
 0x1f8   : > { %2819 = vst.msk [vmem:[%s4573_s16 + $0xb8] sm:$0xff] %vm271_vm1, %v2787_v11  ;;  %v3556_v18 = vpop.f32.mrb[24].mxu1 }
 0x1f9   : > { %2817 = vst.msk [vmem:[%s4573_s16 + $0xa8] sm:$0xff] %vm271_vm1, %v2785_v17  ;;  %v3692_v20 = vpop.f32.mrb[24].mxu0  ;;  %v1517_v22 = vpop.f32.mrb[25].mxu1 }
 0x1fa   : > { %v3724_v23 = vadd.f32 %v3692_v20, %v3556_v18  ;;  %v2694_v35 = vpop.f32.mrb[25].mxu0  ;;  %v3557_v36 = vpop.f32.mrb[26].mxu1 }
 0x1fb   : > { %v3725_v37 = vadd.f32 %v2694_v35, %v1517_v22  ;;  %v3693_v40 = vpop.f32.mrb[26].mxu0  ;;  %v1520_v41 = vpop.f32.mrb[27].mxu1 }
 0x1fc   : > { %v2790_v42 = vadd.f32 %v3724_v23, %v4568_v54  ;;  %v3726_v56 = vadd.f32 %v3693_v40, %v3557_v36  ;;  %v2697_v57 = vpop.f32.mrb[27].mxu0 }
 0x1fd   : > { %v2788_v21 = vadd.f32 %v3725_v37, %v4568_v54  ;;  %v3727_v58 = vadd.f32 %v2697_v57, %v1520_v41 }
 0x1fe   : > { %2822 = vst.msk [vmem:[%s4573_s16 + $0xd0] sm:$0xff] %vm271_vm1, %v2790_v42  ;;  %v2791_v39 = vadd.f32 %v3726_v56, %v4568_v54 }
 0x1ff   : > { %2820 = vst.msk [vmem:[%s4573_s16 + $0xc0] sm:$0xff] %vm271_vm1, %v2788_v21  ;;  %v2789_v55 = vadd.f32 %v3727_v58, %v4568_v54 }
 0x200   : > { %2823 = vst.msk [vmem:[%s4573_s16 + $0xd8] sm:$0xff] %vm271_vm1, %v2791_v39  ;;  %v3560_v61 = vpop.f32.mrb[28].mxu1 }
 0x201   : > { %2821 = vst.msk [vmem:[%s4573_s16 + $0xc8] sm:$0xff] %vm271_vm1, %v2789_v55  ;;  %v3696_v1 = vpop.f32.mrb[28].mxu0  ;;  %v1533_v9 = vpop.f32.mrb[29].mxu1 }
 0x202   : > { %v3728_v10 = vadd.f32 %v3696_v1, %v3560_v61  ;;  %v2710_v53 = vpop.f32.mrb[29].mxu0  ;;  %v3561_v3 = vpop.f32.mrb[30].mxu1 }
 0x203   : > { %v3729_v15 = vadd.f32 %v2710_v53, %v1533_v9  ;;  %v3697_v19 = vpop.f32.mrb[30].mxu0  ;;  %v1536_v26 = vpop.f32.mrb[31].mxu1 }
 0x204   : > { %v2794_v27 = vadd.f32 %v3728_v10, %v4568_v54  ;;  %v3730_v32 = vadd.f32 %v3697_v19, %v3561_v3  ;;  %v2713_v33 = vpop.f32.mrb[31].mxu0 }
 0x205   : > { %v2792_v38 = vadd.f32 %v3729_v15, %v4568_v54  ;;  %v3731_v48 = vadd.f32 %v2713_v33, %v1536_v26 }
 0x206   : > { %2826 = vst.msk [vmem:[%s4573_s16 + $0xf0] sm:$0xff] %vm271_vm1, %v2794_v27  ;;  %v2795_v49 = vadd.f32 %v3730_v32, %v4568_v54 }
 0x207   : > { %2824 = vst.msk [vmem:[%s4573_s16 + $0xe0] sm:$0xff] %vm271_vm1, %v2792_v38  ;;  %v2793_v50 = vadd.f32 %v3731_v48, %v4568_v54 }
 0x208   : > { %2827 = vst.msk [vmem:[%s4573_s16 + $0xf8] sm:$0xff] %vm271_vm1, %v2795_v49 }
 0x209   : > { %2825 = vst.msk [vmem:[%s4573_s16 + $0xe8] sm:$0xff] %vm271_vm1, %v2793_v50 }
 0x20a PF: > { %s13_s12 = sadd.s32 1, %s3981_s12  }
 0x20b   : > { %p10_p4 = scmp.ge.s32.totalorder %s13_s12, 4  }
 0x20d   :  { %12 = sbr.rel (!%p10_p4) target bundleno = 1 (0x1), region = 72 }

</bundles_post_ra>
